<compile_context>
chip_gen: v7x
topology: tpu7x:2x2x1
jax: 0.10.0
libtpu: 0.0.40
codegen_flags: <defaults>
</compile_context>

<pallas_src>
import numpy as np

import jax
import jax.numpy as jnp
from jax.experimental import pallas as pl
from jax.experimental.pallas import tpu as pltpu

# ----------------------------- model config ---------------------------------
N_ACTIONS = 4
N_ATOMS = 51
V_MIN, V_MAX = -10.0, 10.0
N_INPUT_CHANNELS = 4
CONV_BIAS = 0.1
# Linear(1024, 1024) forces the conv stack to flatten to 1024 = 64*4*4, which
# corresponds to a 64x64 spatial input (64 ->conv1-> 15 ->conv2-> 6 ->conv3-> 4).
IMG_HW = 64
BATCH = 2
BATCH_BLOCK = 2                       # batch elements processed per grid step

# ------------------------- derived kernel constants --------------------------
S1 = (IMG_HW - 8) // 4 + 1            # 15 (conv1 output spatial size)
S2 = (S1 - 4) // 2 + 1                # 6  (conv2)
S3 = (S2 - 3) // 1 + 1                # 4  (conv3)
R1 = S1 * S1                          # 225
R2 = S2 * S2                          # 36
R3 = S3 * S3                          # 16
C1, C2, C3 = 32, 64, 64               # conv output channels
K1F = 8 * 8 * N_INPUT_CHANNELS        # 256 conv1 im2col features per patch
K2TAPS, K3TAPS = 16, 9                # 4x4 and 3x3 kernel taps
TAP_GROUP = 4                         # conv2 taps folded into conv1's N
N_GROUPS = K2TAPS // TAP_GROUP        # 4
HID = 1024
ABLK = 128                            # lane-aligned block per action in head
OUT_W = N_ACTIONS * ABLK              # 512

def _round_up(n, m):
    return -(-n // m) * m

GR = _round_up(R2 * BATCH_BLOCK, 8)           # rows per conv2-tap-group block
PR3 = _round_up(BATCH_BLOCK, 8)               # rows reserved per conv3 position
R3ROWS = R3 * PR3                             # conv3 output rows (padded)

_PARAM_ORDER = ("w1", "b1", "w2", "b2", "g3", "w3", "b3", "wm", "bm", "wh", "bh")


# ------------------------------ Pallas kernel --------------------------------
def _fused_forward_kernel(x1_ref, w1_ref, b1_ref, w2_ref, b2_ref, g3_ref,
                          w3_ref, b3_ref, wm_ref, bm_ref, wh_ref, bh_ref,
                          o_ref):
    """Whole forward for one batch block; everything stays on-chip."""
    f32, bf16 = jnp.float32, jnp.bfloat16

    bb = o_ref.shape[1]                        # batch block size
    gr = x1_ref.shape[1] // N_GROUPS           # rows per conv2-tap-group block
    r2b = R2 * bb                              # valid conv2-position rows
    pr3 = g3_ref.shape[0] // (K3TAPS * R3)     # padded rows per conv3 position
    r3rows = R3 * pr3

    # conv1: ONE matmul.  Rows are already in conv2-patch order (group-major,
    # (q2, b) inner); 4 conv2 taps are stacked along K/N via block-diag w1.
    h1 = jnp.dot(x1_ref[0], w1_ref[...], preferred_element_type=f32)
    h1 = jnp.maximum(h1 + b1_ref[...], 0.0).astype(bf16)     # (4*GR, 128)

    # conv2: 4 accumulating matmuls (K=128) over static 8-aligned slices.
    z2 = jnp.zeros((r2b, C2), f32)
    for g in range(N_GROUPS):
        z2 = z2 + jnp.dot(h1[g * gr:g * gr + r2b, :], w2_ref[g],
                          preferred_element_type=f32)
    h2 = jnp.maximum(z2 + b2_ref[...], 0.0).astype(bf16)     # (R2*bb, 64)

    # conv3: ONE stacked 0/1 gather matmul (rows padded to pr3 per position so
    # later slices stay 8-aligned), then 9 accumulating tap matmuls.
    patches = jnp.dot(g3_ref[...], h2,
                      preferred_element_type=f32).astype(bf16)  # (9*R3*pr3, 64)
    z3 = jnp.zeros((r3rows, C3), f32)
    for t in range(K3TAPS):
        z3 = z3 + jnp.dot(patches[t * r3rows:(t + 1) * r3rows, :], w3_ref[t],
                          preferred_element_type=f32)
    h3 = jnp.maximum(z3 + b3_ref[...], 0.0).astype(bf16)     # (R3*pr3, 64)

    # flatten (torch NCHW .view order folded into wm) + main Linear:
    # 16 accumulating (bb, 64) @ (64, 1024) matmuls over 8-aligned slices.
    zm = jnp.zeros((bb, HID), f32)
    for p in range(R3):
        zm = zm + jnp.dot(h3[p * pr3:p * pr3 + bb, :], wm_ref[p],
                          preferred_element_type=f32)
    hm = jnp.maximum(zm + bm_ref[...], 0.0).astype(bf16)     # (bb, 1024)

    # dueling head: "adv - mean(adv) + value" is folded into wh/bh, so this is
    # ONE wide matmul.  Lane layout: [a=0 | a=1 | a=2 | a=3], 128 lanes each,
    # atoms 0..50 in the first 51 lanes of every block.
    z = jnp.dot(hm, wh_ref[...], preferred_element_type=f32) + bh_ref[...]
    valid = jax.lax.broadcasted_iota(jnp.int32, (1, ABLK), 1) < N_ATOMS

    outs = []
    for a in range(N_ACTIONS):
        logits = jnp.where(valid, z[:, a * ABLK:(a + 1) * ABLK], -1e30)
        m = jnp.max(logits, axis=-1, keepdims=True)
        e = jnp.exp(logits - m)
        s = jnp.sum(e, axis=-1, keepdims=True)
        outs.append(e * pl.reciprocal(s, approx=True))        # softmax
    o_ref[0] = jnp.concatenate(outs, axis=-1)                 # (bb, 512)


# ------------------------------ wrappers -------------------------------------
def _im2col_nchw(x, k, s):
    """(B, C, H, W) -> (B, Ho*Wo, C*k*k) patches, feature order (c, i, j)."""
    b, c, h, w = x.shape
    ho = (h - k) // s + 1
    wo = (w - k) // s + 1
    slabs = []
    for i in range(k):
        for j in range(k):
            slabs.append(x[:, :, i:i + s * (ho - 1) + 1:s,
                              j:j + s * (wo - 1) + 1:s])          # (B,C,Ho,Wo)
    p = jnp.stack(slabs, axis=2)                                  # (B,C,k*k,Ho,Wo)
    p = jnp.transpose(p, (0, 3, 4, 1, 2))                         # (B,Ho,Wo,C,k*k)
    return p.reshape(b, ho * wo, c * k * k)


def _build_conv1_gather_index():
    """conv1 output position feeding conv2 tap (i2,j2) at conv2 position q2."""
    idx = np.zeros((N_GROUPS, R2, TAP_GROUP), np.int32)
    for i2 in range(4):                  # group g = kernel row i2
        for j2 in range(4):              # member u = kernel col j2
            for y2 in range(S2):
                for x2 in range(S2):
                    idx[i2, y2 * S2 + x2, j2] = \
                        (2 * y2 + i2) * S1 + (2 * x2 + j2)
    return idx


def _const_spec(shape):
    nd = len(shape)
    return pl.BlockSpec(shape, lambda b, _n=nd: (0,) * _n)


def forward(kparams, x_nchw):
    """Matches DistributionalDuelingDQN.forward; returns (q, z_values)."""
    bsz = x_nchw.shape[0]
    assert bsz % BATCH_BLOCK == 0, "batch must be a multiple of BATCH_BLOCK"
    nb = bsz // BATCH_BLOCK
    bb = BATCH_BLOCK

    # conv1 im2col of the raw input (XLA glue), rows re-ordered into
    # conv2-patch order: (group g, conv2 position q2, batch b) rows with the
    # 4 taps of group g concatenated along features (4*256 = 1024).
    pat = _im2col_nchw(x_nchw.astype(jnp.float32), 8, 4)          # (B, 225, 256)
    idx = _build_conv1_gather_index().reshape(-1)
    sel = pat[:, idx, :]                                          # (B, 4*36*4, 256)
    sel = sel.reshape(nb, bb, N_GROUPS, R2, TAP_GROUP, K1F)
    sel = jnp.transpose(sel, (0, 2, 3, 1, 4, 5))                  # (nb,g,q2,b,u,F)
    sel = sel.reshape(nb, N_GROUPS, R2 * bb, TAP_GROUP * K1F)
    if GR > R2 * bb:
        sel = jnp.pad(sel, ((0, 0), (0, 0), (0, GR - R2 * bb), (0, 0)))
    x1 = sel.reshape(nb, N_GROUPS * GR, TAP_GROUP * K1F).astype(jnp.bfloat16)

    in_specs = [pl.BlockSpec((1, N_GROUPS * GR, TAP_GROUP * K1F),
                             lambda i: (i, 0, 0))]
    in_specs += [_const_spec(kparams[name].shape) for name in _PARAM_ORDER]

    q_flat = pl.pallas_call(
        _fused_forward_kernel,
        out_shape=jax.ShapeDtypeStruct((nb, bb, OUT_W), jnp.float32),
        grid=(nb,),
        in_specs=in_specs,
        out_specs=pl.BlockSpec((1, bb, OUT_W), lambda i: (i, 0, 0)),
        compiler_params=pltpu.CompilerParams(
            dimension_semantics=("parallel",),
            vmem_limit_bytes=24 * 1024 * 1024),
    )(x1, *[kparams[name] for name in _PARAM_ORDER])

    q = q_flat.reshape(bsz, N_ACTIONS, ABLK)[:, :, :N_ATOMS]
    return q, kparams["z_values"]


# --------------------- parameter init / layout preparation -------------------
def _lecun_normal(key, shape, fan_in):
    # init_chainer_default: LeCun normal weights, zero bias (conv bias -> 0.1).
    return jax.random.normal(key, shape, dtype=jnp.float32) / jnp.sqrt(float(fan_in))


def init_params(key):
    ks = jax.random.split(key, 6)
    return {
        "conv1_w": _lecun_normal(ks[0], (C1, N_INPUT_CHANNELS, 8, 8),
                                 N_INPUT_CHANNELS * 8 * 8),
        "conv1_b": jnp.full((C1,), CONV_BIAS, jnp.float32),
        "conv2_w": _lecun_normal(ks[1], (C2, C1, 4, 4), C1 * 4 * 4),
        "conv2_b": jnp.full((C2,), CONV_BIAS, jnp.float32),
        "conv3_w": _lecun_normal(ks[2], (C3, C2, 3, 3), C2 * 3 * 3),
        "conv3_b": jnp.full((C3,), CONV_BIAS, jnp.float32),
        # Linear weights stored as (in, out) (already transposed vs torch);
        # the "in" index of main_w follows torch's NCHW flatten order c*16 + p.
        "main_w": _lecun_normal(ks[3], (HID, HID), HID),
        "main_b": jnp.zeros((HID,), jnp.float32),
        "a_w": _lecun_normal(ks[4], (HID // 2, N_ACTIONS * N_ATOMS), HID // 2),
        "a_b": jnp.zeros((N_ACTIONS * N_ATOMS,), jnp.float32),
        "v_w": _lecun_normal(ks[5], (HID // 2, N_ATOMS), HID // 2),
        "v_b": jnp.zeros((N_ATOMS,), jnp.float32),
        "z_values": jnp.linspace(V_MIN, V_MAX, N_ATOMS, dtype=jnp.float32),
    }


def _conv3_stacked_gather(batch_block, pr3):
    """ONE stacked 0/1 gather matrix: row (t3, q3, b) of the conv3 patch slab
    selects the conv2-output row (map3(q3, t3), b); rows padded to pr3 per
    conv3 position so all downstream slices are 8-sublane aligned."""
    g = np.zeros((K3TAPS * R3 * pr3, R2 * batch_block), np.float32)
    for i3 in range(3):
        for j3 in range(3):
            t3 = i3 * 3 + j3
            for y3 in range(S3):
                for x3 in range(S3):
                    q3 = y3 * S3 + x3
                    q2 = (y3 + i3) * S2 + (x3 + j3)
                    for b in range(batch_block):
                        g[t3 * R3 * pr3 + q3 * pr3 + b,
                          q2 * batch_block + b] = 1.0
    return g


def prepare_kernel_params(params, batch_block=BATCH_BLOCK):
    """One-time conversion of torch-layout params into the fused-kernel layout."""
    f32 = np.float32
    bf16 = jnp.bfloat16

    conv1_w = np.asarray(params["conv1_w"], f32)     # (32, 4, 8, 8)
    conv1_b = np.asarray(params["conv1_b"], f32)
    conv2_w = np.asarray(params["conv2_w"], f32)     # (64, 32, 4, 4)
    conv3_w = np.asarray(params["conv3_w"], f32)     # (64, 64, 3, 3)
    main_w = np.asarray(params["main_w"], f32)       # (1024_in, 1024_out)
    a_w = np.asarray(params["a_w"], f32)             # (512, 204)
    a_b = np.asarray(params["a_b"], f32)
    v_w = np.asarray(params["v_w"], f32)             # (512, 51)
    v_b = np.asarray(params["v_b"], f32)

    # conv1 as an im2col matmul with TAP_GROUP conv2 taps folded into its N
    # via a block-diagonal weight: (4*256, 4*32).
    w1 = conv1_w.reshape(C1, K1F).T                                   # (256, 32)
    w1q = np.zeros((TAP_GROUP * K1F, TAP_GROUP * C1), f32)
    for u in range(TAP_GROUP):
        w1q[u * K1F:(u + 1) * K1F, u * C1:(u + 1) * C1] = w1
    b1q = np.tile(conv1_b, TAP_GROUP).reshape(1, TAP_GROUP * C1)

    # conv2 grouped weights: group g = kernel row i2, member u = kernel col j2.
    w2g = np.zeros((N_GROUPS, TAP_GROUP * C1, C2), f32)               # (4,128,64)
    for g in range(N_GROUPS):
        for u in range(TAP_GROUP):
            w2g[g, u * C1:(u + 1) * C1, :] = conv2_w[:, :, g, u].T

    # conv3 per-tap (Cin, Cout) weights + ONE stacked gather matrix.
    w3 = np.transpose(conv3_w, (2, 3, 1, 0)).reshape(K3TAPS, C2, C3)  # (9,64,64)
    pr3 = _round_up(batch_block, 8)
    g3 = _conv3_stacked_gather(batch_block, pr3)

    # main Linear with torch's NCHW flatten (flat index = c*16 + p) folded in:
    # wm[p][c, :] = main_w[c*16 + p, :]
    wm = main_w.reshape(C3, R3, HID).transpose(1, 0, 2)               # (16,64,1024)

    # dueling head with "advantage - mean(adv) + value" folded into the
    # weights/bias; 128-lane block per action, atoms in the first 51 lanes.
    a_w3 = a_w.reshape(HID // 2, N_ACTIONS, N_ATOMS)
    a_w_mean = a_w3.mean(axis=1)                                      # (512, 51)
    a_b2 = a_b.reshape(N_ACTIONS, N_ATOMS)
    a_b_mean = a_b2.mean(axis=0)                                      # (51,)
    wh = np.zeros((HID, OUT_W), f32)
    bh = np.zeros((1, OUT_W), f32)
    for a in range(N_ACTIONS):
        wh[:HID // 2, a * ABLK:a * ABLK + N_ATOMS] = a_w3[:, a, :] - a_w_mean
        wh[HID // 2:, a * ABLK:a * ABLK + N_ATOMS] = v_w
        bh[0, a * ABLK:a * ABLK + N_ATOMS] = a_b2[a] - a_b_mean + v_b

    return {
        "w1": jnp.asarray(w1q, bf16),
        "b1": jnp.asarray(b1q),
        "w2": jnp.asarray(w2g, bf16),
        "b2": jnp.asarray(np.asarray(params["conv2_b"], f32).reshape(1, C2)),
        "g3": jnp.asarray(g3, bf16),
        "w3": jnp.asarray(w3, bf16),
        "b3": jnp.asarray(np.asarray(params["conv3_b"], f32).reshape(1, C3)),
        "wm": jnp.asarray(wm, bf16),
        "bm": jnp.asarray(np.asarray(params["main_b"], f32).reshape(1, HID)),
        "wh": jnp.asarray(wh, bf16),
        "bh": jnp.asarray(bh),
        "z_values": jnp.asarray(params["z_values"]),
    }


# ------------------------------ f32 reference --------------------------------
def reference_forward(params, x):
    """Pure-JAX/XLA f32 reference of the torch forward (for correctness check)."""
    h = x.astype(jnp.float32)
    for w, b, s in ((params["conv1_w"], params["conv1_b"], 4),
                    (params["conv2_w"], params["conv2_b"], 2),
                    (params["conv3_w"], params["conv3_b"], 1)):
        h = jax.lax.conv_general_dilated(
            h, w, window_strides=(s, s), padding="VALID",
            dimension_numbers=("NCHW", "OIHW", "NCHW"))
        h = jnp.maximum(h + b[None, :, None, None], 0.0)
    bsz = x.shape[0]
    h = h.reshape(bsz, -1)                                  # torch .view(B, -1)
    h = jnp.maximum(h @ params["main_w"] + params["main_b"], 0.0)
    h_a, h_v = h[:, :HID // 2], h[:, HID // 2:]
    ya = (h_a @ params["a_w"] + params["a_b"]).reshape(bsz, N_ACTIONS, N_ATOMS)
    ys = (h_v @ params["v_w"] + params["v_b"]).reshape(bsz, 1, N_ATOMS)
    ya = ya - jnp.mean(ya, axis=1, keepdims=True)
    return jax.nn.softmax(ya + ys, axis=2)


# ------------------------------ main -----------------------------------------
if __name__ == "__main__":
    key = jax.random.PRNGKey(0)
    pkey, xkey = jax.random.split(key)
    params = init_params(pkey)
    kparams = prepare_kernel_params(params, batch_block=BATCH_BLOCK)
    x = jax.random.normal(xkey, (BATCH, N_INPUT_CHANNELS, IMG_HW, IMG_HW),
                          dtype=jnp.float32)

    fwd = jax.jit(forward)
    q, z = fwd(kparams, x)
    q = jax.block_until_ready(q)
    z = jax.block_until_ready(z)

    assert q.shape == (BATCH, N_ACTIONS, N_ATOMS), q.shape
    assert z.shape == (N_ATOMS,), z.shape
    # every (batch, action) row is a probability distribution over atoms
    assert bool(jnp.all(q >= 0.0))
    assert bool(jnp.all(jnp.abs(jnp.sum(q, axis=-1) - 1.0) < 5e-3))

    # cross-check the fused bf16 kernel against a pure-XLA f32 reference
    q_ref = jax.jit(reference_forward)(params, x)
    max_err = float(jnp.max(jnp.abs(q - jax.block_until_ready(q_ref))))
    assert max_err < 3e-2, max_err

    print("KERNEL_OK")
</pallas_src>

<mosaic_0001>
module attributes {stable_mosaic.version = 11 : i64} {
  func.func @_fused_forward_kernel(%arg0: i32, %arg1: memref<1x288x1024xbf16, #tpu.memory_space<vmem>>, %arg2: memref<1024x128xbf16, #tpu.memory_space<vmem>>, %arg3: memref<1x128xf32, #tpu.memory_space<vmem>>, %arg4: memref<4x128x64xbf16, #tpu.memory_space<vmem>>, %arg5: memref<1x64xf32, #tpu.memory_space<vmem>>, %arg6: memref<1152x72xbf16, #tpu.memory_space<vmem>>, %arg7: memref<9x64x64xbf16, #tpu.memory_space<vmem>>, %arg8: memref<1x64xf32, #tpu.memory_space<vmem>>, %arg9: memref<16x64x1024xbf16, #tpu.memory_space<vmem>>, %arg10: memref<1x1024xf32, #tpu.memory_space<vmem>>, %arg11: memref<1024x512xbf16, #tpu.memory_space<vmem>>, %arg12: memref<1x512xf32, #tpu.memory_space<vmem>>, %arg13: memref<1x2x512xf32, #tpu.memory_space<vmem>>) attributes {dimension_semantics = [#tpu.dimension_semantics<parallel>], iteration_bounds = array<i64: 1>, scalar_prefetch = 0 : i64, scratch_operands = 0 : i64, tpu.core_type = #tpu.core_type<tc>, window_params = [{transform_indices = @transform_0, window_bounds = array<i64: 1, 288, 1024>}, {pipeline_mode = #tpu.pipeline_mode<synchronous>, transform_indices = @transform_1, window_bounds = array<i64: 1024, 128>}, {pipeline_mode = #tpu.pipeline_mode<synchronous>, transform_indices = @transform_2, window_bounds = array<i64: 1, 128>}, {pipeline_mode = #tpu.pipeline_mode<synchronous>, transform_indices = @transform_3, window_bounds = array<i64: 4, 128, 64>}, {pipeline_mode = #tpu.pipeline_mode<synchronous>, transform_indices = @transform_4, window_bounds = array<i64: 1, 64>}, {pipeline_mode = #tpu.pipeline_mode<synchronous>, transform_indices = @transform_5, window_bounds = array<i64: 1152, 72>}, {pipeline_mode = #tpu.pipeline_mode<synchronous>, transform_indices = @transform_6, window_bounds = array<i64: 9, 64, 64>}, {pipeline_mode = #tpu.pipeline_mode<synchronous>, transform_indices = @transform_7, window_bounds = array<i64: 1, 64>}, {pipeline_mode = #tpu.pipeline_mode<synchronous>, transform_indices = @transform_8, window_bounds = array<i64: 16, 64, 1024>}, {pipeline_mode = #tpu.pipeline_mode<synchronous>, transform_indices = @transform_9, window_bounds = array<i64: 1, 1024>}, {pipeline_mode = #tpu.pipeline_mode<synchronous>, transform_indices = @transform_10, window_bounds = array<i64: 1024, 512>}, {pipeline_mode = #tpu.pipeline_mode<synchronous>, transform_indices = @transform_11, window_bounds = array<i64: 1, 512>}, {transform_indices = @transform_12, window_bounds = array<i64: 1, 2, 512>}]} {
    %c0 = arith.constant 0 : index
    %c0_0 = arith.constant 0 : index
    %c0_1 = arith.constant 0 : index
    %0 = vector.load %arg1[%c0, %c0_0, %c0_1] : memref<1x288x1024xbf16, #tpu.memory_space<vmem>>, vector<1x288x1024xbf16>
    %1 = vector.shape_cast %0 : vector<1x288x1024xbf16> to vector<288x1024xbf16>
    %c0_2 = arith.constant 0 : index
    %c0_3 = arith.constant 0 : index
    %2 = vector.load %arg2[%c0_2, %c0_3] : memref<1024x128xbf16, #tpu.memory_space<vmem>>, vector<1024x128xbf16>
    %cst = arith.constant dense<0.000000e+00> : vector<288x128xf32>
    %3 = tpu.matmul %1, %2, %cst {dimension_numbers = #tpu.dot_dimension_numbers<[1], [0], [0], [1], [0, 0, 1, 1], [], []>} : vector<288x1024xbf16>, vector<1024x128xbf16>, vector<288x128xf32> -> vector<288x128xf32>
    %c0_4 = arith.constant 0 : index
    %c0_5 = arith.constant 0 : index
    %4 = vector.load %arg3[%c0_4, %c0_5] : memref<1x128xf32, #tpu.memory_space<vmem>>, vector<1x128xf32>
    %5 = vector.broadcast %4 : vector<1x128xf32> to vector<288x128xf32>
    %6 = arith.addf %3, %5 : vector<288x128xf32>
    %cst_6 = arith.constant 0.000000e+00 : f32
    %7 = vector.broadcast %cst_6 : f32 to vector<288x128xf32>
    %8 = arith.maximumf %6, %7 : vector<288x128xf32>
    %9 = arith.truncf %8 : vector<288x128xf32> to vector<288x128xbf16>
    %cst_7 = arith.constant 0.000000e+00 : f32
    %10 = vector.broadcast %cst_7 : f32 to vector<72x64xf32>
    %11 = vector.extract_strided_slice %9 {offsets = [0, 0], sizes = [72, 128], strides = [1, 1]} : vector<288x128xbf16> to vector<72x128xbf16>
    %c0_8 = arith.constant 0 : index
    %c0_9 = arith.constant 0 : index
    %c0_10 = arith.constant 0 : index
    %12 = vector.load %arg4[%c0_8, %c0_9, %c0_10] : memref<4x128x64xbf16, #tpu.memory_space<vmem>>, vector<1x128x64xbf16>
    %13 = vector.shape_cast %12 : vector<1x128x64xbf16> to vector<128x64xbf16>
    %cst_11 = arith.constant dense<0.000000e+00> : vector<72x64xf32>
    %14 = tpu.matmul %11, %13, %cst_11 {dimension_numbers = #tpu.dot_dimension_numbers<[1], [0], [0], [1], [0, 0, 1, 1], [], []>} : vector<72x128xbf16>, vector<128x64xbf16>, vector<72x64xf32> -> vector<72x64xf32>
    %15 = arith.addf %10, %14 : vector<72x64xf32>
    %16 = vector.extract_strided_slice %9 {offsets = [72, 0], sizes = [72, 128], strides = [1, 1]} : vector<288x128xbf16> to vector<72x128xbf16>
    %c1 = arith.constant 1 : index
    %c0_12 = arith.constant 0 : index
    %c0_13 = arith.constant 0 : index
    %17 = vector.load %arg4[%c1, %c0_12, %c0_13] : memref<4x128x64xbf16, #tpu.memory_space<vmem>>, vector<1x128x64xbf16>
    %18 = vector.shape_cast %17 : vector<1x128x64xbf16> to vector<128x64xbf16>
    %cst_14 = arith.constant dense<0.000000e+00> : vector<72x64xf32>
    %19 = tpu.matmul %16, %18, %cst_14 {dimension_numbers = #tpu.dot_dimension_numbers<[1], [0], [0], [1], [0, 0, 1, 1], [], []>} : vector<72x128xbf16>, vector<128x64xbf16>, vector<72x64xf32> -> vector<72x64xf32>
    %20 = arith.addf %15, %19 : vector<72x64xf32>
    %21 = vector.extract_strided_slice %9 {offsets = [144, 0], sizes = [72, 128], strides = [1, 1]} : vector<288x128xbf16> to vector<72x128xbf16>
    %c2 = arith.constant 2 : index
    %c0_15 = arith.constant 0 : index
    %c0_16 = arith.constant 0 : index
    %22 = vector.load %arg4[%c2, %c0_15, %c0_16] : memref<4x128x64xbf16, #tpu.memory_space<vmem>>, vector<1x128x64xbf16>
    %23 = vector.shape_cast %22 : vector<1x128x64xbf16> to vector<128x64xbf16>
    %cst_17 = arith.constant dense<0.000000e+00> : vector<72x64xf32>
    %24 = tpu.matmul %21, %23, %cst_17 {dimension_numbers = #tpu.dot_dimension_numbers<[1], [0], [0], [1], [0, 0, 1, 1], [], []>} : vector<72x128xbf16>, vector<128x64xbf16>, vector<72x64xf32> -> vector<72x64xf32>
    %25 = arith.addf %20, %24 : vector<72x64xf32>
    %26 = vector.extract_strided_slice %9 {offsets = [216, 0], sizes = [72, 128], strides = [1, 1]} : vector<288x128xbf16> to vector<72x128xbf16>
    %c3 = arith.constant 3 : index
    %c0_18 = arith.constant 0 : index
    %c0_19 = arith.constant 0 : index
    %27 = vector.load %arg4[%c3, %c0_18, %c0_19] : memref<4x128x64xbf16, #tpu.memory_space<vmem>>, vector<1x128x64xbf16>
    %28 = vector.shape_cast %27 : vector<1x128x64xbf16> to vector<128x64xbf16>
    %cst_20 = arith.constant dense<0.000000e+00> : vector<72x64xf32>
    %29 = tpu.matmul %26, %28, %cst_20 {dimension_numbers = #tpu.dot_dimension_numbers<[1], [0], [0], [1], [0, 0, 1, 1], [], []>} : vector<72x128xbf16>, vector<128x64xbf16>, vector<72x64xf32> -> vector<72x64xf32>
    %30 = arith.addf %25, %29 : vector<72x64xf32>
    %c0_21 = arith.constant 0 : index
    %c0_22 = arith.constant 0 : index
    %31 = vector.load %arg5[%c0_21, %c0_22] : memref<1x64xf32, #tpu.memory_space<vmem>>, vector<1x64xf32>
    %32 = vector.broadcast %31 : vector<1x64xf32> to vector<72x64xf32>
    %33 = arith.addf %30, %32 : vector<72x64xf32>
    %cst_23 = arith.constant 0.000000e+00 : f32
    %34 = vector.broadcast %cst_23 : f32 to vector<72x64xf32>
    %35 = arith.maximumf %33, %34 : vector<72x64xf32>
    %36 = arith.truncf %35 : vector<72x64xf32> to vector<72x64xbf16>
    %c0_24 = arith.constant 0 : index
    %c0_25 = arith.constant 0 : index
    %37 = vector.load %arg6[%c0_24, %c0_25] : memref<1152x72xbf16, #tpu.memory_space<vmem>>, vector<1152x72xbf16>
    %cst_26 = arith.constant dense<0.000000e+00> : vector<1152x64xf32>
    %38 = tpu.matmul %37, %36, %cst_26 {dimension_numbers = #tpu.dot_dimension_numbers<[1], [0], [0], [1], [0, 0, 1, 1], [], []>} : vector<1152x72xbf16>, vector<72x64xbf16>, vector<1152x64xf32> -> vector<1152x64xf32>
    %39 = arith.truncf %38 : vector<1152x64xf32> to vector<1152x64xbf16>
    %cst_27 = arith.constant 0.000000e+00 : f32
    %40 = vector.broadcast %cst_27 : f32 to vector<128x64xf32>
    %41 = vector.extract_strided_slice %39 {offsets = [0, 0], sizes = [128, 64], strides = [1, 1]} : vector<1152x64xbf16> to vector<128x64xbf16>
    %c0_28 = arith.constant 0 : index
    %c0_29 = arith.constant 0 : index
    %c0_30 = arith.constant 0 : index
    %42 = vector.load %arg7[%c0_28, %c0_29, %c0_30] : memref<9x64x64xbf16, #tpu.memory_space<vmem>>, vector<1x64x64xbf16>
    %43 = vector.shape_cast %42 : vector<1x64x64xbf16> to vector<64x64xbf16>
    %cst_31 = arith.constant dense<0.000000e+00> : vector<128x64xf32>
    %44 = tpu.matmul %41, %43, %cst_31 {dimension_numbers = #tpu.dot_dimension_numbers<[1], [0], [0], [1], [0, 0, 1, 1], [], []>} : vector<128x64xbf16>, vector<64x64xbf16>, vector<128x64xf32> -> vector<128x64xf32>
    %45 = arith.addf %40, %44 : vector<128x64xf32>
    %46 = vector.extract_strided_slice %39 {offsets = [128, 0], sizes = [128, 64], strides = [1, 1]} : vector<1152x64xbf16> to vector<128x64xbf16>
    %c1_32 = arith.constant 1 : index
    %c0_33 = arith.constant 0 : index
    %c0_34 = arith.constant 0 : index
    %47 = vector.load %arg7[%c1_32, %c0_33, %c0_34] : memref<9x64x64xbf16, #tpu.memory_space<vmem>>, vector<1x64x64xbf16>
    %48 = vector.shape_cast %47 : vector<1x64x64xbf16> to vector<64x64xbf16>
    %cst_35 = arith.constant dense<0.000000e+00> : vector<128x64xf32>
    %49 = tpu.matmul %46, %48, %cst_35 {dimension_numbers = #tpu.dot_dimension_numbers<[1], [0], [0], [1], [0, 0, 1, 1], [], []>} : vector<128x64xbf16>, vector<64x64xbf16>, vector<128x64xf32> -> vector<128x64xf32>
    %50 = arith.addf %45, %49 : vector<128x64xf32>
    %51 = vector.extract_strided_slice %39 {offsets = [256, 0], sizes = [128, 64], strides = [1, 1]} : vector<1152x64xbf16> to vector<128x64xbf16>
    %c2_36 = arith.constant 2 : index
    %c0_37 = arith.constant 0 : index
    %c0_38 = arith.constant 0 : index
    %52 = vector.load %arg7[%c2_36, %c0_37, %c0_38] : memref<9x64x64xbf16, #tpu.memory_space<vmem>>, vector<1x64x64xbf16>
    %53 = vector.shape_cast %52 : vector<1x64x64xbf16> to vector<64x64xbf16>
    %cst_39 = arith.constant dense<0.000000e+00> : vector<128x64xf32>
    %54 = tpu.matmul %51, %53, %cst_39 {dimension_numbers = #tpu.dot_dimension_numbers<[1], [0], [0], [1], [0, 0, 1, 1], [], []>} : vector<128x64xbf16>, vector<64x64xbf16>, vector<128x64xf32> -> vector<128x64xf32>
    %55 = arith.addf %50, %54 : vector<128x64xf32>
    %56 = vector.extract_strided_slice %39 {offsets = [384, 0], sizes = [128, 64], strides = [1, 1]} : vector<1152x64xbf16> to vector<128x64xbf16>
    %c3_40 = arith.constant 3 : index
    %c0_41 = arith.constant 0 : index
    %c0_42 = arith.constant 0 : index
    %57 = vector.load %arg7[%c3_40, %c0_41, %c0_42] : memref<9x64x64xbf16, #tpu.memory_space<vmem>>, vector<1x64x64xbf16>
    %58 = vector.shape_cast %57 : vector<1x64x64xbf16> to vector<64x64xbf16>
    %cst_43 = arith.constant dense<0.000000e+00> : vector<128x64xf32>
    %59 = tpu.matmul %56, %58, %cst_43 {dimension_numbers = #tpu.dot_dimension_numbers<[1], [0], [0], [1], [0, 0, 1, 1], [], []>} : vector<128x64xbf16>, vector<64x64xbf16>, vector<128x64xf32> -> vector<128x64xf32>
    %60 = arith.addf %55, %59 : vector<128x64xf32>
    %61 = vector.extract_strided_slice %39 {offsets = [512, 0], sizes = [128, 64], strides = [1, 1]} : vector<1152x64xbf16> to vector<128x64xbf16>
    %c4 = arith.constant 4 : index
    %c0_44 = arith.constant 0 : index
    %c0_45 = arith.constant 0 : index
    %62 = vector.load %arg7[%c4, %c0_44, %c0_45] : memref<9x64x64xbf16, #tpu.memory_space<vmem>>, vector<1x64x64xbf16>
    %63 = vector.shape_cast %62 : vector<1x64x64xbf16> to vector<64x64xbf16>
    %cst_46 = arith.constant dense<0.000000e+00> : vector<128x64xf32>
    %64 = tpu.matmul %61, %63, %cst_46 {dimension_numbers = #tpu.dot_dimension_numbers<[1], [0], [0], [1], [0, 0, 1, 1], [], []>} : vector<128x64xbf16>, vector<64x64xbf16>, vector<128x64xf32> -> vector<128x64xf32>
    %65 = arith.addf %60, %64 : vector<128x64xf32>
    %66 = vector.extract_strided_slice %39 {offsets = [640, 0], sizes = [128, 64], strides = [1, 1]} : vector<1152x64xbf16> to vector<128x64xbf16>
    %c5 = arith.constant 5 : index
    %c0_47 = arith.constant 0 : index
    %c0_48 = arith.constant 0 : index
    %67 = vector.load %arg7[%c5, %c0_47, %c0_48] : memref<9x64x64xbf16, #tpu.memory_space<vmem>>, vector<1x64x64xbf16>
    %68 = vector.shape_cast %67 : vector<1x64x64xbf16> to vector<64x64xbf16>
    %cst_49 = arith.constant dense<0.000000e+00> : vector<128x64xf32>
    %69 = tpu.matmul %66, %68, %cst_49 {dimension_numbers = #tpu.dot_dimension_numbers<[1], [0], [0], [1], [0, 0, 1, 1], [], []>} : vector<128x64xbf16>, vector<64x64xbf16>, vector<128x64xf32> -> vector<128x64xf32>
    %70 = arith.addf %65, %69 : vector<128x64xf32>
    %71 = vector.extract_strided_slice %39 {offsets = [768, 0], sizes = [128, 64], strides = [1, 1]} : vector<1152x64xbf16> to vector<128x64xbf16>
    %c6 = arith.constant 6 : index
    %c0_50 = arith.constant 0 : index
    %c0_51 = arith.constant 0 : index
    %72 = vector.load %arg7[%c6, %c0_50, %c0_51] : memref<9x64x64xbf16, #tpu.memory_space<vmem>>, vector<1x64x64xbf16>
    %73 = vector.shape_cast %72 : vector<1x64x64xbf16> to vector<64x64xbf16>
    %cst_52 = arith.constant dense<0.000000e+00> : vector<128x64xf32>
    %74 = tpu.matmul %71, %73, %cst_52 {dimension_numbers = #tpu.dot_dimension_numbers<[1], [0], [0], [1], [0, 0, 1, 1], [], []>} : vector<128x64xbf16>, vector<64x64xbf16>, vector<128x64xf32> -> vector<128x64xf32>
    %75 = arith.addf %70, %74 : vector<128x64xf32>
    %76 = vector.extract_strided_slice %39 {offsets = [896, 0], sizes = [128, 64], strides = [1, 1]} : vector<1152x64xbf16> to vector<128x64xbf16>
    %c7 = arith.constant 7 : index
    %c0_53 = arith.constant 0 : index
    %c0_54 = arith.constant 0 : index
    %77 = vector.load %arg7[%c7, %c0_53, %c0_54] : memref<9x64x64xbf16, #tpu.memory_space<vmem>>, vector<1x64x64xbf16>
    %78 = vector.shape_cast %77 : vector<1x64x64xbf16> to vector<64x64xbf16>
    %cst_55 = arith.constant dense<0.000000e+00> : vector<128x64xf32>
    %79 = tpu.matmul %76, %78, %cst_55 {dimension_numbers = #tpu.dot_dimension_numbers<[1], [0], [0], [1], [0, 0, 1, 1], [], []>} : vector<128x64xbf16>, vector<64x64xbf16>, vector<128x64xf32> -> vector<128x64xf32>
    %80 = arith.addf %75, %79 : vector<128x64xf32>
    %81 = vector.extract_strided_slice %39 {offsets = [1024, 0], sizes = [128, 64], strides = [1, 1]} : vector<1152x64xbf16> to vector<128x64xbf16>
    %c8 = arith.constant 8 : index
    %c0_56 = arith.constant 0 : index
    %c0_57 = arith.constant 0 : index
    %82 = vector.load %arg7[%c8, %c0_56, %c0_57] : memref<9x64x64xbf16, #tpu.memory_space<vmem>>, vector<1x64x64xbf16>
    %83 = vector.shape_cast %82 : vector<1x64x64xbf16> to vector<64x64xbf16>
    %cst_58 = arith.constant dense<0.000000e+00> : vector<128x64xf32>
    %84 = tpu.matmul %81, %83, %cst_58 {dimension_numbers = #tpu.dot_dimension_numbers<[1], [0], [0], [1], [0, 0, 1, 1], [], []>} : vector<128x64xbf16>, vector<64x64xbf16>, vector<128x64xf32> -> vector<128x64xf32>
    %85 = arith.addf %80, %84 : vector<128x64xf32>
    %c0_59 = arith.constant 0 : index
    %c0_60 = arith.constant 0 : index
    %86 = vector.load %arg8[%c0_59, %c0_60] : memref<1x64xf32, #tpu.memory_space<vmem>>, vector<1x64xf32>
    %87 = vector.broadcast %86 : vector<1x64xf32> to vector<128x64xf32>
    %88 = arith.addf %85, %87 : vector<128x64xf32>
    %cst_61 = arith.constant 0.000000e+00 : f32
    %89 = vector.broadcast %cst_61 : f32 to vector<128x64xf32>
    %90 = arith.maximumf %88, %89 : vector<128x64xf32>
    %91 = arith.truncf %90 : vector<128x64xf32> to vector<128x64xbf16>
    %cst_62 = arith.constant 0.000000e+00 : f32
    %92 = vector.broadcast %cst_62 : f32 to vector<2x1024xf32>
    %93 = vector.extract_strided_slice %91 {offsets = [0, 0], sizes = [2, 64], strides = [1, 1]} : vector<128x64xbf16> to vector<2x64xbf16>
    %c0_63 = arith.constant 0 : index
    %c0_64 = arith.constant 0 : index
    %c0_65 = arith.constant 0 : index
    %94 = vector.load %arg9[%c0_63, %c0_64, %c0_65] : memref<16x64x1024xbf16, #tpu.memory_space<vmem>>, vector<1x64x1024xbf16>
    %95 = vector.shape_cast %94 : vector<1x64x1024xbf16> to vector<64x1024xbf16>
    %cst_66 = arith.constant dense<0.000000e+00> : vector<2x1024xf32>
    %96 = tpu.matmul %93, %95, %cst_66 {dimension_numbers = #tpu.dot_dimension_numbers<[1], [0], [0], [1], [0, 0, 1, 1], [], []>} : vector<2x64xbf16>, vector<64x1024xbf16>, vector<2x1024xf32> -> vector<2x1024xf32>
    %97 = arith.addf %92, %96 : vector<2x1024xf32>
    %98 = vector.extract_strided_slice %91 {offsets = [8, 0], sizes = [2, 64], strides = [1, 1]} : vector<128x64xbf16> to vector<2x64xbf16>
    %c1_67 = arith.constant 1 : index
    %c0_68 = arith.constant 0 : index
    %c0_69 = arith.constant 0 : index
    %99 = vector.load %arg9[%c1_67, %c0_68, %c0_69] : memref<16x64x1024xbf16, #tpu.memory_space<vmem>>, vector<1x64x1024xbf16>
    %100 = vector.shape_cast %99 : vector<1x64x1024xbf16> to vector<64x1024xbf16>
    %cst_70 = arith.constant dense<0.000000e+00> : vector<2x1024xf32>
    %101 = tpu.matmul %98, %100, %cst_70 {dimension_numbers = #tpu.dot_dimension_numbers<[1], [0], [0], [1], [0, 0, 1, 1], [], []>} : vector<2x64xbf16>, vector<64x1024xbf16>, vector<2x1024xf32> -> vector<2x1024xf32>
    %102 = arith.addf %97, %101 : vector<2x1024xf32>
    %103 = vector.extract_strided_slice %91 {offsets = [16, 0], sizes = [2, 64], strides = [1, 1]} : vector<128x64xbf16> to vector<2x64xbf16>
    %c2_71 = arith.constant 2 : index
    %c0_72 = arith.constant 0 : index
    %c0_73 = arith.constant 0 : index
    %104 = vector.load %arg9[%c2_71, %c0_72, %c0_73] : memref<16x64x1024xbf16, #tpu.memory_space<vmem>>, vector<1x64x1024xbf16>
    %105 = vector.shape_cast %104 : vector<1x64x1024xbf16> to vector<64x1024xbf16>
    %cst_74 = arith.constant dense<0.000000e+00> : vector<2x1024xf32>
    %106 = tpu.matmul %103, %105, %cst_74 {dimension_numbers = #tpu.dot_dimension_numbers<[1], [0], [0], [1], [0, 0, 1, 1], [], []>} : vector<2x64xbf16>, vector<64x1024xbf16>, vector<2x1024xf32> -> vector<2x1024xf32>
    %107 = arith.addf %102, %106 : vector<2x1024xf32>
    %108 = vector.extract_strided_slice %91 {offsets = [24, 0], sizes = [2, 64], strides = [1, 1]} : vector<128x64xbf16> to vector<2x64xbf16>
    %c3_75 = arith.constant 3 : index
    %c0_76 = arith.constant 0 : index
    %c0_77 = arith.constant 0 : index
    %109 = vector.load %arg9[%c3_75, %c0_76, %c0_77] : memref<16x64x1024xbf16, #tpu.memory_space<vmem>>, vector<1x64x1024xbf16>
    %110 = vector.shape_cast %109 : vector<1x64x1024xbf16> to vector<64x1024xbf16>
    %cst_78 = arith.constant dense<0.000000e+00> : vector<2x1024xf32>
    %111 = tpu.matmul %108, %110, %cst_78 {dimension_numbers = #tpu.dot_dimension_numbers<[1], [0], [0], [1], [0, 0, 1, 1], [], []>} : vector<2x64xbf16>, vector<64x1024xbf16>, vector<2x1024xf32> -> vector<2x1024xf32>
    %112 = arith.addf %107, %111 : vector<2x1024xf32>
    %113 = vector.extract_strided_slice %91 {offsets = [32, 0], sizes = [2, 64], strides = [1, 1]} : vector<128x64xbf16> to vector<2x64xbf16>
    %c4_79 = arith.constant 4 : index
    %c0_80 = arith.constant 0 : index
    %c0_81 = arith.constant 0 : index
    %114 = vector.load %arg9[%c4_79, %c0_80, %c0_81] : memref<16x64x1024xbf16, #tpu.memory_space<vmem>>, vector<1x64x1024xbf16>
    %115 = vector.shape_cast %114 : vector<1x64x1024xbf16> to vector<64x1024xbf16>
    %cst_82 = arith.constant dense<0.000000e+00> : vector<2x1024xf32>
    %116 = tpu.matmul %113, %115, %cst_82 {dimension_numbers = #tpu.dot_dimension_numbers<[1], [0], [0], [1], [0, 0, 1, 1], [], []>} : vector<2x64xbf16>, vector<64x1024xbf16>, vector<2x1024xf32> -> vector<2x1024xf32>
    %117 = arith.addf %112, %116 : vector<2x1024xf32>
    %118 = vector.extract_strided_slice %91 {offsets = [40, 0], sizes = [2, 64], strides = [1, 1]} : vector<128x64xbf16> to vector<2x64xbf16>
    %c5_83 = arith.constant 5 : index
    %c0_84 = arith.constant 0 : index
    %c0_85 = arith.constant 0 : index
    %119 = vector.load %arg9[%c5_83, %c0_84, %c0_85] : memref<16x64x1024xbf16, #tpu.memory_space<vmem>>, vector<1x64x1024xbf16>
    %120 = vector.shape_cast %119 : vector<1x64x1024xbf16> to vector<64x1024xbf16>
    %cst_86 = arith.constant dense<0.000000e+00> : vector<2x1024xf32>
    %121 = tpu.matmul %118, %120, %cst_86 {dimension_numbers = #tpu.dot_dimension_numbers<[1], [0], [0], [1], [0, 0, 1, 1], [], []>} : vector<2x64xbf16>, vector<64x1024xbf16>, vector<2x1024xf32> -> vector<2x1024xf32>
    %122 = arith.addf %117, %121 : vector<2x1024xf32>
    %123 = vector.extract_strided_slice %91 {offsets = [48, 0], sizes = [2, 64], strides = [1, 1]} : vector<128x64xbf16> to vector<2x64xbf16>
    %c6_87 = arith.constant 6 : index
    %c0_88 = arith.constant 0 : index
    %c0_89 = arith.constant 0 : index
    %124 = vector.load %arg9[%c6_87, %c0_88, %c0_89] : memref<16x64x1024xbf16, #tpu.memory_space<vmem>>, vector<1x64x1024xbf16>
    %125 = vector.shape_cast %124 : vector<1x64x1024xbf16> to vector<64x1024xbf16>
    %cst_90 = arith.constant dense<0.000000e+00> : vector<2x1024xf32>
    %126 = tpu.matmul %123, %125, %cst_90 {dimension_numbers = #tpu.dot_dimension_numbers<[1], [0], [0], [1], [0, 0, 1, 1], [], []>} : vector<2x64xbf16>, vector<64x1024xbf16>, vector<2x1024xf32> -> vector<2x1024xf32>
    %127 = arith.addf %122, %126 : vector<2x1024xf32>
    %128 = vector.extract_strided_slice %91 {offsets = [56, 0], sizes = [2, 64], strides = [1, 1]} : vector<128x64xbf16> to vector<2x64xbf16>
    %c7_91 = arith.constant 7 : index
    %c0_92 = arith.constant 0 : index
    %c0_93 = arith.constant 0 : index
    %129 = vector.load %arg9[%c7_91, %c0_92, %c0_93] : memref<16x64x1024xbf16, #tpu.memory_space<vmem>>, vector<1x64x1024xbf16>
    %130 = vector.shape_cast %129 : vector<1x64x1024xbf16> to vector<64x1024xbf16>
    %cst_94 = arith.constant dense<0.000000e+00> : vector<2x1024xf32>
    %131 = tpu.matmul %128, %130, %cst_94 {dimension_numbers = #tpu.dot_dimension_numbers<[1], [0], [0], [1], [0, 0, 1, 1], [], []>} : vector<2x64xbf16>, vector<64x1024xbf16>, vector<2x1024xf32> -> vector<2x1024xf32>
    %132 = arith.addf %127, %131 : vector<2x1024xf32>
    %133 = vector.extract_strided_slice %91 {offsets = [64, 0], sizes = [2, 64], strides = [1, 1]} : vector<128x64xbf16> to vector<2x64xbf16>
    %c8_95 = arith.constant 8 : index
    %c0_96 = arith.constant 0 : index
    %c0_97 = arith.constant 0 : index
    %134 = vector.load %arg9[%c8_95, %c0_96, %c0_97] : memref<16x64x1024xbf16, #tpu.memory_space<vmem>>, vector<1x64x1024xbf16>
    %135 = vector.shape_cast %134 : vector<1x64x1024xbf16> to vector<64x1024xbf16>
    %cst_98 = arith.constant dense<0.000000e+00> : vector<2x1024xf32>
    %136 = tpu.matmul %133, %135, %cst_98 {dimension_numbers = #tpu.dot_dimension_numbers<[1], [0], [0], [1], [0, 0, 1, 1], [], []>} : vector<2x64xbf16>, vector<64x1024xbf16>, vector<2x1024xf32> -> vector<2x1024xf32>
    %137 = arith.addf %132, %136 : vector<2x1024xf32>
    %138 = vector.extract_strided_slice %91 {offsets = [72, 0], sizes = [2, 64], strides = [1, 1]} : vector<128x64xbf16> to vector<2x64xbf16>
    %c9 = arith.constant 9 : index
    %c0_99 = arith.constant 0 : index
    %c0_100 = arith.constant 0 : index
    %139 = vector.load %arg9[%c9, %c0_99, %c0_100] : memref<16x64x1024xbf16, #tpu.memory_space<vmem>>, vector<1x64x1024xbf16>
    %140 = vector.shape_cast %139 : vector<1x64x1024xbf16> to vector<64x1024xbf16>
    %cst_101 = arith.constant dense<0.000000e+00> : vector<2x1024xf32>
    %141 = tpu.matmul %138, %140, %cst_101 {dimension_numbers = #tpu.dot_dimension_numbers<[1], [0], [0], [1], [0, 0, 1, 1], [], []>} : vector<2x64xbf16>, vector<64x1024xbf16>, vector<2x1024xf32> -> vector<2x1024xf32>
    %142 = arith.addf %137, %141 : vector<2x1024xf32>
    %143 = vector.extract_strided_slice %91 {offsets = [80, 0], sizes = [2, 64], strides = [1, 1]} : vector<128x64xbf16> to vector<2x64xbf16>
    %c10 = arith.constant 10 : index
    %c0_102 = arith.constant 0 : index
    %c0_103 = arith.constant 0 : index
    %144 = vector.load %arg9[%c10, %c0_102, %c0_103] : memref<16x64x1024xbf16, #tpu.memory_space<vmem>>, vector<1x64x1024xbf16>
    %145 = vector.shape_cast %144 : vector<1x64x1024xbf16> to vector<64x1024xbf16>
    %cst_104 = arith.constant dense<0.000000e+00> : vector<2x1024xf32>
    %146 = tpu.matmul %143, %145, %cst_104 {dimension_numbers = #tpu.dot_dimension_numbers<[1], [0], [0], [1], [0, 0, 1, 1], [], []>} : vector<2x64xbf16>, vector<64x1024xbf16>, vector<2x1024xf32> -> vector<2x1024xf32>
    %147 = arith.addf %142, %146 : vector<2x1024xf32>
    %148 = vector.extract_strided_slice %91 {offsets = [88, 0], sizes = [2, 64], strides = [1, 1]} : vector<128x64xbf16> to vector<2x64xbf16>
    %c11 = arith.constant 11 : index
    %c0_105 = arith.constant 0 : index
    %c0_106 = arith.constant 0 : index
    %149 = vector.load %arg9[%c11, %c0_105, %c0_106] : memref<16x64x1024xbf16, #tpu.memory_space<vmem>>, vector<1x64x1024xbf16>
    %150 = vector.shape_cast %149 : vector<1x64x1024xbf16> to vector<64x1024xbf16>
    %cst_107 = arith.constant dense<0.000000e+00> : vector<2x1024xf32>
    %151 = tpu.matmul %148, %150, %cst_107 {dimension_numbers = #tpu.dot_dimension_numbers<[1], [0], [0], [1], [0, 0, 1, 1], [], []>} : vector<2x64xbf16>, vector<64x1024xbf16>, vector<2x1024xf32> -> vector<2x1024xf32>
    %152 = arith.addf %147, %151 : vector<2x1024xf32>
    %153 = vector.extract_strided_slice %91 {offsets = [96, 0], sizes = [2, 64], strides = [1, 1]} : vector<128x64xbf16> to vector<2x64xbf16>
    %c12 = arith.constant 12 : index
    %c0_108 = arith.constant 0 : index
    %c0_109 = arith.constant 0 : index
    %154 = vector.load %arg9[%c12, %c0_108, %c0_109] : memref<16x64x1024xbf16, #tpu.memory_space<vmem>>, vector<1x64x1024xbf16>
    %155 = vector.shape_cast %154 : vector<1x64x1024xbf16> to vector<64x1024xbf16>
    %cst_110 = arith.constant dense<0.000000e+00> : vector<2x1024xf32>
    %156 = tpu.matmul %153, %155, %cst_110 {dimension_numbers = #tpu.dot_dimension_numbers<[1], [0], [0], [1], [0, 0, 1, 1], [], []>} : vector<2x64xbf16>, vector<64x1024xbf16>, vector<2x1024xf32> -> vector<2x1024xf32>
    %157 = arith.addf %152, %156 : vector<2x1024xf32>
    %158 = vector.extract_strided_slice %91 {offsets = [104, 0], sizes = [2, 64], strides = [1, 1]} : vector<128x64xbf16> to vector<2x64xbf16>
    %c13 = arith.constant 13 : index
    %c0_111 = arith.constant 0 : index
    %c0_112 = arith.constant 0 : index
    %159 = vector.load %arg9[%c13, %c0_111, %c0_112] : memref<16x64x1024xbf16, #tpu.memory_space<vmem>>, vector<1x64x1024xbf16>
    %160 = vector.shape_cast %159 : vector<1x64x1024xbf16> to vector<64x1024xbf16>
    %cst_113 = arith.constant dense<0.000000e+00> : vector<2x1024xf32>
    %161 = tpu.matmul %158, %160, %cst_113 {dimension_numbers = #tpu.dot_dimension_numbers<[1], [0], [0], [1], [0, 0, 1, 1], [], []>} : vector<2x64xbf16>, vector<64x1024xbf16>, vector<2x1024xf32> -> vector<2x1024xf32>
    %162 = arith.addf %157, %161 : vector<2x1024xf32>
    %163 = vector.extract_strided_slice %91 {offsets = [112, 0], sizes = [2, 64], strides = [1, 1]} : vector<128x64xbf16> to vector<2x64xbf16>
    %c14 = arith.constant 14 : index
    %c0_114 = arith.constant 0 : index
    %c0_115 = arith.constant 0 : index
    %164 = vector.load %arg9[%c14, %c0_114, %c0_115] : memref<16x64x1024xbf16, #tpu.memory_space<vmem>>, vector<1x64x1024xbf16>
    %165 = vector.shape_cast %164 : vector<1x64x1024xbf16> to vector<64x1024xbf16>
    %cst_116 = arith.constant dense<0.000000e+00> : vector<2x1024xf32>
    %166 = tpu.matmul %163, %165, %cst_116 {dimension_numbers = #tpu.dot_dimension_numbers<[1], [0], [0], [1], [0, 0, 1, 1], [], []>} : vector<2x64xbf16>, vector<64x1024xbf16>, vector<2x1024xf32> -> vector<2x1024xf32>
    %167 = arith.addf %162, %166 : vector<2x1024xf32>
    %168 = vector.extract_strided_slice %91 {offsets = [120, 0], sizes = [2, 64], strides = [1, 1]} : vector<128x64xbf16> to vector<2x64xbf16>
    %c15 = arith.constant 15 : index
    %c0_117 = arith.constant 0 : index
    %c0_118 = arith.constant 0 : index
    %169 = vector.load %arg9[%c15, %c0_117, %c0_118] : memref<16x64x1024xbf16, #tpu.memory_space<vmem>>, vector<1x64x1024xbf16>
    %170 = vector.shape_cast %169 : vector<1x64x1024xbf16> to vector<64x1024xbf16>
    %cst_119 = arith.constant dense<0.000000e+00> : vector<2x1024xf32>
    %171 = tpu.matmul %168, %170, %cst_119 {dimension_numbers = #tpu.dot_dimension_numbers<[1], [0], [0], [1], [0, 0, 1, 1], [], []>} : vector<2x64xbf16>, vector<64x1024xbf16>, vector<2x1024xf32> -> vector<2x1024xf32>
    %172 = arith.addf %167, %171 : vector<2x1024xf32>
    %c0_120 = arith.constant 0 : index
    %c0_121 = arith.constant 0 : index
    %173 = vector.load %arg10[%c0_120, %c0_121] : memref<1x1024xf32, #tpu.memory_space<vmem>>, vector<1x1024xf32>
    %174 = vector.broadcast %173 : vector<1x1024xf32> to vector<2x1024xf32>
    %175 = arith.addf %172, %174 : vector<2x1024xf32>
    %cst_122 = arith.constant 0.000000e+00 : f32
    %176 = vector.broadcast %cst_122 : f32 to vector<2x1024xf32>
    %177 = arith.maximumf %175, %176 : vector<2x1024xf32>
    %178 = arith.truncf %177 : vector<2x1024xf32> to vector<2x1024xbf16>
    %c0_123 = arith.constant 0 : index
    %c0_124 = arith.constant 0 : index
    %179 = vector.load %arg11[%c0_123, %c0_124] : memref<1024x512xbf16, #tpu.memory_space<vmem>>, vector<1024x512xbf16>
    %cst_125 = arith.constant dense<0.000000e+00> : vector<2x512xf32>
    %180 = tpu.matmul %178, %179, %cst_125 {dimension_numbers = #tpu.dot_dimension_numbers<[1], [0], [0], [1], [0, 0, 1, 1], [], []>} : vector<2x1024xbf16>, vector<1024x512xbf16>, vector<2x512xf32> -> vector<2x512xf32>
    %c0_126 = arith.constant 0 : index
    %c0_127 = arith.constant 0 : index
    %181 = vector.load %arg12[%c0_126, %c0_127] : memref<1x512xf32, #tpu.memory_space<vmem>>, vector<1x512xf32>
    %182 = vector.broadcast %181 : vector<1x512xf32> to vector<2x512xf32>
    %183 = arith.addf %180, %182 : vector<2x512xf32>
    %184 = tpu.iota {dimensions = array<i32: 1>} : vector<1x128xi32>
    %c51_i32 = arith.constant 51 : i32
    %185 = vector.broadcast %c51_i32 : i32 to vector<1x128xi32>
    %186 = arith.cmpi slt, %184, %185 : vector<1x128xi32>
    %187 = vector.extract_strided_slice %183 {offsets = [0, 0], sizes = [2, 128], strides = [1, 1]} : vector<2x512xf32> to vector<2x128xf32>
    %cst_128 = arith.constant -1.000000e+30 : f32
    %188 = vector.shape_cast %186 : vector<1x128xi1> to vector<1x128xi1>
    %189 = vector.broadcast %188 : vector<1x128xi1> to vector<2x128xi1>
    %190 = vector.broadcast %cst_128 : f32 to vector<2x128xf32>
    %191 = arith.select %189, %187, %190 : vector<2x128xi1>, vector<2x128xf32>
    %cst_129 = arith.constant dense<0xFF800000> : vector<2xf32>
    %192 = vector.multi_reduction <maximumf>, %191, %cst_129 [1] : vector<2x128xf32> to vector<2xf32>
    %193 = vector.shape_cast %192 : vector<2xf32> to vector<2x1xf32>
    %194 = vector.broadcast %193 : vector<2x1xf32> to vector<2x128xf32>
    %195 = arith.subf %191, %194 : vector<2x128xf32>
    %196 = math.exp %195 : vector<2x128xf32>
    %cst_130 = arith.constant dense<0.000000e+00> : vector<2xf32>
    %197 = vector.multi_reduction <add>, %196, %cst_130 [1] : vector<2x128xf32> to vector<2xf32>
    %198 = vector.shape_cast %197 : vector<2xf32> to vector<2x1xf32>
    %199 = tpu.reciprocal %198 {approx = true} : vector<2x1xf32> -> vector<2x1xf32>
    %200 = vector.broadcast %199 : vector<2x1xf32> to vector<2x128xf32>
    %201 = arith.mulf %196, %200 : vector<2x128xf32>
    %202 = vector.extract_strided_slice %183 {offsets = [0, 128], sizes = [2, 128], strides = [1, 1]} : vector<2x512xf32> to vector<2x128xf32>
    %cst_131 = arith.constant -1.000000e+30 : f32
    %203 = vector.shape_cast %186 : vector<1x128xi1> to vector<1x128xi1>
    %204 = vector.broadcast %203 : vector<1x128xi1> to vector<2x128xi1>
    %205 = vector.broadcast %cst_131 : f32 to vector<2x128xf32>
    %206 = arith.select %204, %202, %205 : vector<2x128xi1>, vector<2x128xf32>
    %cst_132 = arith.constant dense<0xFF800000> : vector<2xf32>
    %207 = vector.multi_reduction <maximumf>, %206, %cst_132 [1] : vector<2x128xf32> to vector<2xf32>
    %208 = vector.shape_cast %207 : vector<2xf32> to vector<2x1xf32>
    %209 = vector.broadcast %208 : vector<2x1xf32> to vector<2x128xf32>
    %210 = arith.subf %206, %209 : vector<2x128xf32>
    %211 = math.exp %210 : vector<2x128xf32>
    %cst_133 = arith.constant dense<0.000000e+00> : vector<2xf32>
    %212 = vector.multi_reduction <add>, %211, %cst_133 [1] : vector<2x128xf32> to vector<2xf32>
    %213 = vector.shape_cast %212 : vector<2xf32> to vector<2x1xf32>
    %214 = tpu.reciprocal %213 {approx = true} : vector<2x1xf32> -> vector<2x1xf32>
    %215 = vector.broadcast %214 : vector<2x1xf32> to vector<2x128xf32>
    %216 = arith.mulf %211, %215 : vector<2x128xf32>
    %217 = vector.extract_strided_slice %183 {offsets = [0, 256], sizes = [2, 128], strides = [1, 1]} : vector<2x512xf32> to vector<2x128xf32>
    %cst_134 = arith.constant -1.000000e+30 : f32
    %218 = vector.shape_cast %186 : vector<1x128xi1> to vector<1x128xi1>
    %219 = vector.broadcast %218 : vector<1x128xi1> to vector<2x128xi1>
    %220 = vector.broadcast %cst_134 : f32 to vector<2x128xf32>
    %221 = arith.select %219, %217, %220 : vector<2x128xi1>, vector<2x128xf32>
    %cst_135 = arith.constant dense<0xFF800000> : vector<2xf32>
    %222 = vector.multi_reduction <maximumf>, %221, %cst_135 [1] : vector<2x128xf32> to vector<2xf32>
    %223 = vector.shape_cast %222 : vector<2xf32> to vector<2x1xf32>
    %224 = vector.broadcast %223 : vector<2x1xf32> to vector<2x128xf32>
    %225 = arith.subf %221, %224 : vector<2x128xf32>
    %226 = math.exp %225 : vector<2x128xf32>
    %cst_136 = arith.constant dense<0.000000e+00> : vector<2xf32>
    %227 = vector.multi_reduction <add>, %226, %cst_136 [1] : vector<2x128xf32> to vector<2xf32>
    %228 = vector.shape_cast %227 : vector<2xf32> to vector<2x1xf32>
    %229 = tpu.reciprocal %228 {approx = true} : vector<2x1xf32> -> vector<2x1xf32>
    %230 = vector.broadcast %229 : vector<2x1xf32> to vector<2x128xf32>
    %231 = arith.mulf %226, %230 : vector<2x128xf32>
    %232 = vector.extract_strided_slice %183 {offsets = [0, 384], sizes = [2, 128], strides = [1, 1]} : vector<2x512xf32> to vector<2x128xf32>
    %cst_137 = arith.constant -1.000000e+30 : f32
    %233 = vector.shape_cast %186 : vector<1x128xi1> to vector<1x128xi1>
    %234 = vector.broadcast %233 : vector<1x128xi1> to vector<2x128xi1>
    %235 = vector.broadcast %cst_137 : f32 to vector<2x128xf32>
    %236 = arith.select %234, %232, %235 : vector<2x128xi1>, vector<2x128xf32>
    %cst_138 = arith.constant dense<0xFF800000> : vector<2xf32>
    %237 = vector.multi_reduction <maximumf>, %236, %cst_138 [1] : vector<2x128xf32> to vector<2xf32>
    %238 = vector.shape_cast %237 : vector<2xf32> to vector<2x1xf32>
    %239 = vector.broadcast %238 : vector<2x1xf32> to vector<2x128xf32>
    %240 = arith.subf %236, %239 : vector<2x128xf32>
    %241 = math.exp %240 : vector<2x128xf32>
    %cst_139 = arith.constant dense<0.000000e+00> : vector<2xf32>
    %242 = vector.multi_reduction <add>, %241, %cst_139 [1] : vector<2x128xf32> to vector<2xf32>
    %243 = vector.shape_cast %242 : vector<2xf32> to vector<2x1xf32>
    %244 = tpu.reciprocal %243 {approx = true} : vector<2x1xf32> -> vector<2x1xf32>
    %245 = vector.broadcast %244 : vector<2x1xf32> to vector<2x128xf32>
    %246 = arith.mulf %241, %245 : vector<2x128xf32>
    %247 = tpu.concatenate %201, %216, %231, %246 in 1 : vector<2x128xf32>, vector<2x128xf32>, vector<2x128xf32>, vector<2x128xf32> -> vector<2x512xf32>
    %c0_140 = arith.constant 0 : index
    %c0_141 = arith.constant 0 : index
    %c0_142 = arith.constant 0 : index
    %248 = vector.load %arg13[%c0_140, %c0_141, %c0_142] : memref<1x2x512xf32, #tpu.memory_space<vmem>>, vector<1x2x512xf32>
    %249 = vector.shape_cast %248 : vector<1x2x512xf32> to vector<2x512xf32>
    %250 = vector.shape_cast %247 : vector<2x512xf32> to vector<1x2x512xf32>
    tpu.vector_store %arg13[%c0_140, %c0_141, %c0_142], %250 {strides = array<i32>} : memref<1x2x512xf32, #tpu.memory_space<vmem>>, vector<1x2x512xf32>,
    return
  }
  func.func @transform_0(%arg0: i32) -> (i32, i32, i32) {
    %c0_i32 = arith.constant 0 : i32
    %c0_i32_0 = arith.constant 0 : i32
    %c0_i32_1 = arith.constant 0 : i32
    return %arg0, %c0_i32, %c0_i32_0 : i32, i32, i32
  }
  func.func @transform_1(%arg0: i32) -> (i32, i32) {
    %c0_i32 = arith.constant 0 : i32
    %c0_i32_0 = arith.constant 0 : i32
    %c0_i32_1 = arith.constant 0 : i32
    return %c0_i32, %c0_i32_0 : i32, i32
  }
  func.func @transform_2(%arg0: i32) -> (i32, i32) {
    %c0_i32 = arith.constant 0 : i32
    %c0_i32_0 = arith.constant 0 : i32
    %c0_i32_1 = arith.constant 0 : i32
    return %c0_i32, %c0_i32_0 : i32, i32
  }
  func.func @transform_3(%arg0: i32) -> (i32, i32, i32) {
    %c0_i32 = arith.constant 0 : i32
    %c0_i32_0 = arith.constant 0 : i32
    %c0_i32_1 = arith.constant 0 : i32
    %c0_i32_2 = arith.constant 0 : i32
    return %c0_i32, %c0_i32_0, %c0_i32_1 : i32, i32, i32
  }
  func.func @transform_4(%arg0: i32) -> (i32, i32) {
    %c0_i32 = arith.constant 0 : i32
    %c0_i32_0 = arith.constant 0 : i32
    %c0_i32_1 = arith.constant 0 : i32
    return %c0_i32, %c0_i32_0 : i32, i32
  }
  func.func @transform_5(%arg0: i32) -> (i32, i32) {
    %c0_i32 = arith.constant 0 : i32
    %c0_i32_0 = arith.constant 0 : i32
    %c0_i32_1 = arith.constant 0 : i32
    return %c0_i32, %c0_i32_0 : i32, i32
  }
  func.func @transform_6(%arg0: i32) -> (i32, i32, i32) {
    %c0_i32 = arith.constant 0 : i32
    %c0_i32_0 = arith.constant 0 : i32
    %c0_i32_1 = arith.constant 0 : i32
    %c0_i32_2 = arith.constant 0 : i32
    return %c0_i32, %c0_i32_0, %c0_i32_1 : i32, i32, i32
  }
  func.func @transform_7(%arg0: i32) -> (i32, i32) {
    %c0_i32 = arith.constant 0 : i32
    %c0_i32_0 = arith.constant 0 : i32
    %c0_i32_1 = arith.constant 0 : i32
    return %c0_i32, %c0_i32_0 : i32, i32
  }
  func.func @transform_8(%arg0: i32) -> (i32, i32, i32) {
    %c0_i32 = arith.constant 0 : i32
    %c0_i32_0 = arith.constant 0 : i32
    %c0_i32_1 = arith.constant 0 : i32
    %c0_i32_2 = arith.constant 0 : i32
    return %c0_i32, %c0_i32_0, %c0_i32_1 : i32, i32, i32
  }
  func.func @transform_9(%arg0: i32) -> (i32, i32) {
    %c0_i32 = arith.constant 0 : i32
    %c0_i32_0 = arith.constant 0 : i32
    %c0_i32_1 = arith.constant 0 : i32
    return %c0_i32, %c0_i32_0 : i32, i32
  }
  func.func @transform_10(%arg0: i32) -> (i32, i32) {
    %c0_i32 = arith.constant 0 : i32
    %c0_i32_0 = arith.constant 0 : i32
    %c0_i32_1 = arith.constant 0 : i32
    return %c0_i32, %c0_i32_0 : i32, i32
  }
  func.func @transform_11(%arg0: i32) -> (i32, i32) {
    %c0_i32 = arith.constant 0 : i32
    %c0_i32_0 = arith.constant 0 : i32
    %c0_i32_1 = arith.constant 0 : i32
    return %c0_i32, %c0_i32_0 : i32, i32
  }
  func.func @transform_12(%arg0: i32) -> (i32, i32, i32) {
    %c0_i32 = arith.constant 0 : i32
    %c0_i32_0 = arith.constant 0 : i32
    %c0_i32_1 = arith.constant 0 : i32
    return %arg0, %c0_i32, %c0_i32_0 : i32, i32, i32
  }
}

</mosaic_0001>

<bundles_post_ra>
// kernel: forward.1
= control target key start
LH: loop header
LB: loop body
LE: loop exit
PB: predicated region body
PF: predicated region fallthrough
CT: control target
= control target key end

     0   :  { %v22332_v0 = vmov 0   ;;  %vm17381_vm0 = vmmov 0   ;;  %vm2225_vm1 = vcmask 1043456   ;;  %vm3325_vm2 = vcmask 588800   ;;  %s22319_s1 = inlined_call_operand.vmem [shape: bf16[1024,128], index: 1, kind: input, shape index: {}]   ;;  %s22320_s0 = inlined_call_operand.vmem [shape: bf16[1,288,1024], index: 0, kind: input, shape index: {}]   ;;  %s22321_s3 = inlined_call_operand.vmem [shape: bf16[4,128,64], index: 3, kind: input, shape index: {}]   ;;  %s22322_s2 = inlined_call_operand.vmem [shape: f32[1,128], index: 2, kind: input, shape index: {}]   ;;  %s22323_s5 = inlined_call_operand.vmem [shape: bf16[1152,72], index: 5, kind: input, shape index: {}]   ;;  %s22324_s6 = inlined_call_operand.vmem [shape: bf16[9,64,64], index: 6, kind: input, shape index: {}]   ;;  %s22325_s4 = inlined_call_operand.vmem [shape: f32[1,64], index: 4, kind: input, shape index: {}]   ;;  %s22326_s8 = inlined_call_operand.vmem [shape: bf16[16,64,1024], index: 8, kind: input, shape index: {}]   ;;  %s22327_s7 = inlined_call_operand.vmem [shape: f32[1,64], index: 7, kind: input, shape index: {}]   ;;  %s22328_s10 = inlined_call_operand.vmem [shape: bf16[1024,512], index: 10, kind: input, shape index: {}]   ;;  %s22329_s9 = inlined_call_operand.vmem [shape: f32[1,1024], index: 9, kind: input, shape index: {}]   ;;  %s22330_s11 = inlined_call_operand.vmem [shape: f32[1,512], index: 11, kind: input, shape index: {}]   ;;  %s22331_s12 = inlined_call_operand.vmem [shape: f32[1,2,512], index: 12, kind: output, shape index: {}]  }
   0x1   :  { %1425 = vmatprep.subr.bf16.mxu0 %v22332_v0  ;;  %v16775_v1 = vld [vmem:[%s22319_s1] sm:$0xff]   ;;  %v16776_v2 = vld [vmem:[%s22319_s1 + $0x8] sm:$0xff]   ;;  %v16777_v3 = vld [vmem:[%s22319_s1 + $0x10] sm:$0xff]   ;;  %vm4268_vm3 = vcmask 523264   ;;  %vm13617_vm5 = vcmask 1041408  }
   0x2   :  { %1426 = vmatpush1.bf16.msra.mxu0 %v16775_v1  ;;  %v16778_v4 = vld [vmem:[%s22319_s1 + $0x18] sm:$0xff]   ;;  %v16779_v5 = vld [vmem:[%s22319_s1 + $0x20] sm:$0xff]   ;;  %v16780_v9 = vld [vmem:[%s22319_s1 + $0x28] sm:$0xff]  }
   0x3   :  { %1427 = vmatprep.subr.bf16.mxu0 %v22332_v0  ;;  %v42_v6 = vld [vmem:[%s22320_s0] sm:$0xff]  ;;  %v16781_v10 = vld [vmem:[%s22319_s1 + $0x30] sm:$0xff]   ;;  %v16782_v11 = vld [vmem:[%s22319_s1 + $0x38] sm:$0xff]  }
   0x4   :  { %v46_v7 = vld [vmem:[%s22320_s0 + $0x20] sm:$0xff]  ;;  %v16784_v13 = vld [vmem:[%s22319_s1 + $0x48] sm:$0xff]   ;;  %v16785_v14 = vld [vmem:[%s22319_s1 + $0x50] sm:$0xff]  }
   0x5   :  { %v13694_v8 = vcombine.high %v42_v6, %v46_v7  ;;  %v16783_v12 = vld [vmem:[%s22319_s1 + $0x40] sm:$0xff]   ;;  %v16786_v15 = vld [vmem:[%s22319_s1 + $0x58] sm:$0xff]   ;;  %v16788_v17 = vld [vmem:[%s22319_s1 + $0x68] sm:$0xff]   ;;  %v13693_v23 = vcombine.low %v42_v6, %v46_v7 }
   0x6   :  { %1428 = vmatpush1.bf16.msra.mxu0 %v16776_v2  ;;  %v16787_v16 = vld [vmem:[%s22319_s1 + $0x60] sm:$0xff]   ;;  %v16789_v18 = vld [vmem:[%s22319_s1 + $0x70] sm:$0xff]   ;;  %v16790_v19 = vld [vmem:[%s22319_s1 + $0x78] sm:$0xff]  }
   0x7   :  { %1429 = vmatprep.subr.bf16.mxu0 %v22332_v0  ;;  %1457 = vmatprep.mubr.bf16.mxu0 %v13694_v8  ;;  %v50_v20 = vld [vmem:[%s22320_s0 + $0x40] sm:$0xff]  ;;  %v16792_v25 = vld [vmem:[%s22319_s1 + $0x88] sm:$0xff]   ;;  %v16793_v30 = vld [vmem:[%s22319_s1 + $0x90] sm:$0xff]  }
   0x8   :  { %v54_v21 = vld [vmem:[%s22320_s0 + $0x60] sm:$0xff]  ;;  %v16794_v31 = vld [vmem:[%s22319_s1 + $0x98] sm:$0xff]   ;;  %v16796_v37 = vld [vmem:[%s22319_s1 + $0xa8] sm:$0xff]  }
   0x9   :  { %v16791_v22 = vld [vmem:[%s22319_s1 + $0x80] sm:$0xff]   ;;  %v13702_v24 = vcombine.high %v50_v20, %v54_v21  ;;  %v13701_v28 = vcombine.low %v50_v20, %v54_v21  ;;  %v16797_v42 = vld [vmem:[%s22319_s1 + $0xb0] sm:$0xff]   ;;  %v16798_v43 = vld [vmem:[%s22319_s1 + $0xb8] sm:$0xff]  }
   0xa   :  { %1430 = vmatpush1.bf16.msra.mxu0 %v16777_v3  ;;  %v58_v26 = vld [vmem:[%s22320_s0 + $0x80] sm:$0xff]  ;;  %v16800_v49 = vld [vmem:[%s22319_s1 + $0xc8] sm:$0xff]   ;;  %v16801_v54 = vld [vmem:[%s22319_s1 + $0xd0] sm:$0xff]  }
   0xb   :  { %1431 = vmatprep.subr.bf16.mxu0 %v22332_v0  ;;  %v62_v27 = vld [vmem:[%s22320_s0 + $0xa0] sm:$0xff]  ;;  %v16802_v55 = vld [vmem:[%s22319_s1 + $0xd8] sm:$0xff]   ;;  %v16804_v61 = vld [vmem:[%s22319_s1 + $0xe8] sm:$0xff]  }
   0xc   :  { %v13710_v29 = vcombine.high %v58_v26, %v62_v27  ;;  %v66_v32 = vld [vmem:[%s22320_s0 + $0xc0] sm:$0xff]  ;;  %v13709_v34 = vcombine.low %v58_v26, %v62_v27  ;;  %v16805_v3 = vld [vmem:[%s22319_s1 + $0xf0] sm:$0xff]  }
   0xd   :  { %v70_v33 = vld [vmem:[%s22320_s0 + $0xe0] sm:$0xff] }
   0xe   :  { %1432 = vmatpush1.bf16.msra.mxu0 %v16778_v4  ;;  %v13718_v35 = vcombine.high %v66_v32, %v70_v33  ;;  %v16795_v36 = vld [vmem:[%s22319_s1 + $0xa0] sm:$0xff]   ;;  %v13717_v40 = vcombine.low %v66_v32, %v70_v33  ;;  %v16806_v4 = vld [vmem:[%s22319_s1 + $0xf8] sm:$0xff]  }
   0xf   :  { %1433 = vmatprep.subr.bf16.mxu0 %v22332_v0  ;;  %v74_v38 = vld [vmem:[%s22320_s0 + $0x100] sm:$0xff] }
  0x10   :  { %v78_v39 = vld [vmem:[%s22320_s0 + $0x120] sm:$0xff] }
  0x11   :  { %v13726_v41 = vcombine.high %v74_v38, %v78_v39  ;;  %v82_v44 = vld [vmem:[%s22320_s0 + $0x140] sm:$0xff]  ;;  %v13725_v46 = vcombine.low %v74_v38, %v78_v39 }
  0x12   :  { %1434 = vmatpush1.bf16.msra.mxu0 %v16779_v5  ;;  %v86_v45 = vld [vmem:[%s22320_s0 + $0x160] sm:$0xff] }
  0x13   :  { %1435 = vmatprep.subr.bf16.mxu0 %v22332_v0  ;;  %v13734_v47 = vcombine.high %v82_v44, %v86_v45  ;;  %v16799_v48 = vld [vmem:[%s22319_s1 + $0xc0] sm:$0xff]   ;;  %v13733_v52 = vcombine.low %v82_v44, %v86_v45  ;;  %v51_v45 = vld [vmem:[%s22320_s0 + $0x48] sm:$0xff] }
  0x14   :  { %v90_v50 = vld [vmem:[%s22320_s0 + $0x180] sm:$0xff] }
  0x15   :  { %v94_v51 = vld [vmem:[%s22320_s0 + $0x1a0] sm:$0xff] }
  0x16   :  { %1436 = vmatpush1.bf16.msra.mxu0 %v16780_v9  ;;  %v13742_v53 = vcombine.high %v90_v50, %v94_v51  ;;  %v98_v56 = vld [vmem:[%s22320_s0 + $0x1c0] sm:$0xff]  ;;  %v13741_v58 = vcombine.low %v90_v50, %v94_v51  ;;  %v16808_v50 = vld [vmem:[%s22319_s1 + $0x108] sm:$0xff]  }
  0x17   :  { %1437 = vmatprep.subr.bf16.mxu0 %v22332_v0  ;;  %v102_v57 = vld [vmem:[%s22320_s0 + $0x1e0] sm:$0xff]  ;;  %v59_v51 = vld [vmem:[%s22320_s0 + $0x88] sm:$0xff] }
  0x18   :  { %v13750_v59 = vcombine.high %v98_v56, %v102_v57  ;;  %v16803_v60 = vld [vmem:[%s22319_s1 + $0xe0] sm:$0xff]   ;;  %v13749_v1 = vcombine.low %v98_v56, %v102_v57  ;;  %v16810_v56 = vld [vmem:[%s22319_s1 + $0x118] sm:$0xff]   ;;  %v67_v57 = vld [vmem:[%s22320_s0 + $0xc8] sm:$0xff] }
  0x19   :  { %v106_v62 = vld [vmem:[%s22320_s0 + $0x200] sm:$0xff] }
  0x1a   :  { %1438 = vmatpush1.bf16.msra.mxu0 %v16781_v10  ;;  %v110_v63 = vld [vmem:[%s22320_s0 + $0x220] sm:$0xff] }
  0x1b   :  { %1439 = vmatprep.subr.bf16.mxu0 %v22332_v0  ;;  %v13758_v2 = vcombine.high %v106_v62, %v110_v63  ;;  %v114_v5 = vld [vmem:[%s22320_s0 + $0x240] sm:$0xff]  ;;  %v13757_v7 = vcombine.low %v106_v62, %v110_v63  ;;  %v16812_v62 = vld [vmem:[%s22319_s1 + $0x128] sm:$0xff]  }
  0x1c   :  { %v118_v6 = vld [vmem:[%s22320_s0 + $0x260] sm:$0xff]  ;;  %v75_v63 = vld [vmem:[%s22320_s0 + $0x108] sm:$0xff] }
  0x1d   :  { %v13766_v8 = vcombine.high %v114_v5, %v118_v6  ;;  %v122_v9 = vld [vmem:[%s22320_s0 + $0x280] sm:$0xff] }
  0x1e   :  { %1440 = vmatpush1.bf16.msra.mxu0 %v16782_v11  ;;  %v126_v10 = vld [vmem:[%s22320_s0 + $0x2a0] sm:$0xff]  ;;  %v13765_v11 = vcombine.low %v114_v5, %v118_v6  ;;  %v16814_v5 = vld [vmem:[%s22319_s1 + $0x138] sm:$0xff]   ;;  %v83_v6 = vld [vmem:[%s22320_s0 + $0x148] sm:$0xff] }
  0x1f   :  { %1441 = vmatprep.subr.bf16.mxu0 %v22332_v0  ;;  %v146_v21 = vld [vmem:[%s22320_s0 + $0x340] sm:$0xff] }
  0x20   :  { %v158_v26 = vld [vmem:[%s22320_s0 + $0x3a0] sm:$0xff] }
  0x21   :  { %v170_v33 = vld [vmem:[%s22320_s0 + $0x400] sm:$0xff] }
  0x22   :  { %1442 = vmatpush1.bf16.msra.mxu0 %v16783_v12  ;;  %v13774_v12 = vcombine.high %v122_v9, %v126_v10  ;;  %v182_v38 = vld [vmem:[%s22320_s0 + $0x460] sm:$0xff] }
  0x23   :  { %1443 = vmatprep.subr.bf16.mxu0 %v22332_v0 }
  0x26   :  { %1444 = vmatpush1.bf16.msra.mxu0 %v16784_v13  ;;  %v130_v13 = vld [vmem:[%s22320_s0 + $0x2c0] sm:$0xff] }
  0x27   :  { %1445 = vmatprep.subr.bf16.mxu0 %v22332_v0 }
  0x2a   :  { %1446 = vmatpush1.bf16.msra.mxu0 %v16785_v14  ;;  %v134_v14 = vld [vmem:[%s22320_s0 + $0x2e0] sm:$0xff] }
  0x2b   :  { %1447 = vmatprep.subr.bf16.mxu0 %v22332_v0 }
  0x2e   :  { %1448 = vmatpush1.bf16.msra.mxu0 %v16786_v15  ;;  %v13773_v15 = vcombine.low %v122_v9, %v126_v10  ;;  %v16815_v10 = vld [vmem:[%s22319_s1 + $0x140] sm:$0xff]  }
  0x2f   :  { %1449 = vmatprep.subr.bf16.mxu0 %v22332_v0 }
  0x32   :  { %1450 = vmatpush1.bf16.msra.mxu0 %v16787_v16  ;;  %v13782_v16 = vcombine.high %v130_v13, %v134_v14 }
  0x33   :  { %1451 = vmatprep.subr.bf16.mxu0 %v22332_v0 }
  0x36   :  { %1452 = vmatpush1.bf16.msra.mxu0 %v16788_v17  ;;  %v138_v17 = vld [vmem:[%s22320_s0 + $0x300] sm:$0xff] }
  0x37   :  { %1453 = vmatprep.subr.bf16.mxu0 %v22332_v0 }
  0x3a   :  { %1454 = vmatpush1.bf16.msra.mxu0 %v16789_v18  ;;  %v142_v18 = vld [vmem:[%s22320_s0 + $0x320] sm:$0xff] }
  0x3b   :  { %1455 = vmatprep.subr.bf16.mxu0 %v22332_v0  ;;  %v13790_v20 = vcombine.high %v138_v17, %v142_v18 }
  0x3e   :  { %1456 = vmatpush1.bf16.msra.mxu0 %v16790_v19  ;;  %v13781_v19 = vcombine.low %v130_v13, %v134_v14  ;;  %v95_v13 = vld [vmem:[%s22320_s0 + $0x1a8] sm:$0xff] }
  0x3f   :  { %1602 = vmatprep.subr.bf16.mxu0 %v22332_v0 }
  0x41   :  { %1458 = vmatmul.mubr.bf16.vlgmr.msra.gmra.mrb[0].mxu0 %v13693_v23  ;;  %v13789_v23 = vcombine.low %v138_v17, %v142_v18  ;;  %v16818_v17 = vld [vmem:[%s22319_s1 + $0x158] sm:$0xff]   ;;  %v99_v18 = vld [vmem:[%s22320_s0 + $0x1c8] sm:$0xff] }
  0x42   :  { %1465 = vmatprep.mubr.bf16.mxu0 %v13702_v24  ;;  %1603 = vmatpush1.bf16.msra.mxu0 %v16791_v22  ;;  %v150_v22 = vld [vmem:[%s22320_s0 + $0x360] sm:$0xff] }
  0x43   :  { %1604 = vmatprep.subr.bf16.mxu0 %v22332_v0  ;;  %v13798_v24 = vcombine.high %v146_v21, %v150_v22  ;;  %v13797_v27 = vcombine.low %v146_v21, %v150_v22  ;;  %v16819_v22 = vld [vmem:[%s22319_s1 + $0x160] sm:$0xff]  }
  0x46   :  { %1605 = vmatpush1.bf16.msra.mxu0 %v16792_v25  ;;  %v154_v25 = vld [vmem:[%s22320_s0 + $0x380] sm:$0xff] }
  0x47   :  { %1606 = vmatprep.subr.bf16.mxu0 %v22332_v0 }
  0x49   :  { %1466 = vmatmul.mubr.bf16.gmra.mrb[4].mxu0 %v13701_v28  ;;  %v13806_v28 = vcombine.high %v154_v25, %v158_v26 }
  0x4a   :  { %1473 = vmatprep.mubr.bf16.mxu0 %v13710_v29  ;;  %1607 = vmatpush1.bf16.msra.mxu0 %v16793_v30  ;;  %v162_v29 = vld [vmem:[%s22320_s0 + $0x3c0] sm:$0xff] }
  0x4b   :  { %1608 = vmatprep.subr.bf16.mxu0 %v22332_v0  ;;  %v166_v30 = vld [vmem:[%s22320_s0 + $0x3e0] sm:$0xff] }
  0x4c   :  { %v13814_v32 = vcombine.high %v162_v29, %v166_v30 }
  0x4e   :  { %1609 = vmatpush1.bf16.msra.mxu0 %v16794_v31  ;;  %v13805_v31 = vcombine.low %v154_v25, %v158_v26  ;;  %v111_v25 = vld [vmem:[%s22320_s0 + $0x228] sm:$0xff] }
  0x4f   :  { %1610 = vmatprep.subr.bf16.mxu0 %v22332_v0 }
  0x51   :  { %1474 = vmatmul.mubr.bf16.gmra.mrb[8].mxu0 %v13709_v34  ;;  %v174_v34 = vld [vmem:[%s22320_s0 + $0x420] sm:$0xff] }
  0x52   :  { %1481 = vmatprep.mubr.bf16.mxu0 %v13718_v35  ;;  %1611 = vmatpush1.bf16.msra.mxu0 %v16795_v36  ;;  %v13813_v35 = vcombine.low %v162_v29, %v166_v30  ;;  %v13822_v36 = vcombine.high %v170_v33, %v174_v34  ;;  %v13821_v39 = vcombine.low %v170_v33, %v174_v34  ;;  %v16822_v29 = vld [vmem:[%s22319_s1 + $0x178] sm:$0xff]   ;;  %v115_v30 = vld [vmem:[%s22320_s0 + $0x248] sm:$0xff] }
  0x53   :  { %1612 = vmatprep.subr.bf16.mxu0 %v22332_v0  ;;  %v123_v34 = vld [vmem:[%s22320_s0 + $0x288] sm:$0xff] }
  0x56   :  { %1613 = vmatpush1.bf16.msra.mxu0 %v16796_v37  ;;  %v178_v37 = vld [vmem:[%s22320_s0 + $0x440] sm:$0xff] }
  0x57   :  { %1614 = vmatprep.subr.bf16.mxu0 %v22332_v0 }
  0x59   :  { %1482 = vmatmul.mubr.bf16.gmra.mrb[12].mxu0 %v13717_v40  ;;  %v13830_v40 = vcombine.high %v178_v37, %v182_v38 }
  0x5a   :  { %1489 = vmatprep.mubr.bf16.mxu0 %v13726_v41  ;;  %1615 = vmatpush1.bf16.msra.mxu0 %v16797_v42  ;;  %v43_v41 = vld [vmem:[%s22320_s0 + $0x8] sm:$0xff] }
  0x5b   :  { %1616 = vmatprep.subr.bf16.mxu0 %v22332_v0  ;;  %v47_v42 = vld [vmem:[%s22320_s0 + $0x28] sm:$0xff] }
  0x5c   :  { %v13696_v44 = vcombine.high %v43_v41, %v47_v42 }
  0x5e   :  { %1617 = vmatpush1.bf16.msra.mxu0 %v16798_v43  ;;  %v13829_v43 = vcombine.low %v178_v37, %v182_v38  ;;  %v131_v38 = vld [vmem:[%s22320_s0 + $0x2c8] sm:$0xff] }
  0x5f   :  { %1618 = vmatprep.subr.bf16.mxu0 %v22332_v0 }
  0x61   :  { %1490 = vmatmul.mubr.bf16.gmra.mrb[16].mxu0 %v13725_v46  ;;  %v55_v46 = vld [vmem:[%s22320_s0 + $0x68] sm:$0xff] }
  0x62   :  { %1497 = vmatprep.mubr.bf16.mxu0 %v13734_v47  ;;  %1619 = vmatpush1.bf16.msra.mxu0 %v16799_v48  ;;  %v13695_v47 = vcombine.low %v43_v41, %v47_v42  ;;  %v13704_v48 = vcombine.high %v51_v45, %v55_v46  ;;  %v139_v42 = vld [vmem:[%s22320_s0 + $0x308] sm:$0xff] }
  0x63   :  { %1620 = vmatprep.subr.bf16.mxu0 %v22332_v0 }
  0x66   :  { %1621 = vmatpush1.bf16.msra.mxu0 %v16800_v49  ;;  %v16807_v49 = vld [vmem:[%s22319_s1 + $0x100] sm:$0xff]  }
  0x67   :  { %1622 = vmatprep.subr.bf16.mxu0 %v22332_v0 }
  0x69   :  { %1498 = vmatmul.mubr.bf16.gmra.mrb[20].mxu0 %v13733_v52  ;;  %v63_v52 = vld [vmem:[%s22320_s0 + $0xa8] sm:$0xff] }
  0x6a   :  { %1505 = vmatprep.mubr.bf16.mxu0 %v13742_v53  ;;  %1623 = vmatpush1.bf16.msra.mxu0 %v16801_v54  ;;  %v13703_v53 = vcombine.low %v51_v45, %v55_v46  ;;  %v13712_v54 = vcombine.high %v59_v51, %v63_v52  ;;  %v147_v46 = vld [vmem:[%s22320_s0 + $0x348] sm:$0xff] }
  0x6b   :  { %1624 = vmatprep.subr.bf16.mxu0 %v22332_v0 }
  0x6e   :  { %1625 = vmatpush1.bf16.msra.mxu0 %v16802_v55  ;;  %v16809_v55 = vld [vmem:[%s22319_s1 + $0x110] sm:$0xff]  }
  0x6f   :  { %1626 = vmatprep.subr.bf16.mxu0 %v22332_v0 }
  0x71   :  { %1506 = vmatmul.mubr.bf16.gmra.mrb[24].mxu0 %v13741_v58  ;;  %v71_v58 = vld [vmem:[%s22320_s0 + $0xe8] sm:$0xff] }
  0x72   :  { %1513 = vmatprep.mubr.bf16.mxu0 %v13750_v59  ;;  %1627 = vmatpush1.bf16.msra.mxu0 %v16803_v60  ;;  %v13711_v59 = vcombine.low %v59_v51, %v63_v52  ;;  %v13720_v60 = vcombine.high %v67_v57, %v71_v58  ;;  %v159_v51 = vld [vmem:[%s22320_s0 + $0x3a8] sm:$0xff] }
  0x73   :  { %1628 = vmatprep.subr.bf16.mxu0 %v22332_v0 }
  0x76   :  { %1629 = vmatpush1.bf16.msra.mxu0 %v16804_v61  ;;  %v16811_v61 = vld [vmem:[%s22319_s1 + $0x120] sm:$0xff]  }
  0x77   :  { %1630 = vmatprep.subr.bf16.mxu0 %v22332_v0 }
  0x79   :  { %1514 = vmatmul.mubr.bf16.gmra.mrb[28].mxu0 %v13749_v1  ;;  %v79_v1 = vld [vmem:[%s22320_s0 + $0x128] sm:$0xff] }
  0x7a   :  { %1521 = vmatprep.mubr.bf16.mxu0 %v13758_v2  ;;  %1631 = vmatpush1.bf16.msra.mxu0 %v16805_v3  ;;  %v13719_v2 = vcombine.low %v67_v57, %v71_v58  ;;  %v13728_v3 = vcombine.high %v75_v63, %v79_v1  ;;  %v171_v58 = vld [vmem:[%s22320_s0 + $0x408] sm:$0xff] }
  0x7b   :  { %1632 = vmatprep.subr.bf16.mxu0 %v22332_v0 }
  0x7e   :  { %1633 = vmatpush1.bf16.msra.mxu0 %v16806_v4  ;;  %v16813_v4 = vld [vmem:[%s22319_s1 + $0x130] sm:$0xff]  }
  0x7f   :  { %1779 = vmatprep.subr.bf16.mxu0 %v22332_v0 }
  0x81   :  { %1522 = vmatmul.mubr.bf16.gmra.mrb[32].mxu0 %v13757_v7  ;;  %v87_v7 = vld [vmem:[%s22320_s0 + $0x168] sm:$0xff] }
  0x82   :  { %1529 = vmatprep.mubr.bf16.mxu0 %v13766_v8  ;;  %v13727_v8 = vcombine.low %v75_v63, %v79_v1  ;;  %v13736_v9 = vcombine.high %v83_v6, %v87_v7  ;;  %v13735_v14 = vcombine.low %v83_v6, %v87_v7  ;;  %v183_v63 = vld [vmem:[%s22320_s0 + $0x468] sm:$0xff]  ;;  %v52_v7 = vld [vmem:[%s22320_s0 + $0x50] sm:$0xff] }
  0x89   :  { %1530 = vmatmul.mubr.bf16.gmra.mrb[36].mxu0 %v13765_v11  ;;  %v16816_v11 = vld [vmem:[%s22319_s1 + $0x148] sm:$0xff]  }
  0x8a   :  { %1537 = vmatprep.mubr.bf16.mxu0 %v13774_v12  ;;  %v91_v12 = vld [vmem:[%s22320_s0 + $0x188] sm:$0xff] }
  0x91   :  { %1538 = vmatmul.mubr.bf16.gmra.mrb[40].mxu0 %v13773_v15  ;;  %v13744_v15 = vcombine.high %v91_v12, %v95_v13 }
  0x92   :  { %1545 = vmatprep.mubr.bf16.mxu0 %v13782_v16  ;;  %v16817_v16 = vld [vmem:[%s22319_s1 + $0x150] sm:$0xff]  }
  0x99   :  { %1546 = vmatmul.mubr.bf16.gmra.mrb[44].mxu0 %v13781_v19  ;;  %v103_v19 = vld [vmem:[%s22320_s0 + $0x1e8] sm:$0xff] }
  0x9a   :  { %1553 = vmatprep.mubr.bf16.mxu0 %v13790_v20  ;;  %v13743_v20 = vcombine.low %v91_v12, %v95_v13  ;;  %v13752_v21 = vcombine.high %v99_v18, %v103_v19  ;;  %v13751_v26 = vcombine.low %v99_v18, %v103_v19  ;;  %v16824_v12 = vld [vmem:[%s22319_s1 + $0x188] sm:$0xff]   ;;  %v60_v13 = vld [vmem:[%s22320_s0 + $0x90] sm:$0xff]  ;;  %v16826_v18 = vld [vmem:[%s22319_s1 + $0x198] sm:$0xff]  }
  0x9b   :  { %v68_v19 = vld [vmem:[%s22320_s0 + $0xd0] sm:$0xff] }
  0xa1   :  { %1554 = vmatmul.mubr.bf16.gmra.mrb[48].mxu0 %v13789_v23  ;;  %v16820_v23 = vld [vmem:[%s22319_s1 + $0x168] sm:$0xff]  }
  0xa2   :  { %1561 = vmatprep.mubr.bf16.mxu0 %v13798_v24  ;;  %v107_v24 = vld [vmem:[%s22320_s0 + $0x208] sm:$0xff] }
  0xa9   :  { %1562 = vmatmul.mubr.bf16.gmra.mrb[52].mxu0 %v13797_v27  ;;  %v13760_v27 = vcombine.high %v107_v24, %v111_v25 }
  0xaa   :  { %1569 = vmatprep.mubr.bf16.mxu0 %v13806_v28  ;;  %v16821_v28 = vld [vmem:[%s22319_s1 + $0x170] sm:$0xff]  }
  0xb1   :  { %1570 = vmatmul.mubr.bf16.gmra.mrb[56].mxu0 %v13805_v31  ;;  %v119_v31 = vld [vmem:[%s22320_s0 + $0x268] sm:$0xff] }
  0xb2   :  { %1577 = vmatprep.mubr.bf16.mxu0 %v13814_v32  ;;  %v13759_v32 = vcombine.low %v107_v24, %v111_v25  ;;  %v13768_v33 = vcombine.high %v115_v30, %v119_v31  ;;  %v16828_v24 = vld [vmem:[%s22319_s1 + $0x1a8] sm:$0xff]   ;;  %v76_v25 = vld [vmem:[%s22320_s0 + $0x110] sm:$0xff] }
  0xb9   :  { %1578 = vmatmul.mubr.bf16.gmra.mrb[60].mxu0 %v13813_v35  ;;  %v127_v35 = vld [vmem:[%s22320_s0 + $0x2a8] sm:$0xff] }
  0xba   :  { %1585 = vmatprep.mubr.bf16.mxu0 %v13822_v36  ;;  %v13767_v36 = vcombine.low %v115_v30, %v119_v31  ;;  %v13776_v37 = vcombine.high %v123_v34, %v127_v35  ;;  %v16830_v30 = vld [vmem:[%s22319_s1 + $0x1b8] sm:$0xff]   ;;  %v84_v31 = vld [vmem:[%s22320_s0 + $0x150] sm:$0xff] }
  0xc1   :  { %1586 = vmatmul.mubr.bf16.gmra.mrb[64].mxu0 %v13821_v39  ;;  %v135_v39 = vld [vmem:[%s22320_s0 + $0x2e8] sm:$0xff] }
  0xc2   :  { %1593 = vmatprep.mubr.bf16.mxu0 %v13830_v40  ;;  %v13775_v40 = vcombine.low %v123_v34, %v127_v35  ;;  %v13784_v41 = vcombine.high %v131_v38, %v135_v39  ;;  %v16831_v35 = vld [vmem:[%s22319_s1 + $0x1c0] sm:$0xff]  }
  0xc9   :  { %1594 = vmatmul.mubr.bf16.gmra.mrb[68].mxu0 %v13829_v43  ;;  %v143_v43 = vld [vmem:[%s22320_s0 + $0x328] sm:$0xff] }
  0xca   :  { %1634 = vmatprep.mubr.bf16.mxu0 %v13696_v44  ;;  %v13783_v44 = vcombine.low %v131_v38, %v135_v39  ;;  %v13792_v45 = vcombine.high %v139_v42, %v143_v43  ;;  %v96_v38 = vld [vmem:[%s22320_s0 + $0x1b0] sm:$0xff] }
  0xd1   :  { %1635 = vmatmul.mubr.bf16.vlgmr.msra.gmra.mrb[0].mxu0 %v13695_v47  ;;  %v151_v47 = vld [vmem:[%s22320_s0 + $0x368] sm:$0xff] }
  0xd2   :  { %1642 = vmatprep.mubr.bf16.mxu0 %v13704_v48  ;;  %1780 = vmatpush1.bf16.msra.mxu0 %v16807_v49  ;;  %v13791_v48 = vcombine.low %v139_v42, %v143_v43  ;;  %v13800_v49 = vcombine.high %v147_v46, %v151_v47  ;;  %v13799_v52 = vcombine.low %v147_v46, %v151_v47  ;;  %v16834_v42 = vld [vmem:[%s22319_s1 + $0x1d8] sm:$0xff]   ;;  %v100_v43 = vld [vmem:[%s22320_s0 + $0x1d0] sm:$0xff]  ;;  %v16835_v47 = vld [vmem:[%s22319_s1 + $0x1e0] sm:$0xff]  }
  0xd3   :  { %1781 = vmatprep.subr.bf16.mxu0 %v22332_v0 }
  0xd6   :  { %1782 = vmatpush1.bf16.msra.mxu0 %v16808_v50  ;;  %v155_v50 = vld [vmem:[%s22320_s0 + $0x388] sm:$0xff] }
  0xd7   :  { %1783 = vmatprep.subr.bf16.mxu0 %v22332_v0 }
  0xd9   :  { %1643 = vmatmul.mubr.bf16.gmra.mrb[4].mxu0 %v13703_v53  ;;  %v13808_v53 = vcombine.high %v155_v50, %v159_v51 }
  0xda   :  { %1650 = vmatprep.mubr.bf16.mxu0 %v13712_v54  ;;  %1784 = vmatpush1.bf16.msra.mxu0 %v16809_v55  ;;  %v163_v54 = vld [vmem:[%s22320_s0 + $0x3c8] sm:$0xff] }
  0xdb   :  { %1785 = vmatprep.subr.bf16.mxu0 %v22332_v0  ;;  %v167_v55 = vld [vmem:[%s22320_s0 + $0x3e8] sm:$0xff] }
  0xdc   :  { %v13816_v57 = vcombine.high %v163_v54, %v167_v55 }
  0xde   :  { %1786 = vmatpush1.bf16.msra.mxu0 %v16810_v56  ;;  %v13807_v56 = vcombine.low %v155_v50, %v159_v51  ;;  %v112_v50 = vld [vmem:[%s22320_s0 + $0x230] sm:$0xff] }
  0xdf   :  { %1787 = vmatprep.subr.bf16.mxu0 %v22332_v0 }
  0xe1   :  { %1651 = vmatmul.mubr.bf16.gmra.mrb[8].mxu0 %v13711_v59  ;;  %v175_v59 = vld [vmem:[%s22320_s0 + $0x428] sm:$0xff] }
  0xe2   :  { %1658 = vmatprep.mubr.bf16.mxu0 %v13720_v60  ;;  %1788 = vmatpush1.bf16.msra.mxu0 %v16811_v61  ;;  %v13815_v60 = vcombine.low %v163_v54, %v167_v55  ;;  %v13824_v61 = vcombine.high %v171_v58, %v175_v59  ;;  %v13823_v1 = vcombine.low %v171_v58, %v175_v59  ;;  %v16838_v54 = vld [vmem:[%s22319_s1 + $0x1f8] sm:$0xff]   ;;  %v116_v55 = vld [vmem:[%s22320_s0 + $0x250] sm:$0xff] }
  0xe3   :  { %1789 = vmatprep.subr.bf16.mxu0 %v22332_v0  ;;  %v124_v59 = vld [vmem:[%s22320_s0 + $0x290] sm:$0xff] }
  0xe6   :  { %1790 = vmatpush1.bf16.msra.mxu0 %v16812_v62  ;;  %v179_v62 = vld [vmem:[%s22320_s0 + $0x448] sm:$0xff] }
  0xe7   :  { %1791 = vmatprep.subr.bf16.mxu0 %v22332_v0 }
  0xe9   :  { %1659 = vmatmul.mubr.bf16.gmra.mrb[12].mxu0 %v13719_v2  ;;  %v13832_v2 = vcombine.high %v179_v62, %v183_v63 }
  0xea   :  { %1666 = vmatprep.mubr.bf16.mxu0 %v13728_v3  ;;  %1792 = vmatpush1.bf16.msra.mxu0 %v16813_v4  ;;  %v44_v3 = vld [vmem:[%s22320_s0 + $0x10] sm:$0xff] }
  0xeb   :  { %1793 = vmatprep.subr.bf16.mxu0 %v22332_v0  ;;  %v48_v4 = vld [vmem:[%s22320_s0 + $0x30] sm:$0xff] }
  0xec   :  { %v13698_v6 = vcombine.high %v44_v3, %v48_v4 }
  0xee   :  { %1794 = vmatpush1.bf16.msra.mxu0 %v16814_v5  ;;  %v13831_v5 = vcombine.low %v179_v62, %v183_v63  ;;  %v132_v63 = vld [vmem:[%s22320_s0 + $0x2d0] sm:$0xff] }
  0xef   :  { %1795 = vmatprep.subr.bf16.mxu0 %v22332_v0 }
  0xf1   :  { %1667 = vmatmul.mubr.bf16.gmra.mrb[16].mxu0 %v13727_v8  ;;  %v56_v8 = vld [vmem:[%s22320_s0 + $0x70] sm:$0xff] }
  0xf2   :  { %1674 = vmatprep.mubr.bf16.mxu0 %v13736_v9  ;;  %1796 = vmatpush1.bf16.msra.mxu0 %v16815_v10  ;;  %v13697_v9 = vcombine.low %v44_v3, %v48_v4  ;;  %v13706_v10 = vcombine.high %v52_v7, %v56_v8  ;;  %v140_v4 = vld [vmem:[%s22320_s0 + $0x310] sm:$0xff] }
  0xf3   :  { %1797 = vmatprep.subr.bf16.mxu0 %v22332_v0 }
  0xf6   :  { %1798 = vmatpush1.bf16.msra.mxu0 %v16816_v11  ;;  %v16823_v11 = vld [vmem:[%s22319_s1 + $0x180] sm:$0xff]  }
  0xf7   :  { %1799 = vmatprep.subr.bf16.mxu0 %v22332_v0 }
  0xf9   :  { %1675 = vmatmul.mubr.bf16.gmra.mrb[20].mxu0 %v13735_v14  ;;  %v64_v14 = vld [vmem:[%s22320_s0 + $0xb0] sm:$0xff] }
  0xfa   :  { %1682 = vmatprep.mubr.bf16.mxu0 %v13744_v15  ;;  %1800 = vmatpush1.bf16.msra.mxu0 %v16817_v16  ;;  %v13705_v15 = vcombine.low %v52_v7, %v56_v8  ;;  %v13714_v16 = vcombine.high %v60_v13, %v64_v14  ;;  %v148_v8 = vld [vmem:[%s22320_s0 + $0x350] sm:$0xff] }
  0xfb   :  { %1801 = vmatprep.subr.bf16.mxu0 %v22332_v0 }
  0xfe   :  { %1802 = vmatpush1.bf16.msra.mxu0 %v16818_v17  ;;  %v16825_v17 = vld [vmem:[%s22319_s1 + $0x190] sm:$0xff]  }
  0xff   :  { %1803 = vmatprep.subr.bf16.mxu0 %v22332_v0 }
 0x101   :  { %1683 = vmatmul.mubr.bf16.gmra.mrb[24].mxu0 %v13743_v20  ;;  %v72_v20 = vld [vmem:[%s22320_s0 + $0xf0] sm:$0xff] }
 0x102   :  { %1690 = vmatprep.mubr.bf16.mxu0 %v13752_v21  ;;  %1804 = vmatpush1.bf16.msra.mxu0 %v16819_v22  ;;  %v13713_v21 = vcombine.low %v60_v13, %v64_v14  ;;  %v13722_v22 = vcombine.high %v68_v19, %v72_v20  ;;  %v160_v13 = vld [vmem:[%s22320_s0 + $0x3b0] sm:$0xff] }
 0x103   :  { %1805 = vmatprep.subr.bf16.mxu0 %v22332_v0 }
 0x106   :  { %1806 = vmatpush1.bf16.msra.mxu0 %v16820_v23  ;;  %v16827_v23 = vld [vmem:[%s22319_s1 + $0x1a0] sm:$0xff]  }
 0x107   :  { %1807 = vmatprep.subr.bf16.mxu0 %v22332_v0 }
 0x109   :  { %1691 = vmatmul.mubr.bf16.gmra.mrb[28].mxu0 %v13751_v26  ;;  %v80_v26 = vld [vmem:[%s22320_s0 + $0x130] sm:$0xff] }
 0x10a   :  { %1698 = vmatprep.mubr.bf16.mxu0 %v13760_v27  ;;  %1808 = vmatpush1.bf16.msra.mxu0 %v16821_v28  ;;  %v13721_v27 = vcombine.low %v68_v19, %v72_v20  ;;  %v13730_v28 = vcombine.high %v76_v25, %v80_v26  ;;  %v172_v20 = vld [vmem:[%s22320_s0 + $0x410] sm:$0xff] }
 0x10b   :  { %1809 = vmatprep.subr.bf16.mxu0 %v22332_v0 }
 0x10e   :  { %1810 = vmatpush1.bf16.msra.mxu0 %v16822_v29  ;;  %v16829_v29 = vld [vmem:[%s22319_s1 + $0x1b0] sm:$0xff]  }
 0x10f   :  { %1956 = vmatprep.subr.bf16.mxu0 %v22332_v0 }
 0x111   :  { %1699 = vmatmul.mubr.bf16.gmra.mrb[32].mxu0 %v13759_v32  ;;  %v88_v32 = vld [vmem:[%s22320_s0 + $0x170] sm:$0xff] }
 0x112   :  { %1706 = vmatprep.mubr.bf16.mxu0 %v13768_v33  ;;  %v13729_v33 = vcombine.low %v76_v25, %v80_v26  ;;  %v13738_v34 = vcombine.high %v84_v31, %v88_v32  ;;  %v13737_v39 = vcombine.low %v84_v31, %v88_v32  ;;  %v184_v25 = vld [vmem:[%s22320_s0 + $0x470] sm:$0xff]  ;;  %v53_v32 = vld [vmem:[%s22320_s0 + $0x58] sm:$0xff] }
 0x119   :  { %1707 = vmatmul.mubr.bf16.gmra.mrb[36].mxu0 %v13767_v36  ;;  %v16832_v36 = vld [vmem:[%s22319_s1 + $0x1c8] sm:$0xff]  }
 0x11a   :  { %1714 = vmatprep.mubr.bf16.mxu0 %v13776_v37  ;;  %v92_v37 = vld [vmem:[%s22320_s0 + $0x190] sm:$0xff] }
 0x121   :  { %1715 = vmatmul.mubr.bf16.gmra.mrb[40].mxu0 %v13775_v40  ;;  %v13746_v40 = vcombine.high %v92_v37, %v96_v38 }
 0x122   :  { %1722 = vmatprep.mubr.bf16.mxu0 %v13784_v41  ;;  %v16833_v41 = vld [vmem:[%s22319_s1 + $0x1d0] sm:$0xff]  }
 0x129   :  { %1723 = vmatmul.mubr.bf16.gmra.mrb[44].mxu0 %v13783_v44  ;;  %v104_v44 = vld [vmem:[%s22320_s0 + $0x1f0] sm:$0xff] }
 0x12a   :  { %1730 = vmatprep.mubr.bf16.mxu0 %v13792_v45  ;;  %v13745_v45 = vcombine.low %v92_v37, %v96_v38  ;;  %v13754_v46 = vcombine.high %v100_v43, %v104_v44  ;;  %v13753_v51 = vcombine.low %v100_v43, %v104_v44  ;;  %v65_v37 = vld [vmem:[%s22320_s0 + $0xb8] sm:$0xff] }
 0x12b   :  { %v77_v44 = vld [vmem:[%s22320_s0 + $0x118] sm:$0xff] }
 0x131   :  { %1731 = vmatmul.mubr.bf16.gmra.mrb[48].mxu0 %v13791_v48  ;;  %v16836_v48 = vld [vmem:[%s22319_s1 + $0x1e8] sm:$0xff]  }
 0x132   :  { %1738 = vmatprep.mubr.bf16.mxu0 %v13800_v49  ;;  %v108_v49 = vld [vmem:[%s22320_s0 + $0x210] sm:$0xff] }
 0x139   :  { %1739 = vmatmul.mubr.bf16.gmra.mrb[52].mxu0 %v13799_v52  ;;  %v13762_v52 = vcombine.high %v108_v49, %v112_v50 }
 0x13a   :  { %1746 = vmatprep.mubr.bf16.mxu0 %v13808_v53  ;;  %v16837_v53 = vld [vmem:[%s22319_s1 + $0x1f0] sm:$0xff]  }
 0x141   :  { %1747 = vmatmul.mubr.bf16.gmra.mrb[56].mxu0 %v13807_v56  ;;  %v120_v56 = vld [vmem:[%s22320_s0 + $0x270] sm:$0xff] }
 0x142   :  { %1754 = vmatprep.mubr.bf16.mxu0 %v13816_v57  ;;  %v13761_v57 = vcombine.low %v108_v49, %v112_v50  ;;  %v13770_v58 = vcombine.high %v116_v55, %v120_v56  ;;  %v89_v49 = vld [vmem:[%s22320_s0 + $0x178] sm:$0xff] }
 0x149   :  { %1755 = vmatmul.mubr.bf16.gmra.mrb[60].mxu0 %v13815_v60  ;;  %v128_v60 = vld [vmem:[%s22320_s0 + $0x2b0] sm:$0xff] }
 0x14a   :  { %1762 = vmatprep.mubr.bf16.mxu0 %v13824_v61  ;;  %v13769_v61 = vcombine.low %v116_v55, %v120_v56  ;;  %v13778_v62 = vcombine.high %v124_v59, %v128_v60  ;;  %v101_v56 = vld [vmem:[%s22320_s0 + $0x1d8] sm:$0xff] }
 0x151   :  { %1763 = vmatmul.mubr.bf16.gmra.mrb[64].mxu0 %v13823_v1  ;;  %v136_v1 = vld [vmem:[%s22320_s0 + $0x2f0] sm:$0xff] }
 0x152   :  { %1770 = vmatprep.mubr.bf16.mxu0 %v13832_v2  ;;  %v13777_v2 = vcombine.low %v124_v59, %v128_v60  ;;  %v13786_v3 = vcombine.high %v132_v63, %v136_v1  ;;  %v109_v60 = vld [vmem:[%s22320_s0 + $0x218] sm:$0xff] }
 0x159   :  { %1771 = vmatmul.mubr.bf16.gmra.mrb[68].mxu0 %v13831_v5  ;;  %v144_v5 = vld [vmem:[%s22320_s0 + $0x330] sm:$0xff] }
 0x15a   :  { %1811 = vmatprep.mubr.bf16.mxu0 %v13698_v6  ;;  %v13785_v6 = vcombine.low %v132_v63, %v136_v1  ;;  %v13794_v7 = vcombine.high %v140_v4, %v144_v5  ;;  %v117_v1 = vld [vmem:[%s22320_s0 + $0x258] sm:$0xff] }
 0x161   :  { %1812 = vmatmul.mubr.bf16.vlgmr.msra.gmra.mrb[0].mxu0 %v13697_v9  ;;  %v152_v9 = vld [vmem:[%s22320_s0 + $0x370] sm:$0xff] }
 0x162   :  { %1819 = vmatprep.mubr.bf16.mxu0 %v13706_v10  ;;  %1957 = vmatpush1.bf16.msra.mxu0 %v16823_v11  ;;  %v13793_v10 = vcombine.low %v140_v4, %v144_v5  ;;  %v13802_v11 = vcombine.high %v148_v8, %v152_v9  ;;  %v13801_v14 = vcombine.low %v148_v8, %v152_v9  ;;  %v125_v5 = vld [vmem:[%s22320_s0 + $0x298] sm:$0xff] }
 0x163   :  { %1958 = vmatprep.subr.bf16.mxu0 %v22332_v0  ;;  %v133_v9 = vld [vmem:[%s22320_s0 + $0x2d8] sm:$0xff] }
 0x166   :  { %1959 = vmatpush1.bf16.msra.mxu0 %v16824_v12  ;;  %v156_v12 = vld [vmem:[%s22320_s0 + $0x390] sm:$0xff] }
 0x167   :  { %1960 = vmatprep.subr.bf16.mxu0 %v22332_v0 }
 0x169   :  { %1820 = vmatmul.mubr.bf16.gmra.mrb[4].mxu0 %v13705_v15  ;;  %v13810_v15 = vcombine.high %v156_v12, %v160_v13 }
 0x16a   :  { %1827 = vmatprep.mubr.bf16.mxu0 %v13714_v16  ;;  %1961 = vmatpush1.bf16.msra.mxu0 %v16825_v17  ;;  %v164_v16 = vld [vmem:[%s22320_s0 + $0x3d0] sm:$0xff] }
 0x16b   :  { %1962 = vmatprep.subr.bf16.mxu0 %v22332_v0  ;;  %v168_v17 = vld [vmem:[%s22320_s0 + $0x3f0] sm:$0xff] }
 0x16c   :  { %v13818_v19 = vcombine.high %v164_v16, %v168_v17 }
 0x16e   :  { %1963 = vmatpush1.bf16.msra.mxu0 %v16826_v18  ;;  %v13809_v18 = vcombine.low %v156_v12, %v160_v13  ;;  %v141_v13 = vld [vmem:[%s22320_s0 + $0x318] sm:$0xff] }
 0x16f   :  { %1964 = vmatprep.subr.bf16.mxu0 %v22332_v0 }
 0x171   :  { %1828 = vmatmul.mubr.bf16.gmra.mrb[8].mxu0 %v13713_v21  ;;  %v176_v21 = vld [vmem:[%s22320_s0 + $0x430] sm:$0xff] }
 0x172   :  { %1835 = vmatprep.mubr.bf16.mxu0 %v13722_v22  ;;  %1965 = vmatpush1.bf16.msra.mxu0 %v16827_v23  ;;  %v13817_v22 = vcombine.low %v164_v16, %v168_v17  ;;  %v13826_v23 = vcombine.high %v172_v20, %v176_v21  ;;  %v13825_v26 = vcombine.low %v172_v20, %v176_v21  ;;  %v149_v17 = vld [vmem:[%s22320_s0 + $0x358] sm:$0xff] }
 0x173   :  { %1966 = vmatprep.subr.bf16.mxu0 %v22332_v0  ;;  %v157_v21 = vld [vmem:[%s22320_s0 + $0x398] sm:$0xff] }
 0x176   :  { %1967 = vmatpush1.bf16.msra.mxu0 %v16828_v24  ;;  %v180_v24 = vld [vmem:[%s22320_s0 + $0x450] sm:$0xff] }
 0x177   :  { %1968 = vmatprep.subr.bf16.mxu0 %v22332_v0 }
 0x179   :  { %1836 = vmatmul.mubr.bf16.gmra.mrb[12].mxu0 %v13721_v27  ;;  %v13834_v27 = vcombine.high %v180_v24, %v184_v25 }
 0x17a   :  { %1843 = vmatprep.mubr.bf16.mxu0 %v13730_v28  ;;  %1969 = vmatpush1.bf16.msra.mxu0 %v16829_v29  ;;  %v45_v28 = vld [vmem:[%s22320_s0 + $0x18] sm:$0xff] }
 0x17b   :  { %1970 = vmatprep.subr.bf16.mxu0 %v22332_v0  ;;  %v49_v29 = vld [vmem:[%s22320_s0 + $0x38] sm:$0xff] }
 0x17c   :  { %v13700_v31 = vcombine.high %v45_v28, %v49_v29 }
 0x17e   :  { %1971 = vmatpush1.bf16.msra.mxu0 %v16830_v30  ;;  %v13833_v30 = vcombine.low %v180_v24, %v184_v25  ;;  %v16839_v25 = vld [vmem:[%s22321_s3 + $0x40] sm:$0xff]  }
 0x17f   :  { %1972 = vmatprep.subr.bf16.mxu0 %v22332_v0 }
 0x181   :  { %1844 = vmatmul.mubr.bf16.gmra.mrb[16].mxu0 %v13729_v33  ;;  %v57_v33 = vld [vmem:[%s22320_s0 + $0x78] sm:$0xff] }
 0x182   :  { %1851 = vmatprep.mubr.bf16.mxu0 %v13738_v34  ;;  %1973 = vmatpush1.bf16.msra.mxu0 %v16831_v35  ;;  %v13699_v34 = vcombine.low %v45_v28, %v49_v29  ;;  %v13708_v35 = vcombine.high %v53_v32, %v57_v33  ;;  %v13707_v38 = vcombine.low %v53_v32, %v57_v33  ;;  %v169_v28 = vld [vmem:[%s22320_s0 + $0x3f8] sm:$0xff]  ;;  %v16840_v29 = vld [vmem:[%s22321_s3 + $0x48] sm:$0xff]   ;;  %v16841_v32 = vld [vmem:[%s22321_s3 + $0x50] sm:$0xff]  }
 0x183   :  { %1974 = vmatprep.subr.bf16.mxu0 %v22332_v0  ;;  %v173_v33 = vld [vmem:[%s22320_s0 + $0x418] sm:$0xff] }
 0x186   :  { %1975 = vmatpush1.bf16.msra.mxu0 %v16832_v36  ;;  %v61_v36 = vld [vmem:[%s22320_s0 + $0x98] sm:$0xff] }
 0x187   :  { %1976 = vmatprep.subr.bf16.mxu0 %v22332_v0 }
 0x189   :  { %1852 = vmatmul.mubr.bf16.gmra.mrb[20].mxu0 %v13737_v39  ;;  %v13716_v39 = vcombine.high %v61_v36, %v65_v37 }
 0x18a   :  { %1859 = vmatprep.mubr.bf16.mxu0 %v13746_v40  ;;  %1977 = vmatpush1.bf16.msra.mxu0 %v16833_v41  ;;  %v69_v40 = vld [vmem:[%s22320_s0 + $0xd8] sm:$0xff] }
 0x18b   :  { %1978 = vmatprep.subr.bf16.mxu0 %v22332_v0  ;;  %v73_v41 = vld [vmem:[%s22320_s0 + $0xf8] sm:$0xff] }
 0x18c   :  { %v13724_v43 = vcombine.high %v69_v40, %v73_v41 }
 0x18e   :  { %1979 = vmatpush1.bf16.msra.mxu0 %v16834_v42  ;;  %v13715_v42 = vcombine.low %v61_v36, %v65_v37 }
 0x18f   :  { %1980 = vmatprep.subr.bf16.mxu0 %v22332_v0 }
 0x191   :  { %1860 = vmatmul.mubr.bf16.gmra.mrb[24].mxu0 %v13745_v45  ;;  %v81_v45 = vld [vmem:[%s22320_s0 + $0x138] sm:$0xff] }
 0x192   :  { %1867 = vmatprep.mubr.bf16.mxu0 %v13754_v46  ;;  %1981 = vmatpush1.bf16.msra.mxu0 %v16835_v47  ;;  %v13723_v46 = vcombine.low %v69_v40, %v73_v41  ;;  %v13732_v47 = vcombine.high %v77_v44, %v81_v45  ;;  %v13731_v50 = vcombine.low %v77_v44, %v81_v45  ;;  %v185_v40 = vld [vmem:[%s22320_s0 + $0x478] sm:$0xff]  ;;  %v16844_v41 = vld [vmem:[%s22321_s3 + $0x68] sm:$0xff]   ;;  %v16845_v44 = vld [vmem:[%s22321_s3 + $0x70] sm:$0xff]  }
 0x193   :  { %1982 = vmatprep.subr.bf16.mxu0 %v22332_v0  ;;  %v16846_v45 = vld [vmem:[%s22321_s3 + $0x78] sm:$0xff]  }
 0x196   :  { %1983 = vmatpush1.bf16.msra.mxu0 %v16836_v48  ;;  %v85_v48 = vld [vmem:[%s22320_s0 + $0x158] sm:$0xff] }
 0x197   :  { %1984 = vmatprep.subr.bf16.mxu0 %v22332_v0 }
 0x199   :  { %1868 = vmatmul.mubr.bf16.gmra.mrb[28].mxu0 %v13753_v51  ;;  %v13740_v51 = vcombine.high %v85_v48, %v89_v49 }
 0x19a   :  { %1875 = vmatprep.mubr.bf16.mxu0 %v13762_v52  ;;  %1985 = vmatpush1.bf16.msra.mxu0 %v16837_v53  ;;  %v93_v52 = vld [vmem:[%s22320_s0 + $0x198] sm:$0xff] }
 0x19b   :  { %1986 = vmatprep.subr.bf16.mxu0 %v22332_v0  ;;  %v97_v53 = vld [vmem:[%s22320_s0 + $0x1b8] sm:$0xff] }
 0x19c   :  { %v13748_v55 = vcombine.high %v93_v52, %v97_v53 }
 0x19e   :  { %1987 = vmatpush1.bf16.msra.mxu0 %v16838_v54  ;;  %v13739_v54 = vcombine.low %v85_v48, %v89_v49 }
 0x1a1   :  { %1876 = vmatmul.mubr.bf16.gmra.mrb[32].mxu0 %v13761_v57  ;;  %v105_v57 = vld [vmem:[%s22320_s0 + $0x1f8] sm:$0xff] }
 0x1a2   :  { %1883 = vmatprep.mubr.bf16.mxu0 %v13770_v58  ;;  %v13747_v58 = vcombine.low %v93_v52, %v97_v53  ;;  %v13756_v59 = vcombine.high %v101_v56, %v105_v57 }
 0x1a9   :  { %1884 = vmatmul.mubr.bf16.gmra.mrb[36].mxu0 %v13769_v61  ;;  %v113_v61 = vld [vmem:[%s22320_s0 + $0x238] sm:$0xff] }
 0x1aa   :  { %1891 = vmatprep.mubr.bf16.mxu0 %v13778_v62  ;;  %v13755_v62 = vcombine.low %v101_v56, %v105_v57  ;;  %v13764_v63 = vcombine.high %v109_v60, %v113_v61 }
 0x1b1   :  { %1892 = vmatmul.mubr.bf16.gmra.mrb[40].mxu0 %v13777_v2  ;;  %v121_v2 = vld [vmem:[%s22320_s0 + $0x278] sm:$0xff] }
 0x1b2   :  { %1899 = vmatprep.mubr.bf16.mxu0 %v13786_v3  ;;  %v13763_v3 = vcombine.low %v109_v60, %v113_v61  ;;  %v13772_v4 = vcombine.high %v117_v1, %v121_v2 }
 0x1b9   :  { %1900 = vmatmul.mubr.bf16.gmra.mrb[44].mxu0 %v13785_v6  ;;  %v129_v6 = vld [vmem:[%s22320_s0 + $0x2b8] sm:$0xff] }
 0x1ba   :  { %1907 = vmatprep.mubr.bf16.mxu0 %v13794_v7  ;;  %v13771_v7 = vcombine.low %v117_v1, %v121_v2  ;;  %v13780_v8 = vcombine.high %v125_v5, %v129_v6 }
 0x1c1   :  { %1908 = vmatmul.mubr.bf16.gmra.mrb[48].mxu0 %v13793_v10  ;;  %v137_v10 = vld [vmem:[%s22320_s0 + $0x2f8] sm:$0xff] }
 0x1c2   :  { %1915 = vmatprep.mubr.bf16.mxu0 %v13802_v11  ;;  %v13779_v11 = vcombine.low %v125_v5, %v129_v6  ;;  %v13788_v12 = vcombine.high %v133_v9, %v137_v10 }
 0x1c9   :  { %1916 = vmatmul.mubr.bf16.gmra.mrb[52].mxu0 %v13801_v14  ;;  %v145_v14 = vld [vmem:[%s22320_s0 + $0x338] sm:$0xff] }
 0x1ca   :  { %1923 = vmatprep.mubr.bf16.mxu0 %v13810_v15  ;;  %v13787_v15 = vcombine.low %v133_v9, %v137_v10  ;;  %v13796_v16 = vcombine.high %v141_v13, %v145_v14 }
 0x1d1   :  { %1924 = vmatmul.mubr.bf16.gmra.mrb[56].mxu0 %v13809_v18  ;;  %v153_v18 = vld [vmem:[%s22320_s0 + $0x378] sm:$0xff] }
 0x1d2   :  { %1931 = vmatprep.mubr.bf16.mxu0 %v13818_v19  ;;  %v13795_v19 = vcombine.low %v141_v13, %v145_v14  ;;  %v13804_v20 = vcombine.high %v149_v17, %v153_v18 }
 0x1d9   :  { %1932 = vmatmul.mubr.bf16.gmra.mrb[60].mxu0 %v13817_v22  ;;  %v161_v22 = vld [vmem:[%s22320_s0 + $0x3b8] sm:$0xff] }
 0x1da   :  { %1939 = vmatprep.mubr.bf16.mxu0 %v13826_v23  ;;  %v13803_v23 = vcombine.low %v149_v17, %v153_v18  ;;  %v13812_v24 = vcombine.high %v157_v21, %v161_v22 }
 0x1e1   :  { %1940 = vmatmul.mubr.bf16.gmra.mrb[64].mxu0 %v13825_v26  ;;  %v17380_v26 = vmov 0.0  }
 0x1e2   :  { %1947 = vmatprep.mubr.bf16.mxu0 %v13834_v27  ;;  %15848 = vmatprep.subr.bf16.mxu1 %v17380_v26  ;;  %v165_v27 = vld [vmem:[%s22320_s0 + $0x3d8] sm:$0xff] }
 0x1e3   :  { %15849 = vmatpush3.bf16.msra.mxu1 %v16839_v25  ;;  %v13819_v36 = vcombine.low %v165_v27, %v169_v28  ;;  %15864 = vmatprep.mubr.msk.bf16.mxu1 %vm17381_vm0, %v17380_v26 }
 0x1e4   :  { %15850 = vmatprep.subr.bf16.mxu1 %v17380_v26 }
 0x1e7   :  { %15851 = vmatpush3.bf16.msra.mxu1 %v16840_v29 }
 0x1e8   :  { %15852 = vmatprep.subr.bf16.mxu1 %v17380_v26 }
 0x1e9   :  { %1948 = vmatmul.mubr.bf16.gmra.mrb[68].mxu0 %v13833_v30  ;;  %v13811_v30 = vcombine.low %v157_v21, %v161_v22 }
 0x1ea   :  { %1988 = vmatprep.mubr.bf16.mxu0 %v13700_v31  ;;  %v13820_v31 = vcombine.high %v165_v27, %v169_v28 }
 0x1eb   :  { %15853 = vmatpush3.bf16.msra.mxu1 %v16841_v32 }
 0x1ec   :  { %15854 = vmatprep.subr.bf16.mxu1 %v17380_v26 }
 0x1f1   :  { %1989 = vmatmul.mubr.bf16.vlgmr.msra.gmra.mrb[0].mxu0 %v13699_v34  ;;  %v177_v34 = vld [vmem:[%s22320_s0 + $0x438] sm:$0xff] }
 0x1f2   :  { %1996 = vmatprep.mubr.bf16.mxu0 %v13708_v35  ;;  %v16842_v35 = vld [vmem:[%s22321_s3 + $0x58] sm:$0xff]   ;;  %v13828_v37 = vcombine.high %v173_v33, %v177_v34 }
 0x1f3   :  { %15855 = vmatpush3.bf16.msra.mxu1 %v16842_v35 }
 0x1f4   :  { %15856 = vmatprep.subr.bf16.mxu1 %v17380_v26 }
 0x1f9   :  { %1997 = vmatmul.mubr.bf16.gmra.mrb[4].mxu0 %v13707_v38  ;;  %v16843_v38 = vld [vmem:[%s22321_s3 + $0x60] sm:$0xff]  }
 0x1fa   :  { %2004 = vmatprep.mubr.bf16.mxu0 %v13716_v39  ;;  %v181_v39 = vld [vmem:[%s22320_s0 + $0x458] sm:$0xff]  ;;  %15857 = vmatpush3.bf16.msra.mxu1 %v16843_v38 }
 0x1fb   :  { %15858 = vmatprep.subr.bf16.mxu1 %v17380_v26 }
 0x1fe   :  { %15859 = vmatpush3.bf16.msra.mxu1 %v16844_v41 }
 0x1ff   :  { %15860 = vmatprep.subr.bf16.mxu1 %v17380_v26 }
 0x201   :  { %2005 = vmatmul.mubr.bf16.gmra.mrb[8].mxu0 %v13715_v42  ;;  %v13827_v42 = vcombine.low %v173_v33, %v177_v34 }
 0x202   :  { %2012 = vmatprep.mubr.bf16.mxu0 %v13724_v43  ;;  %v13836_v43 = vcombine.high %v181_v39, %v185_v40  ;;  %15861 = vmatpush3.bf16.msra.mxu1 %v16845_v44 }
 0x203   :  { %15862 = vmatprep.subr.bf16.mxu1 %v17380_v26 }
 0x206   :  { %15863 = vmatpush3.bf16.msra.mxu1 %v16846_v45  ;;  %v16847_v45 = vld [vmem:[%s22321_s3] sm:$0xff]  }
 0x207   :  { %15884 = vmatprep.subr.bf16.mxu1 %v17380_v26 }
 0x209   :  { %2013 = vmatmul.mubr.bf16.gmra.mrb[12].mxu0 %v13723_v46  ;;  %v13835_v46 = vcombine.low %v181_v39, %v185_v40 }
 0x20a   :  { %2020 = vmatprep.mubr.bf16.mxu0 %v13732_v47  ;;  %v18175_v47 = vld [vmem:[%s22322_s2] ss:$0 sm:$0xff] }
 0x211   :  { %2021 = vmatmul.mubr.bf16.gmra.mrb[16].mxu0 %v13731_v50 }
 0x212   :  { %2028 = vmatprep.mubr.bf16.mxu0 %v13740_v51 }
 0x219   :  { %2029 = vmatmul.mubr.bf16.gmra.mrb[20].mxu0 %v13739_v54 }
 0x21a   :  { %2036 = vmatprep.mubr.bf16.mxu0 %v13748_v55 }
 0x221   :  { %2037 = vmatmul.mubr.bf16.gmra.mrb[24].mxu0 %v13747_v58 }
 0x222   :  { %2044 = vmatprep.mubr.bf16.mxu0 %v13756_v59 }
 0x229   :  { %2045 = vmatmul.mubr.bf16.gmra.mrb[28].mxu0 %v13755_v62 }
 0x22a   :  { %2052 = vmatprep.mubr.bf16.mxu0 %v13764_v63 }
 0x231   :  { %2053 = vmatmul.mubr.bf16.gmra.mrb[32].mxu0 %v13763_v3 }
 0x232   :  { %2060 = vmatprep.mubr.bf16.mxu0 %v13772_v4 }
 0x239   :  { %2061 = vmatmul.mubr.bf16.gmra.mrb[36].mxu0 %v13771_v7 }
 0x23a   :  { %2068 = vmatprep.mubr.bf16.mxu0 %v13780_v8 }
 0x241   :  { %2069 = vmatmul.mubr.bf16.gmra.mrb[40].mxu0 %v13779_v11 }
 0x242   :  { %2076 = vmatprep.mubr.bf16.mxu0 %v13788_v12 }
 0x249   :  { %2077 = vmatmul.mubr.bf16.gmra.mrb[44].mxu0 %v13787_v15 }
 0x24a   :  { %2084 = vmatprep.mubr.bf16.mxu0 %v13796_v16 }
 0x251   :  { %2085 = vmatmul.mubr.bf16.gmra.mrb[48].mxu0 %v13795_v19 }
 0x252   :  { %2092 = vmatprep.mubr.bf16.mxu0 %v13804_v20 }
 0x259   :  { %2093 = vmatmul.mubr.bf16.gmra.mrb[52].mxu0 %v13803_v23 }
 0x25a   :  { %2100 = vmatprep.mubr.bf16.mxu0 %v13812_v24 }
 0x261   :  { %2101 = vmatmul.mubr.bf16.gmra.mrb[56].mxu0 %v13811_v30 }
 0x262   :  { %2108 = vmatprep.mubr.bf16.mxu0 %v13820_v31 }
 0x269   :  { %2109 = vmatmul.mubr.bf16.gmra.mrb[60].mxu0 %v13819_v36 }
 0x26a   :  { %2116 = vmatprep.mubr.bf16.mxu0 %v13828_v37 }
 0x271   :  { %2117 = vmatmul.mubr.bf16.gmra.mrb[64].mxu0 %v13827_v42 }
 0x272   :  { %2124 = vmatprep.mubr.bf16.mxu0 %v13836_v43 }
 0x279   :  { %2125 = vmatmul.mubr.bf16.gmra.mrb[68].mxu0 %v13835_v46 }
 0x27a   :  { %6034 = vmatprep.mubr.bf16.mxu0 %v22332_v0 }
 0x2c4   :  { %v1990_v48 = vpop.f32.mrb[0].mxu0 }
 0x2c5   :  { %v16362_v49 = vadd.f32 %v18175_v47, %v1990_v48  ;;  %v1992_v50 = vpop.f32.mrb[1].mxu0 }
 0x2c6   :  { %v1993_v51 = vpop.f32.mrb[2].mxu0 }
 0x2c7   :  { %v16363_v52 = vadd.f32 %v18175_v47, %v1993_v51  ;;  %v1995_v53 = vpop.f32.mrb[3].mxu0  ;;  %v2133_v54 = vmax.f32 %v16362_v49, 0.0 }
 0x2c8   :  { %v16848_v53 = vld [vmem:[%s22321_s3 + $0x8] sm:$0xff]  }
 0x2c9   :  { %v2134_v55 = vmax.f32 %v16363_v52, 0.0 }
 0x2cb   :  { %v18179_v56 = vpack.c.bf16 %v2134_v55, %v2133_v54 }
 0x2cc   :  { %v1998_v57 = vpop.f32.mrb[4].mxu0 }
 0x2cd   :  { %v16364_v58 = vadd.f32 %v18175_v47, %v1998_v57  ;;  %v2000_v59 = vpop.f32.mrb[5].mxu0 }
 0x2ce   :  { %v2001_v60 = vpop.f32.mrb[6].mxu0 }
 0x2cf   :  { %v16365_v61 = vadd.f32 %v18175_v47, %v2001_v60  ;;  %v2003_v62 = vpop.f32.mrb[7].mxu0  ;;  %v2135_v63 = vmax.f32 %v16364_v58, 0.0  ;;  %v16849_v60 = vld [vmem:[%s22321_s3 + $0x10] sm:$0xff]  }
 0x2d1   :  { %v2136_v1 = vmax.f32 %v16365_v61, 0.0 }
 0x2d3   :  { %v18183_v2 = vpack.c.bf16 %v2136_v1, %v2135_v63 }
 0x2d4   :  { %v2006_v3 = vpop.f32.mrb[8].mxu0 }
 0x2d5   :  { %v16366_v4 = vadd.f32 %v18175_v47, %v2006_v3  ;;  %v2008_v5 = vpop.f32.mrb[9].mxu0 }
 0x2d6   :  { %v2009_v6 = vpop.f32.mrb[10].mxu0  ;;  %v16850_v5 = vld [vmem:[%s22321_s3 + $0x18] sm:$0xff]  }
 0x2d7   :  { %v16367_v7 = vadd.f32 %v18175_v47, %v2009_v6  ;;  %v2011_v8 = vpop.f32.mrb[11].mxu0  ;;  %v2137_v9 = vmax.f32 %v16366_v4, 0.0 }
 0x2d9   :  { %v2138_v10 = vmax.f32 %v16367_v7, 0.0 }
 0x2db   :  { %v18187_v11 = vpack.c.bf16 %v2138_v10, %v2137_v9 }
 0x2dc   :  { %v2014_v12 = vpop.f32.mrb[12].mxu0 }
 0x2dd   :  { %v16368_v13 = vadd.f32 %v18175_v47, %v2014_v12  ;;  %v2016_v14 = vpop.f32.mrb[13].mxu0  ;;  %v16851_v12 = vld [vmem:[%s22321_s3 + $0x20] sm:$0xff]  }
 0x2de   :  { %v2017_v15 = vpop.f32.mrb[14].mxu0 }
 0x2df   :  { %v16369_v16 = vadd.f32 %v18175_v47, %v2017_v15  ;;  %v2019_v17 = vpop.f32.mrb[15].mxu0  ;;  %v2139_v18 = vmax.f32 %v16368_v13, 0.0 }
 0x2e1   :  { %v2140_v19 = vmax.f32 %v16369_v16, 0.0 }
 0x2e3   :  { %v18191_v20 = vpack.c.bf16 %v2140_v19, %v2139_v18  ;;  %v16852_v19 = vld [vmem:[%s22321_s3 + $0x28] sm:$0xff]  }
 0x2e4   :  { %v2022_v21 = vpop.f32.mrb[16].mxu0 }
 0x2e5   :  { %v16370_v22 = vadd.f32 %v18175_v47, %v2022_v21  ;;  %v2024_v23 = vpop.f32.mrb[17].mxu0 }
 0x2e6   :  { %v2025_v24 = vpop.f32.mrb[18].mxu0 }
 0x2e7   :  { %v16371_v25 = vadd.f32 %v18175_v47, %v2025_v24  ;;  %v2027_v27 = vpop.f32.mrb[19].mxu0  ;;  %v2141_v28 = vmax.f32 %v16370_v22, 0.0 }
 0x2e8   :  { %v16853_v27 = vld [vmem:[%s22321_s3 + $0x30] sm:$0xff]  }
 0x2e9   :  { %v2142_v29 = vmax.f32 %v16371_v25, 0.0 }
 0x2eb   :  { %v18195_v30 = vpack.c.bf16 %v2142_v29, %v2141_v28 }
 0x2ec   :  { %v2030_v31 = vpop.f32.mrb[20].mxu0 }
 0x2ed   :  { %v16372_v32 = vadd.f32 %v18175_v47, %v2030_v31  ;;  %v2032_v33 = vpop.f32.mrb[21].mxu0  ;;  %v2226_v41 = vrot.slane %v18195_v30, 4 }
 0x2ee   :  { %v2033_v34 = vpop.f32.mrb[22].mxu0 }
 0x2ef   :  { %v16373_v35 = vadd.f32 %v18175_v47, %v2033_v34  ;;  %v2035_v36 = vpop.f32.mrb[23].mxu0  ;;  %v2143_v37 = vmax.f32 %v16372_v32, 0.0 }
 0x2f1   :  { %v2144_v38 = vmax.f32 %v16373_v35, 0.0  ;;  %v16854_v35 = vld [vmem:[%s22321_s3 + $0x38] sm:$0xff]  }
 0x2f3   :  { %v2174_v39 = vpack.c.bf16 %v2144_v38, %v2143_v37 }
 0x2f4   :  { %v2038_v40 = vpop.f32.mrb[24].mxu0 }
 0x2f5   :  { %v2227_v42 = vrot.slane %v2174_v39, 4  ;;  %v16374_v43 = vadd.f32 %v18175_v47, %v2038_v40  ;;  %v2040_v44 = vpop.f32.mrb[25].mxu0 }
 0x2f6   :  { %v2041_v46 = vpop.f32.mrb[26].mxu0 }
 0x2f7   :  { %v16375_v48 = vadd.f32 %v18175_v47, %v2041_v46  ;;  %v2043_v49 = vpop.f32.mrb[27].mxu0  ;;  %v2228_v50 = vsel %vm2225_vm1, %v2226_v41, %v2227_v42  ;;  %v2145_v51 = vmax.f32 %v16374_v43, 0.0 }
 0x2f8   :  { %15865 = vmatmul.mubr.bf16.vlgmr.msra.gmra.mrb[0].mxu1 %v2228_v50  ;;  %v16855_v50 = vld [vmem:[%s22321_s3 + $0x80] sm:$0xff]  }
 0x2f9   :  { %v2146_v52 = vmax.f32 %v16375_v48, 0.0  ;;  %15868 = vmatprep.mubr.msk.bf16.mxu1 %vm17381_vm0, %v17380_v26  ;;  %15885 = vmatpush3.bf16.msra.mxu1 %v16847_v45 }
 0x2fa   :  { %15886 = vmatprep.subr.bf16.mxu1 %v17380_v26 }
 0x2fb   :  { %v2175_v54 = vpack.c.bf16 %v2146_v52, %v2145_v51 }
 0x2fc   :  { %v2046_v55 = vpop.f32.mrb[28].mxu0 }
 0x2fd   :  { %v2229_v57 = vrot.slane %v2175_v54, 4  ;;  %v16376_v58 = vadd.f32 %v18175_v47, %v2046_v55  ;;  %v2048_v59 = vpop.f32.mrb[29].mxu0  ;;  %15887 = vmatpush3.bf16.msra.mxu1 %v16848_v53 }
 0x2fe   :  { %v2049_v61 = vpop.f32.mrb[30].mxu0  ;;  %15888 = vmatprep.subr.bf16.mxu1 %v17380_v26 }
 0x2ff   :  { %v16377_v62 = vadd.f32 %v18175_v47, %v2049_v61  ;;  %v2051_v63 = vpop.f32.mrb[31].mxu0  ;;  %v2230_v1 = vsel %vm2225_vm1, %v2227_v42, %v2229_v57  ;;  %v2147_v3 = vmax.f32 %v16376_v58, 0.0 }
 0x300   :  { %15869 = vmatmul.mubr.bf16.gmra.mrb[4].mxu1 %v2230_v1 }
 0x301   :  { %v2148_v4 = vmax.f32 %v16377_v62, 0.0  ;;  %15872 = vmatprep.mubr.msk.bf16.mxu1 %vm17381_vm0, %v17380_v26  ;;  %15889 = vmatpush3.bf16.msra.mxu1 %v16849_v60 }
 0x302   :  { %15890 = vmatprep.subr.bf16.mxu1 %v17380_v26 }
 0x303   :  { %v2176_v6 = vpack.c.bf16 %v2148_v4, %v2147_v3 }
 0x304   :  { %v2054_v7 = vpop.f32.mrb[32].mxu0 }
 0x305   :  { %v2231_v8 = vrot.slane %v2176_v6, 4  ;;  %v16378_v9 = vadd.f32 %v18175_v47, %v2054_v7  ;;  %v2056_v10 = vpop.f32.mrb[33].mxu0  ;;  %15891 = vmatpush3.bf16.msra.mxu1 %v16850_v5  ;;  %v16858_v5 = vld [vmem:[%s22321_s3 + $0x98] sm:$0xff]  }
 0x306   :  { %v2057_v13 = vpop.f32.mrb[34].mxu0  ;;  %15892 = vmatprep.subr.bf16.mxu1 %v17380_v26 }
 0x307   :  { %v16379_v14 = vadd.f32 %v18175_v47, %v2057_v13  ;;  %v2059_v15 = vpop.f32.mrb[35].mxu0  ;;  %v2232_v16 = vsel %vm2225_vm1, %v2229_v57, %v2231_v8  ;;  %v2149_v17 = vmax.f32 %v16378_v9, 0.0  ;;  %v16856_v57 = vld [vmem:[%s22321_s3 + $0x88] sm:$0xff]  }
 0x308   :  { %15873 = vmatmul.mubr.bf16.gmra.mrb[8].mxu1 %v2232_v16  ;;  %v16860_v16 = vld [vmem:[%s22321_s3 + $0xa8] sm:$0xff]  }
 0x309   :  { %v2150_v18 = vmax.f32 %v16379_v14, 0.0  ;;  %15876 = vmatprep.mubr.msk.bf16.mxu1 %vm17381_vm0, %v17380_v26  ;;  %15893 = vmatpush3.bf16.msra.mxu1 %v16851_v12 }
 0x30a   :  { %15894 = vmatprep.subr.bf16.mxu1 %v17380_v26 }
 0x30b   :  { %v2177_v21 = vpack.c.bf16 %v2150_v18, %v2149_v17 }
 0x30c   :  { %v2062_v22 = vpop.f32.mrb[36].mxu0 }
 0x30d   :  { %v2233_v23 = vrot.slane %v2177_v21, 4  ;;  %v16380_v24 = vadd.f32 %v18175_v47, %v2062_v22  ;;  %v2064_v25 = vpop.f32.mrb[37].mxu0  ;;  %15895 = vmatpush3.bf16.msra.mxu1 %v16852_v19 }
 0x30e   :  { %v2065_v28 = vpop.f32.mrb[38].mxu0  ;;  %15896 = vmatprep.subr.bf16.mxu1 %v17380_v26 }
 0x30f   :  { %v16381_v29 = vadd.f32 %v18175_v47, %v2065_v28  ;;  %v2067_v31 = vpop.f32.mrb[39].mxu0  ;;  %v2234_v32 = vsel %vm2225_vm1, %v2231_v8, %v2233_v23  ;;  %v2151_v33 = vmax.f32 %v16380_v24, 0.0  ;;  %v16862_v28 = vld [vmem:[%s22321_s3 + $0xb8] sm:$0xff]  }
 0x310   :  { %15877 = vmatmul.mubr.bf16.gmra.mrb[12].mxu1 %v2234_v32 }
 0x311   :  { %v2152_v34 = vmax.f32 %v16381_v29, 0.0  ;;  %15880 = vmatprep.mubr.msk.bf16.mxu1 %vm17381_vm0, %v17380_v26  ;;  %15897 = vmatpush3.bf16.msra.mxu1 %v16853_v27 }
 0x312   :  { %15898 = vmatprep.subr.bf16.mxu1 %v17380_v26 }
 0x313   :  { %v18251_v36 = vpack.c.bf16 %v2152_v34, %v2151_v33 }
 0x314   :  { %v2070_v37 = vpop.f32.mrb[40].mxu0 }
 0x315   :  { %v16382_v38 = vadd.f32 %v18175_v47, %v2070_v37  ;;  %v2072_v39 = vpop.f32.mrb[41].mxu0  ;;  %15899 = vmatpush3.bf16.msra.mxu1 %v16854_v35 }
 0x316   :  { %v2073_v40 = vpop.f32.mrb[42].mxu0  ;;  %15920 = vmatprep.subr.bf16.mxu1 %v17380_v26 }
 0x317   :  { %v16383_v41 = vadd.f32 %v18175_v47, %v2073_v40  ;;  %v2075_v42 = vpop.f32.mrb[43].mxu0  ;;  %v2153_v43 = vmax.f32 %v16382_v38, 0.0 }
 0x318   :  { %15881 = vmatmul.mubr.bf16.gmra.mrb[16].mxu1 %v2233_v23 }
 0x319   :  { %v2154_v44 = vmax.f32 %v16383_v41, 0.0  ;;  %15900 = vmatprep.mubr.msk.bf16.mxu1 %vm17381_vm0, %v17380_v26 }
 0x31b   :  { %v18258_v45 = vpack.c.bf16 %v2154_v44, %v2153_v43 }
 0x31c   :  { %v2078_v46 = vpop.f32.mrb[44].mxu0 }
 0x31d   :  { %v16384_v48 = vadd.f32 %v18175_v47, %v2078_v46  ;;  %v2080_v49 = vpop.f32.mrb[45].mxu0 }
 0x31e   :  { %v2081_v51 = vpop.f32.mrb[46].mxu0  ;;  %v16863_v49 = vld [vmem:[%s22321_s3 + $0xc0] sm:$0xff]  }
 0x31f   :  { %v16385_v52 = vadd.f32 %v18175_v47, %v2081_v51  ;;  %v2083_v53 = vpop.f32.mrb[47].mxu0  ;;  %v2155_v54 = vmax.f32 %v16384_v48, 0.0 }
 0x320   :  { %15901 = vmatmul.mubr.bf16.vlgmr.msra.gmra.mrb[20].mxu1 %v18179_v56  ;;  %v16857_v56 = vld [vmem:[%s22321_s3 + $0x90] sm:$0xff]  }
 0x321   :  { %v2156_v55 = vmax.f32 %v16385_v52, 0.0  ;;  %15904 = vmatprep.mubr.msk.bf16.mxu1 %vm17381_vm0, %v17380_v26  ;;  %15921 = vmatpush3.bf16.msra.mxu1 %v16855_v50 }
 0x322   :  { %15922 = vmatprep.subr.bf16.mxu1 %v17380_v26 }
 0x323   :  { %v18272_v58 = vpack.c.bf16 %v2156_v55, %v2155_v54  ;;  %v16864_v55 = vld [vmem:[%s22321_s3 + $0xc8] sm:$0xff]  }
 0x324   :  { %v2086_v59 = vpop.f32.mrb[48].mxu0 }
 0x325   :  { %v16386_v60 = vadd.f32 %v18175_v47, %v2086_v59  ;;  %v2088_v61 = vpop.f32.mrb[49].mxu0  ;;  %15923 = vmatpush3.bf16.msra.mxu1 %v16856_v57 }
 0x326   :  { %v2089_v62 = vpop.f32.mrb[50].mxu0  ;;  %15924 = vmatprep.subr.bf16.mxu1 %v17380_v26 }
 0x327   :  { %v16387_v63 = vadd.f32 %v18175_v47, %v2089_v62  ;;  %v2091_v1 = vpop.f32.mrb[51].mxu0  ;;  %v2157_v3 = vmax.f32 %v16386_v60, 0.0 }
 0x328   :  { %15905 = vmatmul.mubr.bf16.gmra.mrb[24].mxu1 %v18183_v2  ;;  %v16859_v2 = vld [vmem:[%s22321_s3 + $0xa0] sm:$0xff]  }
 0x329   :  { %v2158_v4 = vmax.f32 %v16387_v63, 0.0  ;;  %15908 = vmatprep.mubr.msk.bf16.mxu1 %vm17381_vm0, %v17380_v26  ;;  %15925 = vmatpush3.bf16.msra.mxu1 %v16857_v56 }
 0x32a   :  { %15926 = vmatprep.subr.bf16.mxu1 %v17380_v26 }
 0x32b   :  { %v18287_v6 = vpack.c.bf16 %v2158_v4, %v2157_v3 }
 0x32c   :  { %v2094_v7 = vpop.f32.mrb[52].mxu0 }
 0x32d   :  { %v16388_v8 = vadd.f32 %v18175_v47, %v2094_v7  ;;  %v2096_v9 = vpop.f32.mrb[53].mxu0  ;;  %15927 = vmatpush3.bf16.msra.mxu1 %v16858_v5  ;;  %v16866_v7 = vld [vmem:[%s22321_s3 + $0xd8] sm:$0xff]  }
 0x32e   :  { %v2097_v10 = vpop.f32.mrb[54].mxu0  ;;  %15928 = vmatprep.subr.bf16.mxu1 %v17380_v26 }
 0x32f   :  { %v16389_v12 = vadd.f32 %v18175_v47, %v2097_v10  ;;  %v2099_v13 = vpop.f32.mrb[55].mxu0  ;;  %v2159_v14 = vmax.f32 %v16388_v8, 0.0  ;;  %v16869_v10 = vld [vmem:[%s22321_s3 + $0xf0] sm:$0xff]  }
 0x330   :  { %15909 = vmatmul.mubr.bf16.gmra.mrb[28].mxu1 %v18187_v11  ;;  %v16861_v11 = vld [vmem:[%s22321_s3 + $0xb0] sm:$0xff]  }
 0x331   :  { %v2160_v15 = vmax.f32 %v16389_v12, 0.0  ;;  %15912 = vmatprep.mubr.msk.bf16.mxu1 %vm17381_vm0, %v17380_v26  ;;  %15929 = vmatpush3.bf16.msra.mxu1 %v16859_v2  ;;  %v16868_v2 = vld [vmem:[%s22321_s3 + $0xe8] sm:$0xff]  }
 0x332   :  { %15930 = vmatprep.subr.bf16.mxu1 %v17380_v26 }
 0x333   :  { %v18302_v17 = vpack.c.bf16 %v2160_v15, %v2159_v14 }
 0x334   :  { %v2102_v18 = vpop.f32.mrb[56].mxu0 }
 0x335   :  { %v16390_v19 = vadd.f32 %v18175_v47, %v2102_v18  ;;  %v2104_v21 = vpop.f32.mrb[57].mxu0  ;;  %15931 = vmatpush3.bf16.msra.mxu1 %v16860_v16  ;;  %v2648_v32 = vrot.slane %v18302_v17, 4 }
 0x336   :  { %v2105_v22 = vpop.f32.mrb[58].mxu0  ;;  %15932 = vmatprep.subr.bf16.mxu1 %v17380_v26 }
 0x337   :  { %v16391_v23 = vadd.f32 %v18175_v47, %v2105_v22  ;;  %v2107_v24 = vpop.f32.mrb[59].mxu0  ;;  %v2161_v25 = vmax.f32 %v16390_v19, 0.0 }
 0x338   :  { %15913 = vmatmul.mubr.bf16.gmra.mrb[32].mxu1 %v18191_v20 }
 0x339   :  { %v2162_v27 = vmax.f32 %v16391_v23, 0.0  ;;  %15916 = vmatprep.mubr.msk.bf16.mxu1 %vm17381_vm0, %v17380_v26  ;;  %15933 = vmatpush3.bf16.msra.mxu1 %v16861_v11 }
 0x33a   :  { %15934 = vmatprep.subr.bf16.mxu1 %v17380_v26 }
 0x33b   :  { %v2183_v29 = vpack.c.bf16 %v2162_v27, %v2161_v25 }
 0x33c   :  { %v2110_v31 = vpop.f32.mrb[60].mxu0 }
 0x33d   :  { %v2649_v33 = vrot.slane %v2183_v29, 4  ;;  %v16392_v34 = vadd.f32 %v18175_v47, %v2110_v31  ;;  %v2112_v20 = vpop.f32.mrb[61].mxu0  ;;  %15935 = vmatpush3.bf16.msra.mxu1 %v16862_v28  ;;  %v16871_v31 = vld [vmem:[%s22323_s5] sm:$0xff]  }
 0x33e   :  { %v2113_v35 = vpop.f32.mrb[62].mxu0  ;;  %15956 = vmatprep.subr.bf16.mxu1 %v17380_v26 }
 0x33f   :  { %v16393_v37 = vadd.f32 %v18175_v47, %v2113_v35  ;;  %v2115_v38 = vpop.f32.mrb[63].mxu0  ;;  %v18322_v39 = vsel %vm2225_vm1, %v2648_v32, %v2649_v33  ;;  %v2163_v40 = vmax.f32 %v16392_v34, 0.0 }
 0x340   :  { %15917 = vmatmul.mubr.bf16.gmra.mrb[36].mxu1 %v18195_v30 }
 0x341   :  { %v2164_v41 = vmax.f32 %v16393_v37, 0.0  ;;  %15936 = vmatprep.mubr.msk.bf16.mxu1 %vm17381_vm0, %v17380_v26 }
 0x343   :  { %v2184_v42 = vpack.c.bf16 %v2164_v41, %v2163_v40 }
 0x344   :  { %v2118_v43 = vpop.f32.mrb[64].mxu0 }
 0x345   :  { %v2651_v44 = vrot.slane %v2184_v42, 4  ;;  %v16394_v46 = vadd.f32 %v18175_v47, %v2118_v43  ;;  %v2120_v48 = vpop.f32.mrb[65].mxu0 }
 0x346   :  { %v2121_v50 = vpop.f32.mrb[66].mxu0 }
 0x347   :  { %v16395_v51 = vadd.f32 %v18175_v47, %v2121_v50  ;;  %v2123_v52 = vpop.f32.mrb[67].mxu0  ;;  %v2652_v30 = vsel %vm2225_vm1, %v2649_v33, %v2651_v44  ;;  %v2165_v53 = vmax.f32 %v16394_v46, 0.0 }
 0x348   :  { %15937 = vmatmul.mubr.bf16.vlgmr.msra.gmra.mrb[40].mxu1 %v18251_v36  ;;  %v16865_v36 = vld [vmem:[%s22321_s3 + $0xd0] sm:$0xff]  }
 0x349   :  { %v2166_v54 = vmax.f32 %v16395_v51, 0.0  ;;  %15940 = vmatprep.mubr.msk.bf16.mxu1 %vm17381_vm0, %v17380_v26  ;;  %15957 = vmatpush3.bf16.msra.mxu1 %v16863_v49 }
 0x34a   :  { %15958 = vmatprep.subr.bf16.mxu1 %v17380_v26 }
 0x34b   :  { %v2185_v57 = vpack.c.bf16 %v2166_v54, %v2165_v53 }
 0x34c   :  { %v2126_v59 = vpop.f32.mrb[68].mxu0 }
 0x34d   :  { %v2653_v60 = vrot.slane %v2185_v57, 4  ;;  %v16396_v61 = vadd.f32 %v18175_v47, %v2126_v59  ;;  %v2128_v56 = vpop.f32.mrb[69].mxu0  ;;  %15959 = vmatpush3.bf16.msra.mxu1 %v16864_v55 }
 0x34e   :  { %v2129_v62 = vpop.f32.mrb[70].mxu0  ;;  %15960 = vmatprep.subr.bf16.mxu1 %v17380_v26 }
 0x34f   :  { %v16397_v63 = vadd.f32 %v18175_v47, %v2129_v62  ;;  %v2131_v1 = vpop.f32.mrb[71].mxu0  ;;  %v2654_v3 = vsel %vm2225_vm1, %v2651_v44, %v2653_v60  ;;  %v2167_v4 = vmax.f32 %v16396_v61, 0.0  ;;  %v16867_v47 = vld [vmem:[%s22321_s3 + $0xe0] sm:$0xff]  }
 0x350   :  { %15941 = vmatmul.mubr.bf16.gmra.mrb[44].mxu1 %v18258_v45 }
 0x351   :  { %v2168_v5 = vmax.f32 %v16397_v63, 0.0  ;;  %15944 = vmatprep.mubr.msk.bf16.mxu1 %vm17381_vm0, %v17380_v26  ;;  %15961 = vmatpush3.bf16.msra.mxu1 %v16865_v36 }
 0x352   :  { %15962 = vmatprep.subr.bf16.mxu1 %v17380_v26 }
 0x353   :  { %v2186_v8 = vpack.c.bf16 %v2168_v5, %v2167_v4 }
 0x355   :  { %v2655_v9 = vrot.slane %v2186_v8, 4  ;;  %15963 = vmatpush3.bf16.msra.mxu1 %v16866_v7 }
 0x356   :  { %15964 = vmatprep.subr.bf16.mxu1 %v17380_v26 }
 0x357   :  { %v2656_v45 = vsel %vm2225_vm1, %v2653_v60, %v2655_v9 }
 0x358   :  { %15945 = vmatmul.mubr.bf16.gmra.mrb[48].mxu1 %v18272_v58  ;;  %v16870_v58 = vld [vmem:[%s22321_s3 + $0xf8] sm:$0xff]  }
 0x359   :  { %15948 = vmatprep.mubr.msk.bf16.mxu1 %vm17381_vm0, %v17380_v26  ;;  %15965 = vmatpush3.bf16.msra.mxu1 %v16867_v47 }
 0x35a   :  { %15966 = vmatprep.subr.bf16.mxu1 %v17380_v26 }
 0x35d   :  { %15967 = vmatpush3.bf16.msra.mxu1 %v16868_v2 }
 0x35e   :  { %15968 = vmatprep.subr.bf16.mxu1 %v17380_v26 }
 0x360   :  { %15949 = vmatmul.mubr.bf16.gmra.mrb[52].mxu1 %v18287_v6 }
 0x361   :  { %15952 = vmatprep.mubr.msk.bf16.mxu1 %vm17381_vm0, %v17380_v26  ;;  %15969 = vmatpush3.bf16.msra.mxu1 %v16869_v10 }
 0x362   :  { %15970 = vmatprep.subr.bf16.mxu1 %v17380_v26 }
 0x365   :  { %15971 = vmatpush3.bf16.msra.mxu1 %v16870_v58 }
 0x368   :  { %15953 = vmatmul.mubr.bf16.gmra.mrb[56].mxu1 %v18302_v17 }
 0x369   :  { %15972 = vmatprep.mubr.msk.bf16.mxu1 %vm17381_vm0, %v17380_v26 }
 0x370   :  { %15973 = vmatmul.mubr.bf16.vlgmr.msra.gmra.mrb[60].mxu1 %v18322_v39 }
 0x371   :  { %15976 = vmatprep.mubr.msk.bf16.mxu1 %vm17381_vm0, %v17380_v26 }
 0x378   :  { %15977 = vmatmul.mubr.bf16.gmra.mrb[64].mxu1 %v2652_v30 }
 0x379   :  { %15980 = vmatprep.mubr.msk.bf16.mxu1 %vm17381_vm0, %v17380_v26 }
 0x380   :  { %15981 = vmatmul.mubr.bf16.gmra.mrb[68].mxu1 %v2654_v3 }
 0x381   :  { %15984 = vmatprep.mubr.msk.bf16.mxu1 %vm17381_vm0, %v17380_v26 }
 0x388   :  { %15985 = vmatmul.mubr.bf16.gmra.mrb[72].mxu1 %v2656_v45 }
 0x389   :  { %15988 = vmatprep.mubr.msk.bf16.mxu1 %vm17381_vm0, %v17380_v26 }
 0x390   :  { %15989 = vmatmul.mubr.bf16.gmra.mrb[76].mxu1 %v2655_v9 }
 0x391   :  { %16002 = vmatprep.mubr.msk.bf16.mxu1 %vm3325_vm2, %v16871_v31 }
 0x3cb   :  { %v2322_v6 = vpop.f32.mrb[0].mxu1 }
 0x3cc   :  { %v15866_v12 = vpop.f32.mrb[1].mxu1 }
 0x3cd   :  { %v2325_v13 = vpop.f32.mrb[2].mxu1 }
 0x3ce   :  { %v15867_v14 = vpop.f32.mrb[3].mxu1 }
 0x3d3   :  { %v2330_v15 = vpop.f32.mrb[4].mxu1 }
 0x3d4   :  { %v15870_v16 = vpop.f32.mrb[5].mxu1 }
 0x3d5   :  { %v2333_v17 = vpop.f32.mrb[6].mxu1 }
 0x3d6   :  { %v15871_v18 = vpop.f32.mrb[7].mxu1 }
 0x3db   :  { %v2338_v19 = vpop.f32.mrb[8].mxu1 }
 0x3dc   :  { %v15874_v21 = vpop.f32.mrb[9].mxu1 }
 0x3dd   :  { %v2341_v11 = vpop.f32.mrb[10].mxu1 }
 0x3de   :  { %v15875_v22 = vpop.f32.mrb[11].mxu1 }
 0x3e3   :  { %v2346_v23 = vpop.f32.mrb[12].mxu1 }
 0x3e4   :  { %v15878_v24 = vpop.f32.mrb[13].mxu1 }
 0x3e5   :  { %v2349_v25 = vpop.f32.mrb[14].mxu1 }
 0x3e6   :  { %v15879_v27 = vpop.f32.mrb[15].mxu1 }
 0x3eb   :  { %v2354_v28 = vpop.f32.mrb[16].mxu1 }
 0x3ec   :  { %v15882_v29 = vpop.f32.mrb[17].mxu1 }
 0x3ed   :  { %v2357_v26 = vpop.f32.mrb[18].mxu1 }
 0x3ee   :  { %v15883_v32 = vpop.f32.mrb[19].mxu1 }
 0x3f3   :  { %v2442_v33 = vpop.f32.mrb[20].mxu1 }
 0x3f4   :  { %v2443_v34 = vadd.f32 %v2442_v33, %v2322_v6  ;;  %v15902_v20 = vpop.f32.mrb[21].mxu1 }
 0x3f5   :  { %v2445_v35 = vpop.f32.mrb[22].mxu1 }
 0x3f6   :  { %v2446_v37 = vadd.f32 %v2445_v35, %v2325_v13  ;;  %v15903_v38 = vpop.f32.mrb[23].mxu1 }
 0x3fb   :  { %v2450_v39 = vpop.f32.mrb[24].mxu1 }
 0x3fc   :  { %v2451_v40 = vadd.f32 %v2450_v39, %v2330_v15  ;;  %v15906_v41 = vpop.f32.mrb[25].mxu1 }
 0x3fd   :  { %v2453_v42 = vpop.f32.mrb[26].mxu1 }
 0x3fe   :  { %v2454_v43 = vadd.f32 %v2453_v42, %v2333_v17  ;;  %v15907_v44 = vpop.f32.mrb[27].mxu1 }
 0x403   :  { %v2458_v46 = vpop.f32.mrb[28].mxu1 }
 0x404   :  { %v2459_v48 = vadd.f32 %v2458_v46, %v2338_v19  ;;  %v15910_v49 = vpop.f32.mrb[29].mxu1 }
 0x405   :  { %v2461_v50 = vpop.f32.mrb[30].mxu1 }
 0x406   :  { %v2462_v51 = vadd.f32 %v2461_v50, %v2341_v11  ;;  %v15911_v52 = vpop.f32.mrb[31].mxu1 }
 0x40b   :  { %v2466_v30 = vpop.f32.mrb[32].mxu1 }
 0x40c   :  { %v2467_v53 = vadd.f32 %v2466_v30, %v2346_v23  ;;  %v15914_v54 = vpop.f32.mrb[33].mxu1 }
 0x40d   :  { %v2469_v55 = vpop.f32.mrb[34].mxu1 }
 0x40e   :  { %v2470_v57 = vadd.f32 %v2469_v55, %v2349_v25  ;;  %v15915_v59 = vpop.f32.mrb[35].mxu1 }
 0x413   :  { %v2474_v60 = vpop.f32.mrb[36].mxu1 }
 0x414   :  { %v2475_v61 = vadd.f32 %v2474_v60, %v2354_v28  ;;  %v15918_v56 = vpop.f32.mrb[37].mxu1  ;;  %v13981_v28 = vld [vmem:[%s22325_s4] ss:$0 sm:$0xff] }
 0x415   :  { %v2477_v36 = vpop.f32.mrb[38].mxu1 }
 0x416   :  { %v15919_v62 = vpop.f32.mrb[39].mxu1 }
 0x41b   :  { %v2579_v63 = vpop.f32.mrb[40].mxu1 }
 0x41c   :  { %v2617_v1 = vadd.f32 %v2579_v63, %v2443_v34  ;;  %v15938_v3 = vpop.f32.mrb[41].mxu1 }
 0x41d   :  { %v2582_v4 = vpop.f32.mrb[42].mxu1 }
 0x41e   :  { %v2618_v5 = vadd.f32 %v2582_v4, %v2446_v37  ;;  %v15939_v7 = vpop.f32.mrb[43].mxu1 }
 0x423   :  { %v2587_v8 = vpop.f32.mrb[44].mxu1 }
 0x424   :  { %v2619_v9 = vadd.f32 %v2587_v8, %v2451_v40  ;;  %v15942_v47 = vpop.f32.mrb[45].mxu1 }
 0x425   :  { %v2590_v45 = vpop.f32.mrb[46].mxu1 }
 0x426   :  { %v2620_v2 = vadd.f32 %v2590_v45, %v2454_v43  ;;  %v15943_v10 = vpop.f32.mrb[47].mxu1 }
 0x42b   :  { %v2595_v58 = vpop.f32.mrb[48].mxu1 }
 0x42c   :  { %v2621_v6 = vadd.f32 %v2595_v58, %v2459_v48  ;;  %v15946_v12 = vpop.f32.mrb[49].mxu1 }
 0x42d   :  { %v2598_v13 = vpop.f32.mrb[50].mxu1 }
 0x42e   :  { %v2622_v14 = vadd.f32 %v2598_v13, %v2462_v51  ;;  %v15947_v15 = vpop.f32.mrb[51].mxu1 }
 0x433   :  { %v2603_v16 = vpop.f32.mrb[52].mxu1 }
 0x434   :  { %v2623_v17 = vadd.f32 %v2603_v16, %v2467_v53  ;;  %v15950_v18 = vpop.f32.mrb[53].mxu1 }
 0x435   :  { %v2606_v19 = vpop.f32.mrb[54].mxu1 }
 0x436   :  { %v2624_v21 = vadd.f32 %v2606_v19, %v2470_v57  ;;  %v15951_v11 = vpop.f32.mrb[55].mxu1  ;;  %v16872_v19 = vld [vmem:[%s22323_s5 + $0x8] sm:$0xff]  }
 0x437   :  { %v16892_v11 = vld [vmem:[%s22324_s6 + $0x28] sm:$0xff]  }
 0x43b   :  { %v2611_v22 = vpop.f32.mrb[56].mxu1 }
 0x43c   :  { %v2625_v23 = vadd.f32 %v2611_v22, %v2475_v61  ;;  %v15954_v24 = vpop.f32.mrb[57].mxu1  ;;  %v16875_v22 = vld [vmem:[%s22323_s5 + $0x18] sm:$0xff]  }
 0x43d   :  { %v2614_v25 = vpop.f32.mrb[58].mxu1  ;;  %v16877_v24 = vld [vmem:[%s22323_s5 + $0x28] sm:$0xff]  }
 0x43e   :  { %v15955_v27 = vpop.f32.mrb[59].mxu1  ;;  %v16878_v25 = vld [vmem:[%s22323_s5 + $0x30] sm:$0xff]  }
 0x43f   :  { %v16911_v27 = vld [vmem:[%s22324_s6 + $0x30] sm:$0xff]  }
 0x443   :  { %v2744_v29 = vpop.f32.mrb[60].mxu1 }
 0x444   :  { %v2782_v26 = vadd.f32 %v2744_v29, %v2617_v1  ;;  %v15974_v31 = vpop.f32.mrb[61].mxu1  ;;  %v16880_v29 = vld [vmem:[%s22323_s5 + $0x40] sm:$0xff]  }
 0x445   :  { %v2747_v32 = vpop.f32.mrb[62].mxu1  ;;  %v16882_v31 = vld [vmem:[%s22323_s5 + $0x50] sm:$0xff]  }
 0x446   :  { %v2798_v33 = vadd.f32 %v13981_v28, %v2782_v26  ;;  %v2783_v34 = vadd.f32 %v2747_v32, %v2618_v5  ;;  %v15975_v20 = vpop.f32.mrb[63].mxu1  ;;  %v16881_v26 = vld [vmem:[%s22323_s5 + $0x48] sm:$0xff]   ;;  %v16883_v32 = vld [vmem:[%s22323_s5 + $0x58] sm:$0xff]  }
 0x447   :  { %v16886_v20 = vld [vmem:[%s22323_s5 + $0x70] sm:$0xff]  }
 0x448   :  { %v2799_v35 = vadd.f32 %v13981_v28, %v2783_v34  ;;  %v2807_v37 = vmax.f32 %v2798_v33, 0.0  ;;  %v16884_v33 = vld [vmem:[%s22323_s5 + $0x60] sm:$0xff]   ;;  %v16885_v34 = vld [vmem:[%s22323_s5 + $0x68] sm:$0xff]  }
 0x44a   :  { %v2808_v38 = vmax.f32 %v2799_v35, 0.0  ;;  %v16887_v35 = vld [vmem:[%s22323_s5 + $0x78] sm:$0xff]  }
 0x44b   :  { %v2752_v39 = vpop.f32.mrb[64].mxu1 }
 0x44c   :  { %v2784_v40 = vadd.f32 %v2752_v39, %v2619_v9  ;;  %v15978_v41 = vpop.f32.mrb[65].mxu1  ;;  %v2816_v42 = vpack.c.bf16 %v2808_v38, %v2807_v37  ;;  %v16888_v37 = vld [vmem:[%s22323_s5 + $0x80] sm:$0xff]   ;;  %v16889_v38 = vld [vmem:[%s22323_s5 + $0x88] sm:$0xff]   ;;  %v16890_v39 = vld [vmem:[%s22323_s5 + $0x90] sm:$0xff]  }
 0x44d   :  { %v2755_v43 = vpop.f32.mrb[66].mxu1  ;;  %v16893_v41 = vld [vmem:[%s22323_s5 + $0xa0] sm:$0xff]  }
 0x44e   :  { %v2800_v44 = vadd.f32 %v13981_v28, %v2784_v40  ;;  %v2785_v46 = vadd.f32 %v2755_v43, %v2620_v2  ;;  %v15979_v48 = vpop.f32.mrb[67].mxu1  ;;  %15992 = vmatprep.subr.bf16.mxu1 %v2816_v42  ;;  %v16891_v40 = vld [vmem:[%s22323_s5 + $0x98] sm:$0xff]   ;;  %v16895_v43 = vld [vmem:[%s22323_s5 + $0xb0] sm:$0xff]  }
 0x44f   :  { %15993 = vmatpush3.bf16.msra.mxu1 %v2816_v42  ;;  %v16894_v42 = vld [vmem:[%s22323_s5 + $0xa8] sm:$0xff]   ;;  %v16930_v48 = vld [vmem:[%s22324_s6 + $0x38] sm:$0xff]  }
 0x450   :  { %v2801_v49 = vadd.f32 %v13981_v28, %v2785_v46  ;;  %v2809_v50 = vmax.f32 %v2800_v44, 0.0  ;;  %v16896_v44 = vld [vmem:[%s22323_s5 + $0xb8] sm:$0xff]   ;;  %v16897_v46 = vld [vmem:[%s22323_s5 + $0xc0] sm:$0xff]  }
 0x452   :  { %v2810_v51 = vmax.f32 %v2801_v49, 0.0  ;;  %v16898_v49 = vld [vmem:[%s22323_s5 + $0xc8] sm:$0xff]  }
 0x453   :  { %v2760_v52 = vpop.f32.mrb[68].mxu1 }
 0x454   :  { %v2786_v30 = vadd.f32 %v2760_v52, %v2621_v6  ;;  %v15982_v53 = vpop.f32.mrb[69].mxu1  ;;  %v2817_v54 = vpack.c.bf16 %v2810_v51, %v2809_v50  ;;  %v16899_v50 = vld [vmem:[%s22323_s5 + $0xd0] sm:$0xff]   ;;  %v16900_v51 = vld [vmem:[%s22323_s5 + $0xd8] sm:$0xff]   ;;  %v16901_v52 = vld [vmem:[%s22323_s5 + $0xe0] sm:$0xff]  }
 0x455   :  { %v2763_v55 = vpop.f32.mrb[70].mxu1  ;;  %v16903_v53 = vld [vmem:[%s22323_s5 + $0xf0] sm:$0xff]  }
 0x456   :  { %v2802_v57 = vadd.f32 %v13981_v28, %v2786_v30  ;;  %v2787_v59 = vadd.f32 %v2763_v55, %v2622_v14  ;;  %v15983_v60 = vpop.f32.mrb[71].mxu1  ;;  %15994 = vmatprep.subr.bf16.mxu1 %v2817_v54  ;;  %v16902_v30 = vld [vmem:[%s22323_s5 + $0xe8] sm:$0xff]   ;;  %v16905_v55 = vld [vmem:[%s22323_s5 + $0x100] sm:$0xff]  }
 0x457   :  { %15995 = vmatpush3.bf16.msra.mxu1 %v2817_v54  ;;  %v16904_v54 = vld [vmem:[%s22323_s5 + $0xf8] sm:$0xff]  }
 0x458   :  { %v2803_v61 = vadd.f32 %v13981_v28, %v2787_v59  ;;  %v2811_v56 = vmax.f32 %v2802_v57, 0.0  ;;  %v16906_v57 = vld [vmem:[%s22323_s5 + $0x108] sm:$0xff]   ;;  %v16907_v59 = vld [vmem:[%s22323_s5 + $0x110] sm:$0xff]   ;;  %v16908_v60 = vld [vmem:[%s22323_s5 + $0x118] sm:$0xff]  }
 0x45a   :  { %v2812_v36 = vmax.f32 %v2803_v61, 0.0  ;;  %v16909_v61 = vld [vmem:[%s22323_s5 + $0x120] sm:$0xff]  }
 0x45b   :  { %v2768_v62 = vpop.f32.mrb[72].mxu1 }
 0x45c   :  { %v2788_v63 = vadd.f32 %v2768_v62, %v2623_v17  ;;  %v15986_v1 = vpop.f32.mrb[73].mxu1  ;;  %v2818_v3 = vpack.c.bf16 %v2812_v36, %v2811_v56  ;;  %v16873_v17 = vld [vmem:[%s22324_s6 + $0x20] sm:$0xff]   ;;  %v16910_v56 = vld [vmem:[%s22323_s5 + $0x128] sm:$0xff]   ;;  %v16912_v36 = vld [vmem:[%s22323_s5 + $0x130] sm:$0xff]  }
 0x45d   :  { %v2771_v4 = vpop.f32.mrb[74].mxu1  ;;  %v16913_v62 = vld [vmem:[%s22323_s5 + $0x138] sm:$0xff]   ;;  %v16915_v1 = vld [vmem:[%s22323_s5 + $0x148] sm:$0xff]  }
 0x45e   :  { %v2804_v5 = vadd.f32 %v13981_v28, %v2788_v63  ;;  %v2789_v7 = vadd.f32 %v2771_v4, %v2624_v21  ;;  %v15987_v8 = vpop.f32.mrb[75].mxu1  ;;  %15996 = vmatprep.subr.bf16.mxu1 %v2818_v3  ;;  %v16874_v21 = vld [vmem:[%s22323_s5 + $0x10] sm:$0xff]   ;;  %v16914_v63 = vld [vmem:[%s22323_s5 + $0x140] sm:$0xff]  }
 0x45f   :  { %15997 = vmatpush3.bf16.msra.mxu1 %v2818_v3  ;;  %v16916_v3 = vld [vmem:[%s22323_s5 + $0x150] sm:$0xff]   ;;  %v18581_v4 = vld [vmem:[%s22324_s6] sm:$0xff]   ;;  %v16919_v8 = vld [vmem:[%s22323_s5 + $0x168] sm:$0xff]  }
 0x460   :  { %v2805_v9 = vadd.f32 %v13981_v28, %v2789_v7  ;;  %v2813_v47 = vmax.f32 %v2804_v5, 0.0  ;;  %v16917_v5 = vld [vmem:[%s22323_s5 + $0x158] sm:$0xff]   ;;  %v16918_v7 = vld [vmem:[%s22323_s5 + $0x160] sm:$0xff]  }
 0x462   :  { %v2814_v45 = vmax.f32 %v2805_v9, 0.0  ;;  %v16920_v9 = vld [vmem:[%s22323_s5 + $0x170] sm:$0xff]  }
 0x463   :  { %v2776_v2 = vpop.f32.mrb[76].mxu1 }
 0x464   :  { %v2790_v10 = vadd.f32 %v2776_v2, %v2625_v23  ;;  %v15990_v58 = vpop.f32.mrb[77].mxu1  ;;  %v2819_v6 = vpack.c.bf16 %v2814_v45, %v2813_v47  ;;  %v16876_v23 = vld [vmem:[%s22323_s5 + $0x20] sm:$0xff]   ;;  %v16921_v47 = vld [vmem:[%s22323_s5 + $0x178] sm:$0xff]   ;;  %v16923_v2 = vld [vmem:[%s22323_s5 + $0x188] sm:$0xff]  }
 0x465   :  { %v2779_v12 = vpop.f32.mrb[78].mxu1  ;;  %v16922_v45 = vld [vmem:[%s22323_s5 + $0x180] sm:$0xff]   ;;  %v16925_v58 = vld [vmem:[%s22323_s5 + $0x198] sm:$0xff]  }
 0x466   :  { %v2806_v13 = vadd.f32 %v13981_v28, %v2790_v10  ;;  %v15991_v14 = vpop.f32.mrb[79].mxu1  ;;  %15998 = vmatprep.subr.bf16.mxu1 %v2819_v6  ;;  %v16879_v28 = vld [vmem:[%s22323_s5 + $0x38] sm:$0xff]   ;;  %v16924_v10 = vld [vmem:[%s22323_s5 + $0x190] sm:$0xff]   ;;  %v16927_v12 = vld [vmem:[%s22323_s5 + $0x1a8] sm:$0xff]  }
 0x467   :  { %15999 = vmatpush3.bf16.msra.mxu1 %v2819_v6  ;;  %v16926_v6 = vld [vmem:[%s22323_s5 + $0x1a0] sm:$0xff]  }
 0x468   :  { %v2815_v15 = vmax.f32 %v2806_v13, 0.0  ;;  %v16928_v13 = vld [vmem:[%s22323_s5 + $0x1b0] sm:$0xff]  }
 0x46a   :  { %v2820_v16 = vpack.c.bf16 %v2815_v15, %v2815_v15 }
 0x46c   :  { %16770 = vmatprep.subr.msk.bf16.mxu1 %vm2225_vm1, %v2820_v16  ;;  %v3544_v18 = vsel %vm2225_vm1, %v2820_v16, 0  ;;  %v16929_v16 = vld [vmem:[%s22323_s5 + $0x1b8] sm:$0xff]  }
 0x46d   :  { %16001 = vmatpush3.bf16.msra.mxu1 %v3544_v18  ;;  %v16931_v18 = vld [vmem:[%s22323_s5 + $0x1c0] sm:$0xff]  }
 0x46e   :  { %16146 = vmatprep.subr.bf16.mxu1 %v16873_v17 }
 0x470   :  { %16003 = vmatmul.mubr.msk.bf16.vlgmr.msra.gmra.mrb[80].mxu1 %vm3325_vm2, %v16872_v19 }
 0x471   :  { %16006 = vmatprep.mubr.msk.bf16.mxu1 %vm3325_vm2, %v16874_v21  ;;  %16147 = vmatpush3.bf16.msra.mxu1 %v16873_v17 }
 0x472   :  { %16148 = vmatprep.subr.bf16.mxu1 %v16892_v11 }
 0x475   :  { %16149 = vmatpush3.bf16.msra.mxu1 %v16892_v11 }
 0x476   :  { %16150 = vmatprep.subr.bf16.mxu1 %v16911_v27 }
 0x478   :  { %16007 = vmatmul.mubr.msk.bf16.gmra.mrb[84].mxu1 %vm3325_vm2, %v16875_v22 }
 0x479   :  { %16010 = vmatprep.mubr.msk.bf16.mxu1 %vm3325_vm2, %v16876_v23  ;;  %16151 = vmatpush3.bf16.msra.mxu1 %v16911_v27  ;;  %v16933_v27 = vld [vmem:[%s22323_s5 + $0x1d0] sm:$0xff]  }
 0x47a   :  { %16152 = vmatprep.subr.bf16.mxu1 %v16930_v48 }
 0x47d   :  { %16153 = vmatpush3.bf16.msra.mxu1 %v16930_v48 }
 0x47e   :  { %16170 = vmatprep.subr.bf16.mxu1 %v18581_v4 }
 0x480   :  { %16011 = vmatmul.mubr.msk.bf16.gmra.mrb[88].mxu1 %vm3325_vm2, %v16877_v24  ;;  %v16932_v24 = vld [vmem:[%s22323_s5 + $0x1c8] sm:$0xff]  }
 0x481   :  { %16014 = vmatprep.mubr.msk.bf16.mxu1 %vm3325_vm2, %v16878_v25 }
 0x488   :  { %16015 = vmatmul.mubr.msk.bf16.gmra.mrb[92].mxu1 %vm3325_vm2, %v16879_v28 }
 0x489   :  { %16018 = vmatprep.mubr.msk.bf16.mxu1 %vm3325_vm2, %v16880_v29 }
 0x490   :  { %16019 = vmatmul.mubr.msk.bf16.gmra.mrb[96].mxu1 %vm3325_vm2, %v16881_v26 }
 0x491   :  { %16022 = vmatprep.mubr.msk.bf16.mxu1 %vm3325_vm2, %v16882_v31 }
 0x498   :  { %16023 = vmatmul.mubr.msk.bf16.gmra.mrb[100].mxu1 %vm3325_vm2, %v16883_v32 }
 0x499   :  { %16026 = vmatprep.mubr.msk.bf16.mxu1 %vm3325_vm2, %v16884_v33  ;;  %v16934_v33 = vld [vmem:[%s22323_s5 + $0x1d8] sm:$0xff]  }
 0x4a0   :  { %16027 = vmatmul.mubr.msk.bf16.gmra.mrb[104].mxu1 %vm3325_vm2, %v16885_v34 }
 0x4a1   :  { %16030 = vmatprep.mubr.msk.bf16.mxu1 %vm3325_vm2, %v16886_v20  ;;  %v16935_v20 = vld [vmem:[%s22323_s5 + $0x1e0] sm:$0xff]  }
 0x4a8   :  { %16031 = vmatmul.mubr.msk.bf16.gmra.mrb[108].mxu1 %vm3325_vm2, %v16887_v35 }
 0x4a9   :  { %16034 = vmatprep.mubr.msk.bf16.mxu1 %vm3325_vm2, %v16888_v37 }
 0x4b0   :  { %16035 = vmatmul.mubr.msk.bf16.gmra.mrb[112].mxu1 %vm3325_vm2, %v16889_v38 }
 0x4b1   :  { %16038 = vmatprep.mubr.msk.bf16.mxu1 %vm3325_vm2, %v16890_v39 }
 0x4b8   :  { %16039 = vmatmul.mubr.msk.bf16.gmra.mrb[116].mxu1 %vm3325_vm2, %v16891_v40 }
 0x4b9   :  { %16042 = vmatprep.mubr.msk.bf16.mxu1 %vm3325_vm2, %v16893_v41  ;;  %v16936_v41 = vld [vmem:[%s22323_s5 + $0x1e8] sm:$0xff]  }
 0x4c0   :  { %16043 = vmatmul.mubr.msk.bf16.gmra.mrb[120].mxu1 %vm3325_vm2, %v16894_v42 }
 0x4c1   :  { %16046 = vmatprep.mubr.msk.bf16.mxu1 %vm3325_vm2, %v16895_v43  ;;  %v16937_v43 = vld [vmem:[%s22323_s5 + $0x1f0] sm:$0xff]  }
 0x4c8   :  { %16047 = vmatmul.mubr.msk.bf16.gmra.mrb[124].mxu1 %vm3325_vm2, %v16896_v44 }
 0x4c9   :  { %16050 = vmatprep.mubr.msk.bf16.mxu1 %vm3325_vm2, %v16897_v46 }
 0x4d0   :  { %16051 = vmatmul.mubr.msk.bf16.gmra.mrb[128].mxu1 %vm3325_vm2, %v16898_v49 }
 0x4d1   :  { %16054 = vmatprep.mubr.msk.bf16.mxu1 %vm3325_vm2, %v16899_v50 }
 0x4d8   :  { %16055 = vmatmul.mubr.msk.bf16.gmra.mrb[132].mxu1 %vm3325_vm2, %v16900_v51  ;;  %v16938_v51 = vld [vmem:[%s22323_s5 + $0x1f8] sm:$0xff]  }
 0x4d9   :  { %16058 = vmatprep.mubr.msk.bf16.mxu1 %vm3325_vm2, %v16901_v52 }
 0x4e0   :  { %16059 = vmatmul.mubr.msk.bf16.gmra.mrb[136].mxu1 %vm3325_vm2, %v16902_v30  ;;  %v16939_v30 = vld [vmem:[%s22323_s5 + $0x200] sm:$0xff]  }
 0x4e1   :  { %16062 = vmatprep.mubr.msk.bf16.mxu1 %vm3325_vm2, %v16903_v53 }
 0x4e8   :  { %16063 = vmatmul.mubr.msk.bf16.gmra.mrb[140].mxu1 %vm3325_vm2, %v16904_v54 }
 0x4e9   :  { %16066 = vmatprep.mubr.msk.bf16.mxu1 %vm3325_vm2, %v16905_v55 }
 0x4f0   :  { %16067 = vmatmul.mubr.msk.bf16.gmra.mrb[144].mxu1 %vm3325_vm2, %v16906_v57 }
 0x4f1   :  { %16070 = vmatprep.mubr.msk.bf16.mxu1 %vm3325_vm2, %v16907_v59 }
 0x4f8   :  { %16071 = vmatmul.mubr.msk.bf16.gmra.mrb[148].mxu1 %vm3325_vm2, %v16908_v60  ;;  %v16940_v60 = vld [vmem:[%s22323_s5 + $0x208] sm:$0xff]  }
 0x4f9   :  { %16074 = vmatprep.mubr.msk.bf16.mxu1 %vm3325_vm2, %v16909_v61 }
 0x500   :  { %16075 = vmatmul.mubr.msk.bf16.gmra.mrb[152].mxu1 %vm3325_vm2, %v16910_v56  ;;  %v16941_v56 = vld [vmem:[%s22323_s5 + $0x210] sm:$0xff]  }
 0x501   :  { %16078 = vmatprep.mubr.msk.bf16.mxu1 %vm3325_vm2, %v16912_v36 }
 0x508   :  { %16079 = vmatmul.mubr.msk.bf16.gmra.mrb[156].mxu1 %vm3325_vm2, %v16913_v62 }
 0x509   :  { %16082 = vmatprep.mubr.msk.bf16.mxu1 %vm3325_vm2, %v16914_v63 }
 0x510   :  { %16083 = vmatmul.mubr.msk.bf16.gmra.mrb[160].mxu1 %vm3325_vm2, %v16915_v1 }
 0x511   :  { %16086 = vmatprep.mubr.msk.bf16.mxu1 %vm3325_vm2, %v16916_v3 }
 0x518   :  { %16087 = vmatmul.mubr.msk.bf16.gmra.mrb[164].mxu1 %vm3325_vm2, %v16917_v5  ;;  %v16942_v5 = vld [vmem:[%s22323_s5 + $0x218] sm:$0xff]  }
 0x519   :  { %16090 = vmatprep.mubr.msk.bf16.mxu1 %vm3325_vm2, %v16918_v7 }
 0x520   :  { %16091 = vmatmul.mubr.msk.bf16.gmra.mrb[168].mxu1 %vm3325_vm2, %v16919_v8  ;;  %v16943_v8 = vld [vmem:[%s22323_s5 + $0x220] sm:$0xff]  }
 0x521   :  { %16094 = vmatprep.mubr.msk.bf16.mxu1 %vm3325_vm2, %v16920_v9 }
 0x528   :  { %16095 = vmatmul.mubr.msk.bf16.gmra.mrb[172].mxu1 %vm3325_vm2, %v16921_v47 }
 0x529   :  { %16098 = vmatprep.mubr.msk.bf16.mxu1 %vm3325_vm2, %v16922_v45 }
 0x530   :  { %16099 = vmatmul.mubr.msk.bf16.gmra.mrb[176].mxu1 %vm3325_vm2, %v16923_v2 }
 0x531   :  { %16102 = vmatprep.mubr.msk.bf16.mxu1 %vm3325_vm2, %v16924_v10 }
 0x538   :  { %16103 = vmatmul.mubr.msk.bf16.gmra.mrb[180].mxu1 %vm3325_vm2, %v16925_v58  ;;  %v16944_v58 = vld [vmem:[%s22323_s5 + $0x228] sm:$0xff]  }
 0x539   :  { %16106 = vmatprep.mubr.msk.bf16.mxu1 %vm3325_vm2, %v16926_v6 }
 0x540   :  { %16107 = vmatmul.mubr.msk.bf16.gmra.mrb[184].mxu1 %vm3325_vm2, %v16927_v12  ;;  %v16945_v12 = vld [vmem:[%s22323_s5 + $0x230] sm:$0xff]  }
 0x541   :  { %16110 = vmatprep.mubr.msk.bf16.mxu1 %vm3325_vm2, %v16928_v13 }
 0x543   :  { %v18632_v14 = vpop.f32.mrb[80].mxu1 }
 0x544   :  { %v18634_v15 = vpop.f32.mrb[81].mxu1 }
 0x545   :  { %v18639_v17 = vpop.f32.mrb[82].mxu1 }
 0x546   :  { %v4156_v19 = vpack.c.bf16 %v18639_v17, %v18632_v14  ;;  %v18646_v21 = vpop.f32.mrb[83].mxu1 }
 0x547   :  { %v4155_v11 = vpack.c.bf16 %v18646_v21, %v18634_v15  ;;  %v16953_v21 = vld [vmem:[%s22324_s6 + $0x50] sm:$0xff]  }
 0x548   :  { %16111 = vmatmul.mubr.msk.bf16.gmra.mrb[188].mxu1 %vm3325_vm2, %v16929_v16 }
 0x549   :  { %16114 = vmatprep.mubr.msk.bf16.mxu1 %vm3325_vm2, %v16931_v18 }
 0x54b   :  { %v18652_v22 = vpop.f32.mrb[84].mxu1 }
 0x54c   :  { %v18654_v23 = vpop.f32.mrb[85].mxu1 }
 0x54d   :  { %v18659_v25 = vpop.f32.mrb[86].mxu1 }
 0x54e   :  { %v4158_v28 = vpack.c.bf16 %v18659_v25, %v18652_v22  ;;  %v18666_v29 = vpop.f32.mrb[87].mxu1 }
 0x54f   :  { %v4157_v26 = vpack.c.bf16 %v18666_v29, %v18654_v23  ;;  %v16955_v29 = vld [vmem:[%s22324_s6 + $0x60] sm:$0xff]  }
 0x550   :  { %16115 = vmatmul.mubr.msk.bf16.gmra.mrb[192].mxu1 %vm3325_vm2, %v16932_v24 }
 0x551   :  { %16118 = vmatprep.mubr.msk.bf16.mxu1 %vm3325_vm2, %v16933_v27 }
 0x553   :  { %v18672_v31 = vpop.f32.mrb[88].mxu1 }
 0x554   :  { %v18674_v32 = vpop.f32.mrb[89].mxu1 }
 0x555   :  { %v18679_v34 = vpop.f32.mrb[90].mxu1 }
 0x556   :  { %v4160_v35 = vpack.c.bf16 %v18679_v34, %v18672_v31  ;;  %v18686_v37 = vpop.f32.mrb[91].mxu1 }
 0x557   :  { %v4159_v38 = vpack.c.bf16 %v18686_v37, %v18674_v32 }
 0x558   :  { %16119 = vmatmul.mubr.msk.bf16.gmra.mrb[196].mxu1 %vm3325_vm2, %v16934_v33  ;;  %v16946_v33 = vld [vmem:[%s22323_s5 + $0x238] sm:$0xff]  }
 0x559   :  { %16122 = vmatprep.mubr.msk.bf16.mxu1 %vm3325_vm2, %v16935_v20 }
 0x55b   :  { %v18692_v39 = vpop.f32.mrb[92].mxu1 }
 0x55c   :  { %v18694_v40 = vpop.f32.mrb[93].mxu1 }
 0x55d   :  { %v18699_v42 = vpop.f32.mrb[94].mxu1 }
 0x55e   :  { %v4162_v44 = vpack.c.bf16 %v18699_v42, %v18692_v39  ;;  %v18706_v46 = vpop.f32.mrb[95].mxu1  ;;  %v16956_v39 = vld [vmem:[%s22324_s6 + $0x68] sm:$0xff]  }
 0x55f   :  { %v4161_v48 = vpack.c.bf16 %v18706_v46, %v18694_v40 }
 0x560   :  { %16123 = vmatmul.mubr.msk.bf16.gmra.mrb[200].mxu1 %vm3325_vm2, %v16936_v41 }
 0x561   :  { %16126 = vmatprep.mubr.msk.bf16.mxu1 %vm3325_vm2, %v16937_v43 }
 0x563   :  { %v16020_v49 = vpop.f32.mrb[96].mxu1 }
 0x564   :  { %v3644_v50 = vpop.f32.mrb[97].mxu1 }
 0x565   :  { %v16021_v52 = vpop.f32.mrb[98].mxu1 }
 0x566   :  { %v4164_v53 = vpack.c.bf16 %v16021_v52, %v16020_v49  ;;  %v3647_v54 = vpop.f32.mrb[99].mxu1 }
 0x567   :  { %v4163_v55 = vpack.c.bf16 %v3647_v54, %v3644_v50 }
 0x568   :  { %16127 = vmatmul.mubr.msk.bf16.gmra.mrb[204].mxu1 %vm3325_vm2, %v16938_v51 }
 0x569   :  { %16130 = vmatprep.mubr.msk.bf16.mxu1 %vm3325_vm2, %v16939_v30 }
 0x56b   :  { %v16024_v57 = vpop.f32.mrb[100].mxu1 }
 0x56c   :  { %v3660_v59 = vpop.f32.mrb[101].mxu1 }
 0x56d   :  { %v16025_v61 = vpop.f32.mrb[102].mxu1 }
 0x56e   :  { %v4166_v36 = vpack.c.bf16 %v16025_v61, %v16024_v57  ;;  %v3663_v62 = vpop.f32.mrb[103].mxu1  ;;  %v16948_v57 = vld [vmem:[%s22324_s6 + $0x8] sm:$0xff]  }
 0x56f   :  { %v4165_v63 = vpack.c.bf16 %v3663_v62, %v3660_v59 }
 0x570   :  { %16131 = vmatmul.mubr.msk.bf16.gmra.mrb[208].mxu1 %vm3325_vm2, %v16940_v60 }
 0x571   :  { %16134 = vmatprep.mubr.msk.bf16.mxu1 %vm3325_vm2, %v16941_v56 }
 0x573   :  { %v18728_v1 = vpop.f32.mrb[104].mxu1 }
 0x574   :  { %v3676_v3 = vpop.f32.mrb[105].mxu1 }
 0x575   :  { %v16029_v7 = vpop.f32.mrb[106].mxu1 }
 0x576   :  { %v4168_v9 = vpack.c.bf16 %v16029_v7, %v18728_v1  ;;  %v3679_v47 = vpop.f32.mrb[107].mxu1  ;;  %v16951_v1 = vld [vmem:[%s22324_s6 + $0x40] sm:$0xff]  }
 0x577   :  { %v4167_v45 = vpack.c.bf16 %v3679_v47, %v3676_v3 }
 0x578   :  { %16135 = vmatmul.mubr.msk.bf16.gmra.mrb[212].mxu1 %vm3325_vm2, %v16942_v5 }
 0x579   :  { %16138 = vmatprep.mubr.msk.bf16.mxu1 %vm3325_vm2, %v16943_v8 }
 0x57b   :  { %v18739_v2 = vpop.f32.mrb[108].mxu1 }
 0x57c   :  { %v3692_v10 = vpop.f32.mrb[109].mxu1 }
 0x57d   :  { %v16033_v6 = vpop.f32.mrb[110].mxu1 }
 0x57e   :  { %v4170_v13 = vpack.c.bf16 %v16033_v6, %v18739_v2  ;;  %v3695_v16 = vpop.f32.mrb[111].mxu1 }
 0x57f   :  { %v4169_v18 = vpack.c.bf16 %v3695_v16, %v3692_v10 }
 0x580   :  { %16139 = vmatmul.mubr.msk.bf16.gmra.mrb[216].mxu1 %vm3325_vm2, %v16944_v58 }
 0x581   :  { %16142 = vmatprep.mubr.msk.bf16.mxu1 %vm3325_vm2, %v16945_v12 }
 0x583   :  { %v18750_v24 = vpop.f32.mrb[112].mxu1 }
 0x584   :  { %v18752_v27 = vpop.f32.mrb[113].mxu1 }
 0x585   :  { %v18757_v20 = vpop.f32.mrb[114].mxu1 }
 0x586   :  { %v4172_v41 = vpack.c.bf16 %v18757_v20, %v18750_v24  ;;  %v18761_v43 = vpop.f32.mrb[115].mxu1 }
 0x587   :  { %v4171_v49 = vpack.c.bf16 %v18761_v43, %v18752_v27 }
 0x588   :  { %16143 = vmatmul.mubr.msk.bf16.gmra.mrb[220].mxu1 %vm3325_vm2, %v16946_v33 }
 0x589   :  { %16154 = vmatprep.mubr.msk.bf16.mxu1 %vm4268_vm3, %v4163_v55  ;;  %v16949_v55 = vld [vmem:[%s22324_s6 + $0x10] sm:$0xff]  }
 0x58b   :  { %v18767_v50 = vpop.f32.mrb[116].mxu1 }
 0x58c   :  { %v18769_v51 = vpop.f32.mrb[117].mxu1 }
 0x58d   :  { %v18771_v52 = vpop.f32.mrb[118].mxu1 }
 0x58e   :  { %v4174_v30 = vpack.c.bf16 %v18771_v52, %v18767_v50  ;;  %v18775_v54 = vpop.f32.mrb[119].mxu1 }
 0x58f   :  { %v4173_v59 = vpack.c.bf16 %v18775_v54, %v18769_v51  ;;  %v16959_v54 = vld [vmem:[%s22324_s6 + $0x80] sm:$0xff]  }
 0x590   :  { %16155 = vmatmul.mubr.msk.bf16.vlgmr.msra.gmra.mrb[224].mxu1 %vm4268_vm3, %v4164_v53 }
 0x591   :  { %16158 = vmatprep.mubr.msk.bf16.mxu1 %vm4268_vm3, %v4165_v63  ;;  %16171 = vmatpush3.bf16.msra.mxu1 %v18581_v4  ;;  %v16950_v4 = vld [vmem:[%s22324_s6 + $0x18] sm:$0xff]  }
 0x592   :  { %16172 = vmatprep.subr.bf16.mxu1 %v16948_v57 }
 0x593   :  { %v18788_v60 = vpop.f32.mrb[120].mxu1 }
 0x594   :  { %v18790_v61 = vpop.f32.mrb[121].mxu1 }
 0x595   :  { %v18792_v56 = vpop.f32.mrb[122].mxu1  ;;  %16173 = vmatpush3.bf16.msra.mxu1 %v16948_v57 }
 0x596   :  { %v4176_v62 = vpack.c.bf16 %v18792_v56, %v18788_v60  ;;  %v18796_v53 = vpop.f32.mrb[123].mxu1  ;;  %16174 = vmatprep.subr.bf16.mxu1 %v16949_v55 }
 0x597   :  { %v4175_v63 = vpack.c.bf16 %v18796_v53, %v18790_v61 }
 0x598   :  { %16159 = vmatmul.mubr.msk.bf16.gmra.mrb[228].mxu1 %vm4268_vm3, %v4166_v36 }
 0x599   :  { %16162 = vmatprep.mubr.msk.bf16.mxu1 %vm4268_vm3, %v4167_v45  ;;  %16175 = vmatpush3.bf16.msra.mxu1 %v16949_v55 }
 0x59a   :  { %16176 = vmatprep.subr.bf16.mxu1 %v16950_v4 }
 0x59b   :  { %v18808_v3 = vpop.f32.mrb[124].mxu1 }
 0x59c   :  { %v18810_v5 = vpop.f32.mrb[125].mxu1 }
 0x59d   :  { %v18812_v7 = vpop.f32.mrb[126].mxu1  ;;  %16177 = vmatpush3.bf16.msra.mxu1 %v16950_v4 }
 0x59e   :  { %v4178_v8 = vpack.c.bf16 %v18812_v7, %v18808_v3  ;;  %v18816_v47 = vpop.f32.mrb[127].mxu1  ;;  %16194 = vmatprep.subr.bf16.mxu1 %v16951_v1  ;;  %v16960_v3 = vld [vmem:[%s22324_s6 + $0x88] sm:$0xff]  }
 0x59f   :  { %v4177_v36 = vpack.c.bf16 %v18816_v47, %v18810_v5 }
 0x5a0   :  { %16163 = vmatmul.mubr.msk.bf16.gmra.mrb[232].mxu1 %vm4268_vm3, %v4168_v9 }
 0x5a1   :  { %16166 = vmatprep.mubr.msk.bf16.mxu1 %vm4268_vm3, %v4169_v18 }
 0x5a3   :  { %v18822_v45 = vpop.f32.mrb[128].mxu1 }
 0x5a4   :  { %v18824_v2 = vpop.f32.mrb[129].mxu1 }
 0x5a5   :  { %v18826_v10 = vpop.f32.mrb[130].mxu1 }
 0x5a6   :  { %v4180_v58 = vpack.c.bf16 %v18826_v10, %v18822_v45  ;;  %v18830_v6 = vpop.f32.mrb[131].mxu1 }
 0x5a7   :  { %v4179_v12 = vpack.c.bf16 %v18830_v6, %v18824_v2 }
 0x5a8   :  { %16167 = vmatmul.mubr.msk.bf16.gmra.mrb[236].mxu1 %vm4268_vm3, %v4170_v13  ;;  %v16952_v13 = vld [vmem:[%s22324_s6 + $0x48] sm:$0xff]  }
 0x5a9   :  { %16178 = vmatprep.mubr.msk.bf16.mxu1 %vm4268_vm3, %v4155_v11 }
 0x5ab   :  { %v18839_v9 = vpop.f32.mrb[132].mxu1 }
 0x5ac   :  { %v18841_v16 = vpop.f32.mrb[133].mxu1 }
 0x5ad   :  { %v18843_v18 = vpop.f32.mrb[134].mxu1 }
 0x5ae   :  { %v4182_v33 = vpack.c.bf16 %v18843_v18, %v18839_v9  ;;  %v18847_v57 = vpop.f32.mrb[135].mxu1 }
 0x5af   :  { %v4181_v15 = vpack.c.bf16 %v18847_v57, %v18841_v16  ;;  %v16963_v57 = vld [vmem:[%s22324_s6 + $0xa0] sm:$0xff]  }
 0x5b0   :  { %16179 = vmatmul.mubr.msk.bf16.vlgmr.msra.gmra.mrb[224].mxu1 %vm4268_vm3, %v4156_v19  ;;  %v16954_v19 = vld [vmem:[%s22324_s6 + $0x58] sm:$0xff]  }
 0x5b1   :  { %16182 = vmatprep.mubr.msk.bf16.mxu1 %vm4268_vm3, %v4157_v26  ;;  %16195 = vmatpush3.bf16.msra.mxu1 %v16951_v1 }
 0x5b2   :  { %16196 = vmatprep.subr.bf16.mxu1 %v16952_v13 }
 0x5b3   :  { %v18865_v11 = vpop.f32.mrb[136].mxu1 }
 0x5b4   :  { %v18867_v55 = vpop.f32.mrb[137].mxu1 }
 0x5b5   :  { %v18869_v4 = vpop.f32.mrb[138].mxu1  ;;  %16197 = vmatpush3.bf16.msra.mxu1 %v16952_v13 }
 0x5b6   :  { %v4184_v14 = vpack.c.bf16 %v18869_v4, %v18865_v11  ;;  %v18873_v17 = vpop.f32.mrb[139].mxu1  ;;  %16198 = vmatprep.subr.bf16.mxu1 %v16953_v21 }
 0x5b7   :  { %v4183_v23 = vpack.c.bf16 %v18873_v17, %v18867_v55 }
 0x5b8   :  { %16183 = vmatmul.mubr.msk.bf16.gmra.mrb[228].mxu1 %vm4268_vm3, %v4158_v28 }
 0x5b9   :  { %16186 = vmatprep.mubr.msk.bf16.mxu1 %vm4268_vm3, %v4159_v38  ;;  %16199 = vmatpush3.bf16.msra.mxu1 %v16953_v21 }
 0x5ba   :  { %16200 = vmatprep.subr.bf16.mxu1 %v16954_v19 }
 0x5bb   :  { %v18891_v26 = vpop.f32.mrb[140].mxu1 }
 0x5bc   :  { %v18893_v1 = vpop.f32.mrb[141].mxu1 }
 0x5bd   :  { %v18895_v13 = vpop.f32.mrb[142].mxu1  ;;  %16201 = vmatpush3.bf16.msra.mxu1 %v16954_v19 }
 0x5be   :  { %v4186_v22 = vpack.c.bf16 %v18895_v13, %v18891_v26  ;;  %v18899_v25 = vpop.f32.mrb[143].mxu1  ;;  %16218 = vmatprep.subr.bf16.mxu1 %v16955_v29  ;;  %v16964_v26 = vld [vmem:[%s22324_s6 + $0xa8] sm:$0xff]  }
 0x5bf   :  { %v4185_v28 = vpack.c.bf16 %v18899_v25, %v18893_v1 }
 0x5c0   :  { %16187 = vmatmul.mubr.msk.bf16.gmra.mrb[232].mxu1 %vm4268_vm3, %v4160_v35 }
 0x5c1   :  { %16190 = vmatprep.mubr.msk.bf16.mxu1 %vm4268_vm3, %v4161_v48 }
 0x5c3   :  { %v18911_v32 = vpop.f32.mrb[144].mxu1 }
 0x5c4   :  { %v18913_v37 = vpop.f32.mrb[145].mxu1 }
 0x5c5   :  { %v18915_v38 = vpop.f32.mrb[146].mxu1 }
 0x5c6   :  { %v4188_v21 = vpack.c.bf16 %v18915_v38, %v18911_v32  ;;  %v18919_v19 = vpop.f32.mrb[147].mxu1 }
 0x5c7   :  { %v4187_v31 = vpack.c.bf16 %v18919_v19, %v18913_v37 }
 0x5c8   :  { %16191 = vmatmul.mubr.msk.bf16.gmra.mrb[236].mxu1 %vm4268_vm3, %v4162_v44  ;;  %v16957_v44 = vld [vmem:[%s22324_s6 + $0x70] sm:$0xff]  }
 0x5c9   :  { %16202 = vmatprep.mubr.msk.bf16.mxu1 %vm4268_vm3, %v4171_v49 }
 0x5cb   :  { %v18931_v34 = vpop.f32.mrb[148].mxu1 }
 0x5cc   :  { %v18933_v35 = vpop.f32.mrb[149].mxu1 }
 0x5cd   :  { %v18935_v40 = vpop.f32.mrb[150].mxu1 }
 0x5ce   :  { %v4190_v46 = vpack.c.bf16 %v18935_v40, %v18931_v34  ;;  %v18939_v48 = vpop.f32.mrb[151].mxu1 }
 0x5cf   :  { %v4189_v42 = vpack.c.bf16 %v18939_v48, %v18933_v35  ;;  %v16967_v48 = vld [vmem:[%s22324_s6 + $0xc0] sm:$0xff]  }
 0x5d0   :  { %16203 = vmatmul.mubr.msk.bf16.vlgmr.msra.gmra.mrb[224].mxu1 %vm4268_vm3, %v4172_v41  ;;  %v16958_v41 = vld [vmem:[%s22324_s6 + $0x78] sm:$0xff]  }
 0x5d1   :  { %16206 = vmatprep.mubr.msk.bf16.mxu1 %vm4268_vm3, %v4173_v59  ;;  %16219 = vmatpush3.bf16.msra.mxu1 %v16955_v29 }
 0x5d2   :  { %16220 = vmatprep.subr.bf16.mxu1 %v16956_v39 }
 0x5d3   :  { %v18957_v27 = vpop.f32.mrb[152].mxu1 }
 0x5d4   :  { %v18959_v43 = vpop.f32.mrb[153].mxu1 }
 0x5d5   :  { %v18961_v49 = vpop.f32.mrb[154].mxu1  ;;  %16221 = vmatpush3.bf16.msra.mxu1 %v16956_v39 }
 0x5d6   :  { %v4192_v24 = vpack.c.bf16 %v18961_v49, %v18957_v27  ;;  %v18965_v20 = vpop.f32.mrb[155].mxu1  ;;  %16222 = vmatprep.subr.bf16.mxu1 %v16957_v44  ;;  %v14299_v49 = vld [vmem:[%s22326_s8 + $0x100] sm:$0xff] }
 0x5d7   :  { %v4191_v51 = vpack.c.bf16 %v18965_v20, %v18959_v43 }
 0x5d8   :  { %16207 = vmatmul.mubr.msk.bf16.gmra.mrb[228].mxu1 %vm4268_vm3, %v4174_v30 }
 0x5d9   :  { %16210 = vmatprep.mubr.msk.bf16.mxu1 %vm4268_vm3, %v4175_v63  ;;  %16223 = vmatpush3.bf16.msra.mxu1 %v16957_v44 }
 0x5da   :  { %16224 = vmatprep.subr.bf16.mxu1 %v16958_v41 }
 0x5db   :  { %v18983_v59 = vpop.f32.mrb[156].mxu1 }
 0x5dc   :  { %v18985_v29 = vpop.f32.mrb[157].mxu1 }
 0x5dd   :  { %v18987_v39 = vpop.f32.mrb[158].mxu1  ;;  %16225 = vmatpush3.bf16.msra.mxu1 %v16958_v41 }
 0x5de   :  { %v4194_v50 = vpack.c.bf16 %v18987_v39, %v18983_v59  ;;  %v18991_v52 = vpop.f32.mrb[159].mxu1  ;;  %16242 = vmatprep.subr.bf16.mxu1 %v16959_v54 }
 0x5df   :  { %v4193_v30 = vpack.c.bf16 %v18991_v52, %v18985_v29  ;;  %v14307_v29 = vld [vmem:[%s22326_s8 + $0x140] sm:$0xff] }
 0x5e0   :  { %16211 = vmatmul.mubr.msk.bf16.gmra.mrb[232].mxu1 %vm4268_vm3, %v4176_v62 }
 0x5e1   :  { %16214 = vmatprep.mubr.msk.bf16.mxu1 %vm4268_vm3, %v4177_v36 }
 0x5e3   :  { %v19003_v61 = vpop.f32.mrb[160].mxu1 }
 0x5e4   :  { %v19005_v53 = vpop.f32.mrb[161].mxu1 }
 0x5e5   :  { %v19007_v63 = vpop.f32.mrb[162].mxu1 }
 0x5e6   :  { %v4196_v44 = vpack.c.bf16 %v19007_v63, %v19003_v61  ;;  %v19011_v41 = vpop.f32.mrb[163].mxu1  ;;  %v16969_v61 = vld [vmem:[%s22324_s6 + $0xd0] sm:$0xff]  }
 0x5e7   :  { %v4195_v60 = vpack.c.bf16 %v19011_v41, %v19005_v53  ;;  %v14315_v41 = vld [vmem:[%s22326_s8 + $0x180] sm:$0xff] }
 0x5e8   :  { %16215 = vmatmul.mubr.msk.bf16.gmra.mrb[236].mxu1 %vm4268_vm3, %v4178_v8  ;;  %v16961_v8 = vld [vmem:[%s22324_s6 + $0x90] sm:$0xff]  }
 0x5e9   :  { %16226 = vmatprep.mubr.msk.bf16.mxu1 %vm4268_vm3, %v4179_v12 }
 0x5eb   :  { %v19023_v56 = vpop.f32.mrb[164].mxu1 }
 0x5ec   :  { %v19025_v62 = vpop.f32.mrb[165].mxu1 }
 0x5ed   :  { %v19027_v5 = vpop.f32.mrb[166].mxu1 }
 0x5ee   :  { %v4198_v47 = vpack.c.bf16 %v19027_v5, %v19023_v56  ;;  %v19031_v36 = vpop.f32.mrb[167].mxu1 }
 0x5ef   :  { %v4197_v7 = vpack.c.bf16 %v19031_v36, %v19025_v62 }
 0x5f0   :  { %16227 = vmatmul.mubr.msk.bf16.vlgmr.msra.gmra.mrb[224].mxu1 %vm4268_vm3, %v4180_v58  ;;  %v16962_v58 = vld [vmem:[%s22324_s6 + $0x98] sm:$0xff]  }
 0x5f1   :  { %16230 = vmatprep.mubr.msk.bf16.mxu1 %vm4268_vm3, %v4181_v15  ;;  %16243 = vmatpush3.bf16.msra.mxu1 %v16959_v54 }
 0x5f2   :  { %16244 = vmatprep.subr.bf16.mxu1 %v16960_v3 }
 0x5f3   :  { %v19049_v2 = vpop.f32.mrb[168].mxu1 }
 0x5f4   :  { %v19051_v6 = vpop.f32.mrb[169].mxu1 }
 0x5f5   :  { %v19053_v12 = vpop.f32.mrb[170].mxu1  ;;  %16245 = vmatpush3.bf16.msra.mxu1 %v16960_v3 }
 0x5f6   :  { %v4200_v45 = vpack.c.bf16 %v19053_v12, %v19049_v2  ;;  %v19057_v10 = vpop.f32.mrb[171].mxu1  ;;  %16246 = vmatprep.subr.bf16.mxu1 %v16961_v8 }
 0x5f7   :  { %v4199_v16 = vpack.c.bf16 %v19057_v10, %v19051_v6 }
 0x5f8   :  { %16231 = vmatmul.mubr.msk.bf16.gmra.mrb[228].mxu1 %vm4268_vm3, %v4182_v33 }
 0x5f9   :  { %16234 = vmatprep.mubr.msk.bf16.mxu1 %vm4268_vm3, %v4183_v23  ;;  %16247 = vmatpush3.bf16.msra.mxu1 %v16961_v8 }
 0x5fa   :  { %16248 = vmatprep.subr.bf16.mxu1 %v16962_v58 }
 0x5fb   :  { %v19075_v15 = vpop.f32.mrb[172].mxu1 }
 0x5fc   :  { %v19077_v54 = vpop.f32.mrb[173].mxu1 }
 0x5fd   :  { %v19079_v3 = vpop.f32.mrb[174].mxu1  ;;  %16249 = vmatpush3.bf16.msra.mxu1 %v16962_v58 }
 0x5fe   :  { %v4202_v9 = vpack.c.bf16 %v19079_v3, %v19075_v15  ;;  %v19083_v18 = vpop.f32.mrb[175].mxu1  ;;  %16266 = vmatprep.subr.bf16.mxu1 %v16963_v57  ;;  %v16972_v15 = vld [vmem:[%s22324_s6 + $0xe8] sm:$0xff]  }
 0x5ff   :  { %v4201_v33 = vpack.c.bf16 %v19083_v18, %v19077_v54 }
 0x600   :  { %16235 = vmatmul.mubr.msk.bf16.gmra.mrb[232].mxu1 %vm4268_vm3, %v4184_v14 }
 0x601   :  { %16238 = vmatprep.mubr.msk.bf16.mxu1 %vm4268_vm3, %v4185_v28 }
 0x603   :  { %v19095_v55 = vpop.f32.mrb[176].mxu1 }
 0x604   :  { %v19097_v17 = vpop.f32.mrb[177].mxu1 }
 0x605   :  { %v19099_v23 = vpop.f32.mrb[178].mxu1 }
 0x606   :  { %v4204_v8 = vpack.c.bf16 %v19099_v23, %v19095_v55  ;;  %v19103_v58 = vpop.f32.mrb[179].mxu1  ;;  %v16974_v55 = vld [vmem:[%s22324_s6 + $0xf8] sm:$0xff]  }
 0x607   :  { %v4203_v11 = vpack.c.bf16 %v19103_v58, %v19097_v17 }
 0x608   :  { %16239 = vmatmul.mubr.msk.bf16.gmra.mrb[236].mxu1 %vm4268_vm3, %v4186_v22  ;;  %v16965_v22 = vld [vmem:[%s22324_s6 + $0xb0] sm:$0xff]  }
 0x609   :  { %16250 = vmatprep.mubr.msk.bf16.mxu1 %vm4268_vm3, %v4187_v31 }
 0x60b   :  { %v19115_v4 = vpop.f32.mrb[180].mxu1 }
 0x60c   :  { %v19117_v14 = vpop.f32.mrb[181].mxu1 }
 0x60d   :  { %v19119_v1 = vpop.f32.mrb[182].mxu1 }
 0x60e   :  { %v4206_v25 = vpack.c.bf16 %v19119_v1, %v19115_v4  ;;  %v19123_v28 = vpop.f32.mrb[183].mxu1 }
 0x60f   :  { %v4205_v13 = vpack.c.bf16 %v19123_v28, %v19117_v14 }
 0x610   :  { %16251 = vmatmul.mubr.msk.bf16.vlgmr.msra.gmra.mrb[224].mxu1 %vm4268_vm3, %v4188_v21  ;;  %v16966_v21 = vld [vmem:[%s22324_s6 + $0xb8] sm:$0xff]  }
 0x611   :  { %16254 = vmatprep.mubr.msk.bf16.mxu1 %vm4268_vm3, %v4189_v42  ;;  %16267 = vmatpush3.bf16.msra.mxu1 %v16963_v57 }
 0x612   :  { %16268 = vmatprep.subr.bf16.mxu1 %v16964_v26 }
 0x613   :  { %v19141_v37 = vpop.f32.mrb[184].mxu1 }
 0x614   :  { %v19143_v19 = vpop.f32.mrb[185].mxu1 }
 0x615   :  { %v19145_v31 = vpop.f32.mrb[186].mxu1  ;;  %16269 = vmatpush3.bf16.msra.mxu1 %v16964_v26 }
 0x616   :  { %v4208_v32 = vpack.c.bf16 %v19145_v31, %v19141_v37  ;;  %v19149_v38 = vpop.f32.mrb[187].mxu1  ;;  %16270 = vmatprep.subr.bf16.mxu1 %v16965_v22  ;;  %v16976_v37 = vld [vmem:[%s22324_s6 + $0x108] sm:$0xff]   ;;  %v16977_v31 = vld [vmem:[%s22324_s6 + $0x110] sm:$0xff]  }
 0x617   :  { %v4207_v35 = vpack.c.bf16 %v19149_v38, %v19143_v19  ;;  %v14404_v38 = vld [vmem:[%s22326_s8 + $0x208] sm:$0xff] }
 0x618   :  { %16255 = vmatmul.mubr.msk.bf16.gmra.mrb[228].mxu1 %vm4268_vm3, %v4190_v46 }
 0x619   :  { %16258 = vmatprep.mubr.msk.bf16.mxu1 %vm4268_vm3, %v4191_v51  ;;  %16271 = vmatpush3.bf16.msra.mxu1 %v16965_v22 }
 0x61a   :  { %16272 = vmatprep.subr.bf16.mxu1 %v16966_v21 }
 0x61b   :  { %v19167_v42 = vpop.f32.mrb[188].mxu1 }
 0x61c   :  { %v19169_v57 = vpop.f32.mrb[189].mxu1 }
 0x61d   :  { %v19171_v26 = vpop.f32.mrb[190].mxu1  ;;  %16273 = vmatpush3.bf16.msra.mxu1 %v16966_v21 }
 0x61e   :  { %v19175_v40 = vpop.f32.mrb[191].mxu1  ;;  %16290 = vmatprep.subr.bf16.mxu1 %v16967_v48  ;;  %v22334_v1 = vpack.c.bf16 %v19171_v26, %v19167_v42  ;;  %v14416_v26 = vld [vmem:[%s22326_s8 + $0x268] sm:$0xff] }
 0x61f   :  { %v4209_v46 = vpack.c.bf16 %v19175_v40, %v19169_v57 }
 0x620   :  { %16259 = vmatmul.mubr.msk.bf16.gmra.mrb[232].mxu1 %vm4268_vm3, %v4192_v24  ;;  %v14303_v24 = vld [vmem:[%s22326_s8 + $0x120] sm:$0xff] }
 0x621   :  { %16262 = vmatprep.mubr.msk.bf16.mxu1 %vm4268_vm3, %v4193_v30  ;;  %v14331_v59 = vcombine.low %v14299_v49, %v14303_v24  ;;  %v14332_v39 = vcombine.high %v14299_v49, %v14303_v24  ;;  %v14327_v49 = vld [vmem:[%s22326_s8 + $0x1e0] sm:$0xff] }
 0x623   :  { %v19187_v43 = vpop.f32.mrb[192].mxu1  ;;  %6002 = vmatprep.subr.bf16.mxu0 %v14332_v39  ;;  %v16968_v39 = vld [vmem:[%s22324_s6 + $0xc8] sm:$0xff]  }
 0x624   :  { %v19189_v20 = vpop.f32.mrb[193].mxu1  ;;  %6003 = vmatpush1.bf16.msra.mxu0 %v14331_v59  ;;  %v14323_v59 = vld [vmem:[%s22326_s8 + $0x1c0] sm:$0xff] }
 0x625   :  { %v19191_v51 = vpop.f32.mrb[194].mxu1 }
 0x626   :  { %v19195_v21 = vpop.f32.mrb[195].mxu1  ;;  %v22336_v19 = vpack.c.bf16 %v19191_v51, %v19187_v43  ;;  %v14420_v51 = vld [vmem:[%s22326_s8 + $0x288] sm:$0xff] }
 0x628   :  { %16263 = vmatmul.mubr.msk.bf16.gmra.mrb[236].mxu1 %vm4268_vm3, %v4194_v50  ;;  %v14311_v50 = vld [vmem:[%s22326_s8 + $0x160] sm:$0xff] }
 0x629   :  { %16274 = vmatprep.mubr.msk.bf16.mxu1 %vm4268_vm3, %v4195_v60  ;;  %v14340_v30 = vcombine.high %v14307_v29, %v14311_v50  ;;  %v14319_v60 = vld [vmem:[%s22326_s8 + $0x1a0] sm:$0xff]  ;;  %v14339_v22 = vcombine.low %v14307_v29, %v14311_v50  ;;  %v14356_v29 = vcombine.high %v14323_v59, %v14327_v49 }
 0x62a   :  { %v14348_v34 = vcombine.high %v14315_v41, %v14319_v60  ;;  %v14347_v63 = vcombine.low %v14315_v41, %v14319_v60 }
 0x62b   :  { %v19219_v52 = vpop.f32.mrb[196].mxu1  ;;  %6004 = vmatprep.subr.bf16.mxu0 %v14340_v30 }
 0x62c   :  { %v19221_v53 = vpop.f32.mrb[197].mxu1  ;;  %6005 = vmatpush1.bf16.msra.mxu0 %v14339_v22  ;;  %v16971_v22 = vld [vmem:[%s22324_s6 + $0xe0] sm:$0xff]  }
 0x62d   :  { %v19229_v0 = vpop.f32.mrb[198].mxu1  ;;  %6006 = vmatprep.subr.bf16.mxu0 %v14348_v34 }
 0x62e   :  { %v19233_v24 = vpop.f32.mrb[199].mxu1  ;;  %v22337_v42 = vpack.c.bf16 %v19229_v0, %v19219_v52  ;;  %v14412_v0 = vld [vmem:[%s22326_s8 + $0x248] sm:$0xff] }
 0x62f   :  { %v4213_v27 = vpack.c.bf16 %v19233_v24, %v19221_v53  ;;  %v14445_v43 = vcombine.low %v14412_v0, %v14416_v26  ;;  %v14428_v53 = vld [vmem:[%s22326_s8 + $0x2c8] sm:$0xff] }
 0x630   :  { %16275 = vmatmul.mubr.msk.bf16.vlgmr.msra.gmra.mrb[224].mxu1 %vm4268_vm3, %v4196_v44  ;;  %6007 = vmatpush1.bf16.msra.mxu0 %v14347_v63  ;;  %v14432_v24 = vld [vmem:[%s22326_s8 + $0x2e8] sm:$0xff] }
 0x631   :  { %16278 = vmatprep.mubr.msk.bf16.mxu1 %vm4268_vm3, %v4197_v7  ;;  %16291 = vmatpush3.bf16.msra.mxu1 %v16967_v48  ;;  %v16970_v7 = vld [vmem:[%s22324_s6 + $0xd8] sm:$0xff]   ;;  %v14355_v48 = vcombine.low %v14323_v59, %v14327_v49 }
 0x632   :  { %16292 = vmatprep.subr.bf16.mxu1 %v16968_v39  ;;  %6008 = vmatprep.subr.bf16.mxu0 %v14356_v29 }
 0x633   :  { %v19257_v44 = vpop.f32.mrb[200].mxu1 }
 0x634   :  { %v19259_v50 = vpop.f32.mrb[201].mxu1  ;;  %6009 = vmatpush1.bf16.msra.mxu0 %v14355_v48 }
 0x635   :  { %v19261_v30 = vpop.f32.mrb[202].mxu1  ;;  %16293 = vmatpush3.bf16.msra.mxu1 %v16968_v39 }
 0x636   :  { %v4216_v62 = vpack.c.bf16 %v19261_v30, %v19257_v44  ;;  %v19265_v36 = vpop.f32.mrb[203].mxu1  ;;  %16294 = vmatprep.subr.bf16.mxu1 %v16969_v61  ;;  %v14462_v44 = vcombine.high %v14428_v53, %v14432_v24  ;;  %v14406_v30 = vld [vmem:[%s22326_s8 + $0x218] sm:$0xff] }
 0x637   :  { %v4215_v34 = vpack.c.bf16 %v19265_v36, %v19259_v50  ;;  %v14461_v50 = vcombine.low %v14428_v53, %v14432_v24  ;;  %v14472_v53 = vld [vmem:[%s22326_s8 + $0x308] sm:$0xff] }
 0x638   :  { %16279 = vmatmul.mubr.msk.bf16.gmra.mrb[228].mxu1 %vm4268_vm3, %v4198_v47  ;;  %v14476_v24 = vld [vmem:[%s22326_s8 + $0x328] sm:$0xff] }
 0x639   :  { %16282 = vmatprep.mubr.msk.bf16.mxu1 %vm4268_vm3, %v4199_v16  ;;  %16295 = vmatpush3.bf16.msra.mxu1 %v16969_v61 }
 0x63a   :  { %16296 = vmatprep.subr.bf16.mxu1 %v16970_v7 }
 0x63b   :  { %v19283_v41 = vpop.f32.mrb[204].mxu1 }
 0x63c   :  { %v19285_v60 = vpop.f32.mrb[205].mxu1 }
 0x63d   :  { %v19287_v49 = vpop.f32.mrb[206].mxu1  ;;  %16297 = vmatpush3.bf16.msra.mxu1 %v16970_v7 }
 0x63e   :  { %v4218_v56 = vpack.c.bf16 %v19287_v49, %v19283_v41  ;;  %v19291_v5 = vpop.f32.mrb[207].mxu1  ;;  %16314 = vmatprep.subr.bf16.mxu1 %v16971_v22  ;;  %v19467_v49 = vld [vmem:[%s22327_s7] ss:$0 sm:$0xff] }
 0x63f   :  { %v4217_v47 = vpack.c.bf16 %v19291_v5, %v19285_v60 }
 0x640   :  { %16283 = vmatmul.mubr.msk.bf16.gmra.mrb[232].mxu1 %vm4268_vm3, %v4200_v45 }
 0x641   :  { %16286 = vmatprep.mubr.msk.bf16.mxu1 %vm4268_vm3, %v4201_v33 }
 0x643   :  { %v19303_v6 = vpop.f32.mrb[208].mxu1 }
 0x644   :  { %v19305_v10 = vpop.f32.mrb[209].mxu1 }
 0x645   :  { %v19307_v16 = vpop.f32.mrb[210].mxu1 }
 0x646   :  { %v4220_v39 = vpack.c.bf16 %v19307_v16, %v19303_v6  ;;  %v19311_v59 = vpop.f32.mrb[211].mxu1 }
 0x647   :  { %v4219_v2 = vpack.c.bf16 %v19311_v59, %v19305_v10 }
 0x648   :  { %16287 = vmatmul.mubr.msk.bf16.gmra.mrb[236].mxu1 %vm4268_vm3, %v4202_v9  ;;  %v16973_v9 = vld [vmem:[%s22324_s6 + $0xf0] sm:$0xff]  }
 0x649   :  { %16298 = vmatprep.mubr.msk.bf16.mxu1 %vm4268_vm3, %v4203_v11 }
 0x64b   :  { %v19323_v12 = vpop.f32.mrb[212].mxu1 }
 0x64c   :  { %v19325_v45 = vpop.f32.mrb[213].mxu1 }
 0x64d   :  { %v19327_v54 = vpop.f32.mrb[214].mxu1 }
 0x64e   :  { %v4222_v18 = vpack.c.bf16 %v19327_v54, %v19323_v12  ;;  %v4111_v33 = vpop.f32.mrb[215].mxu1  ;;  %v14418_v12 = vld [vmem:[%s22326_s8 + $0x278] sm:$0xff] }
 0x64f   :  { %v4221_v3 = vpack.c.bf16 %v4111_v33, %v19325_v45 }
 0x650   :  { %16299 = vmatmul.mubr.msk.bf16.vlgmr.msra.gmra.mrb[224].mxu1 %vm4268_vm3, %v4204_v8  ;;  %v16975_v8 = vld [vmem:[%s22324_s6 + $0x100] sm:$0xff]  }
 0x651   :  { %16302 = vmatprep.mubr.msk.bf16.mxu1 %vm4268_vm3, %v4205_v13  ;;  %16315 = vmatpush3.bf16.msra.mxu1 %v16971_v22  ;;  %v14304_v22 = vld [vmem:[%s22326_s8 + $0x128] sm:$0xff] }
 0x652   :  { %16316 = vmatprep.subr.bf16.mxu1 %v16972_v15 }
 0x653   :  { %v16140_v17 = vpop.f32.mrb[216].mxu1 }
 0x654   :  { %v4124_v58 = vpop.f32.mrb[217].mxu1 }
 0x655   :  { %v16141_v11 = vpop.f32.mrb[218].mxu1  ;;  %16317 = vmatpush3.bf16.msra.mxu1 %v16972_v15 }
 0x656   :  { %v4224_v61 = vpack.c.bf16 %v16141_v11, %v16140_v17  ;;  %v4127_v63 = vpop.f32.mrb[219].mxu1  ;;  %16318 = vmatprep.subr.bf16.mxu1 %v16973_v9  ;;  %v14312_v17 = vld [vmem:[%s22326_s8 + $0x168] sm:$0xff] }
 0x657   :  { %v4223_v23 = vpack.c.bf16 %v4127_v63, %v4124_v58  ;;  %v14426_v63 = vld [vmem:[%s22326_s8 + $0x2b8] sm:$0xff] }
 0x658   :  { %16303 = vmatmul.mubr.msk.bf16.gmra.mrb[228].mxu1 %vm4268_vm3, %v4206_v25  ;;  %v22335_v25 = vpack.c.bf16 %v19195_v21, %v19189_v20  ;;  %v22338_v20 = vmov 0   ;;  %v14424_v21 = vld [vmem:[%s22326_s8 + $0x2a8] sm:$0xff] }
 0x659   :  { %16306 = vmatprep.mubr.msk.bf16.mxu1 %vm4268_vm3, %v4207_v35  ;;  %16319 = vmatpush3.bf16.msra.mxu1 %v16973_v9  ;;  %v14408_v35 = vld [vmem:[%s22326_s8 + $0x228] sm:$0xff]  ;;  %v14453_v52 = vcombine.low %v14420_v51, %v14424_v21 }
 0x65a   :  { %16320 = vmatprep.subr.bf16.mxu1 %v16974_v55  ;;  %v14438_v57 = vcombine.high %v14404_v38, %v14408_v35  ;;  %v14437_v40 = vcombine.low %v14404_v38, %v14408_v35  ;;  %v14308_v9 = vld [vmem:[%s22326_s8 + $0x148] sm:$0xff] }
 0x65b   :  { %v16144_v14 = vpop.f32.mrb[220].mxu1 }
 0x65c   :  { %v4140_v28 = vpop.f32.mrb[221].mxu1 }
 0x65d   :  { %v16145_v13 = vpop.f32.mrb[222].mxu1  ;;  %16321 = vmatpush3.bf16.msra.mxu1 %v16974_v55 }
 0x65e   :  { %v4226_v29 = vpack.c.bf16 %v16145_v13, %v16144_v14  ;;  %v4143_v7 = vpop.f32.mrb[223].mxu1  ;;  %16338 = vmatprep.subr.bf16.mxu1 %v16975_v8 }
 0x65f   :  { %v4225_v4 = vpack.c.bf16 %v4143_v7, %v4140_v28 }
 0x660   :  { %16307 = vmatmul.mubr.msk.bf16.gmra.mrb[232].mxu1 %vm4268_vm3, %v4208_v32  ;;  %v16978_v32 = vld [vmem:[%s22324_s6 + $0x118] sm:$0xff]  }
 0x661   :  { %16310 = vmatprep.mubr.msk.bf16.mxu1 %vm4268_vm3, %v4209_v46  ;;  %v14446_v46 = vcombine.high %v14412_v0, %v14416_v26 }
 0x668   :  { %16311 = vmatmul.mubr.msk.bf16.gmra.mrb[236].mxu1 %vm4268_vm3, %v22334_v1 }
 0x669   :  { %16322 = vmatprep.mubr.msk.bf16.mxu1 %vm4268_vm3, %v22335_v25  ;;  %v14316_v25 = vld [vmem:[%s22326_s8 + $0x188] sm:$0xff] }
 0x670   :  { %16323 = vmatmul.mubr.msk.bf16.vlgmr.msra.gmra.mrb[224].mxu1 %vm4268_vm3, %v22336_v19 }
 0x671   :  { %16326 = vmatprep.mubr.msk.bf16.mxu1 %vm4268_vm3, %v4213_v27  ;;  %16339 = vmatpush3.bf16.msra.mxu1 %v16975_v8  ;;  %v14454_v27 = vcombine.high %v14420_v51, %v14424_v21  ;;  %v14324_v51 = vld [vmem:[%s22326_s8 + $0x1c8] sm:$0xff] }
 0x672   :  { %16340 = vmatprep.subr.bf16.mxu1 %v16976_v37  ;;  %v14328_v21 = vld [vmem:[%s22326_s8 + $0x1e8] sm:$0xff] }
 0x675   :  { %16341 = vmatpush3.bf16.msra.mxu1 %v16976_v37  ;;  %v14320_v37 = vld [vmem:[%s22326_s8 + $0x1a8] sm:$0xff] }
 0x676   :  { %16342 = vmatprep.subr.bf16.mxu1 %v16977_v31 }
 0x678   :  { %16327 = vmatmul.mubr.msk.bf16.gmra.mrb[228].mxu1 %vm4268_vm3, %v22337_v42  ;;  %v14341_v42 = vcombine.low %v14308_v9, %v14312_v17 }
 0x679   :  { %16330 = vmatprep.mubr.msk.bf16.mxu1 %vm4268_vm3, %v4215_v34  ;;  %16343 = vmatpush3.bf16.msra.mxu1 %v16977_v31  ;;  %v14300_v34 = vld [vmem:[%s22326_s8 + $0x108] sm:$0xff]  ;;  %v14430_v31 = vld [vmem:[%s22326_s8 + $0x2d8] sm:$0xff] }
 0x67a   :  { %16344 = vmatprep.subr.bf16.mxu1 %v16978_v32  ;;  %v14334_v41 = vcombine.high %v14300_v34, %v14304_v22  ;;  %v14333_v60 = vcombine.low %v14300_v34, %v14304_v22  ;;  %v14358_v34 = vcombine.high %v14324_v51, %v14328_v21 }
 0x67c   :  { %6043 = vmatprep.subr.bf16.mxu0 %v14334_v41 }
 0x67d   :  { %16345 = vmatpush3.bf16.msra.mxu1 %v16978_v32  ;;  %v14434_v32 = vld [vmem:[%s22326_s8 + $0x2f8] sm:$0xff] }
 0x67e   :  { %6730 = vmatprep.subr.bf16.mxu1 %v14438_v57 }
 0x680   :  { %16331 = vmatmul.mubr.msk.bf16.gmra.mrb[232].mxu1 %vm4268_vm3, %v4216_v62  ;;  %v14410_v62 = vld [vmem:[%s22326_s8 + $0x238] sm:$0xff] }
 0x681   :  { %16334 = vmatprep.mubr.msk.bf16.mxu1 %vm4268_vm3, %v4217_v47  ;;  %v14442_v36 = vcombine.high %v14406_v30, %v14410_v62  ;;  %v14441_v48 = vcombine.low %v14406_v30, %v14410_v62  ;;  %v14349_v30 = vcombine.low %v14316_v25, %v14320_v37 }
 0x688   :  { %16335 = vmatmul.mubr.msk.bf16.gmra.mrb[236].mxu1 %vm4268_vm3, %v4218_v56 }
 0x689   :  { %16346 = vmatprep.mubr.msk.bf16.mxu1 %vm4268_vm3, %v4219_v2  ;;  %v14414_v2 = vld [vmem:[%s22326_s8 + $0x258] sm:$0xff] }
 0x68a   :  { %v14449_v13 = vcombine.low %v14414_v2, %v14418_v12 }
 0x690   :  { %16347 = vmatmul.mubr.msk.bf16.vlgmr.msra.gmra.mrb[224].mxu1 %vm4268_vm3, %v4220_v39 }
 0x691   :  { %16350 = vmatprep.mubr.msk.bf16.mxu1 %vm4268_vm3, %v4221_v3  ;;  %6731 = vmatpush1.bf16.msra.mxu1 %v14437_v40  ;;  %v14450_v3 = vcombine.high %v14414_v2, %v14418_v12  ;;  %v14350_v40 = vcombine.high %v14316_v25, %v14320_v37  ;;  %v14317_v37 = vld [vmem:[%s22326_s8 + $0x190] sm:$0xff] }
 0x692   :  { %6732 = vmatprep.subr.bf16.mxu1 %v14446_v46 }
 0x695   :  { %6733 = vmatpush1.bf16.msra.mxu1 %v14445_v43  ;;  %v14466_v43 = vcombine.high %v14430_v31, %v14434_v32 }
 0x696   :  { %6734 = vmatprep.subr.bf16.mxu1 %v14454_v27 }
 0x698   :  { %16351 = vmatmul.mubr.msk.bf16.gmra.mrb[228].mxu1 %vm4268_vm3, %v4222_v18 }
 0x699   :  { %16354 = vmatprep.mubr.msk.bf16.mxu1 %vm4268_vm3, %v4223_v23  ;;  %6735 = vmatpush1.bf16.msra.mxu1 %v14453_v52 }
 0x69a   :  { %6736 = vmatprep.subr.bf16.mxu1 %v14462_v44 }
 0x69d   :  { %6737 = vmatpush1.bf16.msra.mxu1 %v14461_v50 }
 0x69e   :  { %6812 = vmatprep.subr.bf16.mxu1 %v14442_v36 }
 0x6a0   :  { %16355 = vmatmul.mubr.msk.bf16.gmra.mrb[232].mxu1 %vm4268_vm3, %v4224_v61  ;;  %v14422_v61 = vld [vmem:[%s22326_s8 + $0x298] sm:$0xff] }
 0x6a1   :  { %16358 = vmatprep.mubr.msk.bf16.mxu1 %vm4268_vm3, %v4225_v4  ;;  %v14458_v1 = vcombine.high %v14422_v61, %v14426_v63  ;;  %v14457_v26 = vcombine.low %v14422_v61, %v14426_v63  ;;  %v14488_v61 = vld [vmem:[%s22326_s8 + $0x388] sm:$0xff] }
 0x6a2   :  { %v14492_v63 = vld [vmem:[%s22326_s8 + $0x3a8] sm:$0xff] }
 0x6a3   :  { %v14522_v25 = vcombine.high %v14488_v61, %v14492_v63 }
 0x6a8   :  { %16359 = vmatmul.mubr.msk.bf16.gmra.mrb[236].mxu1 %vm4268_vm3, %v4226_v29  ;;  %v14342_v29 = vcombine.high %v14308_v9, %v14312_v17  ;;  %v14313_v9 = vld [vmem:[%s22326_s8 + $0x170] sm:$0xff] }
 0x6a9   :  { %6762 = vmatprep.mubr.bf16.mxu1 %v22338_v20 }
 0x763   :  { %v16348_v56 = vpop.f32.mrb[224].mxu1 }
 0x764   :  { %v5734_v5 = vadd.f32 %v16348_v56, %v19467_v49  ;;  %v5646_v47 = vpop.f32.mrb[225].mxu1  ;;  %v14301_v56 = vld [vmem:[%s22326_s8 + $0x110] sm:$0xff] }
 0x765   :  { %v5732_v6 = vadd.f32 %v19467_v49, %v5646_v47  ;;  %v16349_v10 = vpop.f32.mrb[226].mxu1 }
 0x766   :  { %v5735_v16 = vadd.f32 %v16349_v10, %v19467_v49  ;;  %v5649_v39 = vpop.f32.mrb[227].mxu1  ;;  %v5750_v45 = vmax.f32 %v5734_v5, 0.0  ;;  %v14305_v5 = vld [vmem:[%s22326_s8 + $0x130] sm:$0xff]  ;;  %v14484_v10 = vld [vmem:[%s22326_s8 + $0x368] sm:$0xff] }
 0x767   :  { %v5733_v59 = vadd.f32 %v19467_v49, %v5649_v39  ;;  %v5748_v18 = vmax.f32 %v5732_v6, 0.0  ;;  %v14480_v6 = vld [vmem:[%s22326_s8 + $0x348] sm:$0xff] }
 0x768   :  { %v5751_v54 = vmax.f32 %v5735_v16, 0.0 }
 0x769   :  { %v5749_v33 = vmax.f32 %v5733_v59, 0.0  ;;  %v14357_v59 = vcombine.low %v14324_v51, %v14328_v21  ;;  %v14325_v21 = vld [vmem:[%s22326_s8 + $0x1d0] sm:$0xff] }
 0x76a   :  { %v19479_v15 = vpack.c.bf16 %v5751_v54, %v5750_v45  ;;  %v14505_v45 = vcombine.low %v14472_v53, %v14476_v24  ;;  %v14336_v54 = vcombine.high %v14301_v56, %v14305_v5 }
 0x76b   :  { %v19487_v58 = vpack.c.bf16 %v5749_v33, %v5748_v18  ;;  %v16352_v11 = vpop.f32.mrb[228].mxu1  ;;  %v14514_v33 = vcombine.high %v14480_v6, %v14484_v10 }
 0x76c   :  { %v5738_v55 = vadd.f32 %v16352_v11, %v19467_v49  ;;  %v5662_v23 = vpop.f32.mrb[229].mxu1  ;;  %14468 = vmatmul.mubr.msk.bf16.vlgmr.msra.gmra.mrb[240].mxu1 %vm4268_vm3, %v19479_v15 }
 0x76d   :  { %v19499_v8 = vrot.slane %v19487_v58, 4  ;;  %v5736_v14 = vadd.f32 %v19467_v49, %v5662_v23  ;;  %6813 = vmatpush1.bf16.msra.mxu1 %v14441_v48  ;;  %v16353_v28 = vpop.f32.mrb[230].mxu1  ;;  %6844 = vmatprep.mubr.bf16.mxu1 %v22338_v20  ;;  %v14465_v48 = vcombine.low %v14430_v31, %v14434_v32  ;;  %v14496_v32 = vld [vmem:[%s22326_s8 + $0x3c8] sm:$0xff] }
 0x76e   :  { %v5739_v7 = vadd.f32 %v16353_v28, %v19467_v49  ;;  %v5665_v4 = vpop.f32.mrb[231].mxu1  ;;  %6814 = vmatprep.subr.bf16.mxu1 %v14450_v3  ;;  %v5754_v38 = vmax.f32 %v5738_v55, 0.0  ;;  %v14309_v3 = vld [vmem:[%s22326_s8 + $0x150] sm:$0xff] }
 0x76f   :  { %v5737_v19 = vadd.f32 %v19467_v49, %v5665_v4  ;;  %14363 = vmatmul.mubr.msk.bf16.vlgmr.msra.gmra.mrb[72].mxu0 %vm4268_vm3, %v19499_v8  ;;  %v5752_v57 = vmax.f32 %v5736_v14, 0.0  ;;  %v14335_v14 = vcombine.low %v14301_v56, %v14305_v5 }
 0x770   :  { %v5755_v35 = vmax.f32 %v5739_v7, 0.0  ;;  %6044 = vmatpush1.bf16.msra.mxu0 %v14333_v60  ;;  %6075 = vmatprep.mubr.bf16.mxu0 %v22338_v20  ;;  %v14506_v60 = vcombine.high %v14472_v53, %v14476_v24  ;;  %v14344_v7 = vcombine.high %v14309_v3, %v14313_v9  ;;  %v14474_v24 = vld [vmem:[%s22326_s8 + $0x318] sm:$0xff] }
 0x771   :  { %v5753_v0 = vmax.f32 %v5737_v19, 0.0  ;;  %6815 = vmatpush1.bf16.msra.mxu1 %v14449_v13  ;;  %6045 = vmatprep.subr.bf16.mxu0 %v14342_v29  ;;  %v14513_v29 = vcombine.low %v14480_v6, %v14484_v10  ;;  %v14321_v19 = vld [vmem:[%s22326_s8 + $0x1b0] sm:$0xff]  ;;  %v14310_v10 = vld [vmem:[%s22326_s8 + $0x158] sm:$0xff] }
 0x772   :  { %v19520_v46 = vpack.c.bf16 %v5755_v35, %v5754_v38  ;;  %6816 = vmatprep.subr.bf16.mxu1 %v14458_v1  ;;  %v14500_v38 = vld [vmem:[%s22326_s8 + $0x3e8] sm:$0xff] }
 0x773   :  { %v19528_v27 = vpack.c.bf16 %v5753_v0, %v5752_v57  ;;  %v16356_v52 = vpop.f32.mrb[232].mxu1  ;;  %v14343_v57 = vcombine.low %v14309_v3, %v14313_v9  ;;  %v14530_v51 = vcombine.high %v14496_v32, %v14500_v38  ;;  %v14322_v3 = vld [vmem:[%s22326_s8 + $0x1b8] sm:$0xff] }
 0x774   :  { %v5742_v44 = vadd.f32 %v16356_v52, %v19467_v49  ;;  %6046 = vmatpush1.bf16.msra.mxu0 %v14341_v42  ;;  %v5678_v50 = vpop.f32.mrb[233].mxu1  ;;  %v14329_v52 = vld [vmem:[%s22326_s8 + $0x1f0] sm:$0xff]  ;;  %v14498_v9 = vld [vmem:[%s22326_s8 + $0x3d8] sm:$0xff] }
 0x775   :  { %v5740_v62 = vadd.f32 %v19467_v49, %v5678_v50  ;;  %6817 = vmatpush1.bf16.msra.mxu1 %v14457_v26  ;;  %v16357_v36 = vpop.f32.mrb[234].mxu1  ;;  %6047 = vmatprep.subr.bf16.mxu0 %v14350_v40  ;;  %v14352_v40 = vcombine.high %v14317_v37, %v14321_v19  ;;  %v14351_v50 = vcombine.low %v14317_v37, %v14321_v19  ;;  %v5772_v37 = vld [vmem:[%s22326_s8] sm:$0xff] }
 0x776   :  { %v5743_v22 = vadd.f32 %v16357_v36, %v19467_v49  ;;  %v5681_v41 = vpop.f32.mrb[235].mxu1  ;;  %6818 = vmatprep.subr.bf16.mxu1 %v14466_v43  ;;  %v5758_v16 = vmax.f32 %v5742_v44, 0.0  ;;  %v14478_v44 = vld [vmem:[%s22326_s8 + $0x338] sm:$0xff]  ;;  %v5776_v19 = vld [vmem:[%s22326_s8 + $0x20] sm:$0xff] }
 0x777   :  { %v5741_v47 = vadd.f32 %v19467_v49, %v5681_v41  ;;  %v5756_v2 = vmax.f32 %v5740_v62, 0.0  ;;  %v14360_v62 = vcombine.high %v14325_v21, %v14329_v52  ;;  %v14510_v36 = vcombine.high %v14474_v24, %v14478_v44  ;;  %v14486_v41 = vld [vmem:[%s22326_s8 + $0x378] sm:$0xff] }
 0x778   :  { %v5759_v39 = vmax.f32 %v5743_v22, 0.0  ;;  %6048 = vmatpush1.bf16.msra.mxu0 %v14349_v30  ;;  %v14529_v30 = vcombine.low %v14496_v32, %v14500_v38  ;;  %v14482_v22 = vld [vmem:[%s22326_s8 + $0x358] sm:$0xff]  ;;  %v14509_v56 = vcombine.low %v14474_v24, %v14478_v44  ;;  %v14552_v32 = vld [vmem:[%s22326_s8 + $0x468] sm:$0xff]  ;;  %v5788_v44 = vld [vmem:[%s22326_s8 + $0x80] sm:$0xff] }
 0x779   :  { %v5757_v12 = vmax.f32 %v5741_v47, 0.0  ;;  %6819 = vmatpush1.bf16.msra.mxu1 %v14465_v48  ;;  %6049 = vmatprep.subr.bf16.mxu0 %v14358_v34  ;;  %v14302_v48 = vld [vmem:[%s22326_s8 + $0x118] sm:$0xff]  ;;  %v19619_v47 = vrot.slane %v19479_v15, 4  ;;  %v14518_v6 = vcombine.high %v14482_v22, %v14486_v41 }
 0x77a   :  { %v19552_v18 = vpack.c.bf16 %v5759_v39, %v5758_v16  ;;  %7100 = vmatprep.subr.bf16.mxu1 %v14506_v60  ;;  %v14306_v34 = vld [vmem:[%s22326_s8 + $0x138] sm:$0xff]  ;;  %v14359_v60 = vcombine.low %v14325_v21, %v14329_v52 }
 0x77b   :  { %v19560_v17 = vpack.c.bf16 %v5757_v12, %v5756_v2  ;;  %v16360_v11 = vpop.f32.mrb[236].mxu1  ;;  %v14338_v5 = vcombine.high %v14302_v48, %v14306_v34  ;;  %v14314_v16 = vld [vmem:[%s22326_s8 + $0x178] sm:$0xff]  ;;  %v14337_v2 = vcombine.low %v14302_v48, %v14306_v34  ;;  %v14517_v12 = vcombine.low %v14482_v22, %v14486_v41  ;;  %v5800_v41 = vld [vmem:[%s22326_s8 + $0xe0] sm:$0xff] }
 0x77c   :  { %v5746_v55 = vadd.f32 %v16360_v11, %v19467_v49  ;;  %6050 = vmatpush1.bf16.msra.mxu0 %v14357_v59  ;;  %14470 = vmatmul.mubr.msk.bf16.vlgmr.msra.gmra.mrb[244].mxu1 %vm4268_vm3, %v19479_v15  ;;  %v5694_v23 = vpop.f32.mrb[237].mxu1  ;;  %v14490_v39 = vld [vmem:[%s22326_s8 + $0x398] sm:$0xff] }
 0x77d   :  { %v5744_v28 = vadd.f32 %v19467_v49, %v5694_v23  ;;  %7101 = vmatpush1.bf16.msra.mxu1 %v14505_v45  ;;  %v16361_v13 = vpop.f32.mrb[238].mxu1  ;;  %6084 = vmatprep.subr.bf16.mxu0 %v14336_v54  ;;  %v14494_v59 = vld [vmem:[%s22326_s8 + $0x3b8] sm:$0xff]  ;;  %v14346_v45 = vcombine.high %v14310_v10, %v14314_v16 }
 0x77e   :  { %v5747_v4 = vadd.f32 %v16361_v13, %v19467_v49  ;;  %v5697_v1 = vpop.f32.mrb[239].mxu1  ;;  %7102 = vmatprep.subr.bf16.mxu1 %v14514_v33  ;;  %7132 = vmatprep.mubr.bf16.mxu1 %v22338_v20  ;;  %v5762_v35 = vmax.f32 %v5746_v55, 0.0  ;;  %v14526_v54 = vcombine.high %v14490_v39, %v14494_v59  ;;  %v14318_v33 = vld [vmem:[%s22326_s8 + $0x198] sm:$0xff]  ;;  %v14540_v13 = vld [vmem:[%s22326_s8 + $0x408] sm:$0xff] }
 0x77f   :  { %v5745_v31 = vadd.f32 %v19467_v49, %v5697_v1  ;;  %14364 = vmatmul.mubr.msk.bf16.vlgmr.msra.gmra.mrb[76].mxu0 %vm4268_vm3, %v19499_v8  ;;  %v5760_v0 = vmax.f32 %v5744_v28, 0.0  ;;  %v14521_v49 = vcombine.low %v14488_v61, %v14492_v63  ;;  %v14502_v11 = vld [vmem:[%s22326_s8 + $0x3f8] sm:$0xff]  ;;  %v14345_v61 = vcombine.low %v14310_v10, %v14314_v16 }
 0x780   :  { %v5763_v42 = vmax.f32 %v5747_v4, 0.0  ;;  %6085 = vmatpush1.bf16.msra.mxu0 %v14335_v14  ;;  %6116 = vmatprep.mubr.bf16.mxu0 %v22338_v20  ;;  %v14525_v63 = vcombine.low %v14490_v39, %v14494_v59  ;;  %v14354_v55 = vcombine.high %v14318_v33, %v14322_v3  ;;  %v14534_v23 = vcombine.high %v14498_v9, %v14502_v11  ;;  %v14326_v14 = vld [vmem:[%s22326_s8 + $0x1d8] sm:$0xff]  ;;  %v5773_v39 = vld [vmem:[%s22326_s8 + $0x8] sm:$0xff] }
 0x781   :  { %v5761_v26 = vmax.f32 %v5745_v31, 0.0  ;;  %7103 = vmatpush1.bf16.msra.mxu1 %v14513_v29  ;;  %6086 = vmatprep.subr.bf16.mxu0 %v14344_v7  ;;  %v14330_v28 = vld [vmem:[%s22326_s8 + $0x1f8] sm:$0xff]  ;;  %v14544_v29 = vld [vmem:[%s22326_s8 + $0x428] sm:$0xff]  ;;  %v14353_v7 = vcombine.low %v14318_v33, %v14322_v3  ;;  %v14533_v4 = vcombine.low %v14498_v9, %v14502_v11 }
 0x782   :  { %v19590_v43 = vpack.c.bf16 %v5763_v42, %v5762_v35  ;;  %7104 = vmatprep.subr.bf16.mxu1 %v14522_v25  ;;  %v14362_v1 = vcombine.high %v14326_v14, %v14330_v28  ;;  %v14574_v25 = vcombine.high %v14540_v13, %v14544_v29  ;;  %v14548_v31 = vld [vmem:[%s22326_s8 + $0x448] sm:$0xff]  ;;  %v14361_v38 = vcombine.low %v14326_v14, %v14330_v28 }
 0x783   :  { %v19598_v53 = vpack.c.bf16 %v5761_v26, %v5760_v0  ;;  %v14573_v35 = vcombine.low %v14540_v13, %v14544_v29  ;;  %v14368_v42 = vcombine.high %v5772_v37, %v5776_v19  ;;  %v5780_v0 = vld [vmem:[%s22326_s8 + $0x40] sm:$0xff]  ;;  %v14581_v21 = vcombine.low %v14548_v31, %v14552_v32  ;;  %v5777_v59 = vld [vmem:[%s22326_s8 + $0x28] sm:$0xff] }
 0x784   :  { %6087 = vmatpush1.bf16.msra.mxu0 %v14343_v57  ;;  %v14582_v57 = vcombine.high %v14548_v31, %v14552_v32  ;;  %v5784_v26 = vld [vmem:[%s22326_s8 + $0x60] sm:$0xff]  ;;  %v14370_v33 = vcombine.high %v5773_v39, %v5777_v59  ;;  %v5781_v9 = vld [vmem:[%s22326_s8 + $0x48] sm:$0xff] }
 0x785   :  { %7105 = vmatpush1.bf16.msra.mxu1 %v14521_v49  ;;  %6088 = vmatprep.subr.bf16.mxu0 %v14352_v40  ;;  %v14556_v49 = vld [vmem:[%s22326_s8 + $0x488] sm:$0xff]  ;;  %v14376_v52 = vcombine.high %v5780_v0, %v5784_v26 }
 0x786   :  { %7106 = vmatprep.subr.bf16.mxu1 %v14530_v51  ;;  %v14560_v40 = vld [vmem:[%s22326_s8 + $0x4a8] sm:$0xff]  ;;  %v14367_v51 = vcombine.low %v5772_v37, %v5776_v19 }
 0x787   :  { %v14590_v24 = vcombine.high %v14556_v49, %v14560_v40  ;;  %v14589_v48 = vcombine.low %v14556_v49, %v14560_v40  ;;  %v5785_v11 = vld [vmem:[%s22326_s8 + $0x68] sm:$0xff]  ;;  %v5774_v49 = vld [vmem:[%s22326_s8 + $0x10] sm:$0xff] }
 0x788   :  { %6089 = vmatpush1.bf16.msra.mxu0 %v14351_v50  ;;  %v5792_v50 = vld [vmem:[%s22326_s8 + $0xa0] sm:$0xff]  ;;  %v14378_v14 = vcombine.high %v5781_v9, %v5785_v11  ;;  %v5789_v13 = vld [vmem:[%s22326_s8 + $0x88] sm:$0xff]  ;;  %v5778_v40 = vld [vmem:[%s22326_s8 + $0x30] sm:$0xff] }
 0x789   :  { %7107 = vmatpush1.bf16.msra.mxu1 %v14529_v30  ;;  %6090 = vmatprep.subr.bf16.mxu0 %v14360_v62  ;;  %v14564_v30 = vld [vmem:[%s22326_s8 + $0x4c8] sm:$0xff]  ;;  %v14384_v34 = vcombine.high %v5788_v44, %v5792_v50 }
 0x78a   :  { %7182 = vmatprep.subr.bf16.mxu1 %v14510_v36  ;;  %v14568_v62 = vld [vmem:[%s22326_s8 + $0x4e8] sm:$0xff]  ;;  %v14375_v36 = vcombine.low %v5780_v0, %v5784_v26 }
 0x78b   :  { %v14598_v22 = vcombine.high %v14564_v30, %v14568_v62  ;;  %v5793_v29 = vld [vmem:[%s22326_s8 + $0xa8] sm:$0xff] }
 0x78c   :  { %6091 = vmatpush1.bf16.msra.mxu0 %v14359_v60  ;;  %14536 = vmatmul.mubr.msk.bf16.vlgmr.msra.gmra.mrb[248].mxu1 %vm4268_vm3, %v19619_v47  ;;  %v14542_v60 = vld [vmem:[%s22326_s8 + $0x418] sm:$0xff]  ;;  %v14386_v37 = vcombine.high %v5789_v13, %v5793_v29  ;;  %v5797_v31 = vld [vmem:[%s22326_s8 + $0xc8] sm:$0xff] }
 0x78d   :  { %7183 = vmatpush1.bf16.msra.mxu1 %v14509_v56  ;;  %6125 = vmatprep.subr.bf16.mxu0 %v14338_v5  ;;  %v14546_v56 = vld [vmem:[%s22326_s8 + $0x438] sm:$0xff]  ;;  %v14383_v5 = vcombine.low %v5788_v44, %v5792_v50  ;;  %v5801_v32 = vld [vmem:[%s22326_s8 + $0xe8] sm:$0xff]  ;;  %v14372_v44 = vcombine.high %v5774_v49, %v5778_v40 }
 0x78e   :  { %7184 = vmatprep.subr.bf16.mxu1 %v14518_v6  ;;  %7214 = vmatprep.mubr.bf16.mxu1 %v22338_v20  ;;  %v14597_v6 = vcombine.low %v14564_v30, %v14568_v62  ;;  %v14578_v16 = vcombine.high %v14542_v60, %v14546_v56  ;;  %v14394_v0 = vcombine.high %v5797_v31, %v5801_v32  ;;  %v5782_v30 = vld [vmem:[%s22326_s8 + $0x50] sm:$0xff] }
 0x78f   :  { %14365 = vmatmul.mubr.msk.bf16.vlgmr.msra.gmra.mrb[80].mxu0 %vm4268_vm3, %v19499_v8  ;;  %v5786_v62 = vld [vmem:[%s22326_s8 + $0x70] sm:$0xff] }
 0x790   :  { %6126 = vmatpush1.bf16.msra.mxu0 %v14337_v2  ;;  %6157 = vmatprep.mubr.bf16.mxu0 %v22338_v20  ;;  %v14550_v2 = vld [vmem:[%s22326_s8 + $0x458] sm:$0xff] }
 0x791   :  { %7185 = vmatpush1.bf16.msra.mxu1 %v14517_v12  ;;  %6127 = vmatprep.subr.bf16.mxu0 %v14346_v45  ;;  %v14554_v12 = vld [vmem:[%s22326_s8 + $0x478] sm:$0xff] }
 0x792   :  { %7186 = vmatprep.subr.bf16.mxu1 %v14526_v54  ;;  %v14577_v54 = vcombine.low %v14542_v60, %v14546_v56  ;;  %v14586_v3 = vcombine.high %v14550_v2, %v14554_v12  ;;  %v5790_v60 = vld [vmem:[%s22326_s8 + $0x90] sm:$0xff] }
 0x793   :  { %v5794_v56 = vld [vmem:[%s22326_s8 + $0xb0] sm:$0xff] }
 0x794   :  { %6128 = vmatpush1.bf16.msra.mxu0 %v14345_v61  ;;  %v14558_v61 = vld [vmem:[%s22326_s8 + $0x498] sm:$0xff] }
 0x795   :  { %7187 = vmatpush1.bf16.msra.mxu1 %v14525_v63  ;;  %6129 = vmatprep.subr.bf16.mxu0 %v14354_v55  ;;  %v14562_v63 = vld [vmem:[%s22326_s8 + $0x4b8] sm:$0xff]  ;;  %v14369_v55 = vcombine.low %v5773_v39, %v5777_v59  ;;  %v14388_v39 = vcombine.high %v5790_v60, %v5794_v56 }
 0x796   :  { %7188 = vmatprep.subr.bf16.mxu1 %v14534_v23  ;;  %v14585_v23 = vcombine.low %v14550_v2, %v14554_v12  ;;  %v14594_v28 = vcombine.high %v14558_v61, %v14562_v63  ;;  %v5798_v2 = vld [vmem:[%s22326_s8 + $0xd0] sm:$0xff] }
 0x797   :  { %v5802_v12 = vld [vmem:[%s22326_s8 + $0xf0] sm:$0xff] }
 0x798   :  { %6130 = vmatpush1.bf16.msra.mxu0 %v14353_v7  ;;  %v14566_v7 = vld [vmem:[%s22326_s8 + $0x4d8] sm:$0xff] }
 0x799   :  { %7189 = vmatpush1.bf16.msra.mxu1 %v14533_v4  ;;  %6131 = vmatprep.subr.bf16.mxu0 %v14362_v1  ;;  %v14570_v4 = vld [vmem:[%s22326_s8 + $0x4f8] sm:$0xff]  ;;  %v14377_v1 = vcombine.low %v5781_v9, %v5785_v11  ;;  %v14396_v9 = vcombine.high %v5798_v2, %v5802_v12 }
 0x79a   :  { %7468 = vmatprep.subr.bf16.mxu1 %v14574_v25  ;;  %v14593_v25 = vcombine.low %v14558_v61, %v14562_v63  ;;  %v14602_v19 = vcombine.high %v14566_v7, %v14570_v4  ;;  %v5775_v61 = vld [vmem:[%s22326_s8 + $0x18] sm:$0xff] }
 0x79b   :  { %v5779_v63 = vld [vmem:[%s22326_s8 + $0x38] sm:$0xff] }
 0x79c   :  { %6132 = vmatpush1.bf16.msra.mxu0 %v14361_v38  ;;  %14538 = vmatmul.mubr.msk.bf16.vlgmr.msra.gmra.mrb[252].mxu1 %vm4268_vm3, %v19619_v47  ;;  %v14608_v38 = vld [vmem:[%s22326_s8 + $0x508] sm:$0xff] }
 0x79d   :  { %7469 = vmatpush1.bf16.msra.mxu1 %v14573_v35  ;;  %6329 = vmatprep.subr.bf16.mxu0 %v14368_v42  ;;  %v14612_v35 = vld [vmem:[%s22326_s8 + $0x528] sm:$0xff]  ;;  %v14385_v42 = vcombine.low %v5789_v13, %v5793_v29  ;;  %v14374_v13 = vcombine.high %v5775_v61, %v5779_v63  ;;  %v19838_v29 = vrot.slane %v19528_v27, 4 }
 0x79e   :  { %7470 = vmatprep.subr.bf16.mxu1 %v14582_v57  ;;  %7500 = vmatprep.mubr.bf16.mxu1 %v22338_v20  ;;  %v14601_v57 = vcombine.low %v14566_v7, %v14570_v4  ;;  %v14642_v26 = vcombine.high %v14608_v38, %v14612_v35  ;;  %v5783_v4 = vld [vmem:[%s22326_s8 + $0x58] sm:$0xff] }
 0x79f   :  { %14366 = vmatmul.mubr.msk.bf16.vlgmr.msra.gmra.mrb[84].mxu0 %vm4268_vm3, %v19499_v8  ;;  %v5796_v8 = vld [vmem:[%s22326_s8 + $0xc0] sm:$0xff] }
 0x7a0   :  { %6330 = vmatpush1.bf16.msra.mxu0 %v14367_v51  ;;  %6361 = vmatprep.mubr.bf16.mxu0 %v22338_v20  ;;  %v14392_v10 = vcombine.high %v5796_v8, %v5800_v41  ;;  %v14391_v45 = vcombine.low %v5796_v8, %v5800_v41  ;;  %v14616_v51 = vld [vmem:[%s22326_s8 + $0x548] sm:$0xff]  ;;  %v14380_v8 = vcombine.high %v5782_v30, %v5786_v62 }
 0x7a1   :  { %7471 = vmatpush1.bf16.msra.mxu1 %v14581_v21  ;;  %6331 = vmatprep.subr.bf16.mxu0 %v14376_v52  ;;  %v14620_v21 = vld [vmem:[%s22326_s8 + $0x568] sm:$0xff]  ;;  %v14393_v52 = vcombine.low %v5797_v31, %v5801_v32 }
 0x7a2   :  { %7472 = vmatprep.subr.bf16.mxu1 %v14590_v24  ;;  %v14641_v24 = vcombine.low %v14608_v38, %v14612_v35  ;;  %v14650_v50 = vcombine.high %v14616_v51, %v14620_v21  ;;  %v5791_v35 = vld [vmem:[%s22326_s8 + $0x98] sm:$0xff] }
 0x7a4   :  { %6332 = vmatpush1.bf16.msra.mxu0 %v14375_v36  ;;  %v14624_v36 = vld [vmem:[%s22326_s8 + $0x588] sm:$0xff] }
 0x7a5   :  { %7473 = vmatpush1.bf16.msra.mxu1 %v14589_v48  ;;  %6333 = vmatprep.subr.bf16.mxu0 %v14384_v34  ;;  %v14628_v48 = vld [vmem:[%s22326_s8 + $0x5a8] sm:$0xff]  ;;  %v14371_v34 = vcombine.low %v5774_v49, %v5778_v40 }
 0x7a6   :  { %7474 = vmatprep.subr.bf16.mxu1 %v14598_v22  ;;  %v14649_v22 = vcombine.low %v14616_v51, %v14620_v21  ;;  %v14658_v41 = vcombine.high %v14624_v36, %v14628_v48  ;;  %v5799_v21 = vld [vmem:[%s22326_s8 + $0xd8] sm:$0xff] }
 0x7a8   :  { %6334 = vmatpush1.bf16.msra.mxu0 %v14383_v5  ;;  %v14632_v5 = vld [vmem:[%s22326_s8 + $0x5c8] sm:$0xff] }
 0x7a9   :  { %7475 = vmatpush1.bf16.msra.mxu1 %v14597_v6  ;;  %6335 = vmatprep.subr.bf16.mxu0 %v14392_v10  ;;  %v14636_v6 = vld [vmem:[%s22326_s8 + $0x5e8] sm:$0xff]  ;;  %v14379_v10 = vcombine.low %v5782_v30, %v5786_v62 }
 0x7aa   :  { %7550 = vmatprep.subr.bf16.mxu1 %v14578_v16  ;;  %v14657_v16 = vcombine.low %v14624_v36, %v14628_v48  ;;  %v14666_v59 = vcombine.high %v14632_v5, %v14636_v6  ;;  %v14403_v48 = vld [vmem:[%s22326_s8 + $0x200] sm:$0xff] }
 0x7ac   :  { %6336 = vmatpush1.bf16.msra.mxu0 %v14391_v45  ;;  %14604 = vmatmul.mubr.msk.bf16.vlgmr.msra.gmra.mrb[0].mxu1 %vm4268_vm3, %v19528_v27  ;;  %v14610_v45 = vld [vmem:[%s22326_s8 + $0x518] sm:$0xff] }
 0x7ad   :  { %7551 = vmatpush1.bf16.msra.mxu1 %v14577_v54  ;;  %6370 = vmatprep.subr.bf16.mxu0 %v14370_v33  ;;  %v14614_v54 = vld [vmem:[%s22326_s8 + $0x538] sm:$0xff]  ;;  %v14387_v33 = vcombine.low %v5790_v60, %v5794_v56 }
 0x7ae   :  { %7552 = vmatprep.subr.bf16.mxu1 %v14586_v3  ;;  %7582 = vmatprep.mubr.bf16.mxu1 %v22338_v20  ;;  %v14665_v3 = vcombine.low %v14632_v5, %v14636_v6  ;;  %v14646_v11 = vcombine.high %v14610_v45, %v14614_v54  ;;  %v14411_v6 = vld [vmem:[%s22326_s8 + $0x240] sm:$0xff] }
 0x7af   :  { %14399 = vmatmul.mubr.msk.bf16.vlgmr.msra.gmra.mrb[88].mxu0 %vm4268_vm3, %v19487_v58 }
 0x7b0   :  { %6371 = vmatpush1.bf16.msra.mxu0 %v14369_v55  ;;  %6402 = vmatprep.mubr.bf16.mxu0 %v22338_v20  ;;  %v14618_v55 = vld [vmem:[%s22326_s8 + $0x558] sm:$0xff] }
 0x7b1   :  { %7553 = vmatpush1.bf16.msra.mxu1 %v14585_v23  ;;  %6372 = vmatprep.subr.bf16.mxu0 %v14378_v14  ;;  %v14622_v23 = vld [vmem:[%s22326_s8 + $0x578] sm:$0xff]  ;;  %v14395_v14 = vcombine.low %v5798_v2, %v5802_v12 }
 0x7b2   :  { %7554 = vmatprep.subr.bf16.mxu1 %v14594_v28  ;;  %v14645_v28 = vcombine.low %v14610_v45, %v14614_v54  ;;  %v14654_v7 = vcombine.high %v14618_v55, %v14622_v23  ;;  %v14653_v31 = vcombine.low %v14618_v55, %v14622_v23  ;;  %v14419_v54 = vld [vmem:[%s22326_s8 + $0x280] sm:$0xff] }
 0x7b3   :  { %v14431_v23 = vld [vmem:[%s22326_s8 + $0x2e0] sm:$0xff] }
 0x7b4   :  { %6373 = vmatpush1.bf16.msra.mxu0 %v14377_v1  ;;  %v5787_v1 = vld [vmem:[%s22326_s8 + $0x78] sm:$0xff] }
 0x7b5   :  { %7555 = vmatpush1.bf16.msra.mxu1 %v14593_v25  ;;  %6374 = vmatprep.subr.bf16.mxu0 %v14386_v37  ;;  %v14626_v25 = vld [vmem:[%s22326_s8 + $0x598] sm:$0xff]  ;;  %v14382_v32 = vcombine.high %v5783_v4, %v5787_v1 }
 0x7b6   :  { %7556 = vmatprep.subr.bf16.mxu1 %v14602_v19  ;;  %v14630_v37 = vld [vmem:[%s22326_s8 + $0x5b8] sm:$0xff]  ;;  %v14373_v19 = vcombine.low %v5775_v61, %v5779_v63 }
 0x7b7   :  { %v14662_v38 = vcombine.high %v14626_v25, %v14630_v37  ;;  %v14661_v49 = vcombine.low %v14626_v25, %v14630_v37  ;;  %v14405_v25 = vld [vmem:[%s22326_s8 + $0x210] sm:$0xff] }
 0x7b8   :  { %6375 = vmatpush1.bf16.msra.mxu0 %v14385_v42  ;;  %v5795_v42 = vld [vmem:[%s22326_s8 + $0xb8] sm:$0xff]  ;;  %v14409_v37 = vld [vmem:[%s22326_s8 + $0x230] sm:$0xff] }
 0x7b9   :  { %7557 = vmatpush1.bf16.msra.mxu1 %v14601_v57  ;;  %6376 = vmatprep.subr.bf16.mxu0 %v14394_v0  ;;  %v14634_v57 = vld [vmem:[%s22326_s8 + $0x5d8] sm:$0xff]  ;;  %v14390_v40 = vcombine.high %v5791_v35, %v5795_v42 }
 0x7ba   :  { %7838 = vmatprep.subr.bf16.mxu1 %v14642_v26  ;;  %v14638_v0 = vld [vmem:[%s22326_s8 + $0x5f8] sm:$0xff]  ;;  %v14381_v26 = vcombine.low %v5783_v4, %v5787_v1 }
 0x7bb   :  { %v14670_v51 = vcombine.high %v14634_v57, %v14638_v0  ;;  %v14669_v30 = vcombine.low %v14634_v57, %v14638_v0  ;;  %v14413_v57 = vld [vmem:[%s22326_s8 + $0x250] sm:$0xff] }
 0x7bc   :  { %6377 = vmatpush1.bf16.msra.mxu0 %v14393_v52  ;;  %14606 = vmatmul.mubr.msk.bf16.vlgmr.msra.gmra.mrb[4].mxu1 %vm4268_vm3, %v19528_v27  ;;  %v5803_v52 = vld [vmem:[%s22326_s8 + $0xf8] sm:$0xff]  ;;  %v14417_v0 = vld [vmem:[%s22326_s8 + $0x270] sm:$0xff] }
 0x7bd   :  { %7839 = vmatpush1.bf16.msra.mxu1 %v14641_v24  ;;  %6411 = vmatprep.subr.bf16.mxu0 %v14372_v44  ;;  %v14676_v24 = vld [vmem:[%s22326_s8 + $0x608] sm:$0xff]  ;;  %v14398_v62 = vcombine.high %v5799_v21, %v5803_v52 }
 0x7be   :  { %7840 = vmatprep.subr.bf16.mxu1 %v14650_v50  ;;  %7870 = vmatprep.mubr.bf16.mxu1 %v22338_v20  ;;  %v14680_v44 = vld [vmem:[%s22326_s8 + $0x628] sm:$0xff]  ;;  %v14389_v50 = vcombine.low %v5791_v35, %v5795_v42  ;;  %v14440_v35 = vcombine.high %v14405_v25, %v14409_v37 }
 0x7bf   :  { %14400 = vmatmul.mubr.msk.bf16.vlgmr.msra.gmra.mrb[92].mxu0 %vm4268_vm3, %v19487_v58  ;;  %v14710_v36 = vcombine.high %v14676_v24, %v14680_v44  ;;  %v14709_v60 = vcombine.low %v14676_v24, %v14680_v44  ;;  %v14421_v24 = vld [vmem:[%s22326_s8 + $0x290] sm:$0xff] }
 0x7c0   :  { %6412 = vmatpush1.bf16.msra.mxu0 %v14371_v34  ;;  %6443 = vmatprep.mubr.bf16.mxu0 %v22338_v20  ;;  %v14407_v34 = vld [vmem:[%s22326_s8 + $0x220] sm:$0xff]  ;;  %v14425_v44 = vld [vmem:[%s22326_s8 + $0x2b0] sm:$0xff] }
 0x7c1   :  { %7841 = vmatpush1.bf16.msra.mxu1 %v14649_v22  ;;  %6413 = vmatprep.subr.bf16.mxu0 %v14380_v8  ;;  %v14684_v22 = vld [vmem:[%s22326_s8 + $0x648] sm:$0xff]  ;;  %v14436_v56 = vcombine.high %v14403_v48, %v14407_v34 }
 0x7c2   :  { %7842 = vmatprep.subr.bf16.mxu1 %v14658_v41  ;;  %v14688_v8 = vld [vmem:[%s22326_s8 + $0x668] sm:$0xff]  ;;  %v14397_v41 = vcombine.low %v5799_v21, %v5803_v52  ;;  %v14448_v21 = vcombine.high %v14413_v57, %v14417_v0 }
 0x7c3   :  { %v14718_v5 = vcombine.high %v14684_v22, %v14688_v8  ;;  %v14717_v2 = vcombine.low %v14684_v22, %v14688_v8  ;;  %v14429_v22 = vld [vmem:[%s22326_s8 + $0x2d0] sm:$0xff] }
 0x7c4   :  { %6414 = vmatpush1.bf16.msra.mxu0 %v14379_v10  ;;  %v14415_v10 = vld [vmem:[%s22326_s8 + $0x260] sm:$0xff]  ;;  %v14433_v8 = vld [vmem:[%s22326_s8 + $0x2f0] sm:$0xff] }
 0x7c5   :  { %7843 = vmatpush1.bf16.msra.mxu1 %v14657_v16  ;;  %6415 = vmatprep.subr.bf16.mxu0 %v14388_v39  ;;  %v14692_v16 = vld [vmem:[%s22326_s8 + $0x688] sm:$0xff]  ;;  %v14444_v12 = vcombine.high %v14411_v6, %v14415_v10 }
 0x7c6   :  { %7844 = vmatprep.subr.bf16.mxu1 %v14666_v59  ;;  %v14696_v39 = vld [vmem:[%s22326_s8 + $0x6a8] sm:$0xff]  ;;  %v14435_v59 = vcombine.low %v14403_v48, %v14407_v34  ;;  %v14456_v48 = vcombine.high %v14421_v24, %v14425_v44 }
 0x7c7   :  { %v14726_v45 = vcombine.high %v14692_v16, %v14696_v39  ;;  %v14725_v61 = vcombine.low %v14692_v16, %v14696_v39  ;;  %v14471_v16 = vld [vmem:[%s22326_s8 + $0x300] sm:$0xff] }
 0x7c8   :  { %6416 = vmatpush1.bf16.msra.mxu0 %v14387_v33  ;;  %v14423_v33 = vld [vmem:[%s22326_s8 + $0x2a0] sm:$0xff] }
 0x7c9   :  { %7845 = vmatpush1.bf16.msra.mxu1 %v14665_v3  ;;  %6417 = vmatprep.subr.bf16.mxu0 %v14396_v9  ;;  %v14700_v3 = vld [vmem:[%s22326_s8 + $0x6c8] sm:$0xff]  ;;  %v14452_v63 = vcombine.high %v14419_v54, %v14423_v33  ;;  %v14475_v39 = vld [vmem:[%s22326_s8 + $0x320] sm:$0xff] }
 0x7ca   :  { %7920 = vmatprep.subr.bf16.mxu1 %v14646_v11  ;;  %v14704_v9 = vld [vmem:[%s22326_s8 + $0x6e8] sm:$0xff]  ;;  %v14443_v11 = vcombine.low %v14411_v6, %v14415_v10  ;;  %v14464_v6 = vcombine.high %v14429_v22, %v14433_v8 }
 0x7cb   :  { %v14734_v55 = vcombine.high %v14700_v3, %v14704_v9 }
 0x7cc   :  { %6418 = vmatpush1.bf16.msra.mxu0 %v14395_v14  ;;  %14672 = vmatmul.mubr.msk.bf16.vlgmr.msra.gmra.mrb[8].mxu1 %vm4268_vm3, %v19838_v29  ;;  %v14678_v14 = vld [vmem:[%s22326_s8 + $0x618] sm:$0xff] }
 0x7cd   :  { %7921 = vmatpush1.bf16.msra.mxu1 %v14645_v28  ;;  %6452 = vmatprep.subr.bf16.mxu0 %v14374_v13  ;;  %v14682_v28 = vld [vmem:[%s22326_s8 + $0x638] sm:$0xff]  ;;  %v14451_v13 = vcombine.low %v14419_v54, %v14423_v33  ;;  %v14504_v54 = vcombine.high %v14471_v16, %v14475_v39 }
 0x7ce   :  { %7922 = vmatprep.subr.bf16.mxu1 %v14654_v7  ;;  %7952 = vmatprep.mubr.bf16.mxu1 %v22338_v20  ;;  %v14733_v7 = vcombine.low %v14700_v3, %v14704_v9  ;;  %v14714_v1 = vcombine.high %v14678_v14, %v14682_v28  ;;  %v14479_v3 = vld [vmem:[%s22326_s8 + $0x340] sm:$0xff] }
 0x7cf   :  { %14401 = vmatmul.mubr.msk.bf16.vlgmr.msra.gmra.mrb[96].mxu0 %vm4268_vm3, %v19487_v58  ;;  %v14483_v9 = vld [vmem:[%s22326_s8 + $0x360] sm:$0xff] }
 0x7d0   :  { %6453 = vmatpush1.bf16.msra.mxu0 %v14373_v19  ;;  %6484 = vmatprep.mubr.bf16.mxu0 %v22338_v20  ;;  %v14686_v19 = vld [vmem:[%s22326_s8 + $0x658] sm:$0xff] }
 0x7d1   :  { %7923 = vmatpush1.bf16.msra.mxu1 %v14653_v31  ;;  %6454 = vmatprep.subr.bf16.mxu0 %v14382_v32  ;;  %v14690_v31 = vld [vmem:[%s22326_s8 + $0x678] sm:$0xff] }
 0x7d2   :  { %7924 = vmatprep.subr.bf16.mxu1 %v14662_v38  ;;  %v14713_v38 = vcombine.low %v14678_v14, %v14682_v28  ;;  %v14722_v42 = vcombine.high %v14686_v19, %v14690_v31  ;;  %v14487_v14 = vld [vmem:[%s22326_s8 + $0x380] sm:$0xff] }
 0x7d3   :  { %v14491_v28 = vld [vmem:[%s22326_s8 + $0x3a0] sm:$0xff] }
 0x7d4   :  { %6455 = vmatpush1.bf16.msra.mxu0 %v14381_v26  ;;  %v14694_v26 = vld [vmem:[%s22326_s8 + $0x698] sm:$0xff] }
 0x7d5   :  { %7925 = vmatpush1.bf16.msra.mxu1 %v14661_v49  ;;  %6456 = vmatprep.subr.bf16.mxu0 %v14390_v40  ;;  %v14698_v49 = vld [vmem:[%s22326_s8 + $0x6b8] sm:$0xff]  ;;  %v14439_v40 = vcombine.low %v14405_v25, %v14409_v37  ;;  %v14520_v25 = vcombine.high %v14487_v14, %v14491_v28 }
 0x7d6   :  { %7926 = vmatprep.subr.bf16.mxu1 %v14670_v51  ;;  %v14721_v51 = vcombine.low %v14686_v19, %v14690_v31  ;;  %v14730_v52 = vcombine.high %v14694_v26, %v14698_v49  ;;  %v14499_v19 = vld [vmem:[%s22326_s8 + $0x3e0] sm:$0xff]  ;;  %v14746_v31 = vld [vmem:[%s22326_s8 + $0x718] sm:$0xff] }
 0x7d8   :  { %6457 = vmatpush1.bf16.msra.mxu0 %v14389_v50  ;;  %v14702_v50 = vld [vmem:[%s22326_s8 + $0x6d8] sm:$0xff] }
 0x7d9   :  { %7927 = vmatpush1.bf16.msra.mxu1 %v14669_v30  ;;  %6458 = vmatprep.subr.bf16.mxu0 %v14398_v62  ;;  %v14706_v30 = vld [vmem:[%s22326_s8 + $0x6f8] sm:$0xff]  ;;  %v14447_v62 = vcombine.low %v14413_v57, %v14417_v0  ;;  %v14473_v0 = vld [vmem:[%s22326_s8 + $0x310] sm:$0xff] }
 0x7da   :  { %8206 = vmatprep.subr.bf16.mxu1 %v14710_v36  ;;  %v14729_v36 = vcombine.low %v14694_v26, %v14698_v49  ;;  %v14738_v34 = vcombine.high %v14702_v50, %v14706_v30  ;;  %v14477_v26 = vld [vmem:[%s22326_s8 + $0x330] sm:$0xff]  ;;  %v14754_v49 = vld [vmem:[%s22326_s8 + $0x758] sm:$0xff] }
 0x7dc   :  { %6459 = vmatpush1.bf16.msra.mxu0 %v14397_v41  ;;  %14674 = vmatmul.mubr.msk.bf16.vlgmr.msra.gmra.mrb[12].mxu1 %vm4268_vm3, %v19838_v29  ;;  %v14744_v41 = vld [vmem:[%s22326_s8 + $0x708] sm:$0xff] }
 0x7dd   :  { %8207 = vmatpush1.bf16.msra.mxu1 %v14709_v60  ;;  %6689 = vmatprep.subr.bf16.mxu0 %v14436_v56  ;;  %v14748_v60 = vld [vmem:[%s22326_s8 + $0x728] sm:$0xff]  ;;  %v14455_v56 = vcombine.low %v14421_v24, %v14425_v44  ;;  %v20057_v24 = vrot.slane %v19520_v46, 4 }
 0x7de   :  { %8208 = vmatprep.subr.bf16.mxu1 %v14718_v5  ;;  %8238 = vmatprep.mubr.bf16.mxu1 %v22338_v20  ;;  %v14737_v5 = vcombine.low %v14702_v50, %v14706_v30  ;;  %v14778_v10 = vcombine.high %v14744_v41, %v14748_v60  ;;  %v14481_v50 = vld [vmem:[%s22326_s8 + $0x350] sm:$0xff] }
 0x7df   :  { %14402 = vmatmul.mubr.msk.bf16.vlgmr.msra.gmra.mrb[100].mxu0 %vm4268_vm3, %v19487_v58  ;;  %v14427_v58 = vld [vmem:[%s22326_s8 + $0x2c0] sm:$0xff]  ;;  %v14485_v30 = vld [vmem:[%s22326_s8 + $0x370] sm:$0xff] }
 0x7e0   :  { %6690 = vmatpush1.bf16.msra.mxu0 %v14435_v59  ;;  %6721 = vmatprep.mubr.bf16.mxu0 %v22338_v20  ;;  %v14460_v4 = vcombine.high %v14427_v58, %v14431_v23  ;;  %v14459_v32 = vcombine.low %v14427_v58, %v14431_v23  ;;  %v14752_v59 = vld [vmem:[%s22326_s8 + $0x748] sm:$0xff]  ;;  %v14512_v58 = vcombine.high %v14479_v3, %v14483_v9 }
 0x7e1   :  { %8209 = vmatpush1.bf16.msra.mxu1 %v14717_v2  ;;  %6691 = vmatprep.subr.bf16.mxu0 %v14444_v12  ;;  %v14756_v2 = vld [vmem:[%s22326_s8 + $0x768] sm:$0xff]  ;;  %v14463_v12 = vcombine.low %v14429_v22, %v14433_v8  ;;  %v14516_v22 = vcombine.high %v14481_v50, %v14485_v30 }
 0x7e2   :  { %8210 = vmatprep.subr.bf16.mxu1 %v14726_v45  ;;  %v14777_v45 = vcombine.low %v14744_v41, %v14748_v60  ;;  %v14786_v33 = vcombine.high %v14752_v59, %v14756_v2  ;;  %v14489_v41 = vld [vmem:[%s22326_s8 + $0x390] sm:$0xff] }
 0x7e3   :  { %v14493_v60 = vld [vmem:[%s22326_s8 + $0x3b0] sm:$0xff] }
 0x7e4   :  { %6692 = vmatpush1.bf16.msra.mxu0 %v14443_v11  ;;  %v14760_v11 = vld [vmem:[%s22326_s8 + $0x788] sm:$0xff] }
 0x7e5   :  { %8211 = vmatpush1.bf16.msra.mxu1 %v14725_v61  ;;  %6693 = vmatprep.subr.bf16.mxu0 %v14452_v63  ;;  %v14764_v61 = vld [vmem:[%s22326_s8 + $0x7a8] sm:$0xff]  ;;  %v14503_v63 = vcombine.low %v14471_v16, %v14475_v39  ;;  %v14524_v16 = vcombine.high %v14489_v41, %v14493_v60 }
 0x7e6   :  { %8212 = vmatprep.subr.bf16.mxu1 %v14734_v55  ;;  %v14785_v55 = vcombine.low %v14752_v59, %v14756_v2  ;;  %v14794_v23 = vcombine.high %v14760_v11, %v14764_v61  ;;  %v14497_v59 = vld [vmem:[%s22326_s8 + $0x3d0] sm:$0xff] }
 0x7e7   :  { %v14501_v2 = vld [vmem:[%s22326_s8 + $0x3f0] sm:$0xff] }
 0x7e8   :  { %6694 = vmatpush1.bf16.msra.mxu0 %v14451_v13  ;;  %v14768_v13 = vld [vmem:[%s22326_s8 + $0x7c8] sm:$0xff] }
 0x7e9   :  { %8213 = vmatpush1.bf16.msra.mxu1 %v14733_v7  ;;  %6695 = vmatprep.subr.bf16.mxu0 %v14460_v4  ;;  %v14772_v7 = vld [vmem:[%s22326_s8 + $0x7e8] sm:$0xff]  ;;  %v14511_v4 = vcombine.low %v14479_v3, %v14483_v9  ;;  %v14532_v3 = vcombine.high %v14497_v59, %v14501_v2 }
 0x7ea   :  { %8288 = vmatprep.subr.bf16.mxu1 %v14714_v1  ;;  %v14793_v1 = vcombine.low %v14760_v11, %v14764_v61  ;;  %v14802_v37 = vcombine.high %v14768_v13, %v14772_v7  ;;  %v14539_v11 = vld [vmem:[%s22326_s8 + $0x400] sm:$0xff] }
 0x7eb   :  { %v14543_v61 = vld [vmem:[%s22326_s8 + $0x420] sm:$0xff] }
 0x7ec   :  { %6696 = vmatpush1.bf16.msra.mxu0 %v14459_v32  ;;  %14740 = vmatmul.mubr.msk.bf16.vlgmr.msra.gmra.mrb[16].mxu1 %vm4268_vm3, %v19520_v46  ;;  %v14750_v32 = vld [vmem:[%s22326_s8 + $0x738] sm:$0xff] }
 0x7ed   :  { %8289 = vmatpush1.bf16.msra.mxu1 %v14713_v38  ;;  %6771 = vmatprep.subr.bf16.mxu0 %v14440_v35  ;;  %v14519_v38 = vcombine.low %v14487_v14, %v14491_v28  ;;  %v14801_v35 = vcombine.low %v14768_v13, %v14772_v7  ;;  %v14782_v57 = vcombine.high %v14746_v31, %v14750_v32  ;;  %v14547_v13 = vld [vmem:[%s22326_s8 + $0x440] sm:$0xff] }
 0x7ee   :  { %8290 = vmatprep.subr.bf16.mxu1 %v14722_v42  ;;  %8320 = vmatprep.mubr.bf16.mxu1 %v22338_v20  ;;  %v14572_v14 = vcombine.high %v14539_v11, %v14543_v61  ;;  %v14551_v7 = vld [vmem:[%s22326_s8 + $0x460] sm:$0xff] }
 0x7ef   :  { %14467 = vmatmul.mubr.msk.bf16.vlgmr.msra.gmra.mrb[104].mxu0 %vm4268_vm3, %v19479_v15 }
 0x7f0   :  { %6772 = vmatpush1.bf16.msra.mxu0 %v14439_v40  ;;  %6803 = vmatprep.mubr.bf16.mxu0 %v22338_v20  ;;  %v14758_v40 = vld [vmem:[%s22326_s8 + $0x778] sm:$0xff] }
 0x7f1   :  { %8291 = vmatpush1.bf16.msra.mxu1 %v14721_v51  ;;  %6773 = vmatprep.subr.bf16.mxu0 %v14448_v21  ;;  %v14781_v21 = vcombine.low %v14746_v31, %v14750_v32  ;;  %v14790_v44 = vcombine.high %v14754_v49, %v14758_v40  ;;  %v14555_v31 = vld [vmem:[%s22326_s8 + $0x480] sm:$0xff] }
 0x7f2   :  { %8292 = vmatprep.subr.bf16.mxu1 %v14730_v52  ;;  %v14508_v52 = vcombine.high %v14473_v0, %v14477_v26  ;;  %v14559_v32 = vld [vmem:[%s22326_s8 + $0x4a0] sm:$0xff] }
 0x7f4   :  { %6774 = vmatpush1.bf16.msra.mxu0 %v14447_v62  ;;  %v14762_v62 = vld [vmem:[%s22326_s8 + $0x798] sm:$0xff] }
 0x7f5   :  { %8293 = vmatpush1.bf16.msra.mxu1 %v14729_v36  ;;  %6775 = vmatprep.subr.bf16.mxu0 %v14456_v48  ;;  %v14766_v36 = vld [vmem:[%s22326_s8 + $0x7b8] sm:$0xff]  ;;  %v14507_v48 = vcombine.low %v14473_v0, %v14477_v26  ;;  %v14588_v0 = vcombine.high %v14555_v31, %v14559_v32 }
 0x7f6   :  { %8294 = vmatprep.subr.bf16.mxu1 %v14738_v34  ;;  %v14789_v34 = vcombine.low %v14754_v49, %v14758_v40  ;;  %v14798_v8 = vcombine.high %v14762_v62, %v14766_v36  ;;  %v14567_v49 = vld [vmem:[%s22326_s8 + $0x4e0] sm:$0xff]  ;;  %v14814_v40 = vld [vmem:[%s22326_s8 + $0x818] sm:$0xff] }
 0x7f8   :  { %6776 = vmatpush1.bf16.msra.mxu0 %v14455_v56  ;;  %v14770_v56 = vld [vmem:[%s22326_s8 + $0x7d8] sm:$0xff] }
 0x7f9   :  { %8295 = vmatpush1.bf16.msra.mxu1 %v14737_v5  ;;  %6777 = vmatprep.subr.bf16.mxu0 %v14464_v6  ;;  %v14774_v5 = vld [vmem:[%s22326_s8 + $0x7f8] sm:$0xff]  ;;  %v14515_v6 = vcombine.low %v14481_v50, %v14485_v30  ;;  %v14541_v30 = vld [vmem:[%s22326_s8 + $0x410] sm:$0xff] }
 0x7fa   :  { %8576 = vmatprep.subr.bf16.mxu1 %v14778_v10  ;;  %v14797_v10 = vcombine.low %v14762_v62, %v14766_v36  ;;  %v14806_v39 = vcombine.high %v14770_v56, %v14774_v5  ;;  %v14545_v62 = vld [vmem:[%s22326_s8 + $0x430] sm:$0xff]  ;;  %v14822_v36 = vld [vmem:[%s22326_s8 + $0x858] sm:$0xff] }
 0x7fc   :  { %6778 = vmatpush1.bf16.msra.mxu0 %v14463_v12  ;;  %14742 = vmatmul.mubr.msk.bf16.vlgmr.msra.gmra.mrb[20].mxu1 %vm4268_vm3, %v19520_v46  ;;  %v14812_v12 = vld [vmem:[%s22326_s8 + $0x808] sm:$0xff] }
 0x7fd   :  { %8577 = vmatpush1.bf16.msra.mxu1 %v14777_v45  ;;  %7059 = vmatprep.subr.bf16.mxu0 %v14504_v54  ;;  %v14816_v45 = vld [vmem:[%s22326_s8 + $0x828] sm:$0xff]  ;;  %v14523_v54 = vcombine.low %v14489_v41, %v14493_v60  ;;  %v14549_v60 = vld [vmem:[%s22326_s8 + $0x450] sm:$0xff] }
 0x7fe   :  { %8578 = vmatprep.subr.bf16.mxu1 %v14786_v33  ;;  %8608 = vmatprep.mubr.bf16.mxu1 %v22338_v20  ;;  %v14805_v33 = vcombine.low %v14770_v56, %v14774_v5  ;;  %v14846_v9 = vcombine.high %v14812_v12, %v14816_v45  ;;  %v14553_v56 = vld [vmem:[%s22326_s8 + $0x470] sm:$0xff]  ;;  %v14830_v5 = vld [vmem:[%s22326_s8 + $0x898] sm:$0xff] }
 0x7ff   :  { %14469 = vmatmul.mubr.msk.bf16.vlgmr.msra.gmra.mrb[108].mxu0 %vm4268_vm3, %v19479_v15  ;;  %v14495_v15 = vld [vmem:[%s22326_s8 + $0x3c0] sm:$0xff] }
 0x800   :  { %7060 = vmatpush1.bf16.msra.mxu0 %v14503_v63  ;;  %7091 = vmatprep.mubr.bf16.mxu0 %v22338_v20  ;;  %v14528_v42 = vcombine.high %v14495_v15, %v14499_v19  ;;  %v14527_v51 = vcombine.low %v14495_v15, %v14499_v19  ;;  %v14820_v63 = vld [vmem:[%s22326_s8 + $0x848] sm:$0xff]  ;;  %v14580_v15 = vcombine.high %v14547_v13, %v14551_v7 }
 0x801   :  { %8579 = vmatpush1.bf16.msra.mxu1 %v14785_v55  ;;  %7061 = vmatprep.subr.bf16.mxu0 %v14512_v58  ;;  %v14824_v55 = vld [vmem:[%s22326_s8 + $0x868] sm:$0xff]  ;;  %v14531_v58 = vcombine.low %v14497_v59, %v14501_v2  ;;  %v14557_v2 = vld [vmem:[%s22326_s8 + $0x490] sm:$0xff] }
 0x802   :  { %8580 = vmatprep.subr.bf16.mxu1 %v14794_v23  ;;  %v14845_v23 = vcombine.low %v14812_v12, %v14816_v45  ;;  %v14854_v28 = vcombine.high %v14820_v63, %v14824_v55  ;;  %v14561_v12 = vld [vmem:[%s22326_s8 + $0x4b0] sm:$0xff]  ;;  %v14838_v45 = vld [vmem:[%s22326_s8 + $0x8d8] sm:$0xff] }
 0x804   :  { %7062 = vmatpush1.bf16.msra.mxu0 %v14511_v4  ;;  %v14828_v4 = vld [vmem:[%s22326_s8 + $0x888] sm:$0xff] }
 0x805   :  { %8581 = vmatpush1.bf16.msra.mxu1 %v14793_v1  ;;  %7063 = vmatprep.subr.bf16.mxu0 %v14520_v25  ;;  %v14832_v1 = vld [vmem:[%s22326_s8 + $0x8a8] sm:$0xff]  ;;  %v14571_v25 = vcombine.low %v14539_v11, %v14543_v61  ;;  %v14565_v61 = vld [vmem:[%s22326_s8 + $0x4d0] sm:$0xff] }
 0x806   :  { %8582 = vmatprep.subr.bf16.mxu1 %v14802_v37  ;;  %v14853_v37 = vcombine.low %v14820_v63, %v14824_v55  ;;  %v14862_v19 = vcombine.high %v14828_v4, %v14832_v1  ;;  %v14569_v63 = vld [vmem:[%s22326_s8 + $0x4f0] sm:$0xff]  ;;  %v14880_v55 = vld [vmem:[%s22326_s8 + $0x908] sm:$0xff] }
 0x808   :  { %7064 = vmatpush1.bf16.msra.mxu0 %v14519_v38  ;;  %v14836_v38 = vld [vmem:[%s22326_s8 + $0x8c8] sm:$0xff] }
 0x809   :  { %8583 = vmatpush1.bf16.msra.mxu1 %v14801_v35  ;;  %7065 = vmatprep.subr.bf16.mxu0 %v14528_v42  ;;  %v14840_v35 = vld [vmem:[%s22326_s8 + $0x8e8] sm:$0xff]  ;;  %v14579_v42 = vcombine.low %v14547_v13, %v14551_v7  ;;  %v14607_v7 = vld [vmem:[%s22326_s8 + $0x500] sm:$0xff] }
 0x80a   :  { %8658 = vmatprep.subr.bf16.mxu1 %v14782_v57  ;;  %v14861_v57 = vcombine.low %v14828_v4, %v14832_v1  ;;  %v14870_v26 = vcombine.high %v14836_v38, %v14840_v35  ;;  %v14611_v4 = vld [vmem:[%s22326_s8 + $0x520] sm:$0xff]  ;;  %v14888_v1 = vld [vmem:[%s22326_s8 + $0x948] sm:$0xff] }
 0x80c   :  { %7066 = vmatpush1.bf16.msra.mxu0 %v14527_v51  ;;  %14808 = vmatmul.mubr.msk.bf16.vlgmr.msra.gmra.mrb[24].mxu1 %vm4268_vm3, %v20057_v24  ;;  %v14818_v51 = vld [vmem:[%s22326_s8 + $0x838] sm:$0xff] }
 0x80d   :  { %8659 = vmatpush1.bf16.msra.mxu1 %v14781_v21  ;;  %7141 = vmatprep.subr.bf16.mxu0 %v14508_v52  ;;  %v14587_v21 = vcombine.low %v14555_v31, %v14559_v32  ;;  %v14869_v52 = vcombine.low %v14836_v38, %v14840_v35  ;;  %v14850_v50 = vcombine.high %v14814_v40, %v14818_v51  ;;  %v14615_v32 = vld [vmem:[%s22326_s8 + $0x540] sm:$0xff]  ;;  %v14896_v35 = vld [vmem:[%s22326_s8 + $0x988] sm:$0xff] }
 0x80e   :  { %8660 = vmatprep.subr.bf16.mxu1 %v14790_v44  ;;  %8690 = vmatprep.mubr.bf16.mxu1 %v22338_v20  ;;  %v14619_v38 = vld [vmem:[%s22326_s8 + $0x560] sm:$0xff] }
 0x80f   :  { %14535 = vmatmul.mubr.msk.bf16.vlgmr.msra.gmra.mrb[112].mxu0 %vm4268_vm3, %v19619_v47 }
 0x810   :  { %7142 = vmatpush1.bf16.msra.mxu0 %v14507_v48  ;;  %7173 = vmatprep.mubr.bf16.mxu0 %v22338_v20  ;;  %v14826_v48 = vld [vmem:[%s22326_s8 + $0x878] sm:$0xff] }
 0x811   :  { %8661 = vmatpush1.bf16.msra.mxu1 %v14789_v34  ;;  %7143 = vmatprep.subr.bf16.mxu0 %v14516_v22  ;;  %v14849_v22 = vcombine.low %v14814_v40, %v14818_v51  ;;  %v14858_v41 = vcombine.high %v14822_v36, %v14826_v48  ;;  %v14627_v40 = vld [vmem:[%s22326_s8 + $0x5a0] sm:$0xff] }
 0x812   :  { %8662 = vmatprep.subr.bf16.mxu1 %v14798_v8  ;;  %v14576_v8 = vcombine.high %v14541_v30, %v14545_v62 }
 0x814   :  { %7144 = vmatpush1.bf16.msra.mxu0 %v14515_v6  ;;  %v14834_v6 = vld [vmem:[%s22326_s8 + $0x8b8] sm:$0xff] }
 0x815   :  { %8663 = vmatpush1.bf16.msra.mxu1 %v14797_v10  ;;  %7145 = vmatprep.subr.bf16.mxu0 %v14524_v16  ;;  %v14575_v10 = vcombine.low %v14541_v30, %v14545_v62  ;;  %v14857_v16 = vcombine.low %v14822_v36, %v14826_v48  ;;  %v14866_v59 = vcombine.high %v14830_v5, %v14834_v6 }
 0x816   :  { %8664 = vmatprep.subr.bf16.mxu1 %v14806_v39  ;;  %v14584_v39 = vcombine.high %v14549_v60, %v14553_v56 }
 0x818   :  { %7146 = vmatpush1.bf16.msra.mxu0 %v14523_v54  ;;  %v14842_v54 = vld [vmem:[%s22326_s8 + $0x8f8] sm:$0xff] }
 0x819   :  { %8665 = vmatpush1.bf16.msra.mxu1 %v14805_v33  ;;  %7147 = vmatprep.subr.bf16.mxu0 %v14532_v3  ;;  %v14583_v33 = vcombine.low %v14549_v60, %v14553_v56  ;;  %v14865_v3 = vcombine.low %v14830_v5, %v14834_v6  ;;  %v14874_v11 = vcombine.high %v14838_v45, %v14842_v54  ;;  %v14882_v60 = vld [vmem:[%s22326_s8 + $0x918] sm:$0xff] }
 0x81a   :  { %8944 = vmatprep.subr.bf16.mxu1 %v14846_v9  ;;  %v14592_v9 = vcombine.high %v14557_v2, %v14561_v12  ;;  %v14886_v56 = vld [vmem:[%s22326_s8 + $0x938] sm:$0xff] }
 0x81c   :  { %7148 = vmatpush1.bf16.msra.mxu0 %v14531_v58  ;;  %14810 = vmatmul.mubr.msk.bf16.vlgmr.msra.gmra.mrb[28].mxu1 %vm4268_vm3, %v20057_v24  ;;  %v14884_v58 = vld [vmem:[%s22326_s8 + $0x928] sm:$0xff] }
 0x81d   :  { %8945 = vmatpush1.bf16.msra.mxu1 %v14845_v23  ;;  %7427 = vmatprep.subr.bf16.mxu0 %v14572_v14  ;;  %v14591_v23 = vcombine.low %v14557_v2, %v14561_v12  ;;  %v14873_v14 = vcombine.low %v14838_v45, %v14842_v54  ;;  %v14914_v13 = vcombine.high %v14880_v55, %v14884_v58  ;;  %v14609_v2 = vld [vmem:[%s22326_s8 + $0x510] sm:$0xff]  ;;  %v14890_v45 = vld [vmem:[%s22326_s8 + $0x958] sm:$0xff] }
 0x81e   :  { %8946 = vmatprep.subr.bf16.mxu1 %v14854_v28  ;;  %8976 = vmatprep.mubr.bf16.mxu1 %v22338_v20  ;;  %v14600_v28 = vcombine.high %v14565_v61, %v14569_v63  ;;  %v14613_v12 = vld [vmem:[%s22326_s8 + $0x530] sm:$0xff]  ;;  %v14894_v54 = vld [vmem:[%s22326_s8 + $0x978] sm:$0xff] }
 0x81f   :  { %14537 = vmatmul.mubr.msk.bf16.vlgmr.msra.gmra.mrb[116].mxu0 %vm4268_vm3, %v19619_v47  ;;  %v14563_v47 = vld [vmem:[%s22326_s8 + $0x4c0] sm:$0xff] }
 0x820   :  { %7428 = vmatpush1.bf16.msra.mxu0 %v14571_v25  ;;  %7459 = vmatprep.mubr.bf16.mxu0 %v22338_v20  ;;  %v14596_v44 = vcombine.high %v14563_v47, %v14567_v49  ;;  %v14595_v34 = vcombine.low %v14563_v47, %v14567_v49  ;;  %v14892_v25 = vld [vmem:[%s22326_s8 + $0x968] sm:$0xff]  ;;  %v14623_v49 = vld [vmem:[%s22326_s8 + $0x580] sm:$0xff] }
 0x821   :  { %8947 = vmatpush1.bf16.msra.mxu1 %v14853_v37  ;;  %7429 = vmatprep.subr.bf16.mxu0 %v14580_v15  ;;  %v14599_v37 = vcombine.low %v14565_v61, %v14569_v63  ;;  %v14913_v15 = vcombine.low %v14880_v55, %v14884_v58  ;;  %v14922_v31 = vcombine.high %v14888_v1, %v14892_v25  ;;  %v14617_v63 = vld [vmem:[%s22326_s8 + $0x550] sm:$0xff]  ;;  %v14898_v58 = vld [vmem:[%s22326_s8 + $0x998] sm:$0xff] }
 0x822   :  { %8948 = vmatprep.subr.bf16.mxu1 %v14862_v19  ;;  %v14640_v19 = vcombine.high %v14607_v7, %v14611_v4  ;;  %v14656_v62 = vcombine.high %v14623_v49, %v14627_v40  ;;  %v14655_v6 = vcombine.low %v14623_v49, %v14627_v40  ;;  %v14926_v61 = vcombine.high %v14890_v45, %v14894_v54  ;;  %v14621_v55 = vld [vmem:[%s22326_s8 + $0x570] sm:$0xff]  ;;  %v14948_v40 = vld [vmem:[%s22326_s8 + $0xa08] sm:$0xff] }
 0x824   :  { %7430 = vmatpush1.bf16.msra.mxu0 %v14579_v42  ;;  %v14900_v42 = vld [vmem:[%s22326_s8 + $0x9a8] sm:$0xff] }
 0x825   :  { %8949 = vmatpush1.bf16.msra.mxu1 %v14861_v57  ;;  %7431 = vmatprep.subr.bf16.mxu0 %v14588_v0  ;;  %v14639_v57 = vcombine.low %v14607_v7, %v14611_v4  ;;  %v14921_v0 = vcombine.low %v14888_v1, %v14892_v25  ;;  %v14930_v47 = vcombine.high %v14896_v35, %v14900_v42  ;;  %v14625_v4 = vld [vmem:[%s22326_s8 + $0x590] sm:$0xff] }
 0x826   :  { %8950 = vmatprep.subr.bf16.mxu1 %v14870_v26  ;;  %v14648_v26 = vcombine.high %v14615_v32, %v14619_v38  ;;  %v14629_v1 = vld [vmem:[%s22326_s8 + $0x5b0] sm:$0xff] }
 0x828   :  { %7432 = vmatpush1.bf16.msra.mxu0 %v14587_v21  ;;  %v14904_v21 = vld [vmem:[%s22326_s8 + $0x9c8] sm:$0xff] }
 0x829   :  { %8951 = vmatpush1.bf16.msra.mxu1 %v14869_v52  ;;  %7433 = vmatprep.subr.bf16.mxu0 %v14596_v44  ;;  %v14908_v52 = vld [vmem:[%s22326_s8 + $0x9e8] sm:$0xff] }
 0x82a   :  { %9026 = vmatprep.subr.bf16.mxu1 %v14850_v50  ;;  %v14647_v50 = vcombine.low %v14615_v32, %v14619_v38 }
 0x82c   :  { %7434 = vmatpush1.bf16.msra.mxu0 %v14595_v34  ;;  %14876 = vmatmul.mubr.msk.bf16.vlgmr.msra.gmra.mrb[32].mxu1 %vm4268_vm3, %v19560_v17  ;;  %v14938_v34 = vcombine.high %v14904_v21, %v14908_v52 }
 0x82d   :  { %9027 = vmatpush1.bf16.msra.mxu1 %v14849_v22  ;;  %7509 = vmatprep.subr.bf16.mxu0 %v14576_v8  ;;  %v14631_v22 = vld [vmem:[%s22326_s8 + $0x5c0] sm:$0xff] }
 0x82e   :  { %9028 = vmatprep.subr.bf16.mxu1 %v14858_v41  ;;  %9058 = vmatprep.mubr.bf16.mxu1 %v22338_v20  ;;  %v14635_v8 = vld [vmem:[%s22326_s8 + $0x5e0] sm:$0xff] }
 0x82f   :  { %14603 = vmatmul.mubr.msk.bf16.vlgmr.msra.gmra.mrb[120].mxu0 %vm4268_vm3, %v19528_v27 }
 0x830   :  { %7510 = vmatpush1.bf16.msra.mxu0 %v14575_v10  ;;  %7541 = vmatprep.mubr.bf16.mxu0 %v22338_v20 }
 0x831   :  { %9029 = vmatpush1.bf16.msra.mxu1 %v14857_v16  ;;  %7511 = vmatprep.subr.bf16.mxu0 %v14584_v39  ;;  %v14937_v16 = vcombine.low %v14904_v21, %v14908_v52  ;;  %v14664_v39 = vcombine.high %v14631_v22, %v14635_v8  ;;  %v14952_v21 = vld [vmem:[%s22326_s8 + $0xa28] sm:$0xff] }
 0x832   :  { %9030 = vmatprep.subr.bf16.mxu1 %v14866_v59  ;;  %v14918_v59 = vcombine.high %v14882_v60, %v14886_v56 }
 0x834   :  { %7512 = vmatpush1.bf16.msra.mxu0 %v14583_v33  ;;  %v14663_v33 = vcombine.low %v14631_v22, %v14635_v8  ;;  %v14679_v22 = vld [vmem:[%s22326_s8 + $0x620] sm:$0xff]  ;;  %v14956_v8 = vld [vmem:[%s22326_s8 + $0xa48] sm:$0xff] }
 0x835   :  { %9031 = vmatpush1.bf16.msra.mxu1 %v14865_v3  ;;  %7513 = vmatprep.subr.bf16.mxu0 %v14592_v9  ;;  %v14917_v3 = vcombine.low %v14882_v60, %v14886_v56  ;;  %v14644_v9 = vcombine.high %v14609_v2, %v14613_v12  ;;  %v14960_v60 = vld [vmem:[%s22326_s8 + $0xa68] sm:$0xff] }
 0x836   :  { %9032 = vmatprep.subr.bf16.mxu1 %v14874_v11  ;;  %v20284_v11 = vrot.slane %v19560_v17, 4 }
 0x838   :  { %7514 = vmatpush1.bf16.msra.mxu0 %v14591_v23  ;;  %v14902_v23 = vld [vmem:[%s22326_s8 + $0x9b8] sm:$0xff] }
 0x839   :  { %9033 = vmatpush1.bf16.msra.mxu1 %v14873_v14  ;;  %7515 = vmatprep.subr.bf16.mxu0 %v14600_v28  ;;  %v14643_v14 = vcombine.low %v14609_v2, %v14613_v12  ;;  %v14925_v28 = vcombine.low %v14890_v45, %v14894_v54  ;;  %v14934_v7 = vcombine.high %v14898_v58, %v14902_v23  ;;  %v14968_v2 = vld [vmem:[%s22326_s8 + $0xaa8] sm:$0xff] }
 0x83a   :  { %9314 = vmatprep.subr.bf16.mxu1 %v14914_v13  ;;  %v14652_v13 = vcombine.high %v14617_v63, %v14621_v55  ;;  %v14933_v38 = vcombine.low %v14898_v58, %v14902_v23  ;;  %v14989_v45 = vcombine.low %v14956_v8, %v14960_v60 }
 0x83c   :  { %7516 = vmatpush1.bf16.msra.mxu0 %v14599_v37  ;;  %14878 = vmatmul.mubr.msk.bf16.vlgmr.msra.gmra.mrb[36].mxu1 %vm4268_vm3, %v19560_v17  ;;  %v14906_v37 = vld [vmem:[%s22326_s8 + $0x9d8] sm:$0xff] }
 0x83d   :  { %9315 = vmatpush1.bf16.msra.mxu1 %v14913_v15  ;;  %7797 = vmatprep.subr.bf16.mxu0 %v14640_v19  ;;  %v14910_v15 = vld [vmem:[%s22326_s8 + $0x9f8] sm:$0xff] }
 0x83e   :  { %9316 = vmatprep.subr.bf16.mxu1 %v14922_v31  ;;  %9346 = vmatprep.mubr.bf16.mxu1 %v22338_v20  ;;  %v14651_v31 = vcombine.low %v14617_v63, %v14621_v55  ;;  %v14972_v63 = vld [vmem:[%s22326_s8 + $0xac8] sm:$0xff] }
 0x83f   :  { %14605 = vmatmul.mubr.msk.bf16.vlgmr.msra.gmra.mrb[124].mxu0 %vm4268_vm3, %v19528_v27  ;;  %v20244_v51 = vpop.f32.mrb[240].mxu1  ;;  %v14929_v27 = vcombine.low %v14896_v35, %v14900_v42  ;;  %v14660_v35 = vcombine.high %v14625_v4, %v14629_v1  ;;  %v14976_v55 = vld [vmem:[%s22326_s8 + $0xae8] sm:$0xff] }
 0x840   :  { %7798 = vmatpush1.bf16.msra.mxu0 %v14639_v57  ;;  %v20252_v44 = vpop.f32.mrb[241].mxu1  ;;  %7829 = vmatprep.mubr.bf16.mxu0 %v22338_v20 }
 0x841   :  { %9317 = vmatpush1.bf16.msra.mxu1 %v14921_v0  ;;  %v6768_v30 = vpop.f32.mrb[242].mxu1  ;;  %7799 = vmatprep.subr.bf16.mxu0 %v14648_v26  ;;  %v14942_v0 = vcombine.high %v14906_v37, %v14910_v15  ;;  %v14633_v26 = vld [vmem:[%s22326_s8 + $0x5d0] sm:$0xff] }
 0x842   :  { %v20255_v36 = vpop.f32.mrb[72].mxu0  ;;  %v6769_v48 = vpop.f32.mrb[243].mxu1  ;;  %9318 = vmatprep.subr.bf16.mxu1 %v14930_v47  ;;  %v14637_v47 = vld [vmem:[%s22326_s8 + $0x5f0] sm:$0xff] }
 0x843   :  { %v20263_v41 = vpop.f32.mrb[73].mxu0  ;;  %v14982_v48 = vcombine.high %v14948_v40, %v14952_v21  ;;  %v14667_v56 = vcombine.low %v14633_v26, %v14637_v47 }
 0x844   :  { %7800 = vmatpush1.bf16.msra.mxu0 %v14647_v50  ;;  %v6040_v5 = vpop.f32.mrb[74].mxu0  ;;  %v14659_v50 = vcombine.low %v14625_v4, %v14629_v1  ;;  %v15006_v4 = vcombine.high %v14972_v63, %v14976_v55  ;;  %v14699_v1 = vld [vmem:[%s22326_s8 + $0x6c0] sm:$0xff] }
 0x845   :  { %9319 = vmatpush1.bf16.msra.mxu1 %v14929_v27  ;;  %v6041_v10 = vpop.f32.mrb[75].mxu0  ;;  %7801 = vmatprep.subr.bf16.mxu0 %v14656_v62  ;;  %v14941_v27 = vcombine.low %v14906_v37, %v14910_v15  ;;  %v14668_v62 = vcombine.high %v14633_v26, %v14637_v47  ;;  %v14981_v5 = vcombine.low %v14948_v40, %v14952_v21  ;;  %v14703_v37 = vld [vmem:[%s22326_s8 + $0x6e0] sm:$0xff]  ;;  %v14677_v40 = vld [vmem:[%s22326_s8 + $0x610] sm:$0xff] }
 0x846   :  { %9320 = vmatprep.subr.bf16.mxu1 %v14938_v34  ;;  %v14675_v34 = vld [vmem:[%s22326_s8 + $0x600] sm:$0xff]  ;;  %v14990_v10 = vcombine.high %v14956_v8, %v14960_v60  ;;  %v14732_v26 = vcombine.high %v14699_v1, %v14703_v37  ;;  %v14681_v21 = vld [vmem:[%s22326_s8 + $0x630] sm:$0xff]  ;;  %v14966_v8 = vld [vmem:[%s22326_s8 + $0xa98] sm:$0xff] }
 0x847   :  { %v14707_v12 = vcombine.low %v14675_v34, %v14679_v22  ;;  %v14970_v60 = vld [vmem:[%s22326_s8 + $0xab8] sm:$0xff] }
 0x848   :  { %7802 = vmatpush1.bf16.msra.mxu0 %v14655_v6  ;;  %v14708_v6 = vcombine.high %v14675_v34, %v14679_v22  ;;  %v14685_v34 = vld [vmem:[%s22326_s8 + $0x650] sm:$0xff] }
 0x849   :  { %9321 = vmatpush1.bf16.msra.mxu1 %v14937_v16  ;;  %7803 = vmatprep.subr.bf16.mxu0 %v14664_v39  ;;  %v14683_v16 = vld [vmem:[%s22326_s8 + $0x640] sm:$0xff]  ;;  %v14689_v22 = vld [vmem:[%s22326_s8 + $0x670] sm:$0xff] }
 0x84a   :  { %9396 = vmatprep.subr.bf16.mxu1 %v14918_v59  ;;  %v14687_v39 = vld [vmem:[%s22326_s8 + $0x660] sm:$0xff]  ;;  %v14964_v59 = vld [vmem:[%s22326_s8 + $0xa88] sm:$0xff] }
 0x84b   :  { %v14716_v54 = vcombine.high %v14683_v16, %v14687_v39  ;;  %v14715_v23 = vcombine.low %v14683_v16, %v14687_v39  ;;  %v14693_v16 = vld [vmem:[%s22326_s8 + $0x690] sm:$0xff] }
 0x84c   :  { %7804 = vmatpush1.bf16.msra.mxu0 %v14663_v33  ;;  %14944 = vmatmul.mubr.msk.bf16.vlgmr.msra.gmra.mrb[40].mxu1 %vm4268_vm3, %v20284_v11  ;;  %v14998_v33 = vcombine.high %v14964_v59, %v14968_v2  ;;  %v14697_v39 = vld [vmem:[%s22326_s8 + $0x6b0] sm:$0xff] }
 0x84d   :  { %9397 = vmatpush1.bf16.msra.mxu1 %v14917_v3  ;;  %7879 = vmatprep.subr.bf16.mxu0 %v14644_v9  ;;  %v14691_v3 = vld [vmem:[%s22326_s8 + $0x680] sm:$0xff] }
 0x84e   :  { %9398 = vmatprep.subr.bf16.mxu1 %v14926_v61  ;;  %9428 = vmatprep.mubr.bf16.mxu1 %v22338_v20  ;;  %v14695_v9 = vld [vmem:[%s22326_s8 + $0x6a0] sm:$0xff] }
 0x84f   :  { %v20307_v25 = vpop.f32.mrb[244].mxu1  ;;  %14671 = vmatmul.mubr.msk.bf16.vlgmr.msra.gmra.mrb[128].mxu0 %vm4268_vm3, %v19838_v29 }
 0x850   :  { %v20317_v19 = vpop.f32.mrb[245].mxu1  ;;  %7880 = vmatpush1.bf16.msra.mxu0 %v14643_v14  ;;  %7911 = vmatprep.mubr.bf16.mxu0 %v22338_v20 }
 0x851   :  { %v6850_v32 = vpop.f32.mrb[246].mxu1  ;;  %9399 = vmatpush1.bf16.msra.mxu1 %v14925_v28  ;;  %7881 = vmatprep.subr.bf16.mxu0 %v14652_v13  ;;  %v14997_v28 = vcombine.low %v14964_v59, %v14968_v2  ;;  %v14724_v13 = vcombine.high %v14691_v3, %v14695_v9  ;;  %v14974_v2 = vld [vmem:[%s22326_s8 + $0xad8] sm:$0xff] }
 0x852   :  { %v20320_v42 = vpop.f32.mrb[76].mxu0  ;;  %v6851_v57 = vpop.f32.mrb[247].mxu1  ;;  %9400 = vmatprep.subr.bf16.mxu1 %v14934_v7  ;;  %v14954_v32 = vld [vmem:[%s22326_s8 + $0xa38] sm:$0xff] }
 0x853   :  { %v20328_v49 = vpop.f32.mrb[77].mxu0 }
 0x854   :  { %v6081_v52 = vpop.f32.mrb[78].mxu0  ;;  %7882 = vmatpush1.bf16.msra.mxu0 %v14651_v31  ;;  %v14950_v31 = vld [vmem:[%s22326_s8 + $0xa18] sm:$0xff] }
 0x855   :  { %v6082_v30 = vpop.f32.mrb[79].mxu0  ;;  %9401 = vmatpush1.bf16.msra.mxu1 %v14933_v38  ;;  %7883 = vmatprep.subr.bf16.mxu0 %v14660_v35  ;;  %v14723_v35 = vcombine.low %v14691_v3, %v14695_v9  ;;  %v14986_v47 = vcombine.high %v14950_v31, %v14954_v32  ;;  %v14958_v52 = vld [vmem:[%s22326_s8 + $0xa58] sm:$0xff]  ;;  %v15001_v3 = vcombine.low %v14966_v8, %v14970_v60 }
 0x856   :  { %9402 = vmatprep.subr.bf16.mxu1 %v14942_v0  ;;  %v15005_v0 = vcombine.low %v14972_v63, %v14976_v55  ;;  %v14731_v30 = vcombine.low %v14699_v1, %v14703_v37  ;;  %v14728_v9 = vcombine.high %v14693_v16, %v14697_v39  ;;  %v14727_v37 = vcombine.low %v14693_v16, %v14697_v39  ;;  %v15044_v16 = vld [vmem:[%s22326_s8 + $0xbe8] sm:$0xff] }
 0x858   :  { %7884 = vmatpush1.bf16.msra.mxu0 %v14659_v50  ;;  %v14962_v50 = vld [vmem:[%s22326_s8 + $0xa78] sm:$0xff] }
 0x859   :  { %9403 = vmatpush1.bf16.msra.mxu1 %v14941_v27  ;;  %7885 = vmatprep.subr.bf16.mxu0 %v14668_v62  ;;  %v14985_v27 = vcombine.low %v14950_v31, %v14954_v32  ;;  %v14712_v62 = vcombine.high %v14677_v40, %v14681_v21 }
 0x85a   :  { %9682 = vmatprep.subr.bf16.mxu1 %v14982_v48  ;;  %v14994_v48 = vcombine.high %v14958_v52, %v14962_v50 }
 0x85c   :  { %7886 = vmatpush1.bf16.msra.mxu0 %v14667_v56  ;;  %14946 = vmatmul.mubr.msk.bf16.vlgmr.msra.gmra.mrb[44].mxu1 %vm4268_vm3, %v20284_v11  ;;  %v14711_v56 = vcombine.low %v14677_v40, %v14681_v21 }
 0x85d   :  { %9683 = vmatpush1.bf16.msra.mxu1 %v14981_v5  ;;  %8165 = vmatprep.subr.bf16.mxu0 %v14708_v6  ;;  %v14993_v5 = vcombine.low %v14958_v52, %v14962_v50  ;;  %v14720_v6 = vcombine.high %v14685_v34, %v14689_v22 }
 0x85e   :  { %9684 = vmatprep.subr.bf16.mxu1 %v14990_v10  ;;  %9714 = vmatprep.mubr.bf16.mxu1 %v22338_v20  ;;  %v15002_v10 = vcombine.high %v14966_v8, %v14970_v60 }
 0x85f   :  { %v20369_v61 = vpop.f32.mrb[248].mxu1  ;;  %14673 = vmatmul.mubr.msk.bf16.vlgmr.msra.gmra.mrb[132].mxu0 %vm4268_vm3, %v19838_v29 }
 0x860   :  { %v20379_v58 = vpop.f32.mrb[249].mxu1  ;;  %8166 = vmatpush1.bf16.msra.mxu0 %v14707_v12  ;;  %8197 = vmatprep.mubr.bf16.mxu0 %v22338_v20  ;;  %v14978_v12 = vld [vmem:[%s22326_s8 + $0xaf8] sm:$0xff] }
 0x861   :  { %v7138_v14 = vpop.f32.mrb[250].mxu1  ;;  %9685 = vmatpush1.bf16.msra.mxu1 %v14989_v45  ;;  %8167 = vmatprep.subr.bf16.mxu0 %v14716_v54  ;;  %v14719_v54 = vcombine.low %v14685_v34, %v14689_v22  ;;  %v15009_v32 = vcombine.low %v14974_v2, %v14978_v12 }
 0x862   :  { %v20382_v29 = vpop.f32.mrb[80].mxu0  ;;  %v7139_v7 = vpop.f32.mrb[251].mxu1  ;;  %9686 = vmatprep.subr.bf16.mxu1 %v14998_v33  ;;  %v14701_v14 = vld [vmem:[%s22326_s8 + $0x6d0] sm:$0xff] }
 0x863   :  { %v20390_v15 = vpop.f32.mrb[81].mxu0  ;;  %v15016_v7 = vld [vmem:[%s22326_s8 + $0xb08] sm:$0xff] }
 0x864   :  { %v6122_v38 = vpop.f32.mrb[82].mxu0  ;;  %8168 = vmatpush1.bf16.msra.mxu0 %v14715_v23  ;;  %v15010_v23 = vcombine.high %v14974_v2, %v14978_v12 }
 0x865   :  { %v6123_v57 = vpop.f32.mrb[83].mxu0  ;;  %9687 = vmatpush1.bf16.msra.mxu1 %v14997_v28  ;;  %8169 = vmatprep.subr.bf16.mxu0 %v14724_v13  ;;  %v14705_v28 = vld [vmem:[%s22326_s8 + $0x6f0] sm:$0xff] }
 0x866   :  { %9688 = vmatprep.subr.bf16.mxu1 %v15006_v4  ;;  %v15020_v4 = vld [vmem:[%s22326_s8 + $0xb28] sm:$0xff]  ;;  %v14736_v38 = vcombine.high %v14701_v14, %v14705_v28  ;;  %v14743_v57 = vld [vmem:[%s22326_s8 + $0x700] sm:$0xff]  ;;  %v14735_v40 = vcombine.low %v14701_v14, %v14705_v28 }
 0x867   :  { %v15049_v21 = vcombine.low %v15016_v7, %v15020_v4 }
 0x868   :  { %8170 = vmatpush1.bf16.msra.mxu0 %v14723_v35  ;;  %v15050_v35 = vcombine.high %v15016_v7, %v15020_v4  ;;  %v15018_v7 = vld [vmem:[%s22326_s8 + $0xb18] sm:$0xff] }
 0x869   :  { %9689 = vmatpush1.bf16.msra.mxu1 %v15005_v0  ;;  %8171 = vmatprep.subr.bf16.mxu0 %v14732_v26  ;;  %v14747_v0 = vld [vmem:[%s22326_s8 + $0x720] sm:$0xff]  ;;  %v15024_v26 = vld [vmem:[%s22326_s8 + $0xb48] sm:$0xff]  ;;  %v15022_v4 = vld [vmem:[%s22326_s8 + $0xb38] sm:$0xff] }
 0x86a   :  { %9764 = vmatprep.subr.bf16.mxu1 %v14986_v47  ;;  %v15028_v47 = vld [vmem:[%s22326_s8 + $0xb68] sm:$0xff]  ;;  %v14776_v52 = vcombine.high %v14743_v57, %v14747_v0  ;;  %v14775_v34 = vcombine.low %v14743_v57, %v14747_v0  ;;  %v14745_v57 = vld [vmem:[%s22326_s8 + $0x710] sm:$0xff] }
 0x86b   :  { %v15058_v50 = vcombine.high %v15024_v26, %v15028_v47  ;;  %v15057_v22 = vcombine.low %v15024_v26, %v15028_v47  ;;  %v14749_v0 = vld [vmem:[%s22326_s8 + $0x730] sm:$0xff]  ;;  %v15030_v26 = vld [vmem:[%s22326_s8 + $0xb78] sm:$0xff] }
 0x86c   :  { %8172 = vmatpush1.bf16.msra.mxu0 %v14731_v30  ;;  %15012 = vmatmul.mubr.msk.bf16.vlgmr.msra.gmra.mrb[48].mxu1 %vm4268_vm3, %v19552_v18  ;;  %v14751_v30 = vld [vmem:[%s22326_s8 + $0x740] sm:$0xff] }
 0x86d   :  { %9765 = vmatpush1.bf16.msra.mxu1 %v14985_v27  ;;  %8247 = vmatprep.subr.bf16.mxu0 %v14712_v62  ;;  %v14755_v27 = vld [vmem:[%s22326_s8 + $0x760] sm:$0xff]  ;;  %v15032_v62 = vld [vmem:[%s22326_s8 + $0xb88] sm:$0xff] }
 0x86e   :  { %9766 = vmatprep.subr.bf16.mxu1 %v14994_v48  ;;  %9796 = vmatprep.mubr.bf16.mxu1 %v22338_v20  ;;  %v15036_v48 = vld [vmem:[%s22326_s8 + $0xba8] sm:$0xff]  ;;  %v14784_v8 = vcombine.high %v14751_v30, %v14755_v27  ;;  %v14783_v2 = vcombine.low %v14751_v30, %v14755_v27  ;;  %v14753_v30 = vld [vmem:[%s22326_s8 + $0x750] sm:$0xff] }
 0x86f   :  { %v20431_v59 = vpop.f32.mrb[252].mxu1  ;;  %14739 = vmatmul.mubr.msk.bf16.vlgmr.msra.gmra.mrb[136].mxu0 %vm4268_vm3, %v19520_v46  ;;  %v15066_v60 = vcombine.high %v15032_v62, %v15036_v48  ;;  %v14757_v27 = vld [vmem:[%s22326_s8 + $0x770] sm:$0xff] }
 0x870   :  { %v20441_v45 = vpop.f32.mrb[253].mxu1  ;;  %8248 = vmatpush1.bf16.msra.mxu0 %v14711_v56  ;;  %8279 = vmatprep.mubr.bf16.mxu0 %v22338_v20  ;;  %v14759_v56 = vld [vmem:[%s22326_s8 + $0x780] sm:$0xff] }
 0x871   :  { %v7220_v33 = vpop.f32.mrb[254].mxu1  ;;  %9767 = vmatpush1.bf16.msra.mxu1 %v14993_v5  ;;  %8249 = vmatprep.subr.bf16.mxu0 %v14720_v6  ;;  %v14763_v5 = vld [vmem:[%s22326_s8 + $0x7a0] sm:$0xff] }
 0x872   :  { %v20444_v63 = vpop.f32.mrb[84].mxu0  ;;  %v7221_v55 = vpop.f32.mrb[255].mxu1  ;;  %9768 = vmatprep.subr.bf16.mxu1 %v15002_v10  ;;  %v15040_v10 = vld [vmem:[%s22326_s8 + $0xbc8] sm:$0xff]  ;;  %v14792_v33 = vcombine.high %v14759_v56, %v14763_v5 }
 0x873   :  { %v20452_v13 = vpop.f32.mrb[85].mxu0  ;;  %v14767_v55 = vld [vmem:[%s22326_s8 + $0x7c0] sm:$0xff] }
 0x874   :  { %v6163_v1 = vpop.f32.mrb[86].mxu0  ;;  %8250 = vmatpush1.bf16.msra.mxu0 %v14719_v54  ;;  %v15065_v54 = vcombine.low %v15032_v62, %v15036_v48  ;;  %v15034_v62 = vld [vmem:[%s22326_s8 + $0xb98] sm:$0xff] }
 0x875   :  { %v6164_v31 = vpop.f32.mrb[87].mxu0  ;;  %9769 = vmatpush1.bf16.msra.mxu1 %v15001_v3  ;;  %8251 = vmatprep.subr.bf16.mxu0 %v14728_v9  ;;  %v15074_v9 = vcombine.high %v15040_v10, %v15044_v16  ;;  %v15038_v48 = vld [vmem:[%s22326_s8 + $0xbb8] sm:$0xff] }
 0x876   :  { %9770 = vmatprep.subr.bf16.mxu1 %v15010_v23  ;;  %v14771_v23 = vld [vmem:[%s22326_s8 + $0x7e0] sm:$0xff]  ;;  %v14791_v31 = vcombine.low %v14759_v56, %v14763_v5  ;;  %v14761_v56 = vld [vmem:[%s22326_s8 + $0x790] sm:$0xff] }
 0x877   :  { %v14799_v47 = vcombine.low %v14767_v55, %v14771_v23  ;;  %v14765_v5 = vld [vmem:[%s22326_s8 + $0x7b0] sm:$0xff] }
 0x878   :  { %8252 = vmatpush1.bf16.msra.mxu0 %v14727_v37 }
 0x879   :  { %9771 = vmatpush1.bf16.msra.mxu1 %v15009_v32  ;;  %8253 = vmatprep.subr.bf16.mxu0 %v14736_v38  ;;  %v14800_v38 = vcombine.high %v14767_v55, %v14771_v23 }
 0x87a   :  { %10052 = vmatprep.subr.bf16.mxu1 %v15050_v35  ;;  %v15054_v35 = vcombine.high %v15018_v7, %v15022_v4 }
 0x87c   :  { %8254 = vmatpush1.bf16.msra.mxu0 %v14735_v40  ;;  %15014 = vmatmul.mubr.msk.bf16.vlgmr.msra.gmra.mrb[52].mxu1 %vm4268_vm3, %v19552_v18  ;;  %v15053_v40 = vcombine.low %v15018_v7, %v15022_v4  ;;  %v14773_v7 = vld [vmem:[%s22326_s8 + $0x7f0] sm:$0xff] }
 0x87d   :  { %10053 = vmatpush1.bf16.msra.mxu1 %v15049_v21  ;;  %8535 = vmatprep.subr.bf16.mxu0 %v14776_v52  ;;  %v14780_v21 = vcombine.high %v14745_v57, %v14749_v0  ;;  %v20537_v52 = vrot.slane %v19552_v18, 4 }
 0x87e   :  { %10054 = vmatprep.subr.bf16.mxu1 %v15058_v50  ;;  %10084 = vmatprep.mubr.bf16.mxu1 %v22338_v20 }
 0x87f   :  { %v20493_v6 = vpop.f32.mrb[0].mxu1  ;;  %14741 = vmatmul.mubr.msk.bf16.vlgmr.msra.gmra.mrb[140].mxu0 %vm4268_vm3, %v19520_v46 }
 0x880   :  { %v20503_v39 = vpop.f32.mrb[1].mxu1  ;;  %8536 = vmatpush1.bf16.msra.mxu0 %v14775_v34  ;;  %8567 = vmatprep.mubr.bf16.mxu0 %v22338_v20  ;;  %v14779_v34 = vcombine.low %v14745_v57, %v14749_v0 }
 0x881   :  { %v7506_v12 = vpop.f32.mrb[2].mxu1  ;;  %10055 = vmatpush1.bf16.msra.mxu1 %v15057_v22  ;;  %8537 = vmatprep.subr.bf16.mxu0 %v14784_v8  ;;  %v14788_v8 = vcombine.high %v14753_v30, %v14757_v27 }
 0x882   :  { %v6363_v46 = vpop.f32.mrb[88].mxu0  ;;  %v7507_v3 = vpop.f32.mrb[3].mxu1  ;;  %10056 = vmatprep.subr.bf16.mxu1 %v15066_v60  ;;  %v15070_v60 = vcombine.high %v15034_v62, %v15038_v48 }
 0x883   :  { %v20513_v14 = vadd.f32 %v6363_v46, %v20255_v36  ;;  %v6365_v28 = vpop.f32.mrb[89].mxu0  ;;  %v15073_v36 = vcombine.low %v15040_v10, %v15044_v16  ;;  %v15042_v16 = vld [vmem:[%s22326_s8 + $0xbd8] sm:$0xff]  ;;  %v15069_v46 = vcombine.low %v15034_v62, %v15038_v48  ;;  %v14796_v3 = vcombine.high %v14761_v56, %v14765_v5 }
 0x884   :  { %v20522_v1 = vadd.f32 %v6365_v28, %v20263_v41  ;;  %v6367_v37 = vpop.f32.mrb[90].mxu0  ;;  %8538 = vmatpush1.bf16.msra.mxu0 %v14783_v2  ;;  %v15026_v41 = vld [vmem:[%s22326_s8 + $0xb58] sm:$0xff]  ;;  %v14769_v28 = vld [vmem:[%s22326_s8 + $0x7d0] sm:$0xff] }
 0x885   :  { %v6368_v32 = vpop.f32.mrb[91].mxu0  ;;  %10057 = vmatpush1.bf16.msra.mxu1 %v15065_v54  ;;  %8539 = vmatprep.subr.bf16.mxu0 %v14792_v33  ;;  %v15062_v50 = vcombine.high %v15026_v41, %v15030_v26  ;;  %v15061_v22 = vcombine.low %v15026_v41, %v15030_v26  ;;  %v15046_v2 = vld [vmem:[%s22326_s8 + $0xbf8] sm:$0xff]  ;;  %v14787_v54 = vcombine.low %v14753_v30, %v14757_v27 }
 0x886   :  { %10058 = vmatprep.subr.bf16.mxu1 %v15074_v9  ;;  %v15078_v23 = vcombine.high %v15042_v16, %v15046_v2  ;;  %v15088_v32 = vld [vmem:[%s22326_s8 + $0xc28] sm:$0xff]  ;;  %v14804_v41 = vcombine.high %v14769_v28, %v14773_v7 }
 0x888   :  { %8540 = vmatpush1.bf16.msra.mxu0 %v14791_v31  ;;  %v15084_v31 = vld [vmem:[%s22326_s8 + $0xc08] sm:$0xff] }
 0x889   :  { %10059 = vmatpush1.bf16.msra.mxu1 %v15073_v36  ;;  %8541 = vmatprep.subr.bf16.mxu0 %v14800_v38  ;;  %v15117_v27 = vcombine.low %v15084_v31, %v15088_v32 }
 0x88a   :  { %10134 = vmatprep.subr.bf16.mxu1 %v15054_v35  ;;  %v14795_v35 = vcombine.low %v14761_v56, %v14765_v5 }
 0x88c   :  { %8542 = vmatpush1.bf16.msra.mxu0 %v14799_v47  ;;  %15080 = vmatmul.mubr.msk.bf16.vlgmr.msra.gmra.mrb[56].mxu1 %vm4268_vm3, %v20537_v52  ;;  %v15118_v47 = vcombine.high %v15084_v31, %v15088_v32  ;;  %v14835_v32 = vld [vmem:[%s22326_s8 + $0x8c0] sm:$0xff] }
 0x88d   :  { %10135 = vmatpush1.bf16.msra.mxu1 %v15053_v40  ;;  %8617 = vmatprep.subr.bf16.mxu0 %v14780_v21  ;;  %v14811_v40 = vld [vmem:[%s22326_s8 + $0x800] sm:$0xff] }
 0x88e   :  { %10136 = vmatprep.subr.bf16.mxu1 %v15062_v50  ;;  %10166 = vmatprep.mubr.bf16.mxu1 %v22338_v20  ;;  %v14803_v50 = vcombine.low %v14769_v28, %v14773_v7 }
 0x88f   :  { %v20560_v10 = vpop.f32.mrb[4].mxu1  ;;  %14807 = vmatmul.mubr.msk.bf16.vlgmr.msra.gmra.mrb[144].mxu0 %vm4268_vm3, %v20057_v24 }
 0x890   :  { %v20570_v12 = vpop.f32.mrb[5].mxu1  ;;  %8618 = vmatpush1.bf16.msra.mxu0 %v14779_v34  ;;  %8649 = vmatprep.mubr.bf16.mxu0 %v22338_v20 }
 0x891   :  { %v7588_v33 = vpop.f32.mrb[6].mxu1  ;;  %10137 = vmatpush1.bf16.msra.mxu1 %v15061_v22  ;;  %8619 = vmatprep.subr.bf16.mxu0 %v14788_v8  ;;  %v14819_v22 = vld [vmem:[%s22326_s8 + $0x840] sm:$0xff] }
 0x892   :  { %v6404_v9 = vpop.f32.mrb[92].mxu0  ;;  %v7589_v55 = vpop.f32.mrb[7].mxu1  ;;  %10138 = vmatprep.subr.bf16.mxu1 %v15070_v60  ;;  %v14823_v8 = vld [vmem:[%s22326_s8 + $0x860] sm:$0xff]  ;;  %v15108_v33 = vld [vmem:[%s22326_s8 + $0xcc8] sm:$0xff] }
 0x893   :  { %v6405_v4 = vadd.f32 %v6404_v9, %v20320_v42  ;;  %v6406_v37 = vpop.f32.mrb[93].mxu0  ;;  %v15077_v42 = vcombine.low %v15042_v16, %v15046_v2  ;;  %v14852_v56 = vcombine.high %v14819_v22, %v14823_v8  ;;  %v14827_v16 = vld [vmem:[%s22326_s8 + $0x880] sm:$0xff]  ;;  %v14851_v55 = vcombine.low %v14819_v22, %v14823_v8  ;;  %v15106_v22 = vld [vmem:[%s22326_s8 + $0xcb8] sm:$0xff] }
 0x894   :  { %v6407_v36 = vadd.f32 %v6406_v37, %v20328_v49  ;;  %v6408_v38 = vpop.f32.mrb[94].mxu0  ;;  %8620 = vmatpush1.bf16.msra.mxu0 %v14787_v54  ;;  %v14815_v49 = vld [vmem:[%s22326_s8 + $0x820] sm:$0xff] }
 0x895   :  { %v6855_v57 = vadd.f32 %v20244_v51, %v6405_v4  ;;  %v6409_v0 = vpop.f32.mrb[95].mxu0  ;;  %10139 = vmatpush1.bf16.msra.mxu1 %v15069_v46  ;;  %8621 = vmatprep.subr.bf16.mxu0 %v14796_v3  ;;  %v15092_v51 = vld [vmem:[%s22326_s8 + $0xc48] sm:$0xff]  ;;  %v14844_v48 = vcombine.high %v14811_v40, %v14815_v49  ;;  %v14831_v2 = vld [vmem:[%s22326_s8 + $0x8a0] sm:$0xff] }
 0x896   :  { %v6856_v26 = vadd.f32 %v20252_v44, %v6407_v36  ;;  %10140 = vmatprep.subr.bf16.mxu1 %v15078_v23  ;;  %v15096_v44 = vld [vmem:[%s22326_s8 + $0xc68] sm:$0xff]  ;;  %v14860_v7 = vcombine.high %v14827_v16, %v14831_v2  ;;  %v14839_v36 = vld [vmem:[%s22326_s8 + $0x8e0] sm:$0xff]  ;;  %v15090_v0 = vld [vmem:[%s22326_s8 + $0xc38] sm:$0xff] }
 0x897   :  { %v7225_v21 = vadd.f32 %v20369_v61, %v6855_v57  ;;  %v15126_v34 = vcombine.high %v15092_v51, %v15096_v44  ;;  %v15125_v60 = vcombine.low %v15092_v51, %v15096_v44  ;;  %v15112_v46 = vld [vmem:[%s22326_s8 + $0xce8] sm:$0xff]  ;;  %v15086_v57 = vld [vmem:[%s22326_s8 + $0xc18] sm:$0xff]  ;;  %v14817_v51 = vld [vmem:[%s22326_s8 + $0x830] sm:$0xff] }
 0x898   :  { %8622 = vmatpush1.bf16.msra.mxu0 %v14795_v35  ;;  %v7226_v30 = vadd.f32 %v20379_v58, %v6856_v26  ;;  %v15100_v58 = vld [vmem:[%s22326_s8 + $0xc88] sm:$0xff]  ;;  %v15142_v31 = vcombine.high %v15108_v33, %v15112_v46  ;;  %v14859_v26 = vcombine.low %v14827_v16, %v14831_v2  ;;  %v15098_v44 = vld [vmem:[%s22326_s8 + $0xc78] sm:$0xff] }
 0x899   :  { %10141 = vmatpush1.bf16.msra.mxu1 %v15077_v42  ;;  %8623 = vmatprep.subr.bf16.mxu0 %v14804_v41  ;;  %v7593_v62 = vadd.f32 %v20493_v6, %v7225_v21  ;;  %v15104_v6 = vld [vmem:[%s22326_s8 + $0xca8] sm:$0xff]  ;;  %v14813_v21 = vld [vmem:[%s22326_s8 + $0x810] sm:$0xff]  ;;  %v15110_v16 = vld [vmem:[%s22326_s8 + $0xcd8] sm:$0xff] }
 0x89a   :  { %10420 = vmatprep.subr.bf16.mxu1 %v15118_v47  ;;  %v7594_v61 = vadd.f32 %v20503_v39, %v7226_v30  ;;  %v14843_v39 = vcombine.low %v14811_v40, %v14815_v49  ;;  %v15134_v5 = vcombine.high %v15100_v58, %v15104_v6  ;;  %v14868_v40 = vcombine.high %v14835_v32, %v14839_v36  ;;  %v15114_v2 = vld [vmem:[%s22326_s8 + $0xcf8] sm:$0xff] }
 0x89b   :  { %v15122_v49 = vcombine.high %v15086_v57, %v15090_v0  ;;  %v15121_v30 = vcombine.low %v15086_v57, %v15090_v0  ;;  %v14847_v8 = vcombine.low %v14813_v21, %v14817_v51 }
 0x89c   :  { %8624 = vmatpush1.bf16.msra.mxu0 %v14803_v50  ;;  %15082 = vmatmul.mubr.msk.bf16.vlgmr.msra.gmra.mrb[60].mxu1 %vm4268_vm3, %v20537_v52  ;;  %v14867_v50 = vcombine.low %v14835_v32, %v14839_v36  ;;  %v15152_v36 = vld [vmem:[%s22326_s8 + $0xd08] sm:$0xff] }
 0x89d   :  { %10421 = vmatpush1.bf16.msra.mxu1 %v15117_v27  ;;  %8903 = vmatprep.subr.bf16.mxu0 %v14844_v48  ;;  %v14848_v27 = vcombine.high %v14813_v21, %v14817_v51  ;;  %v14821_v48 = vld [vmem:[%s22326_s8 + $0x850] sm:$0xff]  ;;  %v14879_v21 = vld [vmem:[%s22326_s8 + $0x900] sm:$0xff] }
 0x89e   :  { %10422 = vmatprep.subr.bf16.mxu1 %v15126_v34  ;;  %10452 = vmatprep.mubr.bf16.mxu1 %v22338_v20  ;;  %v15102_v34 = vld [vmem:[%s22326_s8 + $0xc98] sm:$0xff] }
 0x89f   :  { %v7872_v54 = vpop.f32.mrb[8].mxu1  ;;  %14809 = vmatmul.mubr.msk.bf16.vlgmr.msra.gmra.mrb[148].mxu0 %vm4268_vm3, %v20057_v24  ;;  %v15133_v24 = vcombine.low %v15100_v58, %v15104_v6 }
 0x8a0   :  { %v20634_v3 = vadd.f32 %v7872_v54, %v7593_v62  ;;  %v7874_v9 = vpop.f32.mrb[9].mxu1  ;;  %8904 = vmatpush1.bf16.msra.mxu0 %v14843_v39  ;;  %8935 = vmatprep.mubr.bf16.mxu0 %v22338_v20  ;;  %v15138_v39 = vcombine.high %v15102_v34, %v15106_v22 }
 0x8a1   :  { %v20637_v23 = vadd.f32 %v7874_v9, %v7594_v61  ;;  %v7876_v28 = vpop.f32.mrb[10].mxu1  ;;  %10423 = vmatpush1.bf16.msra.mxu1 %v15125_v60  ;;  %8905 = vmatprep.subr.bf16.mxu0 %v14852_v56  ;;  %v14825_v61 = vld [vmem:[%s22326_s8 + $0x870] sm:$0xff]  ;;  %v15137_v9 = vcombine.low %v15102_v34, %v15106_v22 }
 0x8a2   :  { %v6445_v4 = vpop.f32.mrb[96].mxu0  ;;  %v7877_v37 = vpop.f32.mrb[11].mxu1  ;;  %10424 = vmatprep.subr.bf16.mxu1 %v15134_v5  ;;  %v14856_v6 = vcombine.high %v14821_v48, %v14825_v61  ;;  %v14829_v60 = vld [vmem:[%s22326_s8 + $0x890] sm:$0xff] }
 0x8a3   :  { %v20646_v38 = vadd.f32 %v6445_v4, %v20382_v29  ;;  %v6447_v35 = vpop.f32.mrb[97].mxu0  ;;  %v15141_v29 = vcombine.low %v15108_v33, %v15112_v46  ;;  %v14833_v56 = vld [vmem:[%s22326_s8 + $0x8b0] sm:$0xff]  ;;  %v14855_v33 = vcombine.low %v14821_v48, %v14825_v61  ;;  %v14891_v48 = vld [vmem:[%s22326_s8 + $0x960] sm:$0xff]  ;;  %v15168_v61 = vld [vmem:[%s22326_s8 + $0xd88] sm:$0xff] }
 0x8a4   :  { %v20655_v42 = vadd.f32 %v6447_v35, %v20390_v15  ;;  %v6449_v41 = vpop.f32.mrb[98].mxu0  ;;  %8906 = vmatpush1.bf16.msra.mxu0 %v14851_v55  ;;  %v15094_v15 = vld [vmem:[%s22326_s8 + $0xc58] sm:$0xff]  ;;  %v14864_v55 = vcombine.high %v14829_v60, %v14833_v56  ;;  %v14837_v4 = vld [vmem:[%s22326_s8 + $0x8d0] sm:$0xff]  ;;  %v15156_v35 = vld [vmem:[%s22326_s8 + $0xd28] sm:$0xff] }
 0x8a5   :  { %v6450_v47 = vpop.f32.mrb[99].mxu0  ;;  %10425 = vmatpush1.bf16.msra.mxu1 %v15133_v24  ;;  %8907 = vmatprep.subr.bf16.mxu0 %v14860_v7  ;;  %v15130_v62 = vcombine.high %v15094_v15, %v15098_v44  ;;  %v15129_v58 = vcombine.low %v15094_v15, %v15098_v44  ;;  %v15146_v7 = vcombine.high %v15110_v16, %v15114_v2  ;;  %v14841_v37 = vld [vmem:[%s22326_s8 + $0x8f0] sm:$0xff] }
 0x8a6   :  { %10426 = vmatprep.subr.bf16.mxu1 %v15142_v31  ;;  %v14863_v41 = vcombine.low %v14829_v60, %v14833_v56  ;;  %v14871_v44 = vcombine.low %v14837_v4, %v14841_v37  ;;  %v14899_v60 = vld [vmem:[%s22326_s8 + $0x9a0] sm:$0xff] }
 0x8a8   :  { %8908 = vmatpush1.bf16.msra.mxu0 %v14859_v26 }
 0x8a9   :  { %10427 = vmatpush1.bf16.msra.mxu1 %v15141_v29  ;;  %8909 = vmatprep.subr.bf16.mxu0 %v14868_v40  ;;  %v14872_v29 = vcombine.high %v14837_v4, %v14841_v37  ;;  %v14907_v4 = vld [vmem:[%s22326_s8 + $0x9e0] sm:$0xff] }
 0x8aa   :  { %10502 = vmatprep.subr.bf16.mxu1 %v15122_v49  ;;  %v15186_v49 = vcombine.high %v15152_v36, %v15156_v35 }
 0x8ac   :  { %8910 = vmatpush1.bf16.msra.mxu0 %v14867_v50  ;;  %15148 = vmatmul.mubr.msk.bf16.vlgmr.msra.gmra.mrb[64].mxu1 %vm4268_vm3, %v19598_v53  ;;  %v15185_v50 = vcombine.low %v15152_v36, %v15156_v35 }
 0x8ad   :  { %10503 = vmatpush1.bf16.msra.mxu1 %v15121_v30  ;;  %8985 = vmatprep.subr.bf16.mxu0 %v14848_v27 }
 0x8ae   :  { %10504 = vmatprep.subr.bf16.mxu1 %v15130_v62  ;;  %10534 = vmatprep.mubr.bf16.mxu1 %v22338_v20  ;;  %v14887_v62 = vld [vmem:[%s22326_s8 + $0x940] sm:$0xff] }
 0x8af   :  { %v7954_v5 = vpop.f32.mrb[12].mxu1  ;;  %14875 = vmatmul.mubr.msk.bf16.vlgmr.msra.gmra.mrb[152].mxu0 %vm4268_vm3, %v19560_v17 }
 0x8b0   :  { %v7956_v54 = vpop.f32.mrb[13].mxu1  ;;  %8986 = vmatpush1.bf16.msra.mxu0 %v14847_v8  ;;  %9017 = vmatprep.mubr.bf16.mxu0 %v22338_v20 }
 0x8b1   :  { %v7958_v46 = vpop.f32.mrb[14].mxu1  ;;  %10505 = vmatpush1.bf16.msra.mxu1 %v15129_v58  ;;  %8987 = vmatprep.subr.bf16.mxu0 %v14856_v6  ;;  %v14920_v58 = vcombine.high %v14887_v62, %v14891_v48 }
 0x8b2   :  { %v6486_v28 = vpop.f32.mrb[100].mxu0  ;;  %v7959_v24 = vpop.f32.mrb[15].mxu1  ;;  %10506 = vmatprep.subr.bf16.mxu1 %v15138_v39  ;;  %v14895_v39 = vld [vmem:[%s22326_s8 + $0x980] sm:$0xff] }
 0x8b3   :  { %v6487_v31 = vadd.f32 %v6486_v28, %v20444_v63  ;;  %v6488_v32 = vpop.f32.mrb[101].mxu0  ;;  %v15145_v63 = vcombine.low %v15110_v16, %v15114_v2  ;;  %v15180_v16 = vld [vmem:[%s22326_s8 + $0xde8] sm:$0xff] }
 0x8b4   :  { %v6489_v57 = vadd.f32 %v6488_v32, %v20452_v13  ;;  %v6490_v0 = vpop.f32.mrb[102].mxu0  ;;  %8988 = vmatpush1.bf16.msra.mxu0 %v14855_v33  ;;  %v14883_v13 = vld [vmem:[%s22326_s8 + $0x920] sm:$0xff]  ;;  %v14919_v33 = vcombine.low %v14887_v62, %v14891_v48  ;;  %v15158_v32 = vld [vmem:[%s22326_s8 + $0xd38] sm:$0xff]  ;;  %v14897_v62 = vld [vmem:[%s22326_s8 + $0x990] sm:$0xff] }
 0x8b5   :  { %v6859_v26 = vadd.f32 %v20307_v25, %v6487_v31  ;;  %v6491_v47 = vpop.f32.mrb[103].mxu0  ;;  %10507 = vmatpush1.bf16.msra.mxu1 %v15137_v9  ;;  %8989 = vmatprep.subr.bf16.mxu0 %v14864_v55  ;;  %v15160_v25 = vld [vmem:[%s22326_s8 + $0xd48] sm:$0xff]  ;;  %v14912_v30 = vcombine.high %v14879_v21, %v14883_v13  ;;  %v14911_v22 = vcombine.low %v14879_v21, %v14883_v13  ;;  %v15154_v31 = vld [vmem:[%s22326_s8 + $0xd18] sm:$0xff]  ;;  %v20802_v13 = vrot.slane %v19598_v53, 4  ;;  %v14901_v48 = vld [vmem:[%s22326_s8 + $0x9b0] sm:$0xff] }
 0x8b6   :  { %v6860_v40 = vadd.f32 %v20317_v19, %v6489_v57  ;;  %10508 = vmatprep.subr.bf16.mxu1 %v15146_v7  ;;  %v15164_v19 = vld [vmem:[%s22326_s8 + $0xd68] sm:$0xff]  ;;  %v14928_v55 = vcombine.high %v14895_v39, %v14899_v60  ;;  %v14927_v57 = vcombine.low %v14895_v39, %v14899_v60  ;;  %v14881_v47 = vld [vmem:[%s22326_s8 + $0x910] sm:$0xff] }
 0x8b7   :  { %v7229_v51 = vadd.f32 %v20431_v59, %v6859_v26  ;;  %v15194_v59 = vcombine.high %v15160_v25, %v15164_v19  ;;  %v15190_v26 = vcombine.high %v15154_v31, %v15158_v32 }
 0x8b8   :  { %v7230_v15 = vadd.f32 %v20441_v45, %v6860_v40  ;;  %8990 = vmatpush1.bf16.msra.mxu0 %v14863_v41 }
 0x8b9   :  { %10509 = vmatpush1.bf16.msra.mxu1 %v15145_v63  ;;  %8991 = vmatprep.subr.bf16.mxu0 %v14872_v29  ;;  %v7597_v27 = vadd.f32 %v20560_v10, %v7229_v51  ;;  %v15172_v10 = vld [vmem:[%s22326_s8 + $0xda8] sm:$0xff]  ;;  %v14885_v63 = vld [vmem:[%s22326_s8 + $0x930] sm:$0xff]  ;;  %v15166_v29 = vld [vmem:[%s22326_s8 + $0xd78] sm:$0xff] }
 0x8ba   :  { %10790 = vmatprep.subr.bf16.mxu1 %v15186_v49  ;;  %v7598_v45 = vadd.f32 %v20570_v12, %v7230_v15  ;;  %v15193_v12 = vcombine.low %v15160_v25, %v15164_v19  ;;  %v15202_v6 = vcombine.high %v15168_v61, %v15172_v10  ;;  %v15201_v9 = vcombine.low %v15168_v61, %v15172_v10  ;;  %v14889_v25 = vld [vmem:[%s22326_s8 + $0x950] sm:$0xff]  ;;  %v15170_v15 = vld [vmem:[%s22326_s8 + $0xd98] sm:$0xff] }
 0x8bb   :  { %v20743_v34 = vadd.f32 %v7954_v5, %v7597_v27  ;;  %v15176_v5 = vld [vmem:[%s22326_s8 + $0xdc8] sm:$0xff]  ;;  %v15189_v49 = vcombine.low %v15154_v31, %v15158_v32  ;;  %v14916_v21 = vcombine.high %v14881_v47, %v14885_v63  ;;  %v14893_v19 = vld [vmem:[%s22326_s8 + $0x970] sm:$0xff]  ;;  %v15178_v61 = vld [vmem:[%s22326_s8 + $0xdd8] sm:$0xff] }
 0x8bc   :  { %8992 = vmatpush1.bf16.msra.mxu0 %v14871_v44  ;;  %15150 = vmatmul.mubr.msk.bf16.vlgmr.msra.gmra.mrb[68].mxu1 %vm4268_vm3, %v19598_v53  ;;  %v20747_v8 = vadd.f32 %v7956_v54, %v7598_v45  ;;  %v15210_v7 = vcombine.high %v15176_v5, %v15180_v16  ;;  %v15174_v44 = vld [vmem:[%s22326_s8 + $0xdb8] sm:$0xff]  ;;  %v14924_v27 = vcombine.high %v14889_v25, %v14893_v19  ;;  %v14947_v31 = vld [vmem:[%s22326_s8 + $0xa00] sm:$0xff] }
 0x8bd   :  { %10791 = vmatpush1.bf16.msra.mxu1 %v15185_v50  ;;  %9273 = vmatprep.subr.bf16.mxu0 %v14912_v30  ;;  %v14915_v50 = vcombine.low %v14881_v47, %v14885_v63  ;;  %v15182_v10 = vld [vmem:[%s22326_s8 + $0xdf8] sm:$0xff]  ;;  %v15205_v60 = vcombine.low %v15170_v15, %v15174_v44  ;;  %v14951_v32 = vld [vmem:[%s22326_s8 + $0xa20] sm:$0xff]  ;;  %v15236_v63 = vld [vmem:[%s22326_s8 + $0xe88] sm:$0xff] }
 0x8be   :  { %10792 = vmatprep.subr.bf16.mxu1 %v15194_v59  ;;  %10822 = vmatprep.mubr.bf16.mxu1 %v22338_v20  ;;  %v15206_v59 = vcombine.high %v15170_v15, %v15174_v44  ;;  %v14959_v47 = vld [vmem:[%s22326_s8 + $0xa60] sm:$0xff]  ;;  %v15244_v15 = vld [vmem:[%s22326_s8 + $0xec8] sm:$0xff] }
 0x8bf   :  { %v8240_v56 = vpop.f32.mrb[16].mxu1  ;;  %14877 = vmatmul.mubr.msk.bf16.vlgmr.msra.gmra.mrb[156].mxu0 %vm4268_vm3, %v19560_v17  ;;  %v15248_v44 = vld [vmem:[%s22326_s8 + $0xee8] sm:$0xff] }
 0x8c0   :  { %v20765_v2 = vadd.f32 %v8240_v56, %v20634_v3  ;;  %v8242_v54 = vpop.f32.mrb[17].mxu1  ;;  %9274 = vmatpush1.bf16.msra.mxu0 %v14911_v22  ;;  %9305 = vmatprep.mubr.bf16.mxu0 %v22338_v20  ;;  %v14903_v3 = vld [vmem:[%s22326_s8 + $0x9c0] sm:$0xff]  ;;  %v14932_v56 = vcombine.high %v14897_v62, %v14901_v48 }
 0x8c1   :  { %v20769_v46 = vadd.f32 %v8242_v54, %v20637_v23  ;;  %v8244_v17 = vpop.f32.mrb[18].mxu1  ;;  %10793 = vmatpush1.bf16.msra.mxu1 %v15193_v12  ;;  %9275 = vmatprep.subr.bf16.mxu0 %v14920_v58  ;;  %v14936_v41 = vcombine.high %v14903_v3, %v14907_v4  ;;  %v14935_v40 = vcombine.low %v14903_v3, %v14907_v4 }
 0x8c2   :  { %v6723_v28 = vpop.f32.mrb[104].mxu0  ;;  %v8245_v24 = vpop.f32.mrb[19].mxu1  ;;  %10794 = vmatprep.subr.bf16.mxu1 %v15202_v6  ;;  %v14923_v58 = vcombine.low %v14889_v25, %v14893_v19  ;;  %v15214_v54 = vcombine.high %v15178_v61, %v15182_v10  ;;  %v14967_v25 = vld [vmem:[%s22326_s8 + $0xaa0] sm:$0xff] }
 0x8c3   :  { %v20778_v23 = vadd.f32 %v6723_v28, %v20513_v14  ;;  %v6725_v37 = vpop.f32.mrb[105].mxu0  ;;  %v15209_v14 = vcombine.low %v15176_v5, %v15180_v16 }
 0x8c4   :  { %v20787_v36 = vadd.f32 %v6725_v37, %v20522_v1  ;;  %v6727_v35 = vpop.f32.mrb[106].mxu0  ;;  %9276 = vmatpush1.bf16.msra.mxu0 %v14919_v33  ;;  %v15162_v1 = vld [vmem:[%s22326_s8 + $0xd58] sm:$0xff]  ;;  %v14909_v33 = vld [vmem:[%s22326_s8 + $0x9f0] sm:$0xff] }
 0x8c5   :  { %v6728_v0 = vpop.f32.mrb[107].mxu0  ;;  %10795 = vmatpush1.bf16.msra.mxu1 %v15201_v9  ;;  %9277 = vmatprep.subr.bf16.mxu0 %v14928_v55  ;;  %v15198_v51 = vcombine.high %v15162_v1, %v15166_v29  ;;  %v15197_v30 = vcombine.low %v15162_v1, %v15166_v29  ;;  %v15220_v9 = vld [vmem:[%s22326_s8 + $0xe08] sm:$0xff]  ;;  %v14979_v29 = vcombine.low %v14947_v31, %v14951_v32 }
 0x8c6   :  { %10796 = vmatprep.subr.bf16.mxu1 %v15210_v7  ;;  %v15224_v55 = vld [vmem:[%s22326_s8 + $0xe28] sm:$0xff]  ;;  %v14931_v7 = vcombine.low %v14897_v62, %v14901_v48 }
 0x8c7   :  { %v15254_v37 = vcombine.high %v15220_v9, %v15224_v55  ;;  %v15232_v35 = vld [vmem:[%s22326_s8 + $0xe68] sm:$0xff]  ;;  %v15253_v0 = vcombine.low %v15220_v9, %v15224_v55  ;;  %v14953_v9 = vld [vmem:[%s22326_s8 + $0xa30] sm:$0xff]  ;;  %v15234_v55 = vld [vmem:[%s22326_s8 + $0xe78] sm:$0xff] }
 0x8c8   :  { %9278 = vmatpush1.bf16.msra.mxu0 %v14927_v57  ;;  %v15240_v1 = vld [vmem:[%s22326_s8 + $0xea8] sm:$0xff] }
 0x8c9   :  { %10797 = vmatpush1.bf16.msra.mxu1 %v15209_v14  ;;  %9279 = vmatprep.subr.bf16.mxu0 %v14936_v41  ;;  %v14980_v14 = vcombine.high %v14947_v31, %v14951_v32  ;;  %v15269_v62 = vcombine.low %v15236_v63, %v15240_v1  ;;  %v15238_v31 = vld [vmem:[%s22326_s8 + $0xe98] sm:$0xff] }
 0x8ca   :  { %10872 = vmatprep.subr.bf16.mxu1 %v15190_v26  ;;  %v14955_v26 = vld [vmem:[%s22326_s8 + $0xa40] sm:$0xff]  ;;  %v15242_v32 = vld [vmem:[%s22326_s8 + $0xeb8] sm:$0xff] }
 0x8cc   :  { %9280 = vmatpush1.bf16.msra.mxu0 %v14935_v40  ;;  %15216 = vmatmul.mubr.msk.bf16.vlgmr.msra.gmra.mrb[72].mxu1 %vm4268_vm3, %v20802_v13 }
 0x8cd   :  { %10873 = vmatpush1.bf16.msra.mxu1 %v15189_v49  ;;  %9355 = vmatprep.subr.bf16.mxu0 %v14916_v21  ;;  %v14988_v49 = vcombine.high %v14955_v26, %v14959_v47  ;;  %v15270_v21 = vcombine.high %v15236_v63, %v15240_v1  ;;  %v15250_v63 = vld [vmem:[%s22326_s8 + $0xef8] sm:$0xff] }
 0x8ce   :  { %10874 = vmatprep.subr.bf16.mxu1 %v15198_v51  ;;  %10904 = vmatprep.mubr.bf16.mxu1 %v22338_v20  ;;  %v14963_v51 = vld [vmem:[%s22326_s8 + $0xa80] sm:$0xff] }
 0x8cf   :  { %v8322_v45 = vpop.f32.mrb[20].mxu1  ;;  %14943 = vmatmul.mubr.msk.bf16.vlgmr.msra.gmra.mrb[160].mxu0 %vm4268_vm3, %v20284_v11  ;;  %v14996_v48 = vcombine.high %v14963_v51, %v14967_v25 }
 0x8d0   :  { %v20834_v22 = vadd.f32 %v8322_v45, %v20743_v34  ;;  %v8324_v12 = vpop.f32.mrb[21].mxu1  ;;  %9356 = vmatpush1.bf16.msra.mxu0 %v14915_v50  ;;  %9387 = vmatprep.mubr.bf16.mxu0 %v22338_v20  ;;  %v14905_v34 = vld [vmem:[%s22326_s8 + $0x9d0] sm:$0xff] }
 0x8d1   :  { %v20838_v6 = vadd.f32 %v8324_v12, %v20747_v8  ;;  %v8326_v39 = vpop.f32.mrb[22].mxu1  ;;  %10875 = vmatpush1.bf16.msra.mxu1 %v15197_v30  ;;  %9357 = vmatprep.subr.bf16.mxu0 %v14924_v27  ;;  %v14940_v4 = vcombine.high %v14905_v34, %v14909_v33  ;;  %v14939_v57 = vcombine.low %v14905_v34, %v14909_v33  ;;  %v14975_v12 = vld [vmem:[%s22326_s8 + $0xae0] sm:$0xff] }
 0x8d2   :  { %v6805_v5 = vpop.f32.mrb[108].mxu0  ;;  %v8327_v16 = vpop.f32.mrb[23].mxu1  ;;  %10876 = vmatprep.subr.bf16.mxu1 %v15206_v59  ;;  %v14987_v27 = vcombine.low %v14955_v26, %v14959_v47  ;;  %v15222_v39 = vld [vmem:[%s22326_s8 + $0xe18] sm:$0xff] }
 0x8d3   :  { %v20847_v8 = vadd.f32 %v6805_v5, %v20646_v38  ;;  %v6807_v17 = vpop.f32.mrb[109].mxu0  ;;  %v15213_v38 = vcombine.low %v15178_v61, %v15182_v10  ;;  %v15278_v10 = vcombine.high %v15244_v15, %v15248_v44  ;;  %v14995_v16 = vcombine.low %v14963_v51, %v14967_v25  ;;  %v15246_v47 = vld [vmem:[%s22326_s8 + $0xed8] sm:$0xff] }
 0x8d4   :  { %v20856_v28 = vadd.f32 %v6807_v17, %v20655_v42  ;;  %v6809_v24 = vpop.f32.mrb[110].mxu0  ;;  %9358 = vmatpush1.bf16.msra.mxu0 %v14923_v58  ;;  %v15228_v42 = vld [vmem:[%s22326_s8 + $0xe48] sm:$0xff]  ;;  %v14949_v17 = vld [vmem:[%s22326_s8 + $0xa10] sm:$0xff]  ;;  %v15273_v51 = vcombine.low %v15238_v31, %v15242_v32 }
 0x8d5   :  { %v6810_v3 = vpop.f32.mrb[111].mxu0  ;;  %10877 = vmatpush1.bf16.msra.mxu1 %v15205_v60  ;;  %9359 = vmatprep.subr.bf16.mxu0 %v14932_v56  ;;  %v15262_v41 = vcombine.high %v15228_v42, %v15232_v35  ;;  %v15261_v40 = vcombine.low %v15228_v42, %v15232_v35  ;;  %v15226_v60 = vld [vmem:[%s22326_s8 + $0xe38] sm:$0xff]  ;;  %v14983_v42 = vcombine.low %v14949_v17, %v14953_v9 }
 0x8d6   :  { %10878 = vmatprep.subr.bf16.mxu1 %v15214_v54  ;;  %v15258_v33 = vcombine.high %v15222_v39, %v15226_v60  ;;  %v14984_v3 = vcombine.high %v14949_v17, %v14953_v9  ;;  %v15304_v17 = vld [vmem:[%s22326_s8 + $0xf88] sm:$0xff] }
 0x8d7   :  { %v15308_v9 = vld [vmem:[%s22326_s8 + $0xfa8] sm:$0xff] }
 0x8d8   :  { %9360 = vmatpush1.bf16.msra.mxu0 %v14931_v7  ;;  %v15257_v7 = vcombine.low %v15222_v39, %v15226_v60  ;;  %v15019_v39 = vld [vmem:[%s22326_s8 + $0xb20] sm:$0xff]  ;;  %v15300_v60 = vld [vmem:[%s22326_s8 + $0xf68] sm:$0xff] }
 0x8d9   :  { %10879 = vmatpush1.bf16.msra.mxu1 %v15213_v38  ;;  %9361 = vmatprep.subr.bf16.mxu0 %v14940_v4  ;;  %v14957_v4 = vld [vmem:[%s22326_s8 + $0xa50] sm:$0xff] }
 0x8da   :  { %11158 = vmatprep.subr.bf16.mxu1 %v15254_v37  ;;  %v14961_v37 = vld [vmem:[%s22326_s8 + $0xa70] sm:$0xff] }
 0x8dc   :  { %9362 = vmatpush1.bf16.msra.mxu0 %v14939_v57  ;;  %15218 = vmatmul.mubr.msk.bf16.vlgmr.msra.gmra.mrb[76].mxu1 %vm4268_vm3, %v20802_v13  ;;  %v14992_v57 = vcombine.high %v14957_v4, %v14961_v37 }
 0x8dd   :  { %11159 = vmatpush1.bf16.msra.mxu1 %v15253_v0  ;;  %9641 = vmatprep.subr.bf16.mxu0 %v14980_v14  ;;  %v15274_v0 = vcombine.high %v15238_v31, %v15242_v32  ;;  %v14965_v14 = vld [vmem:[%s22326_s8 + $0xa90] sm:$0xff]  ;;  %v15316_v31 = vld [vmem:[%s22326_s8 + $0xfe8] sm:$0xff] }
 0x8de   :  { %11160 = vmatprep.subr.bf16.mxu1 %v15262_v41  ;;  %11190 = vmatprep.mubr.bf16.mxu1 %v22338_v20  ;;  %v14969_v41 = vld [vmem:[%s22326_s8 + $0xab0] sm:$0xff] }
 0x8df   :  { %v8610_v19 = vpop.f32.mrb[24].mxu1  ;;  %14945 = vmatmul.mubr.msk.bf16.vlgmr.msra.gmra.mrb[164].mxu0 %vm4268_vm3, %v20284_v11  ;;  %v15000_v25 = vcombine.high %v14965_v14, %v14969_v41 }
 0x8e0   :  { %v20900_v50 = vadd.f32 %v8610_v19, %v20765_v2  ;;  %v8612_v30 = vpop.f32.mrb[25].mxu1  ;;  %9642 = vmatpush1.bf16.msra.mxu0 %v14979_v29  ;;  %9673 = vmatprep.mubr.bf16.mxu0 %v22338_v20  ;;  %v14971_v2 = vld [vmem:[%s22326_s8 + $0xac0] sm:$0xff] }
 0x8e1   :  { %v20904_v59 = vadd.f32 %v8612_v30, %v20769_v46  ;;  %v8614_v11 = vpop.f32.mrb[26].mxu1  ;;  %11161 = vmatpush1.bf16.msra.mxu1 %v15261_v40  ;;  %9643 = vmatprep.subr.bf16.mxu0 %v14988_v49  ;;  %v15004_v34 = vcombine.high %v14971_v2, %v14975_v12  ;;  %v15003_v24 = vcombine.low %v14971_v2, %v14975_v12  ;;  %v14977_v30 = vld [vmem:[%s22326_s8 + $0xaf0] sm:$0xff] }
 0x8e2   :  { %v7093_v45 = vpop.f32.mrb[112].mxu0  ;;  %v8615_v61 = vpop.f32.mrb[27].mxu1  ;;  %11162 = vmatprep.subr.bf16.mxu1 %v15270_v21  ;;  %v14991_v40 = vcombine.low %v14957_v4, %v14961_v37  ;;  %v15288_v11 = vld [vmem:[%s22326_s8 + $0xf08] sm:$0xff] }
 0x8e3   :  { %v20913_v46 = vadd.f32 %v7093_v45, %v20778_v23  ;;  %v7095_v58 = vpop.f32.mrb[113].mxu0  ;;  %v15277_v23 = vcombine.low %v15244_v15, %v15248_v44  ;;  %v15282_v44 = vcombine.high %v15246_v47, %v15250_v63  ;;  %v14999_v61 = vcombine.low %v14965_v14, %v14969_v41  ;;  %v15312_v37 = vld [vmem:[%s22326_s8 + $0xfc8] sm:$0xff] }
 0x8e4   :  { %v20922_v56 = vadd.f32 %v7095_v58, %v20787_v36  ;;  %v7097_v5 = vpop.f32.mrb[114].mxu0  ;;  %9644 = vmatpush1.bf16.msra.mxu0 %v14987_v27  ;;  %v15230_v36 = vld [vmem:[%s22326_s8 + $0xe58] sm:$0xff]  ;;  %v15015_v58 = vld [vmem:[%s22326_s8 + $0xb00] sm:$0xff] }
 0x8e5   :  { %v7098_v54 = vpop.f32.mrb[115].mxu0  ;;  %11163 = vmatpush1.bf16.msra.mxu1 %v15269_v62  ;;  %9645 = vmatprep.subr.bf16.mxu0 %v14996_v48  ;;  %v15266_v38 = vcombine.high %v15230_v36, %v15234_v55  ;;  %v15265_v35 = vcombine.low %v15230_v36, %v15234_v55  ;;  %v15292_v62 = vld [vmem:[%s22326_s8 + $0xf28] sm:$0xff]  ;;  %v15047_v36 = vcombine.low %v15015_v58, %v15019_v39 }
 0x8e6   :  { %11164 = vmatprep.subr.bf16.mxu1 %v15278_v10  ;;  %v15322_v12 = vcombine.high %v15288_v11, %v15292_v62  ;;  %v15048_v54 = vcombine.high %v15015_v58, %v15019_v39  ;;  %v15306_v58 = vld [vmem:[%s22326_s8 + $0xf98] sm:$0xff] }
 0x8e7   :  { %v15310_v39 = vld [vmem:[%s22326_s8 + $0xfb8] sm:$0xff] }
 0x8e8   :  { %9646 = vmatpush1.bf16.msra.mxu0 %v14995_v16  ;;  %v15321_v16 = vcombine.low %v15288_v11, %v15292_v62  ;;  %v15302_v11 = vld [vmem:[%s22326_s8 + $0xf78] sm:$0xff] }
 0x8e9   :  { %11165 = vmatpush1.bf16.msra.mxu1 %v15277_v23  ;;  %9647 = vmatprep.subr.bf16.mxu0 %v15004_v34  ;;  %v15023_v34 = vld [vmem:[%s22326_s8 + $0xb40] sm:$0xff] }
 0x8ea   :  { %11240 = vmatprep.subr.bf16.mxu1 %v15258_v33  ;;  %v15027_v33 = vld [vmem:[%s22326_s8 + $0xb60] sm:$0xff] }
 0x8ec   :  { %9648 = vmatpush1.bf16.msra.mxu0 %v15003_v24  ;;  %15284 = vmatmul.mubr.msk.bf16.vlgmr.msra.gmra.mrb[80].mxu1 %vm4268_vm3, %v19590_v43  ;;  %v15056_v24 = vcombine.high %v15023_v34, %v15027_v33 }
 0x8ed   :  { %11241 = vmatpush1.bf16.msra.mxu1 %v15257_v7  ;;  %9723 = vmatprep.subr.bf16.mxu0 %v14984_v3  ;;  %v15338_v7 = vcombine.high %v15304_v17, %v15308_v9  ;;  %v15031_v3 = vld [vmem:[%s22326_s8 + $0xb80] sm:$0xff] }
 0x8ee   :  { %11242 = vmatprep.subr.bf16.mxu1 %v15266_v38  ;;  %11272 = vmatprep.mubr.bf16.mxu1 %v22338_v20  ;;  %v15035_v38 = vld [vmem:[%s22326_s8 + $0xba0] sm:$0xff] }
 0x8ef   :  { %v8692_v26 = vpop.f32.mrb[28].mxu1  ;;  %15011 = vmatmul.mubr.msk.bf16.vlgmr.msra.gmra.mrb[168].mxu0 %vm4268_vm3, %v19552_v18  ;;  %v15064_v14 = vcombine.high %v15031_v3, %v15035_v38 }
 0x8f0   :  { %v20966_v1 = vadd.f32 %v8692_v26, %v20834_v22  ;;  %v8694_v29 = vpop.f32.mrb[29].mxu1  ;;  %9724 = vmatpush1.bf16.msra.mxu0 %v14983_v42  ;;  %9755 = vmatprep.mubr.bf16.mxu0 %v22338_v20  ;;  %v14973_v22 = vld [vmem:[%s22326_s8 + $0xad0] sm:$0xff] }
 0x8f1   :  { %v20970_v49 = vadd.f32 %v8694_v29, %v20838_v6  ;;  %v8696_v21 = vpop.f32.mrb[30].mxu1  ;;  %11243 = vmatpush1.bf16.msra.mxu1 %v15265_v35  ;;  %9725 = vmatprep.subr.bf16.mxu0 %v14992_v57  ;;  %v15008_v2 = vcombine.high %v14973_v22, %v14977_v30  ;;  %v15007_v5 = vcombine.low %v14973_v22, %v14977_v30  ;;  %v15017_v30 = vld [vmem:[%s22326_s8 + $0xb10] sm:$0xff] }
 0x8f2   :  { %v7175_v19 = vpop.f32.mrb[116].mxu0  ;;  %v8697_v15 = vpop.f32.mrb[31].mxu1  ;;  %11244 = vmatprep.subr.bf16.mxu1 %v15274_v0  ;;  %v15055_v35 = vcombine.low %v15023_v34, %v15027_v33  ;;  %v15337_v0 = vcombine.low %v15304_v17, %v15308_v9  ;;  %v15294_v21 = vld [vmem:[%s22326_s8 + $0xf38] sm:$0xff] }
 0x8f3   :  { %v20979_v6 = vadd.f32 %v7175_v19, %v20847_v8  ;;  %v7177_v27 = vpop.f32.mrb[117].mxu0  ;;  %v15281_v8 = vcombine.low %v15246_v47, %v15250_v63  ;;  %v15346_v47 = vcombine.high %v15312_v37, %v15316_v31  ;;  %v15043_v63 = vld [vmem:[%s22326_s8 + $0xbe0] sm:$0xff]  ;;  %v15063_v19 = vcombine.low %v15031_v3, %v15035_v38  ;;  %v15314_v33 = vld [vmem:[%s22326_s8 + $0xfd8] sm:$0xff] }
 0x8f4   :  { %v20988_v48 = vadd.f32 %v7177_v27, %v20856_v28  ;;  %v7179_v45 = vpop.f32.mrb[118].mxu0  ;;  %9726 = vmatpush1.bf16.msra.mxu0 %v14991_v40  ;;  %v15296_v28 = vld [vmem:[%s22326_s8 + $0xf48] sm:$0xff]  ;;  %v15290_v40 = vld [vmem:[%s22326_s8 + $0xf18] sm:$0xff]  ;;  %v15021_v27 = vld [vmem:[%s22326_s8 + $0xb30] sm:$0xff]  ;;  %v15341_v3 = vcombine.low %v15306_v58, %v15310_v39 }
 0x8f5   :  { %v7180_v10 = vpop.f32.mrb[119].mxu0  ;;  %11245 = vmatpush1.bf16.msra.mxu1 %v15273_v51  ;;  %9727 = vmatprep.subr.bf16.mxu0 %v15000_v25  ;;  %v15330_v23 = vcombine.high %v15296_v28, %v15300_v60  ;;  %v15329_v55 = vcombine.low %v15296_v28, %v15300_v60  ;;  %v15326_v22 = vcombine.high %v15290_v40, %v15294_v21  ;;  %v15318_v17 = vld [vmem:[%s22326_s8 + $0xff8] sm:$0xff] }
 0x8f6   :  { %11246 = vmatprep.subr.bf16.mxu1 %v15282_v44  ;;  %v15325_v45 = vcombine.low %v15290_v40, %v15294_v21  ;;  %v21069_v10 = vrot.slane %v19590_v43, 4  ;;  %v15051_v28 = vcombine.low %v15017_v30, %v15021_v27  ;;  %v15095_v40 = vld [vmem:[%s22326_s8 + $0xc60] sm:$0xff] }
 0x8f8   :  { %9728 = vmatpush1.bf16.msra.mxu0 %v14999_v61  ;;  %v15052_v61 = vcombine.high %v15017_v30, %v15021_v27 }
 0x8f9   :  { %11247 = vmatpush1.bf16.msra.mxu1 %v15281_v8  ;;  %9729 = vmatprep.subr.bf16.mxu0 %v15008_v2  ;;  %v15025_v2 = vld [vmem:[%s22326_s8 + $0xb50] sm:$0xff] }
 0x8fa   :  { %11528 = vmatprep.subr.bf16.mxu1 %v15322_v12  ;;  %v15029_v12 = vld [vmem:[%s22326_s8 + $0xb70] sm:$0xff] }
 0x8fc   :  { %9730 = vmatpush1.bf16.msra.mxu0 %v15007_v5  ;;  %15286 = vmatmul.mubr.msk.bf16.vlgmr.msra.gmra.mrb[84].mxu1 %vm4268_vm3, %v19590_v43  ;;  %v15060_v5 = vcombine.high %v15025_v2, %v15029_v12 }
 0x8fd   :  { %11529 = vmatpush1.bf16.msra.mxu1 %v15321_v16  ;;  %10011 = vmatprep.subr.bf16.mxu0 %v15048_v54  ;;  %v15342_v16 = vcombine.high %v15306_v58, %v15310_v39  ;;  %v15033_v54 = vld [vmem:[%s22326_s8 + $0xb90] sm:$0xff] }
 0x8fe   :  { %11530 = vmatprep.subr.bf16.mxu1 %v15330_v23  ;;  %11560 = vmatprep.mubr.bf16.mxu1 %v22338_v20  ;;  %v15037_v23 = vld [vmem:[%s22326_s8 + $0xbb0] sm:$0xff] }
 0x8ff   :  { %v8978_v4 = vpop.f32.mrb[32].mxu1  ;;  %15013 = vmatmul.mubr.msk.bf16.vlgmr.msra.gmra.mrb[172].mxu0 %vm4268_vm3, %v19552_v18  ;;  %v15068_v38 = vcombine.high %v15033_v54, %v15037_v23 }
 0x900   :  { %v21032_v32 = vadd.f32 %v8978_v4, %v20900_v50  ;;  %v8980_v42 = vpop.f32.mrb[33].mxu1  ;;  %10012 = vmatpush1.bf16.msra.mxu0 %v15047_v36  ;;  %10043 = vmatprep.mubr.bf16.mxu0 %v22338_v20  ;;  %v15039_v50 = vld [vmem:[%s22326_s8 + $0xbc0] sm:$0xff] }
 0x901   :  { %v21036_v57 = vadd.f32 %v8980_v42, %v20904_v59  ;;  %v8982_v18 = vpop.f32.mrb[34].mxu1  ;;  %11531 = vmatpush1.bf16.msra.mxu1 %v15329_v55  ;;  %10013 = vmatprep.subr.bf16.mxu0 %v15056_v24  ;;  %v15072_v44 = vcombine.high %v15039_v50, %v15043_v63  ;;  %v15071_v62 = vcombine.low %v15039_v50, %v15043_v63  ;;  %v15045_v42 = vld [vmem:[%s22326_s8 + $0xbf0] sm:$0xff]  ;;  %v15083_v50 = vld [vmem:[%s22326_s8 + $0xc00] sm:$0xff] }
 0x902   :  { %v7461_v41 = vpop.f32.mrb[120].mxu0  ;;  %v8983_v26 = vpop.f32.mrb[35].mxu1  ;;  %11532 = vmatprep.subr.bf16.mxu1 %v15338_v7  ;;  %v15059_v55 = vcombine.low %v15025_v2, %v15029_v12 }
 0x903   :  { %v21045_v59 = vadd.f32 %v7461_v41, %v20913_v46  ;;  %v7463_v29 = vpop.f32.mrb[121].mxu0  ;;  %v15345_v46 = vcombine.low %v15312_v37, %v15316_v31  ;;  %v15350_v31 = vcombine.high %v15314_v33, %v15318_v17  ;;  %v15349_v26 = vcombine.low %v15314_v33, %v15318_v17  ;;  %v15105_v33 = vld [vmem:[%s22326_s8 + $0xcb0] sm:$0xff] }
 0x904   :  { %v21054_v51 = vadd.f32 %v7463_v29, %v20922_v56  ;;  %v7465_v25 = vpop.f32.mrb[122].mxu0  ;;  %10014 = vmatpush1.bf16.msra.mxu0 %v15055_v35  ;;  %v15298_v56 = vld [vmem:[%s22326_s8 + $0xf58] sm:$0xff]  ;;  %v15091_v29 = vld [vmem:[%s22326_s8 + $0xc40] sm:$0xff] }
 0x905   :  { %v7466_v15 = vpop.f32.mrb[123].mxu0  ;;  %11533 = vmatpush1.bf16.msra.mxu1 %v15337_v0  ;;  %10015 = vmatprep.subr.bf16.mxu0 %v15064_v14  ;;  %v15334_v8 = vcombine.high %v15298_v56, %v15302_v11  ;;  %v15333_v60 = vcombine.low %v15298_v56, %v15302_v11  ;;  %v15067_v14 = vcombine.low %v15033_v54, %v15037_v23 }
 0x906   :  { %11534 = vmatprep.subr.bf16.mxu1 %v15346_v47  ;;  %v15124_v25 = vcombine.high %v15091_v29, %v15095_v40  ;;  %v15103_v15 = vld [vmem:[%s22326_s8 + $0xca0] sm:$0xff]  ;;  %v15123_v30 = vcombine.low %v15091_v29, %v15095_v40 }
 0x907   :  { %v15167_v40 = vld [vmem:[%s22326_s8 + $0xd80] sm:$0xff] }
 0x908   :  { %10016 = vmatpush1.bf16.msra.mxu0 %v15063_v19  ;;  %v15099_v19 = vld [vmem:[%s22326_s8 + $0xc80] sm:$0xff] }
 0x909   :  { %11535 = vmatpush1.bf16.msra.mxu1 %v15345_v46  ;;  %10017 = vmatprep.subr.bf16.mxu0 %v15072_v44  ;;  %v15132_v11 = vcombine.high %v15099_v19, %v15103_v15  ;;  %v15131_v12 = vcombine.low %v15099_v19, %v15103_v15 }
 0x90a   :  { %11610 = vmatprep.subr.bf16.mxu1 %v15326_v22 }
 0x90c   :  { %10018 = vmatpush1.bf16.msra.mxu0 %v15071_v62  ;;  %15352 = vmatmul.mubr.msk.bf16.vlgmr.msra.gmra.mrb[88].mxu1 %vm4268_vm3, %v21069_v10 }
 0x90d   :  { %11611 = vmatpush1.bf16.msra.mxu1 %v15325_v45  ;;  %10093 = vmatprep.subr.bf16.mxu0 %v15052_v61 }
 0x90e   :  { %11612 = vmatprep.subr.bf16.mxu1 %v15334_v8  ;;  %11642 = vmatprep.mubr.bf16.mxu1 %v22338_v20 }
 0x90f   :  { %v9060_v34 = vpop.f32.mrb[36].mxu1  ;;  %15079 = vmatmul.mubr.msk.bf16.vlgmr.msra.gmra.mrb[176].mxu0 %vm4268_vm3, %v20537_v52 }
 0x910   :  { %v21101_v9 = vadd.f32 %v9060_v34, %v20966_v1  ;;  %v9062_v36 = vpop.f32.mrb[37].mxu1  ;;  %10094 = vmatpush1.bf16.msra.mxu0 %v15051_v28  ;;  %10125 = vmatprep.mubr.bf16.mxu0 %v22338_v20  ;;  %v15041_v1 = vld [vmem:[%s22326_s8 + $0xbd0] sm:$0xff] }
 0x911   :  { %v21105_v24 = vadd.f32 %v9062_v36, %v20970_v49  ;;  %v9064_v7 = vpop.f32.mrb[38].mxu1  ;;  %11613 = vmatpush1.bf16.msra.mxu1 %v15333_v60  ;;  %10095 = vmatprep.subr.bf16.mxu0 %v15060_v5  ;;  %v15076_v47 = vcombine.high %v15041_v1, %v15045_v42  ;;  %v15085_v28 = vld [vmem:[%s22326_s8 + $0xc10] sm:$0xff] }
 0x912   :  { %v7543_v4 = vpop.f32.mrb[124].mxu0  ;;  %v9065_v37 = vpop.f32.mrb[39].mxu1  ;;  %11614 = vmatprep.subr.bf16.mxu1 %v15342_v16  ;;  %v15089_v60 = vld [vmem:[%s22326_s8 + $0xc30] sm:$0xff] }
 0x913   :  { %v21114_v49 = vadd.f32 %v7543_v4, %v20979_v6  ;;  %v7545_v35 = vpop.f32.mrb[125].mxu0  ;;  %v15087_v6 = vld [vmem:[%s22326_s8 + $0xc20] sm:$0xff]  ;;  %v15120_v5 = vcombine.high %v15085_v28, %v15089_v60  ;;  %v15097_v16 = vld [vmem:[%s22326_s8 + $0xc70] sm:$0xff]  ;;  %v15119_v54 = vcombine.low %v15085_v28, %v15089_v60 }
 0x914   :  { %v21117_v18 = vadd.f32 %v7545_v35, %v20988_v48  ;;  %v7547_v0 = vpop.f32.mrb[126].mxu0  ;;  %10096 = vmatpush1.bf16.msra.mxu0 %v15059_v55  ;;  %v15075_v48 = vcombine.low %v15041_v1, %v15045_v42  ;;  %v15116_v63 = vcombine.high %v15083_v50, %v15087_v6  ;;  %v15115_v21 = vcombine.low %v15083_v50, %v15087_v6  ;;  %v15101_v34 = vld [vmem:[%s22326_s8 + $0xc90] sm:$0xff]  ;;  %v15155_v50 = vld [vmem:[%s22326_s8 + $0xd20] sm:$0xff] }
 0x915   :  { %v7548_v41 = vpop.f32.mrb[127].mxu0  ;;  %11615 = vmatpush1.bf16.msra.mxu1 %v15341_v3  ;;  %10097 = vmatprep.subr.bf16.mxu0 %v15068_v38  ;;  %v15136_v4 = vcombine.high %v15101_v34, %v15105_v33  ;;  %v15109_v1 = vld [vmem:[%s22326_s8 + $0xcd0] sm:$0xff] }
 0x916   :  { %11616 = vmatprep.subr.bf16.mxu1 %v15350_v31  ;;  %v15165_v60 = vld [vmem:[%s22326_s8 + $0xd70] sm:$0xff] }
 0x918   :  { %10098 = vmatpush1.bf16.msra.mxu0 %v15067_v14  ;;  %v15135_v14 = vcombine.low %v15101_v34, %v15105_v33 }
 0x919   :  { %11617 = vmatpush1.bf16.msra.mxu1 %v15349_v26  ;;  %10099 = vmatprep.subr.bf16.mxu0 %v15076_v47  ;;  %v15151_v47 = vld [vmem:[%s22326_s8 + $0xd00] sm:$0xff] }
 0x91a   :  { %v15184_v6 = vcombine.high %v15151_v47, %v15155_v50 }
 0x91c   :  { %10100 = vmatpush1.bf16.msra.mxu0 %v15075_v48  ;;  %15354 = vmatmul.mubr.msk.bf16.vlgmr.msra.gmra.mrb[92].mxu1 %vm4268_vm3, %v21069_v10  ;;  %v15163_v48 = vld [vmem:[%s22326_s8 + $0xd60] sm:$0xff] }
 0x91d   :  { %10379 = vmatprep.subr.bf16.mxu0 %v15116_v63  ;;  %v15183_v63 = vcombine.low %v15151_v47, %v15155_v50  ;;  %v15231_v50 = vld [vmem:[%s22326_s8 + $0xe60] sm:$0xff] }
 0x91f   :  { %v9348_v46 = vpop.f32.mrb[40].mxu1  ;;  %15081 = vmatmul.mubr.msk.bf16.vlgmr.msra.gmra.mrb[180].mxu0 %vm4268_vm3, %v20537_v52  ;;  %v15107_v52 = vld [vmem:[%s22326_s8 + $0xcc0] sm:$0xff] }
 0x920   :  { %v21142_v44 = vadd.f32 %v9348_v46, %v21032_v32  ;;  %v9350_v22 = vpop.f32.mrb[41].mxu1  ;;  %10380 = vmatpush1.bf16.msra.mxu0 %v15115_v21  ;;  %10411 = vmatprep.mubr.bf16.mxu0 %v22338_v20  ;;  %v15111_v32 = vld [vmem:[%s22326_s8 + $0xce0] sm:$0xff] }
 0x921   :  { %v21146_v27 = vadd.f32 %v9350_v22, %v21036_v57  ;;  %v9352_v56 = vpop.f32.mrb[42].mxu1  ;;  %10381 = vmatprep.subr.bf16.mxu0 %v15124_v25  ;;  %v15140_v39 = vcombine.high %v15107_v52, %v15111_v32  ;;  %v15171_v21 = vld [vmem:[%s22326_s8 + $0xda0] sm:$0xff] }
 0x922   :  { %v7831_v62 = vpop.f32.mrb[128].mxu0  ;;  %v9353_v45 = vpop.f32.mrb[43].mxu1  ;;  %v15200_v56 = vcombine.high %v15167_v40, %v15171_v21 }
 0x923   :  { %v21155_v61 = vadd.f32 %v7831_v62, %v21045_v59  ;;  %v7833_v8 = vpop.f32.mrb[129].mxu0  ;;  %v15139_v59 = vcombine.low %v15107_v52, %v15111_v32 }
 0x924   :  { %v21158_v57 = vadd.f32 %v7833_v8, %v21054_v51  ;;  %v7835_v2 = vpop.f32.mrb[130].mxu0  ;;  %10382 = vmatpush1.bf16.msra.mxu0 %v15123_v30  ;;  %v15093_v51 = vld [vmem:[%s22326_s8 + $0xc50] sm:$0xff]  ;;  %v15199_v8 = vcombine.low %v15167_v40, %v15171_v21 }
 0x925   :  { %v7836_v58 = vpop.f32.mrb[131].mxu0  ;;  %10383 = vmatprep.subr.bf16.mxu0 %v15132_v11  ;;  %v15128_v23 = vcombine.high %v15093_v51, %v15097_v16  ;;  %v15127_v7 = vcombine.low %v15093_v51, %v15097_v16  ;;  %v15169_v51 = vld [vmem:[%s22326_s8 + $0xd90] sm:$0xff] }
 0x926   :  { %v15153_v58 = vld [vmem:[%s22326_s8 + $0xd10] sm:$0xff] }
 0x927   :  { %v15173_v16 = vld [vmem:[%s22326_s8 + $0xdb0] sm:$0xff] }
 0x928   :  { %10384 = vmatpush1.bf16.msra.mxu0 %v15131_v12 }
 0x929   :  { %10385 = vmatprep.subr.bf16.mxu0 %v15140_v39  ;;  %v15157_v39 = vld [vmem:[%s22326_s8 + $0xd30] sm:$0xff] }
 0x92a   :  { %v15188_v28 = vcombine.high %v15153_v58, %v15157_v39 }
 0x92c   :  { %10386 = vmatpush1.bf16.msra.mxu0 %v15139_v59  ;;  %v15187_v59 = vcombine.low %v15153_v58, %v15157_v39  ;;  %v15233_v58 = vld [vmem:[%s22326_s8 + $0xe70] sm:$0xff] }
 0x92d   :  { %10461 = vmatprep.subr.bf16.mxu0 %v15120_v5 }
 0x92f   :  { %v9430_v17 = vpop.f32.mrb[44].mxu1  ;;  %15147 = vmatmul.mubr.msk.bf16.vlgmr.msra.gmra.mrb[184].mxu0 %vm4268_vm3, %v19598_v53 }
 0x930   :  { %v21181_v36 = vadd.f32 %v9430_v17, %v21101_v9  ;;  %v9432_v55 = vpop.f32.mrb[45].mxu1  ;;  %10462 = vmatpush1.bf16.msra.mxu0 %v15119_v54  ;;  %10493 = vmatprep.mubr.bf16.mxu0 %v22338_v20  ;;  %v15113_v9 = vld [vmem:[%s22326_s8 + $0xcf0] sm:$0xff] }
 0x931   :  { %v21185_v3 = vadd.f32 %v9432_v55, %v21105_v24  ;;  %v9434_v38 = vpop.f32.mrb[46].mxu1  ;;  %10463 = vmatprep.subr.bf16.mxu0 %v15128_v23  ;;  %v15144_v26 = vcombine.high %v15109_v1, %v15113_v9 }
 0x932   :  { %v7913_v37 = vpop.f32.mrb[132].mxu0  ;;  %v9435_v31 = vpop.f32.mrb[47].mxu1 }
 0x933   :  { %v21194_v42 = vadd.f32 %v7913_v37, %v21114_v49  ;;  %v7915_v35 = vpop.f32.mrb[133].mxu0  ;;  %v15143_v49 = vcombine.low %v15109_v1, %v15113_v9  ;;  %v15177_v37 = vld [vmem:[%s22326_s8 + $0xdd0] sm:$0xff] }
 0x934   :  { %v21197_v24 = vadd.f32 %v7915_v35, %v21117_v18  ;;  %v7917_v0 = vpop.f32.mrb[134].mxu0  ;;  %10464 = vmatpush1.bf16.msra.mxu0 %v15127_v7  ;;  %v15159_v18 = vld [vmem:[%s22326_s8 + $0xd40] sm:$0xff]  ;;  %v15204_v7 = vcombine.high %v15169_v51, %v15173_v16  ;;  %v15203_v35 = vcombine.low %v15169_v51, %v15173_v16 }
 0x935   :  { %v7918_v41 = vpop.f32.mrb[135].mxu0  ;;  %10465 = vmatprep.subr.bf16.mxu0 %v15136_v4  ;;  %v15192_v29 = vcombine.high %v15159_v18, %v15163_v48  ;;  %v15191_v46 = vcombine.low %v15159_v18, %v15163_v48  ;;  %v15235_v18 = vld [vmem:[%s22326_s8 + $0xe80] sm:$0xff] }
 0x936   :  { %v15219_v41 = vld [vmem:[%s22326_s8 + $0xe00] sm:$0xff] }
 0x937   :  { %v15239_v48 = vld [vmem:[%s22326_s8 + $0xea0] sm:$0xff] }
 0x938   :  { %10466 = vmatpush1.bf16.msra.mxu0 %v15135_v14 }
 0x939   :  { %10467 = vmatprep.subr.bf16.mxu0 %v15144_v26  ;;  %v15223_v26 = vld [vmem:[%s22326_s8 + $0xe20] sm:$0xff] }
 0x93a   :  { %v15252_v47 = vcombine.high %v15219_v41, %v15223_v26 }
 0x93c   :  { %10468 = vmatpush1.bf16.msra.mxu0 %v15143_v49  ;;  %v15251_v49 = vcombine.low %v15219_v41, %v15223_v26  ;;  %v15299_v41 = vld [vmem:[%s22326_s8 + $0xf60] sm:$0xff] }
 0x93d   :  { %10749 = vmatprep.subr.bf16.mxu0 %v15184_v6 }
 0x93f   :  { %v9716_v25 = vpop.f32.mrb[48].mxu1  ;;  %15149 = vmatmul.mubr.msk.bf16.vlgmr.msra.gmra.mrb[188].mxu0 %vm4268_vm3, %v19598_v53  ;;  %v15175_v53 = vld [vmem:[%s22326_s8 + $0xdc0] sm:$0xff] }
 0x940   :  { %v21220_v19 = vadd.f32 %v9716_v25, %v21142_v44  ;;  %v9718_v15 = vpop.f32.mrb[49].mxu1  ;;  %10750 = vmatpush1.bf16.msra.mxu0 %v15183_v63  ;;  %10781 = vmatprep.mubr.bf16.mxu0 %v22338_v20  ;;  %v15179_v44 = vld [vmem:[%s22326_s8 + $0xde0] sm:$0xff] }
 0x941   :  { %v21224_v22 = vadd.f32 %v9718_v15, %v21146_v27  ;;  %v9720_v30 = vpop.f32.mrb[50].mxu1  ;;  %10751 = vmatprep.subr.bf16.mxu0 %v15192_v29  ;;  %v15208_v12 = vcombine.high %v15175_v53, %v15179_v44 }
 0x942   :  { %v8199_v11 = vpop.f32.mrb[136].mxu0  ;;  %v9721_v62 = vpop.f32.mrb[51].mxu1 }
 0x943   :  { %v21233_v45 = vadd.f32 %v8199_v11, %v21155_v61  ;;  %v8201_v52 = vpop.f32.mrb[137].mxu0  ;;  %v15207_v61 = vcombine.low %v15175_v53, %v15179_v44  ;;  %v15267_v44 = vcombine.low %v15235_v18, %v15239_v48 }
 0x944   :  { %v21236_v27 = vadd.f32 %v8201_v52, %v21158_v57  ;;  %v8203_v32 = vpop.f32.mrb[138].mxu0  ;;  %10752 = vmatpush1.bf16.msra.mxu0 %v15191_v46  ;;  %v15161_v57 = vld [vmem:[%s22326_s8 + $0xd50] sm:$0xff]  ;;  %v15268_v46 = vcombine.high %v15235_v18, %v15239_v48 }
 0x945   :  { %v8204_v2 = vpop.f32.mrb[139].mxu0  ;;  %10753 = vmatprep.subr.bf16.mxu0 %v15200_v56  ;;  %v15196_v5 = vcombine.high %v15161_v57, %v15165_v60  ;;  %v15195_v33 = vcombine.low %v15161_v57, %v15165_v60  ;;  %v15241_v57 = vld [vmem:[%s22326_s8 + $0xeb0] sm:$0xff] }
 0x946   :  { %v15225_v2 = vld [vmem:[%s22326_s8 + $0xe30] sm:$0xff] }
 0x948   :  { %10754 = vmatpush1.bf16.msra.mxu0 %v15199_v8  ;;  %v15221_v8 = vld [vmem:[%s22326_s8 + $0xe10] sm:$0xff] }
 0x949   :  { %10755 = vmatprep.subr.bf16.mxu0 %v15208_v12  ;;  %v15256_v12 = vcombine.high %v15221_v8, %v15225_v2  ;;  %v15255_v39 = vcombine.low %v15221_v8, %v15225_v2 }
 0x94c   :  { %10756 = vmatpush1.bf16.msra.mxu0 %v15207_v61 }
 0x94d   :  { %10831 = vmatprep.subr.bf16.mxu0 %v15188_v28  ;;  %v15237_v28 = vld [vmem:[%s22326_s8 + $0xe90] sm:$0xff] }
 0x94f   :  { %v9798_v54 = vpop.f32.mrb[52].mxu1  ;;  %15215 = vmatmul.mubr.msk.bf16.vlgmr.msra.gmra.mrb[192].mxu0 %vm4268_vm3, %v20802_v13 }
 0x950   :  { %v21259_v23 = vadd.f32 %v9798_v54, %v21181_v36  ;;  %v9800_v34 = vpop.f32.mrb[53].mxu1  ;;  %10832 = vmatpush1.bf16.msra.mxu0 %v15187_v59  ;;  %10863 = vmatprep.mubr.bf16.mxu0 %v22338_v20  ;;  %v15181_v36 = vld [vmem:[%s22326_s8 + $0xdf0] sm:$0xff] }
 0x951   :  { %v21263_v17 = vadd.f32 %v9800_v34, %v21185_v3  ;;  %v9802_v55 = vpop.f32.mrb[54].mxu1  ;;  %10833 = vmatprep.subr.bf16.mxu0 %v15196_v5  ;;  %v15212_v14 = vcombine.high %v15177_v37, %v15181_v36  ;;  %v15272_v34 = vcombine.high %v15237_v28, %v15241_v57 }
 0x952   :  { %v8281_v38 = vpop.f32.mrb[140].mxu0  ;;  %v9803_v4 = vpop.f32.mrb[55].mxu1 }
 0x953   :  { %v21272_v31 = vadd.f32 %v8281_v38, %v21194_v42  ;;  %v8283_v1 = vpop.f32.mrb[141].mxu0  ;;  %v15211_v42 = vcombine.low %v15177_v37, %v15181_v36  ;;  %v15271_v36 = vcombine.low %v15237_v28, %v15241_v57 }
 0x954   :  { %v21275_v3 = vadd.f32 %v8283_v1, %v21197_v24  ;;  %v8285_v9 = vpop.f32.mrb[142].mxu0  ;;  %10834 = vmatpush1.bf16.msra.mxu0 %v15195_v33  ;;  %v15227_v24 = vld [vmem:[%s22326_s8 + $0xe40] sm:$0xff] }
 0x955   :  { %v8286_v0 = vpop.f32.mrb[143].mxu0  ;;  %10835 = vmatprep.subr.bf16.mxu0 %v15204_v7  ;;  %v15260_v6 = vcombine.high %v15227_v24, %v15231_v50  ;;  %v15259_v21 = vcombine.low %v15227_v24, %v15231_v50  ;;  %v15245_v7 = vld [vmem:[%s22326_s8 + $0xed0] sm:$0xff]  ;;  %v15307_v24 = vld [vmem:[%s22326_s8 + $0xfa0] sm:$0xff] }
 0x956   :  { %v15291_v0 = vld [vmem:[%s22326_s8 + $0xf20] sm:$0xff] }
 0x958   :  { %10836 = vmatpush1.bf16.msra.mxu0 %v15203_v35  ;;  %v15287_v35 = vld [vmem:[%s22326_s8 + $0xf00] sm:$0xff] }
 0x959   :  { %10837 = vmatprep.subr.bf16.mxu0 %v15212_v14  ;;  %v15320_v14 = vcombine.high %v15287_v35, %v15291_v0  ;;  %v15319_v26 = vcombine.low %v15287_v35, %v15291_v0 }
 0x95c   :  { %10838 = vmatpush1.bf16.msra.mxu0 %v15211_v42 }
 0x95d   :  { %11117 = vmatprep.subr.bf16.mxu0 %v15252_v47  ;;  %v15303_v47 = vld [vmem:[%s22326_s8 + $0xf80] sm:$0xff] }
 0x95f   :  { %v10086_v63 = vpop.f32.mrb[56].mxu1  ;;  %15217 = vmatmul.mubr.msk.bf16.vlgmr.msra.gmra.mrb[196].mxu0 %vm4268_vm3, %v20802_v13  ;;  %v15243_v13 = vld [vmem:[%s22326_s8 + $0xec0] sm:$0xff] }
 0x960   :  { %v21298_v29 = vadd.f32 %v10086_v63, %v21220_v19  ;;  %v10088_v40 = vpop.f32.mrb[57].mxu1  ;;  %11118 = vmatpush1.bf16.msra.mxu0 %v15251_v49  ;;  %11149 = vmatprep.mubr.bf16.mxu0 %v22338_v20  ;;  %v15247_v19 = vld [vmem:[%s22326_s8 + $0xee0] sm:$0xff] }
 0x961   :  { %v21302_v25 = vadd.f32 %v10088_v40, %v21224_v22  ;;  %v10090_v15 = vpop.f32.mrb[58].mxu1  ;;  %11119 = vmatprep.subr.bf16.mxu0 %v15260_v6  ;;  %v15276_v32 = vcombine.high %v15243_v13, %v15247_v19  ;;  %v15336_v40 = vcombine.high %v15303_v47, %v15307_v24 }
 0x962   :  { %v8569_v30 = vpop.f32.mrb[144].mxu0  ;;  %v10091_v56 = vpop.f32.mrb[59].mxu1 }
 0x963   :  { %v21311_v11 = vadd.f32 %v8569_v30, %v21233_v45  ;;  %v8571_v62 = vpop.f32.mrb[145].mxu0  ;;  %v15275_v45 = vcombine.low %v15243_v13, %v15247_v19  ;;  %v15335_v13 = vcombine.low %v15303_v47, %v15307_v24  ;;  %v16984_v47 = vld [vmem:[%s22328_s10 + $0xc] ss:$16 sps:$4 sm:$0xff]   ;;  %v16985_v24 = vld [vmem:[%s22328_s10 + $0x20] ss:$16 sps:$4 sm:$0xff]  }
 0x964   :  { %v21314_v22 = vadd.f32 %v8571_v62, %v21236_v27  ;;  %v8573_v53 = vpop.f32.mrb[146].mxu0  ;;  %11120 = vmatpush1.bf16.msra.mxu0 %v15259_v21  ;;  %v15229_v27 = vld [vmem:[%s22326_s8 + $0xe50] sm:$0xff]  ;;  %13447 = vmatprep.subr.bf16.mxu1 %v16984_v47 }
 0x965   :  { %v8574_v52 = vpop.f32.mrb[147].mxu0  ;;  %11121 = vmatprep.subr.bf16.mxu0 %v15268_v46  ;;  %v15264_v61 = vcombine.high %v15229_v27, %v15233_v58  ;;  %v15263_v51 = vcombine.low %v15229_v27, %v15233_v58  ;;  %v15289_v53 = vld [vmem:[%s22326_s8 + $0xf10] sm:$0xff] }
 0x968   :  { %11122 = vmatpush1.bf16.msra.mxu0 %v15267_v44  ;;  %v15293_v44 = vld [vmem:[%s22326_s8 + $0xf30] sm:$0xff] }
 0x969   :  { %11123 = vmatprep.subr.bf16.mxu0 %v15276_v32  ;;  %v15301_v32 = vld [vmem:[%s22326_s8 + $0xf70] sm:$0xff]  ;;  %v15323_v8 = vcombine.low %v15289_v53, %v15293_v44 }
 0x96c   :  { %11124 = vmatpush1.bf16.msra.mxu0 %v15275_v45  ;;  %v15305_v45 = vld [vmem:[%s22326_s8 + $0xf90] sm:$0xff] }
 0x96d   :  { %11199 = vmatprep.subr.bf16.mxu0 %v15256_v12  ;;  %v15309_v12 = vld [vmem:[%s22326_s8 + $0xfb0] sm:$0xff] }
 0x96f   :  { %v10168_v60 = vpop.f32.mrb[60].mxu1  ;;  %15283 = vmatmul.mubr.msk.bf16.vlgmr.msra.gmra.mrb[200].mxu0 %vm4268_vm3, %v19590_v43 }
 0x970   :  { %v21337_v59 = vadd.f32 %v10168_v60, %v21259_v23  ;;  %v10170_v5 = vpop.f32.mrb[61].mxu1  ;;  %11200 = vmatpush1.bf16.msra.mxu0 %v15255_v39  ;;  %11231 = vmatprep.mubr.bf16.mxu0 %v22338_v20  ;;  %v15249_v23 = vld [vmem:[%s22326_s8 + $0xef0] sm:$0xff]  ;;  %v15340_v60 = vcombine.high %v15305_v45, %v15309_v12 }
 0x971   :  { %v21341_v16 = vadd.f32 %v10170_v5, %v21263_v17  ;;  %v10172_v54 = vpop.f32.mrb[62].mxu1  ;;  %11201 = vmatprep.subr.bf16.mxu0 %v15264_v61  ;;  %v15280_v9 = vcombine.high %v15245_v7, %v15249_v23 }
 0x972   :  { %v8651_v33 = vpop.f32.mrb[148].mxu0  ;;  %v10173_v55 = vpop.f32.mrb[63].mxu1  ;;  %v15313_v54 = vld [vmem:[%s22326_s8 + $0xfd0] sm:$0xff] }
 0x973   :  { %v21350_v38 = vadd.f32 %v8651_v33, %v21272_v31  ;;  %v8653_v4 = vpop.f32.mrb[149].mxu0  ;;  %v15279_v31 = vcombine.low %v15245_v7, %v15249_v23 }
 0x974   :  { %v21353_v17 = vadd.f32 %v8653_v4, %v21275_v3  ;;  %v8655_v37 = vpop.f32.mrb[150].mxu0  ;;  %11202 = vmatpush1.bf16.msra.mxu0 %v15263_v51  ;;  %v15295_v3 = vld [vmem:[%s22326_s8 + $0xf40] sm:$0xff] }
 0x975   :  { %v8656_v1 = vpop.f32.mrb[151].mxu0  ;;  %11203 = vmatprep.subr.bf16.mxu0 %v15272_v34  ;;  %v15328_v42 = vcombine.high %v15295_v3, %v15299_v41  ;;  %v15327_v18 = vcombine.low %v15295_v3, %v15299_v41 }
 0x978   :  { %11204 = vmatpush1.bf16.msra.mxu0 %v15271_v36 }
 0x979   :  { %11205 = vmatprep.subr.bf16.mxu0 %v15280_v9 }
 0x97c   :  { %11206 = vmatpush1.bf16.msra.mxu0 %v15279_v31 }
 0x97d   :  { %11487 = vmatprep.subr.bf16.mxu0 %v15320_v14 }
 0x97f   :  { %v10454_v50 = vpop.f32.mrb[64].mxu1  ;;  %15285 = vmatmul.mubr.msk.bf16.vlgmr.msra.gmra.mrb[204].mxu0 %vm4268_vm3, %v19590_v43  ;;  %v15311_v43 = vld [vmem:[%s22326_s8 + $0xfc0] sm:$0xff] }
 0x980   :  { %v21376_v49 = vadd.f32 %v10454_v50, %v21298_v29  ;;  %v10456_v6 = vpop.f32.mrb[65].mxu1  ;;  %11488 = vmatpush1.bf16.msra.mxu0 %v15319_v26  ;;  %11519 = vmatprep.mubr.bf16.mxu0 %v22338_v20  ;;  %v15315_v29 = vld [vmem:[%s22326_s8 + $0xfe0] sm:$0xff] }
 0x981   :  { %v21380_v48 = vadd.f32 %v10456_v6, %v21302_v25  ;;  %v10458_v63 = vpop.f32.mrb[66].mxu1  ;;  %11489 = vmatprep.subr.bf16.mxu0 %v15328_v42  ;;  %v15344_v62 = vcombine.high %v15311_v43, %v15315_v29  ;;  %v15343_v52 = vcombine.low %v15311_v43, %v15315_v29  ;;  %v16981_v26 = vld [vmem:[%s22328_s10 + $0x4] ss:$16 sps:$4 sm:$0xff]   ;;  %v16982_v42 = vld [vmem:[%s22328_s10 + $0x8] ss:$16 sps:$4 sm:$0xff]  }
 0x982   :  { %v8937_v21 = vpop.f32.mrb[152].mxu0  ;;  %v10459_v15 = vpop.f32.mrb[67].mxu1  ;;  %v16987_v50 = vld [vmem:[%s22328_s10 + $0x24] ss:$16 sps:$4 sm:$0xff]   ;;  %13448 = vmatpush1.bf16.msra.mxu1 %v16982_v42  ;;  %v16990_v6 = vld [vmem:[%s22328_s10 + $0x2c] ss:$16 sps:$4 sm:$0xff]  }
 0x983   :  { %v9067_v46 = vadd.f32 %v8937_v21, %v21311_v11  ;;  %v8939_v30 = vpop.f32.mrb[153].mxu0  ;;  %v15324_v11 = vcombine.high %v15289_v53, %v15293_v44  ;;  %13449 = vmatprep.subr.bf16.mxu1 %v16990_v6  ;;  %v16993_v29 = vld [vmem:[%s22328_s10 + $0x44] ss:$16 sps:$4 sm:$0xff]   ;;  %v16997_v44 = vld [vmem:[%s22328_s10 + $0x60] ss:$16 sps:$4 sm:$0xff]  }
 0x984   :  { %v9068_v56 = vadd.f32 %v8939_v30, %v21314_v22  ;;  %v8941_v25 = vpop.f32.mrb[154].mxu0  ;;  %11490 = vmatpush1.bf16.msra.mxu0 %v15327_v18  ;;  %v15297_v22 = vld [vmem:[%s22326_s8 + $0xf50] sm:$0xff] }
 0x985   :  { %v8942_v19 = vpop.f32.mrb[155].mxu0  ;;  %11491 = vmatprep.subr.bf16.mxu0 %v15336_v40  ;;  %v15332_v2 = vcombine.high %v15297_v22, %v15301_v32  ;;  %v15331_v61 = vcombine.low %v15297_v22, %v15301_v32  ;;  %v16991_v25 = vld [vmem:[%s22328_s10 + $0x40] ss:$16 sps:$4 sm:$0xff]   ;;  %v17002_v22 = vld [vmem:[%s22328_s10 + $0x6c] ss:$16 sps:$4 sm:$0xff]  }
 0x986   :  { %v17005_v32 = vld [vmem:[%s22328_s10 + $0x84] ss:$16 sps:$4 sm:$0xff]  }
 0x987   :  { %v17041_v6 = vld [vmem:[%s22328_s10 + $0x144] ss:$16 sps:$4 sm:$0xff]  }
 0x988   :  { %11492 = vmatpush1.bf16.msra.mxu0 %v15335_v13  ;;  %v16994_v13 = vld [vmem:[%s22328_s10 + $0x48] ss:$16 sps:$4 sm:$0xff]  }
 0x989   :  { %11493 = vmatprep.subr.bf16.mxu0 %v15344_v62 }
 0x98c   :  { %11494 = vmatpush1.bf16.msra.mxu0 %v15343_v52  ;;  %v16999_v52 = vld [vmem:[%s22328_s10 + $0x64] ss:$16 sps:$4 sm:$0xff]  }
 0x98d   :  { %11569 = vmatprep.subr.bf16.mxu0 %v15324_v11  ;;  %v17000_v11 = vld [vmem:[%s22328_s10 + $0x68] ss:$16 sps:$4 sm:$0xff]  }
 0x98f   :  { %v10536_v27 = vpop.f32.mrb[68].mxu1  ;;  %15351 = vmatmul.mubr.msk.bf16.vlgmr.msra.gmra.mrb[208].mxu0 %vm4268_vm3, %v21069_v10 }
 0x990   :  { %v10549_v58 = vadd.f32 %v10536_v27, %v21337_v59  ;;  %v10538_v39 = vpop.f32.mrb[69].mxu1  ;;  %11570 = vmatpush1.bf16.msra.mxu0 %v15323_v8  ;;  %11601 = vmatprep.mubr.bf16.mxu0 %v22338_v20  ;;  %v15317_v59 = vld [vmem:[%s22326_s8 + $0xff0] sm:$0xff]  ;;  %v17008_v8 = vld [vmem:[%s22328_s10 + $0x8c] ss:$16 sps:$4 sm:$0xff]  }
 0x991   :  { %v10550_v28 = vadd.f32 %v10538_v39, %v21341_v16  ;;  %v10540_v57 = vpop.f32.mrb[70].mxu1  ;;  %11571 = vmatprep.subr.bf16.mxu0 %v15332_v2  ;;  %v15339_v16 = vcombine.low %v15305_v45, %v15309_v12  ;;  %v15348_v23 = vcombine.high %v15313_v54, %v15317_v59  ;;  %v15347_v4 = vcombine.low %v15313_v54, %v15317_v59  ;;  %v17003_v2 = vld [vmem:[%s22328_s10 + $0x80] ss:$16 sps:$4 sm:$0xff]   ;;  %v17006_v45 = vld [vmem:[%s22328_s10 + $0x88] ss:$16 sps:$4 sm:$0xff]  }
 0x992   :  { %v9019_v5 = vpop.f32.mrb[156].mxu0  ;;  %v10541_v51 = vpop.f32.mrb[71].mxu1  ;;  %v17011_v12 = vld [vmem:[%s22328_s10 + $0xa4] ss:$16 sps:$4 sm:$0xff]   ;;  %v17014_v27 = vld [vmem:[%s22328_s10 + $0xac] ss:$16 sps:$4 sm:$0xff]  }
 0x993   :  { %v9071_v34 = vadd.f32 %v9019_v5, %v21350_v38  ;;  %v9021_v33 = vpop.f32.mrb[157].mxu0  ;;  %v17012_v39 = vld [vmem:[%s22328_s10 + $0xa8] ss:$16 sps:$4 sm:$0xff]   ;;  %v17017_v59 = vld [vmem:[%s22328_s10 + $0xc4] ss:$16 sps:$4 sm:$0xff]  }
 0x994   :  { %v9072_v20 = vadd.f32 %v9021_v33, %v21353_v17  ;;  %v9023_v55 = vpop.f32.mrb[158].mxu0  ;;  %11572 = vmatpush1.bf16.msra.mxu0 %v15331_v61 }
 0x995   :  { %v9024_v7 = vpop.f32.mrb[159].mxu0  ;;  %11573 = vmatprep.subr.bf16.mxu0 %v15340_v60  ;;  %v17015_v55 = vld [vmem:[%s22328_s10 + $0xc0] ss:$16 sps:$4 sm:$0xff]  }
 0x998   :  { %11574 = vmatpush1.bf16.msra.mxu0 %v15339_v16  ;;  %v17018_v16 = vld [vmem:[%s22328_s10 + $0xc8] ss:$16 sps:$4 sm:$0xff]  }
 0x999   :  { %11575 = vmatprep.subr.bf16.mxu0 %v15348_v23 }
 0x99c   :  { %11576 = vmatpush1.bf16.msra.mxu0 %v15347_v4 }
 0x99d   :  { %13283 = vmatprep.subr.bf16.mxu0 %v16981_v26 }
 0x99f   :  { %v10824_v37 = vpop.f32.mrb[72].mxu1  ;;  %15353 = vmatmul.mubr.msk.bf16.vlgmr.msra.gmra.mrb[212].mxu0 %vm4268_vm3, %v21069_v10  ;;  %v16979_v10 = vld [vmem:[%s22328_s10] ss:$16 sps:$4 sm:$0xff]  }
 0x9a0   :  { %v21424_v36 = vadd.f32 %v10824_v37, %v21376_v49  ;;  %v10826_v38 = vpop.f32.mrb[73].mxu1  ;;  %13284 = vmatpush1.bf16.msra.mxu0 %v16979_v10  ;;  %v16988_v49 = vld [vmem:[%s22328_s10 + $0x28] ss:$16 sps:$4 sm:$0xff]   ;;  %v17021_v37 = vld [vmem:[%s22328_s10 + $0xe0] ss:$16 sps:$4 sm:$0xff]  }
 0x9a1   :  { %v21427_v17 = vadd.f32 %v10826_v38, %v21380_v48  ;;  %v10828_v1 = vpop.f32.mrb[74].mxu1  ;;  %13285 = vmatprep.subr.bf16.mxu0 %v16987_v50  ;;  %13450 = vmatpush1.bf16.msra.mxu1 %v16988_v49  ;;  %v17024_v38 = vld [vmem:[%s22328_s10 + $0xe8] ss:$16 sps:$4 sm:$0xff]  }
 0x9a2   :  { %v9307_v9 = vpop.f32.mrb[160].mxu0  ;;  %v10829_v35 = vpop.f32.mrb[75].mxu1  ;;  %v17029_v1 = vld [vmem:[%s22328_s10 + $0x104] ss:$16 sps:$4 sm:$0xff]  }
 0x9a3   :  { %v21429_v0 = vadd.f32 %v9307_v9, %v9067_v46  ;;  %v9309_v31 = vpop.f32.mrb[161].mxu0  ;;  %v16996_v46 = vld [vmem:[%s22328_s10 + $0x4c] ss:$16 sps:$4 sm:$0xff]   ;;  %v17027_v35 = vld [vmem:[%s22328_s10 + $0x100] ss:$16 sps:$4 sm:$0xff]  }
 0x9a4   :  { %v21431_v14 = vadd.f32 %v9309_v31, %v9068_v56  ;;  %v9311_v3 = vpop.f32.mrb[162].mxu0  ;;  %13286 = vmatpush1.bf16.msra.mxu0 %v16985_v24  ;;  %13451 = vmatprep.subr.bf16.mxu1 %v16996_v46  ;;  %v17032_v9 = vld [vmem:[%s22328_s10 + $0x10c] ss:$16 sps:$4 sm:$0xff]   ;;  %v17035_v31 = vld [vmem:[%s22328_s10 + $0x124] ss:$16 sps:$4 sm:$0xff]  }
 0x9a5   :  { %v9312_v41 = vpop.f32.mrb[163].mxu0  ;;  %13287 = vmatprep.subr.bf16.mxu0 %v16993_v29  ;;  %13452 = vmatpush1.bf16.msra.mxu1 %v16994_v13  ;;  %v17033_v3 = vld [vmem:[%s22328_s10 + $0x120] ss:$16 sps:$4 sm:$0xff]   ;;  %v17053_v13 = vld [vmem:[%s22328_s10 + $0x184] ss:$16 sps:$4 sm:$0xff]  }
 0x9a6   :  { %13453 = vmatprep.subr.bf16.mxu1 %v17002_v22  ;;  %v17036_v41 = vld [vmem:[%s22328_s10 + $0x128] ss:$16 sps:$4 sm:$0xff]   ;;  %v17045_v46 = vld [vmem:[%s22328_s10 + $0x160] ss:$16 sps:$4 sm:$0xff]  }
 0x9a7   :  { %v17060_v22 = vld [vmem:[%s22328_s10 + $0x1a8] ss:$16 sps:$4 sm:$0xff]  }
 0x9a8   :  { %13288 = vmatpush1.bf16.msra.mxu0 %v16991_v25  ;;  %v17050_v25 = vld [vmem:[%s22328_s10 + $0x16c] ss:$16 sps:$4 sm:$0xff]  }
 0x9a9   :  { %13289 = vmatprep.subr.bf16.mxu0 %v16999_v52  ;;  %13454 = vmatpush1.bf16.msra.mxu1 %v17000_v11  ;;  %v17062_v52 = vld [vmem:[%s22328_s10 + $0x1ac] ss:$16 sps:$4 sm:$0xff]   ;;  %v17057_v11 = vld [vmem:[%s22328_s10 + $0x1a0] ss:$16 sps:$4 sm:$0xff]  }
 0x9aa   :  { %13455 = vmatprep.subr.bf16.mxu1 %v17008_v8 }
 0x9ac   :  { %13290 = vmatpush1.bf16.msra.mxu0 %v16997_v44  ;;  %v17059_v44 = vld [vmem:[%s22328_s10 + $0x1a4] ss:$16 sps:$4 sm:$0xff]  }
 0x9ad   :  { %13291 = vmatprep.subr.bf16.mxu0 %v17005_v32  ;;  %13456 = vmatpush1.bf16.msra.mxu1 %v17006_v45 }
 0x9ae   :  { %13457 = vmatprep.subr.bf16.mxu1 %v17014_v27 }
 0x9af   :  { %v10906_v18 = vpop.f32.mrb[76].mxu1 }
 0x9b0   :  { %v21457_v48 = vadd.f32 %v10906_v18, %v10549_v58  ;;  %v10908_v63 = vpop.f32.mrb[77].mxu1  ;;  %v17009_v58 = vld [vmem:[%s22328_s10 + $0xa0] ss:$16 sps:$4 sm:$0xff]   ;;  %13292 = vmatpush1.bf16.msra.mxu0 %v17003_v2  ;;  %v17044_v18 = vld [vmem:[%s22328_s10 + $0x14c] ss:$16 sps:$4 sm:$0xff]  }
 0x9b1   :  { %v21459_v40 = vadd.f32 %v10908_v63, %v10550_v28  ;;  %v10910_v21 = vpop.f32.mrb[78].mxu1  ;;  %13293 = vmatprep.subr.bf16.mxu0 %v17011_v12  ;;  %13458 = vmatpush1.bf16.msra.mxu1 %v17012_v39  ;;  %v17065_v39 = vld [vmem:[%s22328_s10 + $0x1c4] ss:$16 sps:$4 sm:$0xff]  }
 0x9b2   :  { %v9389_v15 = vpop.f32.mrb[164].mxu0  ;;  %v10911_v43 = vpop.f32.mrb[79].mxu1  ;;  %v17042_v21 = vld [vmem:[%s22328_s10 + $0x148] ss:$16 sps:$4 sm:$0xff]  }
 0x9b3   :  { %v21467_v30 = vadd.f32 %v9389_v15, %v9071_v34  ;;  %v9391_v56 = vpop.f32.mrb[165].mxu0  ;;  %v17020_v34 = vld [vmem:[%s22328_s10 + $0xcc] ss:$16 sps:$4 sm:$0xff]  }
 0x9b4   :  { %v21475_v19 = vadd.f32 %v9391_v56, %v9072_v20  ;;  %v9393_v62 = vpop.f32.mrb[166].mxu0  ;;  %13294 = vmatpush1.bf16.msra.mxu0 %v17009_v58  ;;  %13459 = vmatprep.subr.bf16.mxu1 %v17020_v34  ;;  %v17048_v56 = vld [vmem:[%s22328_s10 + $0x168] ss:$16 sps:$4 sm:$0xff]   ;;  %v17071_v34 = vld [vmem:[%s22328_s10 + $0x1e4] ss:$16 sps:$4 sm:$0xff]  }
 0x9b5   :  { %v9394_v53 = vpop.f32.mrb[167].mxu0  ;;  %13295 = vmatprep.subr.bf16.mxu0 %v17017_v59  ;;  %13460 = vmatpush1.bf16.msra.mxu1 %v17018_v16  ;;  %v17051_v62 = vld [vmem:[%s22328_s10 + $0x180] ss:$16 sps:$4 sm:$0xff]   ;;  %v17077_v16 = vld [vmem:[%s22328_s10 + $0x204] ss:$16 sps:$4 sm:$0xff]  }
 0x9b6   :  { %v17054_v53 = vld [vmem:[%s22328_s10 + $0x188] ss:$16 sps:$4 sm:$0xff]  }
 0x9b8   :  { %13296 = vmatpush1.bf16.msra.mxu0 %v17015_v55  ;;  %v17072_v55 = vld [vmem:[%s22328_s10 + $0x1e8] ss:$16 sps:$4 sm:$0xff]  }
 0x9bf   :  { %v11192_v61 = vpop.f32.mrb[80].mxu1 }
 0x9c0   :  { %v21514_v28 = vadd.f32 %v11192_v61, %v21424_v36  ;;  %v11194_v57 = vpop.f32.mrb[81].mxu1  ;;  %v17023_v36 = vld [vmem:[%s22328_s10 + $0xe4] ss:$16 sps:$4 sm:$0xff]  }
 0x9c1   :  { %v21517_v60 = vadd.f32 %v11194_v57, %v21427_v17  ;;  %v11196_v5 = vpop.f32.mrb[82].mxu1  ;;  %v17026_v17 = vld [vmem:[%s22328_s10 + $0xec] ss:$16 sps:$4 sm:$0xff]   ;;  %13297 = vmatprep.subr.bf16.mxu0 %v17023_v36 }
 0x9c2   :  { %v9675_v51 = vpop.f32.mrb[168].mxu0  ;;  %v11197_v54 = vpop.f32.mrb[83].mxu1  ;;  %13461 = vmatprep.subr.bf16.mxu1 %v17026_v17  ;;  %13298 = vmatpush1.bf16.msra.mxu0 %v17021_v37 }
 0x9c3   :  { %v21526_v33 = vadd.f32 %v9675_v51, %v21429_v0  ;;  %v9677_v20 = vpop.f32.mrb[169].mxu0  ;;  %v17030_v0 = vld [vmem:[%s22328_s10 + $0x108] ss:$16 sps:$4 sm:$0xff]   ;;  %13462 = vmatpush1.bf16.msra.mxu1 %v17024_v38  ;;  %13299 = vmatprep.subr.bf16.mxu0 %v17029_v1  ;;  %v17068_v54 = vld [vmem:[%s22328_s10 + $0x1cc] ss:$16 sps:$4 sm:$0xff]  }
 0x9c4   :  { %v21535_v7 = vadd.f32 %v9677_v20, %v21431_v14  ;;  %v9679_v23 = vpop.f32.mrb[170].mxu0  ;;  %v17038_v14 = vld [vmem:[%s22328_s10 + $0x12c] ss:$16 sps:$4 sm:$0xff]   ;;  %13463 = vmatprep.subr.bf16.mxu1 %v17032_v9  ;;  %v17069_v20 = vld [vmem:[%s22328_s10 + $0x1e0] ss:$16 sps:$4 sm:$0xff]  }
 0x9c5   :  { %v9680_v4 = vpop.f32.mrb[171].mxu0 }
 0x9c6   :  { %13300 = vmatpush1.bf16.msra.mxu0 %v17027_v35 }
 0x9c7   :  { %13464 = vmatpush1.bf16.msra.mxu1 %v17030_v0  ;;  %13301 = vmatprep.subr.bf16.mxu0 %v17035_v31 }
 0x9c8   :  { %13465 = vmatprep.subr.bf16.mxu1 %v17038_v14 }
 0x9ca   :  { %13302 = vmatpush1.bf16.msra.mxu0 %v17033_v3 }
 0x9cb   :  { %13466 = vmatpush1.bf16.msra.mxu1 %v17036_v41  ;;  %13303 = vmatprep.subr.bf16.mxu0 %v17041_v6 }
 0x9cc   :  { %13467 = vmatprep.subr.bf16.mxu1 %v17044_v18 }
 0x9cf   :  { %v11274_v10 = vpop.f32.mrb[84].mxu1  ;;  %13468 = vmatpush1.bf16.msra.mxu1 %v17042_v21 }
 0x9d0   :  { %v21574_v26 = vadd.f32 %v11274_v10, %v21457_v48  ;;  %v11276_v42 = vpop.f32.mrb[85].mxu1  ;;  %13469 = vmatprep.subr.bf16.mxu1 %v17050_v25 }
 0x9d1   :  { %v21577_v47 = vadd.f32 %v11276_v42, %v21459_v40  ;;  %v11278_v24 = vpop.f32.mrb[86].mxu1  ;;  %v17039_v40 = vld [vmem:[%s22328_s10 + $0x140] ss:$16 sps:$4 sm:$0xff]  }
 0x9d2   :  { %v9757_v50 = vpop.f32.mrb[172].mxu0  ;;  %v11279_v49 = vpop.f32.mrb[87].mxu1  ;;  %13304 = vmatpush1.bf16.msra.mxu0 %v17039_v40 }
 0x9d3   :  { %v21586_v48 = vadd.f32 %v9757_v50, %v21467_v30  ;;  %v9759_v63 = vpop.f32.mrb[173].mxu0  ;;  %v17047_v30 = vld [vmem:[%s22328_s10 + $0x164] ss:$16 sps:$4 sm:$0xff]   ;;  %13470 = vmatpush1.bf16.msra.mxu1 %v17048_v56 }
 0x9d4   :  { %v21595_v15 = vadd.f32 %v9759_v63, %v21475_v19  ;;  %v9761_v43 = vpop.f32.mrb[174].mxu0  ;;  %13305 = vmatprep.subr.bf16.mxu0 %v17047_v30  ;;  %v17056_v19 = vld [vmem:[%s22328_s10 + $0x18c] ss:$16 sps:$4 sm:$0xff]  }
 0x9d5   :  { %v9762_v29 = vpop.f32.mrb[175].mxu0  ;;  %13471 = vmatprep.subr.bf16.mxu1 %v17056_v19 }
 0x9d6   :  { %13306 = vmatpush1.bf16.msra.mxu0 %v17045_v46 }
 0x9d7   :  { %13307 = vmatprep.subr.bf16.mxu0 %v17053_v13  ;;  %13472 = vmatpush1.bf16.msra.mxu1 %v17054_v53 }
 0x9d8   :  { %13473 = vmatprep.subr.bf16.mxu1 %v17062_v52 }
 0x9da   :  { %13308 = vmatpush1.bf16.msra.mxu0 %v17051_v62 }
 0x9db   :  { %13309 = vmatprep.subr.bf16.mxu0 %v17059_v44  ;;  %13474 = vmatpush1.bf16.msra.mxu1 %v17060_v22 }
 0x9dc   :  { %13475 = vmatprep.subr.bf16.mxu1 %v17068_v54 }
 0x9de   :  { %13310 = vmatpush1.bf16.msra.mxu0 %v17057_v11 }
 0x9df   :  { %v11562_v32 = vpop.f32.mrb[88].mxu1  ;;  %13311 = vmatprep.subr.bf16.mxu0 %v17065_v39  ;;  %v11661_v39 = vlaneseq }
 0x9e0   :  { %v21634_v8 = vadd.f32 %v11562_v32, %v21514_v28  ;;  %v11564_v2 = vpop.f32.mrb[89].mxu1  ;;  %v17063_v28 = vld [vmem:[%s22328_s10 + $0x1c0] ss:$16 sps:$4 sm:$0xff]  }
 0x9e1   :  { %v21637_v45 = vadd.f32 %v11564_v2, %v21517_v60  ;;  %v11566_v12 = vpop.f32.mrb[90].mxu1  ;;  %v17066_v60 = vld [vmem:[%s22328_s10 + $0x1c8] ss:$16 sps:$4 sm:$0xff]  }
 0x9e2   :  { %v10045_v27 = vpop.f32.mrb[176].mxu0  ;;  %v11567_v58 = vpop.f32.mrb[91].mxu1  ;;  %13312 = vmatpush1.bf16.msra.mxu0 %v17063_v28  ;;  %13476 = vmatpush1.bf16.msra.mxu1 %v17066_v60 }
 0x9e3   :  { %v10175_v61 = vadd.f32 %v10045_v27, %v21526_v33  ;;  %v10047_v57 = vpop.f32.mrb[177].mxu0  ;;  %v17074_v33 = vld [vmem:[%s22328_s10 + $0x1ec] ss:$16 sps:$4 sm:$0xff]   ;;  %13313 = vmatprep.subr.bf16.mxu0 %v17071_v34 }
 0x9e4   :  { %v10176_v5 = vadd.f32 %v10047_v57, %v21535_v7  ;;  %v10049_v51 = vpop.f32.mrb[178].mxu0  ;;  %13477 = vmatprep.subr.bf16.mxu1 %v17074_v33  ;;  %v17080_v7 = vld [vmem:[%s22328_s10 + $0x20c] ss:$16 sps:$4 sm:$0xff]   ;;  %v21680_v57 = vshrl.u32 %v11661_v39, 7 }
 0x9e5   :  { %v10050_v59 = vpop.f32.mrb[179].mxu0 }
 0x9e6   :  { %13314 = vmatpush1.bf16.msra.mxu0 %v17069_v20  ;;  %13478 = vmatpush1.bf16.msra.mxu1 %v17072_v55  ;;  %v11675_v28 = vsub.s32 3, %v21680_v57  ;;  %v11663_v60 = vsub.s32 0, %v21680_v57  ;;  %v11667_v51 = vsub.s32 1, %v21680_v57 }
 0x9e7   :  { %13324 = vmatprep.subr.bf16.mxu0 %v17077_v16  ;;  %13488 = vmatprep.subr.bf16.mxu1 %v17080_v7 }
 0x9ef   :  { %v11644_v23 = vpop.f32.mrb[92].mxu1 }
 0x9f0   :  { %v21672_v4 = vadd.f32 %v11644_v23, %v21574_v26  ;;  %v11646_v37 = vpop.f32.mrb[93].mxu1 }
 0x9f1   :  { %v21675_v36 = vadd.f32 %v11646_v37, %v21577_v47  ;;  %v11648_v38 = vpop.f32.mrb[94].mxu1 }
 0x9f2   :  { %v10127_v17 = vpop.f32.mrb[180].mxu0  ;;  %v11649_v1 = vpop.f32.mrb[95].mxu1 }
 0x9f3   :  { %v10179_v9 = vadd.f32 %v10127_v17, %v21586_v48  ;;  %v10129_v35 = vpop.f32.mrb[181].mxu0 }
 0x9f4   :  { %v10180_v0 = vadd.f32 %v10129_v35, %v21595_v15  ;;  %v10131_v31 = vpop.f32.mrb[182].mxu0 }
 0x9f5   :  { %v10132_v14 = vpop.f32.mrb[183].mxu0  ;;  %v17075_v31 = vld [vmem:[%s22328_s10 + $0x200] ss:$16 sps:$4 sm:$0xff]  }
 0x9f6   :  { %v17078_v14 = vld [vmem:[%s22328_s10 + $0x208] ss:$16 sps:$4 sm:$0xff]  }
 0xa02   :  { %v10413_v3 = vpop.f32.mrb[184].mxu0 }
 0xa03   :  { %v10543_v41 = vadd.f32 %v10413_v3, %v10175_v61  ;;  %v10415_v10 = vpop.f32.mrb[185].mxu0 }
 0xa04   :  { %v10544_v42 = vadd.f32 %v10415_v10, %v10176_v5  ;;  %v10417_v26 = vpop.f32.mrb[186].mxu0  ;;  %v21687_v5 = vld [vmem:[%s22329_s9] sm:$0xff] }
 0xa05   :  { %v10418_v24 = vpop.f32.mrb[187].mxu0  ;;  %v11676_v54 = vrot.slane %v21687_v5, %v11675_v28  ;;  %v11664_v59 = vrot.slane %v21687_v5, %v11663_v60  ;;  %v11668_v33 = vrot.slane %v21687_v5, %v11667_v51  ;;  %v17084_v26 = vld [vmem:[%s22328_s10 + $0x228] ss:$16 sps:$4 sm:$0xff]  }
 0xa06   :  { %v17089_v24 = vld [vmem:[%s22328_s10 + $0x244] ss:$16 sps:$4 sm:$0xff]  }
 0xa07   :  { %v11704_v23 = vadd.f32 %v11676_v54, %v21637_v45  ;;  %v17083_v45 = vld [vmem:[%s22328_s10 + $0x224] ss:$16 sps:$4 sm:$0xff]   ;;  %v17128_v54 = vld [vmem:[%s22328_s10 + $0x30c] ss:$16 sps:$4 sm:$0xff]  }
 0xa09   :  { %v11712_v35 = vmax.f32 %v11704_v23, 0.0  ;;  %v17140_v23 = vld [vmem:[%s22328_s10 + $0x34c] ss:$16 sps:$4 sm:$0xff]  }
 0xa0b   :  { %v11720_v10 = vpack.c.bf16 %v11712_v35, %v11712_v35  ;;  %v17144_v35 = vld [vmem:[%s22328_s10 + $0x368] ss:$16 sps:$4 sm:$0xff]  }
 0xa12   :  { %v10495_v50 = vpop.f32.mrb[188].mxu0 }
 0xa13   :  { %v10547_v49 = vadd.f32 %v10495_v50, %v10179_v9  ;;  %v10497_v47 = vpop.f32.mrb[189].mxu0  ;;  %v17092_v50 = vld [vmem:[%s22328_s10 + $0x24c] ss:$16 sps:$4 sm:$0xff]  }
 0xa14   :  { %v10548_v6 = vadd.f32 %v10497_v47, %v10180_v0  ;;  %v10499_v18 = vpop.f32.mrb[190].mxu0  ;;  %v17087_v47 = vld [vmem:[%s22328_s10 + $0x240] ss:$16 sps:$4 sm:$0xff]  }
 0xa15   :  { %v10500_v63 = vpop.f32.mrb[191].mxu0 }
 0xa22   :  { %v10783_v40 = vpop.f32.mrb[192].mxu0 }
 0xa23   :  { %v10913_v21 = vadd.f32 %v10783_v40, %v10543_v41  ;;  %v10785_v48 = vpop.f32.mrb[193].mxu0  ;;  %v17086_v41 = vld [vmem:[%s22328_s10 + $0x22c] ss:$16 sps:$4 sm:$0xff]   ;;  %v17095_v40 = vld [vmem:[%s22328_s10 + $0x264] ss:$16 sps:$4 sm:$0xff]  }
 0xa24   :  { %v10914_v43 = vadd.f32 %v10785_v48, %v10544_v42  ;;  %v10787_v29 = vpop.f32.mrb[194].mxu0  ;;  %v17081_v42 = vld [vmem:[%s22328_s10 + $0x220] ss:$16 sps:$4 sm:$0xff]  }
 0xa25   :  { %v10788_v15 = vpop.f32.mrb[195].mxu0 }
 0xa26   :  { %v17093_v15 = vld [vmem:[%s22328_s10 + $0x260] ss:$16 sps:$4 sm:$0xff]  }
 0xa32   :  { %v10865_v46 = vpop.f32.mrb[196].mxu0 }
 0xa33   :  { %v10917_v30 = vadd.f32 %v10865_v46, %v10547_v49  ;;  %v10867_v56 = vpop.f32.mrb[197].mxu0  ;;  %v17096_v46 = vld [vmem:[%s22328_s10 + $0x268] ss:$16 sps:$4 sm:$0xff]  }
 0xa34   :  { %v10918_v25 = vadd.f32 %v10867_v56, %v10548_v6  ;;  %v10869_v13 = vpop.f32.mrb[198].mxu0  ;;  %v17090_v6 = vld [vmem:[%s22328_s10 + $0x248] ss:$16 sps:$4 sm:$0xff]   ;;  %v17104_v56 = vld [vmem:[%s22328_s10 + $0x28c] ss:$16 sps:$4 sm:$0xff]  }
 0xa35   :  { %v10870_v19 = vpop.f32.mrb[199].mxu0  ;;  %v17102_v13 = vld [vmem:[%s22328_s10 + $0x288] ss:$16 sps:$4 sm:$0xff]  }
 0xa36   :  { %v17107_v19 = vld [vmem:[%s22328_s10 + $0x2a4] ss:$16 sps:$4 sm:$0xff]  }
 0xa42   :  { %v11151_v62 = vpop.f32.mrb[200].mxu0 }
 0xa43   :  { %v11281_v53 = vadd.f32 %v11151_v62, %v10913_v21  ;;  %v11153_v44 = vpop.f32.mrb[201].mxu0  ;;  %v17098_v21 = vld [vmem:[%s22328_s10 + $0x26c] ss:$16 sps:$4 sm:$0xff]  }
 0xa44   :  { %v11282_v52 = vadd.f32 %v11153_v44, %v10914_v43  ;;  %v11155_v11 = vpop.f32.mrb[202].mxu0  ;;  %v17110_v62 = vld [vmem:[%s22328_s10 + $0x2ac] ss:$16 sps:$4 sm:$0xff]   ;;  %v17108_v44 = vld [vmem:[%s22328_s10 + $0x2a8] ss:$16 sps:$4 sm:$0xff]  }
 0xa45   :  { %v11156_v22 = vpop.f32.mrb[203].mxu0  ;;  %v17116_v11 = vld [vmem:[%s22328_s10 + $0x2cc] ss:$16 sps:$4 sm:$0xff]  }
 0xa46   :  { %v17111_v22 = vld [vmem:[%s22328_s10 + $0x2c0] ss:$16 sps:$4 sm:$0xff]  }
 0xa52   :  { %v11233_v32 = vpop.f32.mrb[204].mxu0 }
 0xa53   :  { %v11285_v2 = vadd.f32 %v11233_v32, %v10917_v30  ;;  %v11235_v12 = vpop.f32.mrb[205].mxu0  ;;  %v17101_v30 = vld [vmem:[%s22328_s10 + $0x284] ss:$16 sps:$4 sm:$0xff]   ;;  %v17114_v32 = vld [vmem:[%s22328_s10 + $0x2c8] ss:$16 sps:$4 sm:$0xff]  }
 0xa54   :  { %v11286_v27 = vadd.f32 %v11235_v12, %v10918_v25  ;;  %v11237_v58 = vpop.f32.mrb[206].mxu0  ;;  %v17099_v25 = vld [vmem:[%s22328_s10 + $0x280] ss:$16 sps:$4 sm:$0xff]   ;;  %v17122_v12 = vld [vmem:[%s22328_s10 + $0x2ec] ss:$16 sps:$4 sm:$0xff]  }
 0xa55   :  { %v11238_v61 = vpop.f32.mrb[207].mxu0  ;;  %v17120_v58 = vld [vmem:[%s22328_s10 + $0x2e8] ss:$16 sps:$4 sm:$0xff]  }
 0xa56   :  { %v17125_v61 = vld [vmem:[%s22328_s10 + $0x304] ss:$16 sps:$4 sm:$0xff]  }
 0xa62   :  { %v11521_v34 = vpop.f32.mrb[208].mxu0 }
 0xa63   :  { %v11651_v20 = vadd.f32 %v11521_v34, %v11281_v53  ;;  %v11523_v55 = vpop.f32.mrb[209].mxu0  ;;  %v17105_v53 = vld [vmem:[%s22328_s10 + $0x2a0] ss:$16 sps:$4 sm:$0xff]   ;;  %v17126_v34 = vld [vmem:[%s22328_s10 + $0x308] ss:$16 sps:$4 sm:$0xff]  }
 0xa64   :  { %v11652_v16 = vadd.f32 %v11523_v55, %v11282_v52  ;;  %v11525_v7 = vpop.f32.mrb[210].mxu0  ;;  %v17113_v52 = vld [vmem:[%s22328_s10 + $0x2c4] ss:$16 sps:$4 sm:$0xff]   ;;  %v17129_v55 = vld [vmem:[%s22328_s10 + $0x320] ss:$16 sps:$4 sm:$0xff]  }
 0xa65   :  { %v11701_v37 = vadd.f32 %v11664_v59, %v11651_v20  ;;  %v11526_v38 = vpop.f32.mrb[211].mxu0  ;;  %v17123_v59 = vld [vmem:[%s22328_s10 + $0x300] ss:$16 sps:$4 sm:$0xff]   ;;  %v17134_v20 = vld [vmem:[%s22328_s10 + $0x32c] ss:$16 sps:$4 sm:$0xff]  }
 0xa66   :  { %v11702_v17 = vadd.f32 %v11668_v33, %v11652_v16  ;;  %v17131_v33 = vld [vmem:[%s22328_s10 + $0x324] ss:$16 sps:$4 sm:$0xff]   ;;  %v17132_v16 = vld [vmem:[%s22328_s10 + $0x328] ss:$16 sps:$4 sm:$0xff]  }
 0xa67   :  { %v11709_v1 = vmax.f32 %v11701_v37, 0.0  ;;  %v17137_v7 = vld [vmem:[%s22328_s10 + $0x344] ss:$16 sps:$4 sm:$0xff]   ;;  %v17135_v37 = vld [vmem:[%s22328_s10 + $0x340] ss:$16 sps:$4 sm:$0xff]  }
 0xa68   :  { %v11710_v9 = vmax.f32 %v11702_v17, 0.0  ;;  %v17138_v38 = vld [vmem:[%s22328_s10 + $0x348] ss:$16 sps:$4 sm:$0xff]   ;;  %v17143_v17 = vld [vmem:[%s22328_s10 + $0x364] ss:$16 sps:$4 sm:$0xff]  }
 0xa69   :  { %v11717_v3 = vpack.c.bf16 %v11709_v1, %v11709_v1  ;;  %v17146_v1 = vld [vmem:[%s22328_s10 + $0x36c] ss:$16 sps:$4 sm:$0xff]  }
 0xa6a   :  { %v11718_v0 = vpack.c.bf16 %v11710_v9, %v11710_v9  ;;  %v17141_v9 = vld [vmem:[%s22328_s10 + $0x360] ss:$16 sps:$4 sm:$0xff]  }
 0xa6c   :  { %13315 = vmatprep.mubr.bf16.mxu0 %v11718_v0  ;;  %13479 = vmatprep.mubr.bf16.mxu1 %v11718_v0  ;;  %v17149_v0 = vld [vmem:[%s22328_s10 + $0x384] ss:$16 sps:$4 sm:$0xff]  }
 0xa6d   :  { %13316 = vmatmul.mubr.bf16.vlgmr.msra.gmra.mrb[216].mxu0 %v11717_v3  ;;  %13480 = vmatmul.mubr.bf16.vlgmr.msra.gmra.mrb[96].mxu1 %v11717_v3  ;;  %v17150_v3 = vld [vmem:[%s22328_s10 + $0x388] ss:$16 sps:$4 sm:$0xff]  }
 0xa6e   :  { %13325 = vmatpush1.bf16.msra.mxu0 %v17075_v31  ;;  %13489 = vmatpush1.bf16.msra.mxu1 %v17078_v14  ;;  %v17152_v31 = vld [vmem:[%s22328_s10 + $0x38c] ss:$16 sps:$4 sm:$0xff]   ;;  %v17147_v14 = vld [vmem:[%s22328_s10 + $0x380] ss:$16 sps:$4 sm:$0xff]  }
 0xa6f   :  { %13356 = vmatprep.mubr.bf16.mxu0 %v11720_v10  ;;  %13520 = vmatprep.mubr.bf16.mxu1 %v11720_v10  ;;  %v17158_v10 = vld [vmem:[%s22328_s10 + $0x3ac] ss:$16 sps:$4 sm:$0xff]  }
 0xa70   :  { %13326 = vmatprep.subr.bf16.mxu0 %v17083_v45  ;;  %13490 = vmatprep.subr.bf16.mxu1 %v17086_v41  ;;  %v11671_v45 = vsub.s32 2, %v21680_v57  ;;  %v17155_v41 = vld [vmem:[%s22328_s10 + $0x3a4] ss:$16 sps:$4 sm:$0xff]  }
 0xa72   :  { %13327 = vmatpush1.bf16.msra.mxu0 %v17081_v42  ;;  %13491 = vmatpush1.bf16.msra.mxu1 %v17084_v26  ;;  %v11603_v49 = vpop.f32.mrb[212].mxu0  ;;  %v11683_v42 = vsub.s32 5, %v21680_v57  ;;  %v17153_v26 = vld [vmem:[%s22328_s10 + $0x3a0] ss:$16 sps:$4 sm:$0xff]  }
 0xa73   :  { %v21730_v18 = vadd.f32 %v11603_v49, %v11285_v2  ;;  %v11605_v63 = vpop.f32.mrb[213].mxu0  ;;  %13328 = vmatprep.subr.bf16.mxu0 %v17089_v24  ;;  %13492 = vmatprep.subr.bf16.mxu1 %v17092_v50  ;;  %v17119_v2 = vld [vmem:[%s22328_s10 + $0x2e4] ss:$16 sps:$4 sm:$0xff]   ;;  %v17156_v24 = vld [vmem:[%s22328_s10 + $0x3a8] ss:$16 sps:$4 sm:$0xff]   ;;  %v11672_v50 = vrot.slane %v21687_v5, %v11671_v45 }
 0xa74   :  { %v21738_v48 = vadd.f32 %v11605_v63, %v11286_v27  ;;  %v11607_v43 = vpop.f32.mrb[214].mxu0  ;;  %v17117_v27 = vld [vmem:[%s22328_s10 + $0x2e0] ss:$16 sps:$4 sm:$0xff]   ;;  %v17161_v49 = vld [vmem:[%s22328_s10 + $0x3c4] ss:$16 sps:$4 sm:$0xff]  }
 0xa75   :  { %v11608_v29 = vpop.f32.mrb[215].mxu0  ;;  %v17159_v63 = vld [vmem:[%s22328_s10 + $0x3c0] ss:$16 sps:$4 sm:$0xff]   ;;  %v17167_v43 = vld [vmem:[%s22328_s10 + $0x3e4] ss:$16 sps:$4 sm:$0xff]  }
 0xa76   :  { %13329 = vmatpush1.bf16.msra.mxu0 %v17087_v47  ;;  %13493 = vmatpush1.bf16.msra.mxu1 %v17090_v6  ;;  %v17164_v47 = vld [vmem:[%s22328_s10 + $0x3cc] ss:$16 sps:$4 sm:$0xff]   ;;  %v11684_v6 = vrot.slane %v21687_v5, %v11683_v42  ;;  %v17222_v42 = vld [vmem:[%s22328_s10 + $0x508] ss:$16 sps:$4 sm:$0xff]  }
 0xa77   :  { %13330 = vmatprep.subr.bf16.mxu0 %v17095_v40  ;;  %13494 = vmatprep.subr.bf16.mxu1 %v17098_v21  ;;  %v17162_v40 = vld [vmem:[%s22328_s10 + $0x3c8] ss:$16 sps:$4 sm:$0xff]   ;;  %v11703_v21 = vadd.f32 %v11672_v50, %v21634_v8  ;;  %v17170_v29 = vld [vmem:[%s22328_s10 + $0x3ec] ss:$16 sps:$4 sm:$0xff]   ;;  %v17225_v50 = vld [vmem:[%s22328_s10 + $0x520] ss:$16 sps:$4 sm:$0xff]  }
 0xa78   :  { %v17168_v8 = vld [vmem:[%s22328_s10 + $0x3e8] ss:$16 sps:$4 sm:$0xff]  }
 0xa7a   :  { %13331 = vmatpush1.bf16.msra.mxu0 %v17093_v15  ;;  %13495 = vmatpush1.bf16.msra.mxu1 %v17096_v46  ;;  %v11706_v15 = vadd.f32 %v11684_v6, %v21738_v48  ;;  %v17165_v46 = vld [vmem:[%s22328_s10 + $0x3e0] ss:$16 sps:$4 sm:$0xff]   ;;  %v17176_v48 = vld [vmem:[%s22328_s10 + $0x40c] ss:$16 sps:$4 sm:$0xff]  }
 0xa7b   :  { %13332 = vmatprep.subr.bf16.mxu0 %v17101_v30  ;;  %13496 = vmatprep.subr.bf16.mxu1 %v17104_v56  ;;  %v11711_v30 = vmax.f32 %v11703_v21, 0.0  ;;  %v17173_v56 = vld [vmem:[%s22328_s10 + $0x404] ss:$16 sps:$4 sm:$0xff]   ;;  %v17236_v6 = vld [vmem:[%s22328_s10 + $0x54c] ss:$16 sps:$4 sm:$0xff]  }
 0xa7c   :  { %v17239_v21 = vld [vmem:[%s22328_s10 + $0x564] ss:$16 sps:$4 sm:$0xff]  }
 0xa7e   :  { %13333 = vmatpush1.bf16.msra.mxu0 %v17099_v25  ;;  %13497 = vmatpush1.bf16.msra.mxu1 %v17102_v13  ;;  %v11714_v25 = vmax.f32 %v11706_v15, 0.0  ;;  %v17171_v13 = vld [vmem:[%s22328_s10 + $0x400] ss:$16 sps:$4 sm:$0xff]   ;;  %v17240_v15 = vld [vmem:[%s22328_s10 + $0x568] ss:$16 sps:$4 sm:$0xff]  }
 0xa7f   :  { %13334 = vmatprep.subr.bf16.mxu0 %v17107_v19  ;;  %13498 = vmatprep.subr.bf16.mxu1 %v17110_v62  ;;  %v11719_v19 = vpack.c.bf16 %v11711_v30, %v11711_v30  ;;  %v17174_v62 = vld [vmem:[%s22328_s10 + $0x408] ss:$16 sps:$4 sm:$0xff]   ;;  %v17243_v30 = vld [vmem:[%s22328_s10 + $0x580] ss:$16 sps:$4 sm:$0xff]  }
 0xa82   :  { %13335 = vmatpush1.bf16.msra.mxu0 %v17105_v53  ;;  %13499 = vmatpush1.bf16.msra.mxu1 %v17108_v44  ;;  %v11722_v53 = vpack.c.bf16 %v11714_v25, %v11714_v25  ;;  %v17179_v44 = vld [vmem:[%s22328_s10 + $0x424] ss:$16 sps:$4 sm:$0xff]  }
 0xa83   :  { %13336 = vmatprep.subr.bf16.mxu0 %v17113_v52  ;;  %13500 = vmatprep.subr.bf16.mxu1 %v17116_v11  ;;  %v17182_v52 = vld [vmem:[%s22328_s10 + $0x42c] ss:$16 sps:$4 sm:$0xff]   ;;  %v17177_v11 = vld [vmem:[%s22328_s10 + $0x420] ss:$16 sps:$4 sm:$0xff]   ;;  %v17251_v25 = vld [vmem:[%s22328_s10 + $0x5a4] ss:$16 sps:$4 sm:$0xff]  }
 0xa86   :  { %13337 = vmatpush1.bf16.msra.mxu0 %v17111_v22  ;;  %13501 = vmatpush1.bf16.msra.mxu1 %v17114_v32  ;;  %v17180_v22 = vld [vmem:[%s22328_s10 + $0x428] ss:$16 sps:$4 sm:$0xff]   ;;  %v17185_v32 = vld [vmem:[%s22328_s10 + $0x444] ss:$16 sps:$4 sm:$0xff]  }
 0xa87   :  { %13338 = vmatprep.subr.bf16.mxu0 %v17119_v2  ;;  %13502 = vmatprep.subr.bf16.mxu1 %v17122_v12  ;;  %v17188_v2 = vld [vmem:[%s22328_s10 + $0x44c] ss:$16 sps:$4 sm:$0xff]   ;;  %v17183_v12 = vld [vmem:[%s22328_s10 + $0x440] ss:$16 sps:$4 sm:$0xff]  }
 0xa8a   :  { %13339 = vmatpush1.bf16.msra.mxu0 %v17117_v27  ;;  %13503 = vmatpush1.bf16.msra.mxu1 %v17120_v58  ;;  %v17186_v27 = vld [vmem:[%s22328_s10 + $0x448] ss:$16 sps:$4 sm:$0xff]   ;;  %v17191_v58 = vld [vmem:[%s22328_s10 + $0x464] ss:$16 sps:$4 sm:$0xff]  }
 0xa8b   :  { %13340 = vmatprep.subr.bf16.mxu0 %v17125_v61  ;;  %13504 = vmatprep.subr.bf16.mxu1 %v17128_v54  ;;  %v17194_v61 = vld [vmem:[%s22328_s10 + $0x46c] ss:$16 sps:$4 sm:$0xff]   ;;  %v17189_v54 = vld [vmem:[%s22328_s10 + $0x460] ss:$16 sps:$4 sm:$0xff]  }
 0xa8e   :  { %13341 = vmatpush1.bf16.msra.mxu0 %v17123_v59  ;;  %13505 = vmatpush1.bf16.msra.mxu1 %v17126_v34  ;;  %v17192_v59 = vld [vmem:[%s22328_s10 + $0x468] ss:$16 sps:$4 sm:$0xff]   ;;  %v17197_v34 = vld [vmem:[%s22328_s10 + $0x484] ss:$16 sps:$4 sm:$0xff]  }
 0xa8f   :  { %13342 = vmatprep.subr.bf16.mxu0 %v17131_v33  ;;  %13506 = vmatprep.subr.bf16.mxu1 %v17134_v20  ;;  %v17200_v33 = vld [vmem:[%s22328_s10 + $0x48c] ss:$16 sps:$4 sm:$0xff]   ;;  %v17195_v20 = vld [vmem:[%s22328_s10 + $0x480] ss:$16 sps:$4 sm:$0xff]  }
 0xa92   :  { %13343 = vmatpush1.bf16.msra.mxu0 %v17129_v55  ;;  %13507 = vmatpush1.bf16.msra.mxu1 %v17132_v16  ;;  %v17198_v55 = vld [vmem:[%s22328_s10 + $0x488] ss:$16 sps:$4 sm:$0xff]   ;;  %v17203_v16 = vld [vmem:[%s22328_s10 + $0x4a4] ss:$16 sps:$4 sm:$0xff]  }
 0xa93   :  { %13344 = vmatprep.subr.bf16.mxu0 %v17137_v7  ;;  %13508 = vmatprep.subr.bf16.mxu1 %v17140_v23  ;;  %v17206_v7 = vld [vmem:[%s22328_s10 + $0x4ac] ss:$16 sps:$4 sm:$0xff]   ;;  %v17201_v23 = vld [vmem:[%s22328_s10 + $0x4a0] ss:$16 sps:$4 sm:$0xff]  }
 0xa96   :  { %13345 = vmatpush1.bf16.msra.mxu0 %v17135_v37  ;;  %13509 = vmatpush1.bf16.msra.mxu1 %v17138_v38  ;;  %v17204_v37 = vld [vmem:[%s22328_s10 + $0x4a8] ss:$16 sps:$4 sm:$0xff]   ;;  %v17209_v38 = vld [vmem:[%s22328_s10 + $0x4c4] ss:$16 sps:$4 sm:$0xff]  }
 0xa97   :  { %13346 = vmatprep.subr.bf16.mxu0 %v17143_v17  ;;  %13510 = vmatprep.subr.bf16.mxu1 %v17146_v1  ;;  %v17212_v17 = vld [vmem:[%s22328_s10 + $0x4cc] ss:$16 sps:$4 sm:$0xff]   ;;  %v17207_v1 = vld [vmem:[%s22328_s10 + $0x4c0] ss:$16 sps:$4 sm:$0xff]  }
 0xa9a   :  { %13347 = vmatpush1.bf16.msra.mxu0 %v17141_v9  ;;  %13511 = vmatpush1.bf16.msra.mxu1 %v17144_v35  ;;  %v17210_v9 = vld [vmem:[%s22328_s10 + $0x4c8] ss:$16 sps:$4 sm:$0xff]   ;;  %v17215_v35 = vld [vmem:[%s22328_s10 + $0x4e4] ss:$16 sps:$4 sm:$0xff]  }
 0xa9b   :  { %13348 = vmatprep.subr.bf16.mxu0 %v17149_v0  ;;  %13512 = vmatprep.subr.bf16.mxu1 %v17152_v31  ;;  %v17218_v0 = vld [vmem:[%s22328_s10 + $0x4ec] ss:$16 sps:$4 sm:$0xff]   ;;  %v17213_v31 = vld [vmem:[%s22328_s10 + $0x4e0] ss:$16 sps:$4 sm:$0xff]  }
 0xa9e   :  { %13349 = vmatpush1.bf16.msra.mxu0 %v17147_v14  ;;  %13513 = vmatpush1.bf16.msra.mxu1 %v17150_v3  ;;  %v17216_v14 = vld [vmem:[%s22328_s10 + $0x4e8] ss:$16 sps:$4 sm:$0xff]   ;;  %v17221_v3 = vld [vmem:[%s22328_s10 + $0x504] ss:$16 sps:$4 sm:$0xff]  }
 0xa9f   :  { %13350 = vmatprep.subr.bf16.mxu0 %v17155_v41  ;;  %13514 = vmatprep.subr.bf16.mxu1 %v17158_v10  ;;  %v17224_v41 = vld [vmem:[%s22328_s10 + $0x50c] ss:$16 sps:$4 sm:$0xff]   ;;  %v17219_v10 = vld [vmem:[%s22328_s10 + $0x500] ss:$16 sps:$4 sm:$0xff]  }
 0xaa2   :  { %13351 = vmatpush1.bf16.msra.mxu0 %v17153_v26  ;;  %13515 = vmatpush1.bf16.msra.mxu1 %v17156_v24  ;;  %v17227_v26 = vld [vmem:[%s22328_s10 + $0x524] ss:$16 sps:$4 sm:$0xff]   ;;  %v17230_v24 = vld [vmem:[%s22328_s10 + $0x52c] ss:$16 sps:$4 sm:$0xff]  }
 0xaa3   :  { %13352 = vmatprep.subr.bf16.mxu0 %v17161_v49  ;;  %13516 = vmatprep.subr.bf16.mxu1 %v17164_v47  ;;  %v17228_v49 = vld [vmem:[%s22328_s10 + $0x528] ss:$16 sps:$4 sm:$0xff]   ;;  %v17233_v47 = vld [vmem:[%s22328_s10 + $0x544] ss:$16 sps:$4 sm:$0xff]  }
 0xaa6   :  { %13353 = vmatpush1.bf16.msra.mxu0 %v17159_v63  ;;  %13517 = vmatpush1.bf16.msra.mxu1 %v17162_v40  ;;  %v17231_v63 = vld [vmem:[%s22328_s10 + $0x540] ss:$16 sps:$4 sm:$0xff]   ;;  %v17234_v40 = vld [vmem:[%s22328_s10 + $0x548] ss:$16 sps:$4 sm:$0xff]  }
 0xaa7   :  { %13354 = vmatprep.subr.bf16.mxu0 %v17167_v43  ;;  %13518 = vmatprep.subr.bf16.mxu1 %v17170_v29  ;;  %v17242_v43 = vld [vmem:[%s22328_s10 + $0x56c] ss:$16 sps:$4 sm:$0xff]   ;;  %v17237_v29 = vld [vmem:[%s22328_s10 + $0x560] ss:$16 sps:$4 sm:$0xff]  }
 0xaaa   :  { %13355 = vmatpush1.bf16.msra.mxu0 %v17165_v46  ;;  %13519 = vmatpush1.bf16.msra.mxu1 %v17168_v8  ;;  %v17245_v46 = vld [vmem:[%s22328_s10 + $0x584] ss:$16 sps:$4 sm:$0xff]   ;;  %v17248_v8 = vld [vmem:[%s22328_s10 + $0x58c] ss:$16 sps:$4 sm:$0xff]  }
 0xaab   :  { %13365 = vmatprep.subr.bf16.mxu0 %v17173_v56  ;;  %13529 = vmatprep.subr.bf16.mxu1 %v17176_v48  ;;  %v11679_v56 = vsub.s32 4, %v21680_v57  ;;  %v17246_v48 = vld [vmem:[%s22328_s10 + $0x588] ss:$16 sps:$4 sm:$0xff]  }
 0xaad   :  { %13357 = vmatmul.mubr.bf16.vlgmr.msra.gmra.mrb[216].mxu0 %v11719_v19  ;;  %13521 = vmatmul.mubr.bf16.vlgmr.msra.gmra.mrb[96].mxu1 %v11719_v19  ;;  %v11691_v19 = vsub.s32 7, %v21680_v57 }
 0xaae   :  { %13366 = vmatpush1.bf16.msra.mxu0 %v17171_v13  ;;  %13397 = vmatprep.mubr.bf16.mxu0 %v11722_v53  ;;  %v17254_v13 = vld [vmem:[%s22328_s10 + $0x5ac] ss:$16 sps:$4 sm:$0xff]  }
 0xaaf   :  { %13530 = vmatpush1.bf16.msra.mxu1 %v17174_v62  ;;  %13561 = vmatprep.mubr.bf16.mxu1 %v11722_v53  ;;  %v17249_v62 = vld [vmem:[%s22328_s10 + $0x5a0] ss:$16 sps:$4 sm:$0xff]   ;;  %v11680_v53 = vrot.slane %v21687_v5, %v11679_v56  ;;  %v17320_v56 = vld [vmem:[%s22328_s10 + $0x70c] ss:$16 sps:$4 sm:$0xff]  }
 0xab0   :  { %13367 = vmatprep.subr.bf16.mxu0 %v17179_v44  ;;  %13531 = vmatprep.subr.bf16.mxu1 %v17182_v52  ;;  %v17252_v44 = vld [vmem:[%s22328_s10 + $0x5a8] ss:$16 sps:$4 sm:$0xff]   ;;  %v17257_v52 = vld [vmem:[%s22328_s10 + $0x5c4] ss:$16 sps:$4 sm:$0xff]  }
 0xab2   :  { %13368 = vmatpush1.bf16.msra.mxu0 %v17177_v11  ;;  %v17260_v11 = vld [vmem:[%s22328_s10 + $0x5cc] ss:$16 sps:$4 sm:$0xff]  }
 0xab3   :  { %13532 = vmatpush1.bf16.msra.mxu1 %v17180_v22  ;;  %13369 = vmatprep.subr.bf16.mxu0 %v17185_v32  ;;  %v11692_v22 = vrot.slane %v21687_v5, %v11691_v19  ;;  %v17255_v32 = vld [vmem:[%s22328_s10 + $0x5c0] ss:$16 sps:$4 sm:$0xff]   ;;  %v17326_v19 = vld [vmem:[%s22328_s10 + $0x72c] ss:$16 sps:$4 sm:$0xff]  }
 0xab4   :  { %13533 = vmatprep.subr.bf16.mxu1 %v17188_v2  ;;  %v11705_v2 = vadd.f32 %v11680_v53, %v21730_v18  ;;  %v17261_v18 = vld [vmem:[%s22328_s10 + $0x5e0] ss:$16 sps:$4 sm:$0xff]   ;;  %v17324_v53 = vld [vmem:[%s22328_s10 + $0x728] ss:$16 sps:$4 sm:$0xff]  }
 0xab6   :  { %13370 = vmatpush1.bf16.msra.mxu0 %v17183_v12  ;;  %v17258_v12 = vld [vmem:[%s22328_s10 + $0x5c8] ss:$16 sps:$4 sm:$0xff]  }
 0xab7   :  { %13534 = vmatpush1.bf16.msra.mxu1 %v17186_v27  ;;  %13371 = vmatprep.subr.bf16.mxu0 %v17191_v58  ;;  %v17263_v27 = vld [vmem:[%s22328_s10 + $0x5e4] ss:$16 sps:$4 sm:$0xff]   ;;  %v17266_v58 = vld [vmem:[%s22328_s10 + $0x5ec] ss:$16 sps:$4 sm:$0xff]  }
 0xab8   :  { %13535 = vmatprep.subr.bf16.mxu1 %v17194_v61  ;;  %v11708_v61 = vadd.f32 %v11692_v22, %v21675_v36  ;;  %v17272_v36 = vld [vmem:[%s22328_s10 + $0x60c] ss:$16 sps:$4 sm:$0xff]   ;;  %v17330_v22 = vld [vmem:[%s22328_s10 + $0x748] ss:$16 sps:$4 sm:$0xff]  }
 0xaba   :  { %13372 = vmatpush1.bf16.msra.mxu0 %v17189_v54  ;;  %v11713_v54 = vmax.f32 %v11705_v2, 0.0  ;;  %v17338_v2 = vld [vmem:[%s22328_s10 + $0x76c] ss:$16 sps:$4 sm:$0xff]  }
 0xabb   :  { %13536 = vmatpush1.bf16.msra.mxu1 %v17192_v59  ;;  %13373 = vmatprep.subr.bf16.mxu0 %v17197_v34  ;;  %v17264_v59 = vld [vmem:[%s22328_s10 + $0x5e8] ss:$16 sps:$4 sm:$0xff]   ;;  %v17269_v34 = vld [vmem:[%s22328_s10 + $0x604] ss:$16 sps:$4 sm:$0xff]  }
 0xabc   :  { %13537 = vmatprep.subr.bf16.mxu1 %v17200_v33  ;;  %v11716_v33 = vmax.f32 %v11708_v61, 0.0  ;;  %v17344_v61 = vld [vmem:[%s22328_s10 + $0x78c] ss:$16 sps:$4 sm:$0xff]  }
 0xabe   :  { %13374 = vmatpush1.bf16.msra.mxu0 %v17195_v20  ;;  %v17267_v20 = vld [vmem:[%s22328_s10 + $0x600] ss:$16 sps:$4 sm:$0xff]  }
 0xabf   :  { %13538 = vmatpush1.bf16.msra.mxu1 %v17198_v55  ;;  %13375 = vmatprep.subr.bf16.mxu0 %v17203_v16  ;;  %v11721_v55 = vpack.c.bf16 %v11713_v54, %v11713_v54  ;;  %v17270_v16 = vld [vmem:[%s22328_s10 + $0x608] ss:$16 sps:$4 sm:$0xff]   ;;  %v11687_v54 = vsub.s32 6, %v21680_v57 }
 0xac0   :  { %13539 = vmatprep.subr.bf16.mxu1 %v17206_v7  ;;  %v17275_v7 = vld [vmem:[%s22328_s10 + $0x624] ss:$16 sps:$4 sm:$0xff]  }
 0xac2   :  { %13376 = vmatpush1.bf16.msra.mxu0 %v17201_v23  ;;  %v11724_v23 = vpack.c.bf16 %v11716_v33, %v11716_v33  ;;  %v17345_v33 = vld [vmem:[%s22328_s10 + $0x7a0] ss:$16 sps:$4 sm:$0xff]  }
 0xac3   :  { %13540 = vmatpush1.bf16.msra.mxu1 %v17204_v37  ;;  %13377 = vmatprep.subr.bf16.mxu0 %v17209_v38  ;;  %v17278_v37 = vld [vmem:[%s22328_s10 + $0x62c] ss:$16 sps:$4 sm:$0xff]   ;;  %v17273_v38 = vld [vmem:[%s22328_s10 + $0x620] ss:$16 sps:$4 sm:$0xff]  }
 0xac4   :  { %13541 = vmatprep.subr.bf16.mxu1 %v17212_v17  ;;  %v17276_v17 = vld [vmem:[%s22328_s10 + $0x628] ss:$16 sps:$4 sm:$0xff]  }
 0xac6   :  { %13378 = vmatpush1.bf16.msra.mxu0 %v17207_v1  ;;  %v17281_v1 = vld [vmem:[%s22328_s10 + $0x644] ss:$16 sps:$4 sm:$0xff]  }
 0xac7   :  { %13542 = vmatpush1.bf16.msra.mxu1 %v17210_v9  ;;  %13379 = vmatprep.subr.bf16.mxu0 %v17215_v35  ;;  %v17284_v9 = vld [vmem:[%s22328_s10 + $0x64c] ss:$16 sps:$4 sm:$0xff]   ;;  %v17279_v35 = vld [vmem:[%s22328_s10 + $0x640] ss:$16 sps:$4 sm:$0xff]  }
 0xac8   :  { %13543 = vmatprep.subr.bf16.mxu1 %v17218_v0  ;;  %v17282_v0 = vld [vmem:[%s22328_s10 + $0x648] ss:$16 sps:$4 sm:$0xff]  }
 0xaca   :  { %13380 = vmatpush1.bf16.msra.mxu0 %v17213_v31  ;;  %v17287_v31 = vld [vmem:[%s22328_s10 + $0x664] ss:$16 sps:$4 sm:$0xff]  }
 0xacb   :  { %13544 = vmatpush1.bf16.msra.mxu1 %v17216_v14  ;;  %13381 = vmatprep.subr.bf16.mxu0 %v17221_v3  ;;  %v17290_v14 = vld [vmem:[%s22328_s10 + $0x66c] ss:$16 sps:$4 sm:$0xff]   ;;  %v17285_v3 = vld [vmem:[%s22328_s10 + $0x660] ss:$16 sps:$4 sm:$0xff]  }
 0xacc   :  { %13545 = vmatprep.subr.bf16.mxu1 %v17224_v41  ;;  %v17288_v41 = vld [vmem:[%s22328_s10 + $0x668] ss:$16 sps:$4 sm:$0xff]  }
 0xace   :  { %13382 = vmatpush1.bf16.msra.mxu0 %v17219_v10  ;;  %v17293_v10 = vld [vmem:[%s22328_s10 + $0x684] ss:$16 sps:$4 sm:$0xff]  }
 0xacf   :  { %13546 = vmatpush1.bf16.msra.mxu1 %v17222_v42  ;;  %13383 = vmatprep.subr.bf16.mxu0 %v17227_v26  ;;  %v17296_v42 = vld [vmem:[%s22328_s10 + $0x68c] ss:$16 sps:$4 sm:$0xff]   ;;  %v17291_v26 = vld [vmem:[%s22328_s10 + $0x680] ss:$16 sps:$4 sm:$0xff]  }
 0xad0   :  { %13547 = vmatprep.subr.bf16.mxu1 %v17230_v24  ;;  %v17294_v24 = vld [vmem:[%s22328_s10 + $0x688] ss:$16 sps:$4 sm:$0xff]  }
 0xad2   :  { %13384 = vmatpush1.bf16.msra.mxu0 %v17225_v50  ;;  %v17299_v50 = vld [vmem:[%s22328_s10 + $0x6a4] ss:$16 sps:$4 sm:$0xff]  }
 0xad3   :  { %13548 = vmatpush1.bf16.msra.mxu1 %v17228_v49  ;;  %13385 = vmatprep.subr.bf16.mxu0 %v17233_v47  ;;  %v17302_v49 = vld [vmem:[%s22328_s10 + $0x6ac] ss:$16 sps:$4 sm:$0xff]   ;;  %v17297_v47 = vld [vmem:[%s22328_s10 + $0x6a0] ss:$16 sps:$4 sm:$0xff]  }
 0xad4   :  { %13549 = vmatprep.subr.bf16.mxu1 %v17236_v6  ;;  %v17300_v6 = vld [vmem:[%s22328_s10 + $0x6a8] ss:$16 sps:$4 sm:$0xff]  }
 0xad6   :  { %13386 = vmatpush1.bf16.msra.mxu0 %v17231_v63  ;;  %v17305_v63 = vld [vmem:[%s22328_s10 + $0x6c4] ss:$16 sps:$4 sm:$0xff]  }
 0xad7   :  { %13550 = vmatpush1.bf16.msra.mxu1 %v17234_v40  ;;  %13387 = vmatprep.subr.bf16.mxu0 %v17239_v21  ;;  %v17308_v40 = vld [vmem:[%s22328_s10 + $0x6cc] ss:$16 sps:$4 sm:$0xff]   ;;  %v17303_v21 = vld [vmem:[%s22328_s10 + $0x6c0] ss:$16 sps:$4 sm:$0xff]  }
 0xad8   :  { %13551 = vmatprep.subr.bf16.mxu1 %v17242_v43  ;;  %v17306_v43 = vld [vmem:[%s22328_s10 + $0x6c8] ss:$16 sps:$4 sm:$0xff]  }
 0xada   :  { %13388 = vmatpush1.bf16.msra.mxu0 %v17237_v29  ;;  %v17311_v29 = vld [vmem:[%s22328_s10 + $0x6e4] ss:$16 sps:$4 sm:$0xff]  }
 0xadb   :  { %13552 = vmatpush1.bf16.msra.mxu1 %v17240_v15  ;;  %13389 = vmatprep.subr.bf16.mxu0 %v17245_v46  ;;  %v17314_v15 = vld [vmem:[%s22328_s10 + $0x6ec] ss:$16 sps:$4 sm:$0xff]   ;;  %v17309_v46 = vld [vmem:[%s22328_s10 + $0x6e0] ss:$16 sps:$4 sm:$0xff]  }
 0xadc   :  { %13553 = vmatprep.subr.bf16.mxu1 %v17248_v8  ;;  %v17312_v8 = vld [vmem:[%s22328_s10 + $0x6e8] ss:$16 sps:$4 sm:$0xff]  }
 0xade   :  { %13390 = vmatpush1.bf16.msra.mxu0 %v17243_v30  ;;  %v17317_v30 = vld [vmem:[%s22328_s10 + $0x704] ss:$16 sps:$4 sm:$0xff]  }
 0xadf   :  { %13554 = vmatpush1.bf16.msra.mxu1 %v17246_v48  ;;  %13391 = vmatprep.subr.bf16.mxu0 %v17251_v25  ;;  %v17315_v48 = vld [vmem:[%s22328_s10 + $0x700] ss:$16 sps:$4 sm:$0xff]   ;;  %v17318_v25 = vld [vmem:[%s22328_s10 + $0x708] ss:$16 sps:$4 sm:$0xff]  }
 0xae0   :  { %13555 = vmatprep.subr.bf16.mxu1 %v17254_v13  ;;  %v17323_v13 = vld [vmem:[%s22328_s10 + $0x724] ss:$16 sps:$4 sm:$0xff]  }
 0xae2   :  { %13392 = vmatpush1.bf16.msra.mxu0 %v17249_v62  ;;  %v17321_v62 = vld [vmem:[%s22328_s10 + $0x720] ss:$16 sps:$4 sm:$0xff]  }
 0xae3   :  { %13556 = vmatpush1.bf16.msra.mxu1 %v17252_v44  ;;  %13393 = vmatprep.subr.bf16.mxu0 %v17257_v52  ;;  %v17329_v44 = vld [vmem:[%s22328_s10 + $0x744] ss:$16 sps:$4 sm:$0xff]   ;;  %v17332_v52 = vld [vmem:[%s22328_s10 + $0x74c] ss:$16 sps:$4 sm:$0xff]  }
 0xae4   :  { %13557 = vmatprep.subr.bf16.mxu1 %v17260_v11  ;;  %v17327_v11 = vld [vmem:[%s22328_s10 + $0x740] ss:$16 sps:$4 sm:$0xff]  }
 0xae6   :  { %13394 = vmatpush1.bf16.msra.mxu0 %v17255_v32  ;;  %v17335_v32 = vld [vmem:[%s22328_s10 + $0x764] ss:$16 sps:$4 sm:$0xff]  }
 0xae7   :  { %13558 = vmatpush1.bf16.msra.mxu1 %v17258_v12  ;;  %13395 = vmatprep.subr.bf16.mxu0 %v17263_v27  ;;  %v17333_v12 = vld [vmem:[%s22328_s10 + $0x760] ss:$16 sps:$4 sm:$0xff]   ;;  %v17336_v27 = vld [vmem:[%s22328_s10 + $0x768] ss:$16 sps:$4 sm:$0xff]  }
 0xae8   :  { %13559 = vmatprep.subr.bf16.mxu1 %v17266_v58  ;;  %v17341_v58 = vld [vmem:[%s22328_s10 + $0x784] ss:$16 sps:$4 sm:$0xff]  }
 0xaea   :  { %13396 = vmatpush1.bf16.msra.mxu0 %v17261_v18  ;;  %v17339_v18 = vld [vmem:[%s22328_s10 + $0x780] ss:$16 sps:$4 sm:$0xff]  }
 0xaeb   :  { %13560 = vmatpush1.bf16.msra.mxu1 %v17264_v59  ;;  %13406 = vmatprep.subr.bf16.mxu0 %v17269_v34  ;;  %v17342_v59 = vld [vmem:[%s22328_s10 + $0x788] ss:$16 sps:$4 sm:$0xff]   ;;  %v17347_v34 = vld [vmem:[%s22328_s10 + $0x7a4] ss:$16 sps:$4 sm:$0xff]  }
 0xaec   :  { %13570 = vmatprep.subr.bf16.mxu1 %v17272_v36  ;;  %v17350_v36 = vld [vmem:[%s22328_s10 + $0x7ac] ss:$16 sps:$4 sm:$0xff]  }
 0xaed   :  { %13398 = vmatmul.mubr.bf16.vlgmr.msra.gmra.mrb[216].mxu0 %v11721_v55 }
 0xaee   :  { %13562 = vmatmul.mubr.bf16.vlgmr.msra.gmra.mrb[96].mxu1 %v11721_v55  ;;  %13407 = vmatpush1.bf16.msra.mxu0 %v17267_v20  ;;  %v11688_v20 = vrot.slane %v21687_v5, %v11687_v54  ;;  %v17348_v55 = vld [vmem:[%s22328_s10 + $0x7a8] ss:$16 sps:$4 sm:$0xff]   ;;  %v17351_v5 = vld [vmem:[%s22328_s10 + $0x7c0] ss:$16 sps:$4 sm:$0xff]  }
 0xaef   :  { %13438 = vmatprep.mubr.bf16.mxu0 %v11724_v23  ;;  %13571 = vmatpush1.bf16.msra.mxu1 %v17270_v16  ;;  %v17353_v16 = vld [vmem:[%s22328_s10 + $0x7c4] ss:$16 sps:$4 sm:$0xff]  }
 0xaf0   :  { %13602 = vmatprep.mubr.bf16.mxu1 %v11724_v23  ;;  %13408 = vmatprep.subr.bf16.mxu0 %v17275_v7  ;;  %v17356_v7 = vld [vmem:[%s22328_s10 + $0x7cc] ss:$16 sps:$4 sm:$0xff]   ;;  %v11707_v23 = vadd.f32 %v11688_v20, %v21672_v4  ;;  %v17357_v4 = vld [vmem:[%s22328_s10 + $0x7e0] ss:$16 sps:$4 sm:$0xff]   ;;  %v17382_v20 = vmov 1983009808  }
 0xaf1   :  { %13572 = vmatprep.subr.bf16.mxu1 %v17278_v37  ;;  %v17354_v37 = vld [vmem:[%s22328_s10 + $0x7c8] ss:$16 sps:$4 sm:$0xff]  }
 0xaf2   :  { %13409 = vmatpush1.bf16.msra.mxu0 %v17273_v38  ;;  %v17359_v38 = vld [vmem:[%s22328_s10 + $0x7e4] ss:$16 sps:$4 sm:$0xff]  }
 0xaf3   :  { %13573 = vmatpush1.bf16.msra.mxu1 %v17276_v17  ;;  %13410 = vmatprep.subr.bf16.mxu0 %v17281_v1  ;;  %v17362_v17 = vld [vmem:[%s22328_s10 + $0x7ec] ss:$16 sps:$4 sm:$0xff]   ;;  %v11715_v1 = vmax.f32 %v11707_v23, 0.0 }
 0xaf4   :  { %13574 = vmatprep.subr.bf16.mxu1 %v17284_v9  ;;  %v17360_v9 = vld [vmem:[%s22328_s10 + $0x7e8] ss:$16 sps:$4 sm:$0xff]  }
 0xaf6   :  { %13411 = vmatpush1.bf16.msra.mxu0 %v17279_v35  ;;  %v11723_v35 = vpack.c.bf16 %v11715_v1, %v11715_v1 }
 0xaf7   :  { %13575 = vmatpush1.bf16.msra.mxu1 %v17282_v0  ;;  %13412 = vmatprep.subr.bf16.mxu0 %v17287_v31  ;;  %v11981_v0 = vld [vmem:[%s22330_s11] sm:$0xf]  ;;  %v13612_v31 = vand.u32 127, %v11661_v39 }
 0xaf8   :  { %13576 = vmatprep.subr.bf16.mxu1 %v17290_v14  ;;  %v11986_v14 = vrot.slane %v11981_v0, %v11663_v60 }
 0xaf9   :  { %vm13613_vm4 = vcmp.lt.s32.totalorder %v13612_v31, 51 }
 0xafa   :  { %13413 = vmatpush1.bf16.msra.mxu0 %v17285_v3  ;;  %v11994_v3 = vrot.slane %v11981_v0, %v11671_v45 }
 0xafb   :  { %13577 = vmatpush1.bf16.msra.mxu1 %v17288_v41  ;;  %13414 = vmatprep.subr.bf16.mxu0 %v17293_v10  ;;  %v11990_v41 = vrot.slane %v11981_v0, %v11667_v51  ;;  %v11998_v10 = vrot.slane %v11981_v0, %v11675_v28 }
 0xafc   :  { %13578 = vmatprep.subr.bf16.mxu1 %v17296_v42 }
 0xafe   :  { %13415 = vmatpush1.bf16.msra.mxu0 %v17291_v26 }
 0xaff   :  { %13579 = vmatpush1.bf16.msra.mxu1 %v17294_v24  ;;  %13416 = vmatprep.subr.bf16.mxu0 %v17299_v50 }
 0xb00   :  { %13580 = vmatprep.subr.bf16.mxu1 %v17302_v49 }
 0xb02   :  { %13417 = vmatpush1.bf16.msra.mxu0 %v17297_v47 }
 0xb03   :  { %13581 = vmatpush1.bf16.msra.mxu1 %v17300_v6  ;;  %13418 = vmatprep.subr.bf16.mxu0 %v17305_v63 }
 0xb04   :  { %13582 = vmatprep.subr.bf16.mxu1 %v17308_v40 }
 0xb06   :  { %13419 = vmatpush1.bf16.msra.mxu0 %v17303_v21 }
 0xb07   :  { %13583 = vmatpush1.bf16.msra.mxu1 %v17306_v43  ;;  %13420 = vmatprep.subr.bf16.mxu0 %v17311_v29 }
 0xb08   :  { %13584 = vmatprep.subr.bf16.mxu1 %v17314_v15 }
 0xb0a   :  { %13421 = vmatpush1.bf16.msra.mxu0 %v17309_v46 }
 0xb0b   :  { %13585 = vmatpush1.bf16.msra.mxu1 %v17312_v8  ;;  %13422 = vmatprep.subr.bf16.mxu0 %v17317_v30 }
 0xb0c   :  { %13586 = vmatprep.subr.bf16.mxu1 %v17320_v56 }
 0xb0e   :  { %13423 = vmatpush1.bf16.msra.mxu0 %v17315_v48 }
 0xb0f   :  { %13587 = vmatpush1.bf16.msra.mxu1 %v17318_v25  ;;  %13424 = vmatprep.subr.bf16.mxu0 %v17323_v13 }
 0xb10   :  { %13588 = vmatprep.subr.bf16.mxu1 %v17326_v19 }
 0xb12   :  { %13425 = vmatpush1.bf16.msra.mxu0 %v17321_v62 }
 0xb13   :  { %13589 = vmatpush1.bf16.msra.mxu1 %v17324_v53  ;;  %13426 = vmatprep.subr.bf16.mxu0 %v17329_v44 }
 0xb14   :  { %13590 = vmatprep.subr.bf16.mxu1 %v17332_v52 }
 0xb16   :  { %13427 = vmatpush1.bf16.msra.mxu0 %v17327_v11 }
 0xb17   :  { %13591 = vmatpush1.bf16.msra.mxu1 %v17330_v22  ;;  %13428 = vmatprep.subr.bf16.mxu0 %v17335_v32 }
 0xb18   :  { %13592 = vmatprep.subr.bf16.mxu1 %v17338_v2 }
 0xb1a   :  { %13429 = vmatpush1.bf16.msra.mxu0 %v17333_v12 }
 0xb1b   :  { %13593 = vmatpush1.bf16.msra.mxu1 %v17336_v27  ;;  %13430 = vmatprep.subr.bf16.mxu0 %v17341_v58 }
 0xb1c   :  { %13594 = vmatprep.subr.bf16.mxu1 %v17344_v61 }
 0xb1e   :  { %13431 = vmatpush1.bf16.msra.mxu0 %v17339_v18 }
 0xb1f   :  { %13595 = vmatpush1.bf16.msra.mxu1 %v17342_v59  ;;  %13432 = vmatprep.subr.bf16.mxu0 %v17347_v34 }
 0xb20   :  { %13596 = vmatprep.subr.bf16.mxu1 %v17350_v36 }
 0xb22   :  { %13433 = vmatpush1.bf16.msra.mxu0 %v17345_v33 }
 0xb23   :  { %13597 = vmatpush1.bf16.msra.mxu1 %v17348_v55  ;;  %13434 = vmatprep.subr.bf16.mxu0 %v17353_v16  ;;  %v13672_v55 = vunpack.c.l.s4 %v17382_v20 }
 0xb24   :  { %13598 = vmatprep.subr.bf16.mxu1 %v17356_v7 }
 0xb26   :  { %13435 = vmatpush1.bf16.msra.mxu0 %v17351_v5  ;;  %v13673_v5 = vunpack.c.0.s8 %v13672_v55 }
 0xb27   :  { %13599 = vmatpush1.bf16.msra.mxu1 %v17354_v37  ;;  %13436 = vmatprep.subr.bf16.mxu0 %v17359_v38 }
 0xb28   :  { %13600 = vmatprep.subr.bf16.mxu1 %v17362_v17 }
 0xb2a   :  { %13437 = vmatpush1.bf16.msra.mxu0 %v17357_v4  ;;  %v13676_v4 = vsub.s32 %v13673_v5, %v21680_v57 }
 0xb2b   :  { %13601 = vmatpush1.bf16.msra.mxu1 %v17360_v9 }
 0xb2d   :  { %13439 = vmatmul.mubr.bf16.vlgmr.msra.gmra.mrb[216].mxu0 %v11723_v35 }
 0xb2e   :  { %13603 = vmatmul.mubr.bf16.vlgmr.msra.gmra.mrb[96].mxu1 %v11723_v35 }
 0xc00   :  { %v13440_v42 = vpop.f32.mrb[216].mxu0 }
 0xc01   :  { %v16398_v26 = vadd.f32 %v13440_v42, %v11986_v14  ;;  %v13604_v24 = vpop.f32.mrb[96].mxu1  ;;  %v13442_v50 = vpop.f32.mrb[217].mxu0 }
 0xc02   :  { %v16400_v49 = vadd.f32 %v13604_v24, %v11994_v3  ;;  %v16399_v39 = vadd.f32 %v13442_v50, %v11990_v41  ;;  %v13606_v47 = vpop.f32.mrb[97].mxu1  ;;  %v13444_v6 = vpop.f32.mrb[218].mxu0 }
 0xc03   :  { %v16401_v60 = vadd.f32 %v13606_v47, %v11998_v10  ;;  %v13608_v63 = vpop.f32.mrb[98].mxu1  ;;  %v13445_v40 = vpop.f32.mrb[219].mxu0  ;;  %v13616_v45 = vsel %vm13613_vm4, %v16398_v26, -1e+30 }
 0xc04   :  { %v13609_v21 = vpop.f32.mrb[99].mxu1  ;;  %v13641_v51 = vsel %vm13613_vm4, %v16400_v49, -1e+30  ;;  %v13618_v28 = vsel %vm13617_vm5, %v13616_v45, -inf  ;;  %v13629_v29 = vsel %vm13613_vm4, %v16399_v39, -1e+30 }
 0xc05   :  { %v13642_v43 = vsel %vm13617_vm5, %v13641_v51, -inf  ;;  %13619 = vmax.xlane.f32.xlu0 %v13618_v28  ;;  %v13653_v15 = vsel %vm13613_vm4, %v16401_v60, -1e+30  ;;  %v13630_v46 = vsel %vm13617_vm5, %v13629_v29, -inf }
 0xc06   :  { %13643 = vmax.xlane.f32.xlu1 %v13642_v43  ;;  %v13654_v8 = vsel %vm13617_vm5, %v13653_v15, -inf }
 0xc09   :  { %13631 = vmax.xlane.f32.xlu0 %v13630_v46 }
 0xc0a   :  { %13655 = vmax.xlane.f32.xlu1 %v13654_v8 }
 0xc92   :  { %v13620_v30 = vpop.xlane.xlu0 %13619 }
 0xc93   :  { %v13644_v56 = vpop.xlane.xlu1 %13643  ;;  %v13621_v48 = vsub.f32 %v13616_v45, %v13620_v30 }
 0xc94   :  { %v13645_v25 = vsub.f32 %v13641_v51, %v13644_v56 }
 0xc95   :  { %v13622_v13 = vmul.f32 1.442695, %v13621_v48 }
 0xc96   :  { %v13646_v19 = vmul.f32 1.442695, %v13645_v25  ;;  %v13632_v62 = vpop.xlane.xlu0 %13631 }
 0xc97   :  { %17363 = vpow2.f32 %v13622_v13  ;;  %v13656_v53 = vpop.xlane.xlu1 %13655  ;;  %v13633_v44 = vsub.f32 %v13629_v29, %v13632_v62 }
 0xc98   :  { %v13657_v52 = vsub.f32 %v13653_v15, %v13656_v53  ;;  %17365 = vpow2.f32 %v13646_v19 }
 0xc99   :  { %v13634_v11 = vmul.f32 1.442695, %v13633_v44 }
 0xc9a   :  { %v13658_v22 = vmul.f32 1.442695, %v13657_v52 }
 0xc9b   :  { %17367 = vpow2.f32 %v13634_v11 }
 0xc9c   :  { %17369 = vpow2.f32 %v13658_v22 }
 0xca1   :  { %v17364_v32 = vpop.eup %17363 }
 0xca2   :  { %v13624_v2 = vsel %vm13617_vm5, %v17364_v32, 0.0  ;;  %v17366_v12 = vpop.eup %17365 }
 0xca3   :  { %13625 = vadd.xlane.f32.xlu0 %v13624_v2  ;;  %v13648_v58 = vsel %vm13617_vm5, %v17366_v12, 0.0 }
 0xca5   :  { %v17368_v27 = vpop.eup %17367 }
 0xca6   :  { %v13636_v61 = vsel %vm13617_vm5, %v17368_v27, 0.0  ;;  %v17370_v18 = vpop.eup %17369 }
 0xca7   :  { %13649 = vadd.xlane.f32.xlu0 %v13648_v58  ;;  %13637 = vadd.xlane.f32.xlu1 %v13636_v61  ;;  %v13660_v54 = vsel %vm13617_vm5, %v17370_v18, 0.0 }
 0xcab   :  { %13661 = vadd.xlane.f32.xlu1 %v13660_v54 }
 0xd30   :  { %v13626_v59 = vpop.xlane.xlu0 %13625 }
 0xd31   :  { %17371 = vrcp.f32 %v13626_v59 }
 0xd34   :  { %v13638_v34 = vpop.xlane.xlu1 %13637  ;;  %v13650_v36 = vpop.xlane.xlu0 %13649 }
 0xd35   :  { %17373 = vrcp.f32 %v13638_v34 }
 0xd36   :  { %17375 = vrcp.f32 %v13650_v36 }
 0xd38   :  { %v13662_v33 = vpop.xlane.xlu1 %13661 }
 0xd39   :  { %17377 = vrcp.f32 %v13662_v33 }
 0xd3b   :  { %v17372_v16 = vpop.eup %17371 }
 0xd3c   :  { %v13628_v38 = vmul.f32 %v17372_v16, %v17364_v32 }
 0xd3f   :  { %v17374_v7 = vpop.eup %17373 }
 0xd40   :  { %v13640_v23 = vmul.f32 %v17374_v7, %v17368_v27  ;;  %v17376_v37 = vpop.eup %17375 }
 0xd41   :  { %v13652_v9 = vmul.f32 %v17376_v37, %v17366_v12 }
 0xd42   :  { %v13669_v1 = vcombine.low %v13628_v38, %v13640_v23 }
 0xd43   :  { %v17378_v17 = vpop.eup %17377 }
 0xd44   :  { %v13664_v35 = vmul.f32 %v17378_v17, %v17370_v18  ;;  %v13677_v31 = vrot.slane %v13669_v1, %v13676_v4 }
 0xd46   :  { %v13670_v0 = vcombine.low %v13652_v9, %v13664_v35 }
 0xd48   :  { %v13684_v14 = vrot.slane %v13670_v0, %v13676_v4 }
 0xd4a   :  { %v13685_v3 = vcombine.low %v13677_v31, %v13684_v14 }
 0xd4c   :  { %13687 = vst [vmem:[%s22331_s12] sm:$0xff] %v13685_v3 }

</bundles_post_ra>
